<compile_context>
chip_gen: v7x
topology: tpu7x:2x2x1
jax: 0.10.0
libtpu: 0.0.40
codegen_flags: <defaults>
</compile_context>

<pallas_src>
import jax
import jax.numpy as jnp
from jax.experimental import pallas as pl
from jax.experimental.pallas import tpu as pltpu

_LANE = 128  # TPU lane width; output-channel dim is padded to a multiple.


def _round_up(x, m):
    return (x + m - 1) // m * m


def _cdiv(a, b):
    return (a + b - 1) // b


def _store_with_zero_halo(dst_ref, src):
    """Write src (B,H,W,C) into dst_ref (B,H+2,W+2,C) with a zero 1-px border.

    Left/right zero columns are folded into the interior row store (one
    full-width store) instead of separate masked width-1 column stores; the
    top/bottom halo rows are written explicitly.  Done every grid step (cheap,
    interior is fully overwritten anyway) — megacore-safe.
    """
    Bt, Hp, Wp, C = dst_ref.shape
    H = Hp - 2
    zero_row = jnp.zeros((Bt, 1, Wp, C), dst_ref.dtype)
    zero_col = jnp.zeros((Bt, H, 1, C), dst_ref.dtype)
    dst_ref[:, 0:1, :, :] = zero_row
    dst_ref[:, Hp - 1:Hp, :, :] = zero_row
    dst_ref[:, 1:1 + H, :, :] = jnp.concatenate(
        [zero_col, src.astype(dst_ref.dtype), zero_col], axis=2)


def _conv3x3_relu(src_ref, w_ref, b_ref, B, H, W, Cout_p):
    """3x3 'same' conv + bias + ReLU as 9 accumulating MXU matmuls (K = C).

    src_ref : (B, H+2, W+2, C)   bf16 VMEM scratch with zero halo
    w_ref   : (3, 3, C, Cout_p)  bf16 weights (HWIO, channel-padded)
    b_ref   : (1, Cout_p)        f32 bias (zero on padded channels)
    returns : (M, Cout_p)        f32, M = B*H*W
    """
    C = src_ref.shape[-1]
    M = B * H * W
    # Accumulator initialised from the bias broadcast (saves zeros + one add).
    acc = jnp.broadcast_to(b_ref[...], (M, Cout_p)).astype(jnp.float32)
    for ky in range(3):
        for kx in range(3):
            patch = src_ref[:, ky:ky + H, kx:kx + W, :].reshape(M, C)
            acc = acc + jnp.dot(patch, w_ref[ky, kx],
                                preferred_element_type=jnp.float32)
    return jnp.maximum(acc, 0.0)


def _unet_conv2_kernel(x_ref, w1_ref, b1_ref, w2_ref, b2_ref, out_ref,
                       xpad_ref, mid_ref):
    # x_ref   : (B, H, W, Cin)          bf16 unpadded input tile
    # w1_ref  : (3, 3, Cin, Cout_p)     bf16
    # b1_ref  : (1, Cout_p)             f32
    # w2_ref  : (3, 3, Cout_p, Cout_p)  bf16
    # b2_ref  : (1, Cout_p)             f32
    # out_ref : (B, H, W, Cout_p)       bf16 (lane-dense, padded channels)
    # xpad_ref: (B, H+2, W+2, Cin)      bf16 VMEM scratch
    # mid_ref : (B, H+2, W+2, Cout_p)   bf16 VMEM scratch
    B, H, W, _ = x_ref.shape
    Cout_p = out_ref.shape[-1]

    # In-kernel zero padding of the input tile.
    _store_with_zero_halo(xpad_ref, x_ref[...])

    # conv1 -> ReLU, stored (bf16) into the padded intermediate scratch.
    y1 = _conv3x3_relu(xpad_ref, w1_ref, b1_ref, B, H, W, Cout_p)
    _store_with_zero_halo(mid_ref, y1.reshape(B, H, W, Cout_p))

    # conv2 -> ReLU -> bf16 output (f32 accumulation inside _conv3x3_relu).
    y2 = _conv3x3_relu(mid_ref, w2_ref, b2_ref, B, H, W, Cout_p)
    out_ref[...] = y2.reshape(B, H, W, Cout_p).astype(out_ref.dtype)


def _pick_batch_tile(n, h, w, m_cap=8192):
    """Batch elements per grid step.

    Keeps the matmul M dim (= tile*h*w) large enough to amortize the ~0.35us
    per-step overhead, while keeping >=2 parallel grid steps whenever n >= 2
    so both v7x TensorCores get work (no effect on single-TC v5e/v6e).
    """
    per = max(h * w, 1)
    bt = max(1, min(n, m_cap // per))
    if n >= 2:
        bt = min(bt, _cdiv(n, 2))
    return max(bt, 1)


def _vmem_limit_bytes(b_tile, h, w, cin, cout_p):
    """Scoped-VMEM request: double-buffered blocks + scratch + live values."""
    bf16, f32 = 2, 4
    m = b_tile * h * w
    x_blk = b_tile * h * w * cin * bf16
    out_blk = b_tile * h * w * cout_p * bf16
    weights = (9 * cin * cout_p + 9 * cout_p * cout_p) * bf16 + 2 * cout_p * f32
    xpad = b_tile * (h + 2) * (w + 2) * cin * bf16
    mid = b_tile * (h + 2) * (w + 2) * cout_p * bf16
    live = m * cout_p * (f32 + bf16)  # f32 accumulator + one bf16 patch/value
    total = 2 * (x_blk + out_blk + weights) + xpad + mid + 2 * live
    total = int(1.5 * total) + (4 << 20)
    # Clamp: >= 32 MiB (default scoped limit territory), <= 48 MiB (fits the
    # 64 MiB v7x VMEM with headroom; harmless on 128 MiB v5e/v6e).
    return min(max(total, 32 << 20), 48 << 20)


def _prep_conv_weight(w_oihw, cin_p, cout_p):
    """OIHW -> HWIO, zero-padded to (3, 3, cin_p, cout_p), bf16."""
    cout, cin = w_oihw.shape[0], w_oihw.shape[1]
    w = jnp.transpose(w_oihw, (2, 3, 1, 0))
    w = jnp.pad(w, ((0, 0), (0, 0), (0, cin_p - cin), (0, cout_p - cout)))
    return w.astype(jnp.bfloat16)


def unet_conv2_nhwc(x_nhwc, w1_hwio, b1_p, w2_hwio, b2_p):
    """NHWC / bf16 / padded-Cout_p core (chain several blocks without layout
    round trips).  Returns (N, H, W, Cout_p) bf16."""
    N, H, W, Cin = x_nhwc.shape
    Cout_p = w1_hwio.shape[-1]

    b_tile = _pick_batch_tile(N, H, W)
    n_steps = _cdiv(N, b_tile)
    n_pad = n_steps * b_tile
    if n_pad != N:
        x_nhwc = jnp.pad(x_nhwc, ((0, n_pad - N), (0, 0), (0, 0), (0, 0)))

    out = pl.pallas_call(
        _unet_conv2_kernel,
        out_shape=jax.ShapeDtypeStruct((n_pad, H, W, Cout_p), jnp.bfloat16),
        grid=(n_steps,),
        in_specs=[
            pl.BlockSpec((b_tile, H, W, Cin), lambda n: (n, 0, 0, 0)),
            pl.BlockSpec((3, 3, Cin, Cout_p), lambda n: (0, 0, 0, 0)),
            pl.BlockSpec((1, Cout_p), lambda n: (0, 0)),
            pl.BlockSpec((3, 3, Cout_p, Cout_p), lambda n: (0, 0, 0, 0)),
            pl.BlockSpec((1, Cout_p), lambda n: (0, 0)),
        ],
        out_specs=pl.BlockSpec((b_tile, H, W, Cout_p), lambda n: (n, 0, 0, 0)),
        scratch_shapes=[
            pltpu.VMEM((b_tile, H + 2, W + 2, Cin), jnp.bfloat16),
            pltpu.VMEM((b_tile, H + 2, W + 2, Cout_p), jnp.bfloat16),
        ],
        compiler_params=pltpu.CompilerParams(
            dimension_semantics=("parallel",),
            vmem_limit_bytes=_vmem_limit_bytes(b_tile, H, W, Cin, Cout_p)),
    )(x_nhwc, w1_hwio, b1_p, w2_hwio, b2_p)
    return out[:N]


def unet_conv2(x_nchw, w1_oihw, b1, w2_oihw, b2):
    """Forward pass of unetConv2 (is_batchnorm=False, n=2, ks=3, s=1, p=1).

    x_nchw  : (N, Cin, H, W) float32
    w1_oihw : (Cout, Cin, 3, 3), b1: (Cout,)
    w2_oihw : (Cout, Cout, 3, 3), b2: (Cout,)
    returns : (N, Cout, H, W) float32
    """
    N, Cin, H, W = x_nchw.shape
    Cout = w1_oihw.shape[0]
    Cout_p = _round_up(Cout, _LANE)

    # Layout glue (one HBM pass each way; chained layers should use the NHWC
    # entry point above and keep the padded-Cout_p layout between blocks).
    x = jnp.transpose(x_nchw, (0, 2, 3, 1)).astype(jnp.bfloat16)
    w1_p = _prep_conv_weight(w1_oihw, Cin, Cout_p)      # (3,3,Cin,Cout_p)
    w2_p = _prep_conv_weight(w2_oihw, Cout_p, Cout_p)   # (3,3,Cout_p,Cout_p)
    b1_p = jnp.pad(b1, (0, Cout_p - Cout)).reshape(1, Cout_p).astype(jnp.float32)
    b2_p = jnp.pad(b2, (0, Cout_p - Cout)).reshape(1, Cout_p).astype(jnp.float32)

    out_nhwc = unet_conv2_nhwc(x, w1_p, b1_p, w2_p, b2_p)
    out_nhwc = out_nhwc[..., :Cout].astype(jnp.float32)  # drop channel padding
    return jnp.transpose(out_nhwc, (0, 3, 1, 2))          # NHWC -> NCHW


def _init_params(key, in_size, out_size, ks=3):
    """Kaiming-normal (fan_in) conv weights + PyTorch-default uniform biases."""
    k1, k2, k3, k4 = jax.random.split(key, 4)
    fan_in1 = in_size * ks * ks
    fan_in2 = out_size * ks * ks
    w1 = jax.random.normal(k1, (out_size, in_size, ks, ks), jnp.float32) * jnp.sqrt(2.0 / fan_in1)
    b1 = jax.random.uniform(k2, (out_size,), jnp.float32,
                            -1.0 / jnp.sqrt(fan_in1), 1.0 / jnp.sqrt(fan_in1))
    w2 = jax.random.normal(k3, (out_size, out_size, ks, ks), jnp.float32) * jnp.sqrt(2.0 / fan_in2)
    b2 = jax.random.uniform(k4, (out_size,), jnp.float32,
                            -1.0 / jnp.sqrt(fan_in2), 1.0 / jnp.sqrt(fan_in2))
    return w1, b1, w2, b2


def _ref_forward(x, w1, b1, w2, b2):
    """Pure-JAX f32 reference (lax conv) for correctness sanity check."""
    dn = ("NCHW", "OIHW", "NCHW")
    y = jax.lax.conv_general_dilated(x, w1, (1, 1), [(1, 1), (1, 1)],
                                     dimension_numbers=dn)
    y = jax.nn.relu(y + b1[None, :, None, None])
    y = jax.lax.conv_general_dilated(y, w2, (1, 1), [(1, 1), (1, 1)],
                                     dimension_numbers=dn)
    y = jax.nn.relu(y + b2[None, :, None, None])
    return y


if __name__ == "__main__":
    key = jax.random.PRNGKey(0)
    k_x, k_p = jax.random.split(key)

    N, Cin, Cout, H, W = 2, 4, 8, 16, 16
    x = jax.random.normal(k_x, (N, Cin, H, W), jnp.float32)
    w1, b1, w2, b2 = _init_params(k_p, Cin, Cout)

    out = unet_conv2(x, w1, b1, w2, b2)
    out = jax.block_until_ready(out)

    ref = jax.block_until_ready(_ref_forward(x, w1, b1, w2, b2))
    assert out.shape == (N, Cout, H, W)
    # Tolerance accounts for bf16 matmul inputs, bf16 intermediate storage and
    # bf16 output (accumulation is f32).
    assert jnp.allclose(out, ref, rtol=3e-2, atol=3e-2)

    print("KERNEL_OK")
</pallas_src>

<mosaic_0001>
module attributes {stable_mosaic.version = 11 : i64} {
  func.func @_unet_conv2_kernel(%arg0: i32, %arg1: memref<1x16x16x4xbf16, #tpu.memory_space<vmem>>, %arg2: memref<3x3x4x128xbf16, #tpu.memory_space<vmem>>, %arg3: memref<1x128xf32, #tpu.memory_space<vmem>>, %arg4: memref<3x3x128x128xbf16, #tpu.memory_space<vmem>>, %arg5: memref<1x128xf32, #tpu.memory_space<vmem>>, %arg6: memref<1x16x16x128xbf16, #tpu.memory_space<vmem>>, %arg7: memref<1x18x18x4xbf16, #tpu.memory_space<vmem>>, %arg8: memref<1x18x18x128xbf16, #tpu.memory_space<vmem>>) attributes {dimension_semantics = [#tpu.dimension_semantics<parallel>], iteration_bounds = array<i64: 2>, scalar_prefetch = 0 : i64, scratch_operands = 2 : i64, tpu.core_type = #tpu.core_type<tc>, window_params = [{transform_indices = @transform_0, window_bounds = array<i64: 1, 16, 16, 4>}, {pipeline_mode = #tpu.pipeline_mode<synchronous>, transform_indices = @transform_1, window_bounds = array<i64: 3, 3, 4, 128>}, {pipeline_mode = #tpu.pipeline_mode<synchronous>, transform_indices = @transform_2, window_bounds = array<i64: 1, 128>}, {pipeline_mode = #tpu.pipeline_mode<synchronous>, transform_indices = @transform_3, window_bounds = array<i64: 3, 3, 128, 128>}, {pipeline_mode = #tpu.pipeline_mode<synchronous>, transform_indices = @transform_4, window_bounds = array<i64: 1, 128>}, {transform_indices = @transform_5, window_bounds = array<i64: 1, 16, 16, 128>}]} {
    %c0 = arith.constant 0 : index
    %c0_0 = arith.constant 0 : index
    %c0_1 = arith.constant 0 : index
    %c0_2 = arith.constant 0 : index
    %0 = vector.load %arg1[%c0, %c0_0, %c0_1, %c0_2] : memref<1x16x16x4xbf16, #tpu.memory_space<vmem>>, vector<1x16x16x4xbf16>
    %cst = arith.constant 0.000000e+00 : bf16
    %1 = vector.broadcast %cst : bf16 to vector<1x1x18x4xbf16>
    %cst_3 = arith.constant 0.000000e+00 : bf16
    %2 = vector.broadcast %cst_3 : bf16 to vector<1x16x1x4xbf16>
    %c0_4 = arith.constant 0 : index
    %c0_5 = arith.constant 0 : index
    %c0_6 = arith.constant 0 : index
    %c0_7 = arith.constant 0 : index
    %3 = vector.load %arg7[%c0_4, %c0_5, %c0_6, %c0_7] : memref<1x18x18x4xbf16, #tpu.memory_space<vmem>>, vector<1x1x18x4xbf16>
    tpu.vector_store %arg7[%c0_4, %c0_5, %c0_6, %c0_7], %1 {strides = array<i32>} : memref<1x18x18x4xbf16, #tpu.memory_space<vmem>>, vector<1x1x18x4xbf16>,
    %c0_8 = arith.constant 0 : index
    %c17 = arith.constant 17 : index
    %c0_9 = arith.constant 0 : index
    %c0_10 = arith.constant 0 : index
    %4 = vector.load %arg7[%c0_8, %c17, %c0_9, %c0_10] : memref<1x18x18x4xbf16, #tpu.memory_space<vmem>>, vector<1x1x18x4xbf16>
    tpu.vector_store %arg7[%c0_8, %c17, %c0_9, %c0_10], %1 {strides = array<i32>} : memref<1x18x18x4xbf16, #tpu.memory_space<vmem>>, vector<1x1x18x4xbf16>,
    %5 = tpu.concatenate %2, %0, %2 in 2 : vector<1x16x1x4xbf16>, vector<1x16x16x4xbf16>, vector<1x16x1x4xbf16> -> vector<1x16x18x4xbf16>
    %c0_11 = arith.constant 0 : index
    %c1 = arith.constant 1 : index
    %c0_12 = arith.constant 0 : index
    %c0_13 = arith.constant 0 : index
    %6 = vector.load %arg7[%c0_11, %c1, %c0_12, %c0_13] : memref<1x18x18x4xbf16, #tpu.memory_space<vmem>>, vector<1x16x18x4xbf16>
    tpu.vector_store %arg7[%c0_11, %c1, %c0_12, %c0_13], %5 {strides = array<i32>} : memref<1x18x18x4xbf16, #tpu.memory_space<vmem>>, vector<1x16x18x4xbf16>,
    %c0_14 = arith.constant 0 : index
    %c0_15 = arith.constant 0 : index
    %7 = vector.load %arg3[%c0_14, %c0_15] : memref<1x128xf32, #tpu.memory_space<vmem>>, vector<1x128xf32>
    %8 = vector.shape_cast %7 : vector<1x128xf32> to vector<1x128xf32>
    %9 = vector.broadcast %8 : vector<1x128xf32> to vector<256x128xf32>
    %c0_16 = arith.constant 0 : index
    %c0_17 = arith.constant 0 : index
    %c0_18 = arith.constant 0 : index
    %c0_19 = arith.constant 0 : index
    %10 = vector.load %arg7[%c0_16, %c0_17, %c0_18, %c0_19] : memref<1x18x18x4xbf16, #tpu.memory_space<vmem>>, vector<1x16x16x4xbf16>
    %11 = vector.shape_cast %10 : vector<1x16x16x4xbf16> to vector<256x4xbf16>
    %c0_20 = arith.constant 0 : index
    %c0_21 = arith.constant 0 : index
    %c0_22 = arith.constant 0 : index
    %c0_23 = arith.constant 0 : index
    %12 = vector.load %arg2[%c0_20, %c0_21, %c0_22, %c0_23] : memref<3x3x4x128xbf16, #tpu.memory_space<vmem>>, vector<1x1x4x128xbf16>
    %13 = vector.shape_cast %12 : vector<1x1x4x128xbf16> to vector<4x128xbf16>
    %cst_24 = arith.constant dense<0.000000e+00> : vector<256x128xf32>
    %14 = tpu.matmul %11, %13, %cst_24 {dimension_numbers = #tpu.dot_dimension_numbers<[1], [0], [0], [1], [0, 0, 1, 1], [], []>} : vector<256x4xbf16>, vector<4x128xbf16>, vector<256x128xf32> -> vector<256x128xf32>
    %15 = arith.addf %9, %14 : vector<256x128xf32>
    %c0_25 = arith.constant 0 : index
    %c0_26 = arith.constant 0 : index
    %c1_27 = arith.constant 1 : index
    %c0_28 = arith.constant 0 : index
    %16 = vector.load %arg7[%c0_25, %c0_26, %c1_27, %c0_28] : memref<1x18x18x4xbf16, #tpu.memory_space<vmem>>, vector<1x16x16x4xbf16>
    %17 = vector.shape_cast %16 : vector<1x16x16x4xbf16> to vector<256x4xbf16>
    %c0_29 = arith.constant 0 : index
    %c1_30 = arith.constant 1 : index
    %c0_31 = arith.constant 0 : index
    %c0_32 = arith.constant 0 : index
    %18 = vector.load %arg2[%c0_29, %c1_30, %c0_31, %c0_32] : memref<3x3x4x128xbf16, #tpu.memory_space<vmem>>, vector<1x1x4x128xbf16>
    %19 = vector.shape_cast %18 : vector<1x1x4x128xbf16> to vector<4x128xbf16>
    %cst_33 = arith.constant dense<0.000000e+00> : vector<256x128xf32>
    %20 = tpu.matmul %17, %19, %cst_33 {dimension_numbers = #tpu.dot_dimension_numbers<[1], [0], [0], [1], [0, 0, 1, 1], [], []>} : vector<256x4xbf16>, vector<4x128xbf16>, vector<256x128xf32> -> vector<256x128xf32>
    %21 = arith.addf %15, %20 : vector<256x128xf32>
    %c0_34 = arith.constant 0 : index
    %c0_35 = arith.constant 0 : index
    %c2 = arith.constant 2 : index
    %c0_36 = arith.constant 0 : index
    %22 = vector.load %arg7[%c0_34, %c0_35, %c2, %c0_36] : memref<1x18x18x4xbf16, #tpu.memory_space<vmem>>, vector<1x16x16x4xbf16>
    %23 = vector.shape_cast %22 : vector<1x16x16x4xbf16> to vector<256x4xbf16>
    %c0_37 = arith.constant 0 : index
    %c2_38 = arith.constant 2 : index
    %c0_39 = arith.constant 0 : index
    %c0_40 = arith.constant 0 : index
    %24 = vector.load %arg2[%c0_37, %c2_38, %c0_39, %c0_40] : memref<3x3x4x128xbf16, #tpu.memory_space<vmem>>, vector<1x1x4x128xbf16>
    %25 = vector.shape_cast %24 : vector<1x1x4x128xbf16> to vector<4x128xbf16>
    %cst_41 = arith.constant dense<0.000000e+00> : vector<256x128xf32>
    %26 = tpu.matmul %23, %25, %cst_41 {dimension_numbers = #tpu.dot_dimension_numbers<[1], [0], [0], [1], [0, 0, 1, 1], [], []>} : vector<256x4xbf16>, vector<4x128xbf16>, vector<256x128xf32> -> vector<256x128xf32>
    %27 = arith.addf %21, %26 : vector<256x128xf32>
    %c0_42 = arith.constant 0 : index
    %c1_43 = arith.constant 1 : index
    %c0_44 = arith.constant 0 : index
    %c0_45 = arith.constant 0 : index
    %28 = vector.load %arg7[%c0_42, %c1_43, %c0_44, %c0_45] : memref<1x18x18x4xbf16, #tpu.memory_space<vmem>>, vector<1x16x16x4xbf16>
    %29 = vector.shape_cast %28 : vector<1x16x16x4xbf16> to vector<256x4xbf16>
    %c1_46 = arith.constant 1 : index
    %c0_47 = arith.constant 0 : index
    %c0_48 = arith.constant 0 : index
    %c0_49 = arith.constant 0 : index
    %30 = vector.load %arg2[%c1_46, %c0_47, %c0_48, %c0_49] : memref<3x3x4x128xbf16, #tpu.memory_space<vmem>>, vector<1x1x4x128xbf16>
    %31 = vector.shape_cast %30 : vector<1x1x4x128xbf16> to vector<4x128xbf16>
    %cst_50 = arith.constant dense<0.000000e+00> : vector<256x128xf32>
    %32 = tpu.matmul %29, %31, %cst_50 {dimension_numbers = #tpu.dot_dimension_numbers<[1], [0], [0], [1], [0, 0, 1, 1], [], []>} : vector<256x4xbf16>, vector<4x128xbf16>, vector<256x128xf32> -> vector<256x128xf32>
    %33 = arith.addf %27, %32 : vector<256x128xf32>
    %c0_51 = arith.constant 0 : index
    %c1_52 = arith.constant 1 : index
    %c1_53 = arith.constant 1 : index
    %c0_54 = arith.constant 0 : index
    %34 = vector.load %arg7[%c0_51, %c1_52, %c1_53, %c0_54] : memref<1x18x18x4xbf16, #tpu.memory_space<vmem>>, vector<1x16x16x4xbf16>
    %35 = vector.shape_cast %34 : vector<1x16x16x4xbf16> to vector<256x4xbf16>
    %c1_55 = arith.constant 1 : index
    %c1_56 = arith.constant 1 : index
    %c0_57 = arith.constant 0 : index
    %c0_58 = arith.constant 0 : index
    %36 = vector.load %arg2[%c1_55, %c1_56, %c0_57, %c0_58] : memref<3x3x4x128xbf16, #tpu.memory_space<vmem>>, vector<1x1x4x128xbf16>
    %37 = vector.shape_cast %36 : vector<1x1x4x128xbf16> to vector<4x128xbf16>
    %cst_59 = arith.constant dense<0.000000e+00> : vector<256x128xf32>
    %38 = tpu.matmul %35, %37, %cst_59 {dimension_numbers = #tpu.dot_dimension_numbers<[1], [0], [0], [1], [0, 0, 1, 1], [], []>} : vector<256x4xbf16>, vector<4x128xbf16>, vector<256x128xf32> -> vector<256x128xf32>
    %39 = arith.addf %33, %38 : vector<256x128xf32>
    %c0_60 = arith.constant 0 : index
    %c1_61 = arith.constant 1 : index
    %c2_62 = arith.constant 2 : index
    %c0_63 = arith.constant 0 : index
    %40 = vector.load %arg7[%c0_60, %c1_61, %c2_62, %c0_63] : memref<1x18x18x4xbf16, #tpu.memory_space<vmem>>, vector<1x16x16x4xbf16>
    %41 = vector.shape_cast %40 : vector<1x16x16x4xbf16> to vector<256x4xbf16>
    %c1_64 = arith.constant 1 : index
    %c2_65 = arith.constant 2 : index
    %c0_66 = arith.constant 0 : index
    %c0_67 = arith.constant 0 : index
    %42 = vector.load %arg2[%c1_64, %c2_65, %c0_66, %c0_67] : memref<3x3x4x128xbf16, #tpu.memory_space<vmem>>, vector<1x1x4x128xbf16>
    %43 = vector.shape_cast %42 : vector<1x1x4x128xbf16> to vector<4x128xbf16>
    %cst_68 = arith.constant dense<0.000000e+00> : vector<256x128xf32>
    %44 = tpu.matmul %41, %43, %cst_68 {dimension_numbers = #tpu.dot_dimension_numbers<[1], [0], [0], [1], [0, 0, 1, 1], [], []>} : vector<256x4xbf16>, vector<4x128xbf16>, vector<256x128xf32> -> vector<256x128xf32>
    %45 = arith.addf %39, %44 : vector<256x128xf32>
    %c0_69 = arith.constant 0 : index
    %c2_70 = arith.constant 2 : index
    %c0_71 = arith.constant 0 : index
    %c0_72 = arith.constant 0 : index
    %46 = vector.load %arg7[%c0_69, %c2_70, %c0_71, %c0_72] : memref<1x18x18x4xbf16, #tpu.memory_space<vmem>>, vector<1x16x16x4xbf16>
    %47 = vector.shape_cast %46 : vector<1x16x16x4xbf16> to vector<256x4xbf16>
    %c2_73 = arith.constant 2 : index
    %c0_74 = arith.constant 0 : index
    %c0_75 = arith.constant 0 : index
    %c0_76 = arith.constant 0 : index
    %48 = vector.load %arg2[%c2_73, %c0_74, %c0_75, %c0_76] : memref<3x3x4x128xbf16, #tpu.memory_space<vmem>>, vector<1x1x4x128xbf16>
    %49 = vector.shape_cast %48 : vector<1x1x4x128xbf16> to vector<4x128xbf16>
    %cst_77 = arith.constant dense<0.000000e+00> : vector<256x128xf32>
    %50 = tpu.matmul %47, %49, %cst_77 {dimension_numbers = #tpu.dot_dimension_numbers<[1], [0], [0], [1], [0, 0, 1, 1], [], []>} : vector<256x4xbf16>, vector<4x128xbf16>, vector<256x128xf32> -> vector<256x128xf32>
    %51 = arith.addf %45, %50 : vector<256x128xf32>
    %c0_78 = arith.constant 0 : index
    %c2_79 = arith.constant 2 : index
    %c1_80 = arith.constant 1 : index
    %c0_81 = arith.constant 0 : index
    %52 = vector.load %arg7[%c0_78, %c2_79, %c1_80, %c0_81] : memref<1x18x18x4xbf16, #tpu.memory_space<vmem>>, vector<1x16x16x4xbf16>
    %53 = vector.shape_cast %52 : vector<1x16x16x4xbf16> to vector<256x4xbf16>
    %c2_82 = arith.constant 2 : index
    %c1_83 = arith.constant 1 : index
    %c0_84 = arith.constant 0 : index
    %c0_85 = arith.constant 0 : index
    %54 = vector.load %arg2[%c2_82, %c1_83, %c0_84, %c0_85] : memref<3x3x4x128xbf16, #tpu.memory_space<vmem>>, vector<1x1x4x128xbf16>
    %55 = vector.shape_cast %54 : vector<1x1x4x128xbf16> to vector<4x128xbf16>
    %cst_86 = arith.constant dense<0.000000e+00> : vector<256x128xf32>
    %56 = tpu.matmul %53, %55, %cst_86 {dimension_numbers = #tpu.dot_dimension_numbers<[1], [0], [0], [1], [0, 0, 1, 1], [], []>} : vector<256x4xbf16>, vector<4x128xbf16>, vector<256x128xf32> -> vector<256x128xf32>
    %57 = arith.addf %51, %56 : vector<256x128xf32>
    %c0_87 = arith.constant 0 : index
    %c2_88 = arith.constant 2 : index
    %c2_89 = arith.constant 2 : index
    %c0_90 = arith.constant 0 : index
    %58 = vector.load %arg7[%c0_87, %c2_88, %c2_89, %c0_90] : memref<1x18x18x4xbf16, #tpu.memory_space<vmem>>, vector<1x16x16x4xbf16>
    %59 = vector.shape_cast %58 : vector<1x16x16x4xbf16> to vector<256x4xbf16>
    %c2_91 = arith.constant 2 : index
    %c2_92 = arith.constant 2 : index
    %c0_93 = arith.constant 0 : index
    %c0_94 = arith.constant 0 : index
    %60 = vector.load %arg2[%c2_91, %c2_92, %c0_93, %c0_94] : memref<3x3x4x128xbf16, #tpu.memory_space<vmem>>, vector<1x1x4x128xbf16>
    %61 = vector.shape_cast %60 : vector<1x1x4x128xbf16> to vector<4x128xbf16>
    %cst_95 = arith.constant dense<0.000000e+00> : vector<256x128xf32>
    %62 = tpu.matmul %59, %61, %cst_95 {dimension_numbers = #tpu.dot_dimension_numbers<[1], [0], [0], [1], [0, 0, 1, 1], [], []>} : vector<256x4xbf16>, vector<4x128xbf16>, vector<256x128xf32> -> vector<256x128xf32>
    %63 = arith.addf %57, %62 : vector<256x128xf32>
    %cst_96 = arith.constant 0.000000e+00 : f32
    %64 = vector.broadcast %cst_96 : f32 to vector<256x128xf32>
    %65 = arith.maximumf %63, %64 : vector<256x128xf32>
    %66 = vector.shape_cast %65 : vector<256x128xf32> to vector<1x16x16x128xf32>
    %cst_97 = arith.constant 0.000000e+00 : bf16
    %67 = vector.broadcast %cst_97 : bf16 to vector<1x1x18x128xbf16>
    %cst_98 = arith.constant 0.000000e+00 : bf16
    %68 = vector.broadcast %cst_98 : bf16 to vector<1x16x1x128xbf16>
    %c0_99 = arith.constant 0 : index
    %c0_100 = arith.constant 0 : index
    %c0_101 = arith.constant 0 : index
    %c0_102 = arith.constant 0 : index
    %69 = vector.load %arg8[%c0_99, %c0_100, %c0_101, %c0_102] : memref<1x18x18x128xbf16, #tpu.memory_space<vmem>>, vector<1x1x18x128xbf16>
    tpu.vector_store %arg8[%c0_99, %c0_100, %c0_101, %c0_102], %67 {strides = array<i32>} : memref<1x18x18x128xbf16, #tpu.memory_space<vmem>>, vector<1x1x18x128xbf16>,
    %c0_103 = arith.constant 0 : index
    %c17_104 = arith.constant 17 : index
    %c0_105 = arith.constant 0 : index
    %c0_106 = arith.constant 0 : index
    %70 = vector.load %arg8[%c0_103, %c17_104, %c0_105, %c0_106] : memref<1x18x18x128xbf16, #tpu.memory_space<vmem>>, vector<1x1x18x128xbf16>
    tpu.vector_store %arg8[%c0_103, %c17_104, %c0_105, %c0_106], %67 {strides = array<i32>} : memref<1x18x18x128xbf16, #tpu.memory_space<vmem>>, vector<1x1x18x128xbf16>,
    %71 = arith.truncf %66 : vector<1x16x16x128xf32> to vector<1x16x16x128xbf16>
    %72 = tpu.concatenate %68, %71, %68 in 2 : vector<1x16x1x128xbf16>, vector<1x16x16x128xbf16>, vector<1x16x1x128xbf16> -> vector<1x16x18x128xbf16>
    %c0_107 = arith.constant 0 : index
    %c1_108 = arith.constant 1 : index
    %c0_109 = arith.constant 0 : index
    %c0_110 = arith.constant 0 : index
    %73 = vector.load %arg8[%c0_107, %c1_108, %c0_109, %c0_110] : memref<1x18x18x128xbf16, #tpu.memory_space<vmem>>, vector<1x16x18x128xbf16>
    tpu.vector_store %arg8[%c0_107, %c1_108, %c0_109, %c0_110], %72 {strides = array<i32>} : memref<1x18x18x128xbf16, #tpu.memory_space<vmem>>, vector<1x16x18x128xbf16>,
    %c0_111 = arith.constant 0 : index
    %c0_112 = arith.constant 0 : index
    %74 = vector.load %arg5[%c0_111, %c0_112] : memref<1x128xf32, #tpu.memory_space<vmem>>, vector<1x128xf32>
    %75 = vector.shape_cast %74 : vector<1x128xf32> to vector<1x128xf32>
    %76 = vector.broadcast %75 : vector<1x128xf32> to vector<256x128xf32>
    %c0_113 = arith.constant 0 : index
    %c0_114 = arith.constant 0 : index
    %c0_115 = arith.constant 0 : index
    %c0_116 = arith.constant 0 : index
    %77 = vector.load %arg8[%c0_113, %c0_114, %c0_115, %c0_116] : memref<1x18x18x128xbf16, #tpu.memory_space<vmem>>, vector<1x16x16x128xbf16>
    %78 = vector.shape_cast %77 : vector<1x16x16x128xbf16> to vector<256x128xbf16>
    %c0_117 = arith.constant 0 : index
    %c0_118 = arith.constant 0 : index
    %c0_119 = arith.constant 0 : index
    %c0_120 = arith.constant 0 : index
    %79 = vector.load %arg4[%c0_117, %c0_118, %c0_119, %c0_120] : memref<3x3x128x128xbf16, #tpu.memory_space<vmem>>, vector<1x1x128x128xbf16>
    %80 = vector.shape_cast %79 : vector<1x1x128x128xbf16> to vector<128x128xbf16>
    %cst_121 = arith.constant dense<0.000000e+00> : vector<256x128xf32>
    %81 = tpu.matmul %78, %80, %cst_121 {dimension_numbers = #tpu.dot_dimension_numbers<[1], [0], [0], [1], [0, 0, 1, 1], [], []>} : vector<256x128xbf16>, vector<128x128xbf16>, vector<256x128xf32> -> vector<256x128xf32>
    %82 = arith.addf %76, %81 : vector<256x128xf32>
    %c0_122 = arith.constant 0 : index
    %c0_123 = arith.constant 0 : index
    %c1_124 = arith.constant 1 : index
    %c0_125 = arith.constant 0 : index
    %83 = vector.load %arg8[%c0_122, %c0_123, %c1_124, %c0_125] : memref<1x18x18x128xbf16, #tpu.memory_space<vmem>>, vector<1x16x16x128xbf16>
    %84 = vector.shape_cast %83 : vector<1x16x16x128xbf16> to vector<256x128xbf16>
    %c0_126 = arith.constant 0 : index
    %c1_127 = arith.constant 1 : index
    %c0_128 = arith.constant 0 : index
    %c0_129 = arith.constant 0 : index
    %85 = vector.load %arg4[%c0_126, %c1_127, %c0_128, %c0_129] : memref<3x3x128x128xbf16, #tpu.memory_space<vmem>>, vector<1x1x128x128xbf16>
    %86 = vector.shape_cast %85 : vector<1x1x128x128xbf16> to vector<128x128xbf16>
    %cst_130 = arith.constant dense<0.000000e+00> : vector<256x128xf32>
    %87 = tpu.matmul %84, %86, %cst_130 {dimension_numbers = #tpu.dot_dimension_numbers<[1], [0], [0], [1], [0, 0, 1, 1], [], []>} : vector<256x128xbf16>, vector<128x128xbf16>, vector<256x128xf32> -> vector<256x128xf32>
    %88 = arith.addf %82, %87 : vector<256x128xf32>
    %c0_131 = arith.constant 0 : index
    %c0_132 = arith.constant 0 : index
    %c2_133 = arith.constant 2 : index
    %c0_134 = arith.constant 0 : index
    %89 = vector.load %arg8[%c0_131, %c0_132, %c2_133, %c0_134] : memref<1x18x18x128xbf16, #tpu.memory_space<vmem>>, vector<1x16x16x128xbf16>
    %90 = vector.shape_cast %89 : vector<1x16x16x128xbf16> to vector<256x128xbf16>
    %c0_135 = arith.constant 0 : index
    %c2_136 = arith.constant 2 : index
    %c0_137 = arith.constant 0 : index
    %c0_138 = arith.constant 0 : index
    %91 = vector.load %arg4[%c0_135, %c2_136, %c0_137, %c0_138] : memref<3x3x128x128xbf16, #tpu.memory_space<vmem>>, vector<1x1x128x128xbf16>
    %92 = vector.shape_cast %91 : vector<1x1x128x128xbf16> to vector<128x128xbf16>
    %cst_139 = arith.constant dense<0.000000e+00> : vector<256x128xf32>
    %93 = tpu.matmul %90, %92, %cst_139 {dimension_numbers = #tpu.dot_dimension_numbers<[1], [0], [0], [1], [0, 0, 1, 1], [], []>} : vector<256x128xbf16>, vector<128x128xbf16>, vector<256x128xf32> -> vector<256x128xf32>
    %94 = arith.addf %88, %93 : vector<256x128xf32>
    %c0_140 = arith.constant 0 : index
    %c1_141 = arith.constant 1 : index
    %c0_142 = arith.constant 0 : index
    %c0_143 = arith.constant 0 : index
    %95 = vector.load %arg8[%c0_140, %c1_141, %c0_142, %c0_143] : memref<1x18x18x128xbf16, #tpu.memory_space<vmem>>, vector<1x16x16x128xbf16>
    %96 = vector.shape_cast %95 : vector<1x16x16x128xbf16> to vector<256x128xbf16>
    %c1_144 = arith.constant 1 : index
    %c0_145 = arith.constant 0 : index
    %c0_146 = arith.constant 0 : index
    %c0_147 = arith.constant 0 : index
    %97 = vector.load %arg4[%c1_144, %c0_145, %c0_146, %c0_147] : memref<3x3x128x128xbf16, #tpu.memory_space<vmem>>, vector<1x1x128x128xbf16>
    %98 = vector.shape_cast %97 : vector<1x1x128x128xbf16> to vector<128x128xbf16>
    %cst_148 = arith.constant dense<0.000000e+00> : vector<256x128xf32>
    %99 = tpu.matmul %96, %98, %cst_148 {dimension_numbers = #tpu.dot_dimension_numbers<[1], [0], [0], [1], [0, 0, 1, 1], [], []>} : vector<256x128xbf16>, vector<128x128xbf16>, vector<256x128xf32> -> vector<256x128xf32>
    %100 = arith.addf %94, %99 : vector<256x128xf32>
    %c0_149 = arith.constant 0 : index
    %c1_150 = arith.constant 1 : index
    %c1_151 = arith.constant 1 : index
    %c0_152 = arith.constant 0 : index
    %101 = vector.load %arg8[%c0_149, %c1_150, %c1_151, %c0_152] : memref<1x18x18x128xbf16, #tpu.memory_space<vmem>>, vector<1x16x16x128xbf16>
    %102 = vector.shape_cast %101 : vector<1x16x16x128xbf16> to vector<256x128xbf16>
    %c1_153 = arith.constant 1 : index
    %c1_154 = arith.constant 1 : index
    %c0_155 = arith.constant 0 : index
    %c0_156 = arith.constant 0 : index
    %103 = vector.load %arg4[%c1_153, %c1_154, %c0_155, %c0_156] : memref<3x3x128x128xbf16, #tpu.memory_space<vmem>>, vector<1x1x128x128xbf16>
    %104 = vector.shape_cast %103 : vector<1x1x128x128xbf16> to vector<128x128xbf16>
    %cst_157 = arith.constant dense<0.000000e+00> : vector<256x128xf32>
    %105 = tpu.matmul %102, %104, %cst_157 {dimension_numbers = #tpu.dot_dimension_numbers<[1], [0], [0], [1], [0, 0, 1, 1], [], []>} : vector<256x128xbf16>, vector<128x128xbf16>, vector<256x128xf32> -> vector<256x128xf32>
    %106 = arith.addf %100, %105 : vector<256x128xf32>
    %c0_158 = arith.constant 0 : index
    %c1_159 = arith.constant 1 : index
    %c2_160 = arith.constant 2 : index
    %c0_161 = arith.constant 0 : index
    %107 = vector.load %arg8[%c0_158, %c1_159, %c2_160, %c0_161] : memref<1x18x18x128xbf16, #tpu.memory_space<vmem>>, vector<1x16x16x128xbf16>
    %108 = vector.shape_cast %107 : vector<1x16x16x128xbf16> to vector<256x128xbf16>
    %c1_162 = arith.constant 1 : index
    %c2_163 = arith.constant 2 : index
    %c0_164 = arith.constant 0 : index
    %c0_165 = arith.constant 0 : index
    %109 = vector.load %arg4[%c1_162, %c2_163, %c0_164, %c0_165] : memref<3x3x128x128xbf16, #tpu.memory_space<vmem>>, vector<1x1x128x128xbf16>
    %110 = vector.shape_cast %109 : vector<1x1x128x128xbf16> to vector<128x128xbf16>
    %cst_166 = arith.constant dense<0.000000e+00> : vector<256x128xf32>
    %111 = tpu.matmul %108, %110, %cst_166 {dimension_numbers = #tpu.dot_dimension_numbers<[1], [0], [0], [1], [0, 0, 1, 1], [], []>} : vector<256x128xbf16>, vector<128x128xbf16>, vector<256x128xf32> -> vector<256x128xf32>
    %112 = arith.addf %106, %111 : vector<256x128xf32>
    %c0_167 = arith.constant 0 : index
    %c2_168 = arith.constant 2 : index
    %c0_169 = arith.constant 0 : index
    %c0_170 = arith.constant 0 : index
    %113 = vector.load %arg8[%c0_167, %c2_168, %c0_169, %c0_170] : memref<1x18x18x128xbf16, #tpu.memory_space<vmem>>, vector<1x16x16x128xbf16>
    %114 = vector.shape_cast %113 : vector<1x16x16x128xbf16> to vector<256x128xbf16>
    %c2_171 = arith.constant 2 : index
    %c0_172 = arith.constant 0 : index
    %c0_173 = arith.constant 0 : index
    %c0_174 = arith.constant 0 : index
    %115 = vector.load %arg4[%c2_171, %c0_172, %c0_173, %c0_174] : memref<3x3x128x128xbf16, #tpu.memory_space<vmem>>, vector<1x1x128x128xbf16>
    %116 = vector.shape_cast %115 : vector<1x1x128x128xbf16> to vector<128x128xbf16>
    %cst_175 = arith.constant dense<0.000000e+00> : vector<256x128xf32>
    %117 = tpu.matmul %114, %116, %cst_175 {dimension_numbers = #tpu.dot_dimension_numbers<[1], [0], [0], [1], [0, 0, 1, 1], [], []>} : vector<256x128xbf16>, vector<128x128xbf16>, vector<256x128xf32> -> vector<256x128xf32>
    %118 = arith.addf %112, %117 : vector<256x128xf32>
    %c0_176 = arith.constant 0 : index
    %c2_177 = arith.constant 2 : index
    %c1_178 = arith.constant 1 : index
    %c0_179 = arith.constant 0 : index
    %119 = vector.load %arg8[%c0_176, %c2_177, %c1_178, %c0_179] : memref<1x18x18x128xbf16, #tpu.memory_space<vmem>>, vector<1x16x16x128xbf16>
    %120 = vector.shape_cast %119 : vector<1x16x16x128xbf16> to vector<256x128xbf16>
    %c2_180 = arith.constant 2 : index
    %c1_181 = arith.constant 1 : index
    %c0_182 = arith.constant 0 : index
    %c0_183 = arith.constant 0 : index
    %121 = vector.load %arg4[%c2_180, %c1_181, %c0_182, %c0_183] : memref<3x3x128x128xbf16, #tpu.memory_space<vmem>>, vector<1x1x128x128xbf16>
    %122 = vector.shape_cast %121 : vector<1x1x128x128xbf16> to vector<128x128xbf16>
    %cst_184 = arith.constant dense<0.000000e+00> : vector<256x128xf32>
    %123 = tpu.matmul %120, %122, %cst_184 {dimension_numbers = #tpu.dot_dimension_numbers<[1], [0], [0], [1], [0, 0, 1, 1], [], []>} : vector<256x128xbf16>, vector<128x128xbf16>, vector<256x128xf32> -> vector<256x128xf32>
    %124 = arith.addf %118, %123 : vector<256x128xf32>
    %c0_185 = arith.constant 0 : index
    %c2_186 = arith.constant 2 : index
    %c2_187 = arith.constant 2 : index
    %c0_188 = arith.constant 0 : index
    %125 = vector.load %arg8[%c0_185, %c2_186, %c2_187, %c0_188] : memref<1x18x18x128xbf16, #tpu.memory_space<vmem>>, vector<1x16x16x128xbf16>
    %126 = vector.shape_cast %125 : vector<1x16x16x128xbf16> to vector<256x128xbf16>
    %c2_189 = arith.constant 2 : index
    %c2_190 = arith.constant 2 : index
    %c0_191 = arith.constant 0 : index
    %c0_192 = arith.constant 0 : index
    %127 = vector.load %arg4[%c2_189, %c2_190, %c0_191, %c0_192] : memref<3x3x128x128xbf16, #tpu.memory_space<vmem>>, vector<1x1x128x128xbf16>
    %128 = vector.shape_cast %127 : vector<1x1x128x128xbf16> to vector<128x128xbf16>
    %cst_193 = arith.constant dense<0.000000e+00> : vector<256x128xf32>
    %129 = tpu.matmul %126, %128, %cst_193 {dimension_numbers = #tpu.dot_dimension_numbers<[1], [0], [0], [1], [0, 0, 1, 1], [], []>} : vector<256x128xbf16>, vector<128x128xbf16>, vector<256x128xf32> -> vector<256x128xf32>
    %130 = arith.addf %124, %129 : vector<256x128xf32>
    %cst_194 = arith.constant 0.000000e+00 : f32
    %131 = vector.broadcast %cst_194 : f32 to vector<256x128xf32>
    %132 = arith.maximumf %130, %131 : vector<256x128xf32>
    %133 = vector.shape_cast %132 : vector<256x128xf32> to vector<1x16x16x128xf32>
    %134 = arith.truncf %133 : vector<1x16x16x128xf32> to vector<1x16x16x128xbf16>
    %c0_195 = arith.constant 0 : index
    %c0_196 = arith.constant 0 : index
    %c0_197 = arith.constant 0 : index
    %c0_198 = arith.constant 0 : index
    %135 = vector.load %arg6[%c0_195, %c0_196, %c0_197, %c0_198] : memref<1x16x16x128xbf16, #tpu.memory_space<vmem>>, vector<1x16x16x128xbf16>
    tpu.vector_store %arg6[%c0_195, %c0_196, %c0_197, %c0_198], %134 {strides = array<i32>} : memref<1x16x16x128xbf16, #tpu.memory_space<vmem>>, vector<1x16x16x128xbf16>,
    return
  }
  func.func @transform_0(%arg0: i32) -> (i32, i32, i32, i32) {
    %c0_i32 = arith.constant 0 : i32
    %c0_i32_0 = arith.constant 0 : i32
    %c0_i32_1 = arith.constant 0 : i32
    %c0_i32_2 = arith.constant 0 : i32
    return %arg0, %c0_i32, %c0_i32_0, %c0_i32_1 : i32, i32, i32, i32
  }
  func.func @transform_1(%arg0: i32) -> (i32, i32, i32, i32) {
    %c0_i32 = arith.constant 0 : i32
    %c0_i32_0 = arith.constant 0 : i32
    %c0_i32_1 = arith.constant 0 : i32
    %c0_i32_2 = arith.constant 0 : i32
    %c0_i32_3 = arith.constant 0 : i32
    return %c0_i32, %c0_i32_0, %c0_i32_1, %c0_i32_2 : i32, i32, i32, i32
  }
  func.func @transform_2(%arg0: i32) -> (i32, i32) {
    %c0_i32 = arith.constant 0 : i32
    %c0_i32_0 = arith.constant 0 : i32
    %c0_i32_1 = arith.constant 0 : i32
    return %c0_i32, %c0_i32_0 : i32, i32
  }
  func.func @transform_3(%arg0: i32) -> (i32, i32, i32, i32) {
    %c0_i32 = arith.constant 0 : i32
    %c0_i32_0 = arith.constant 0 : i32
    %c0_i32_1 = arith.constant 0 : i32
    %c0_i32_2 = arith.constant 0 : i32
    %c0_i32_3 = arith.constant 0 : i32
    return %c0_i32, %c0_i32_0, %c0_i32_1, %c0_i32_2 : i32, i32, i32, i32
  }
  func.func @transform_4(%arg0: i32) -> (i32, i32) {
    %c0_i32 = arith.constant 0 : i32
    %c0_i32_0 = arith.constant 0 : i32
    %c0_i32_1 = arith.constant 0 : i32
    return %c0_i32, %c0_i32_0 : i32, i32
  }
  func.func @transform_5(%arg0: i32) -> (i32, i32, i32, i32) {
    %c0_i32 = arith.constant 0 : i32
    %c0_i32_0 = arith.constant 0 : i32
    %c0_i32_1 = arith.constant 0 : i32
    %c0_i32_2 = arith.constant 0 : i32
    return %arg0, %c0_i32, %c0_i32_0, %c0_i32_1 : i32, i32, i32, i32
  }
}

</mosaic_0001>

<bundles_post_ra>
// kernel: tpu_custom_call.1
= control target key start
LH: loop header
LB: loop body
LE: loop exit
PB: predicated region body
PF: predicated region fallthrough
CT: control target
= control target key end

     0   :  { %10 = vsyncpa [#allocation5], 0  ;;  %s17736_s0 = inlined_call_operand.vmem [shape: bf16[2,16,16,4], index: 0, kind: input, shape index: {}]   ;;  %s17737_s1 = inlined_call_operand.vmem [shape: bf16[3,3,4,128], index: 1, kind: input, shape index: {}]   ;;  %s17738_s2 = inlined_call_operand.vmem [shape: f32[1,128], index: 2, kind: input, shape index: {}]   ;;  %s17739_s3 = inlined_call_operand.hbm [shape: bf16[3,3,128,128], index: 3, kind: input, shape index: {}]   ;;  %s17740_s4 = inlined_call_operand.vmem [shape: f32[1,128], index: 4, kind: input, shape index: {}]   ;;  %s17741_s5 = inlined_call_operand.hbm [shape: bf16[2,16,16,128], index: 5, kind: output, shape index: {}]  }
   0x1   :  { %11 = vsyncpa [#allocation6], 0 }
   0x2   :  { %13 = vsyncpa [#allocation6 + $0x1], 0  ;;  %s14085_s18 = smov 0   ;;  %s14087_s19 = smov 0  }
   0x3   :  { %s14089_s20 = smov 0   ;;  %s14091_s21 = smov 0  }
   0x4 LB: > { %s14106_s22 = sadd.s32 4294967295, %s14046_s21   ;;  %s11098_s23 = sadd.s32 4294967294, %s14046_s21   ;;  %s14046_s21 = sphi %s14091_s21, %s18121_s21   ;;  %s14042_s20 = sphi %s14089_s20, %s18120_s20   ;;  %s14038_s19 = sphi %s14087_s19, %s18119_s19   ;;  %s14034_s18 = sphi %s14085_s18, %s18118_s18  }
   0x5   : > { %s14110_s24 = sadd.s32 1, %s14046_s21   ;;  %s136_s25 = sadd.s32 1, %s14042_s20 }
   0x6   : > { %s133_s26 = ssub.s32 %s14046_s21, %s14110_s24  ;;  %p146_p0 = scmp.ne.s32.totalorder %s14042_s20, %s14038_s19 }
   0x7   : > { %p134_p1 = scmp.eq.s32.totalorder %s133_s26, 0  ;;  %p147_p2 = scmp.eq.s32.totalorder %s14106_s22, 1 }
   0x8   : > { %p152_p3 = scmp.ne.s32.totalorder %s14038_s19, %s14034_s18  ;;  %p153_p4 = scmp.eq.s32.totalorder %s11098_s23, 1 }
   0x9   : > { %s14121_s27 = scalar_select %p134_p1, %s14042_s20, %s136_s25  }
   0xa   : > { %p14123_p5 = por %p147_p2, %p146_p0  ;;  %p14127_p6 = por %p153_p4, %p152_p3 }
   0xb   : > { %p11099_p7 = scmp.ge.s32.totalorder %s14046_s21, 1  ;;  %p160_p8 = scmp.lt.s32.totalorder %s14046_s21, 3 }
   0xc   : > { %s17843_s28 = scalar_select %p14123_p5, 1, 0 }
   0xd   : > { %s17844_s29 = scalar_select %p14127_p6, 1, 0 }
   0xe   : > { %p17742_p9 = scmp.eq.s32.totalorder %s14106_s22, 0  ;;  %p14134_p10 = pnand %p11099_p7, %p160_p8 }
   0xf   : > { %s14048_s6 = smov [#allocation4]   ;;  %s13952_s11 = scalar_lea.hbm %s17739_s3, 9216 }
  0x10   : > { %s17845_s30 = scalar_select %p14134_p10, 1, 0 }
  0x11   : > { %s178_s7 = sshll.u32 %s14048_s6, 4  ;;  %p13709_p11 = pneg %p14134_p10  ;;  %s179_s7 = int_to_ptr.vmem [resolvable:$true] %s178_s7 }
  0x12   : > { %p13953_p13 = scmp.ne.s32.totalorder %s17739_s3, %s13952_s11  ;;  %p13959_p3 = scmp.lt.u32.totalorder %s13952_s11, %s17739_s3 }
  0x13   : > { %p14142_p12 = pnand %p17742_p9, %p13709_p11 }
  0x15   : > { %p13954_p0 = pneg %p14142_p12 }
  0x17   : > { %p13955_p1 = pnand %p13954_p0, %p13953_p13 }
  0x19   : > { %p13956_p2 = pneg %p13955_p1 }
  0x1b   : > { %p13961_p4 = pnand %p13959_p3, %p13956_p2 }
  0x1d   : > { %13964 = shalt.err (!%p13961_p4)
}
  0x1e   : > { %s13965_s16 = scalar_lea.vmem %s179_s7, 9216  ;;  %p13973_p9 = scmp.lt.s32.totalorder %s179_s7, %s179_s7 }
  0x1f   : > { %p13966_p7 = scmp.ne.s32.totalorder %s179_s7, %s13965_s16  ;;  %p13974_p6 = scmp.lt.s32.totalorder %s13965_s16, %s13965_s16 }
  0x21   : > { %p13968_p8 = pnand %p13966_p7, %p13954_p0  ;;  %p13975_p5 = por %p13974_p6, %p13973_p9 }
  0x23   : > { %p13969_p11 = pneg %p13968_p8 }
  0x25   : > { %p13976_p10 = pnand %p13975_p5, %p13969_p11 }
  0x27   : > { %13979 = shalt.err (!%p13976_p10)
}
  0x28   : > { %s14049_s17 = smov 64   ;;  %s14050_s23 = smov 4  }
  0x29   : > { %13712 = dma.hbm_to_vmem [thread:$0]  (!%p14142_p12), %s17739_s3, 9216, %s179_s7, [#allocation5], %s14049_s17, %s14049_s17, %s14050_s23  }
  0x2a   : > { %p17847_p13 = scmp.ne.s32.totalorder %s17845_s30, 0 }
  0x2c   : > { %205 = sbr.rel (%p17847_p13) target bundleno = 1635 (0x663), region = 40 }
  0x33   : > { %p17848_p1 = scmp.eq.s32.totalorder %s14106_s22, 0 }
  0x35   : > { %14025 = dma.done.wait (%p17848_p1), [#allocation5], 9216   ;;  %p17849_p0 = pmov %p17848_p1 }
  0x36   : > { %vm271_vm0 = vcmask 27648   ;;  %v14051_v0 = vmov 0   ;;  %p233_p5 = scmp.lt.s32.totalorder %s14106_s22, 1  ;;  %vm274_vm1 = vcmask 24576   ;;  %vm933_vm2 = vcmask 1041408   ;;  %s230_s16 = sand.u32 1, %s14038_s19  }
  0x37   : > { %14027 = vsyncadd (%p17849_p0), [#allocation5], 4294958080  ;;  %272 = vst.msk [vmem:[#allocation2] sm:$0xf] %vm271_vm0, %v14051_v0  ;;  %vm884_vm3 = vcmask 31744   ;;  %vm504_vm5 = vcmask 1040384  }
  0x38   : > { %273 = vst.msk [vmem:[#allocation2 + $0x4] sm:$0xf] %vm271_vm0, %v14051_v0  ;;  %277 = vst.msk [vmem:[#allocation2 + $0xcc] sm:$0xf] %vm271_vm0, %v14051_v0  ;;  %s234_s30 = scalar_select %p233_p5, %s14106_s22, 1  ;;  %v17850_v15 = vmov 0 }
  0x39   : > { %278 = vst.msk [vmem:[#allocation2 + $0xd0] sm:$0xf] %vm271_vm0, %v14051_v0  ;;  %5473 = vst [vmem:[#allocation3] sm:$0xf] %v14051_v0  ;;  %vm505_vm4 = vsmask.f32 256 }
  0x3a   : > { %5474 = vst [vmem:[#allocation3 + $0x4] sm:$0xf] %v14051_v0  ;;  %5475 = vst [vmem:[#allocation3 + $0x8] sm:$0x1] %v14051_v0  ;;  %s11866_s6 = sshll.u32 %s234_s30, 7  ;;  %vm1923_vm10 = vcmask 1042432  }
  0x3b   : > { %5477 = vst [vmem:[#allocation3 + $0xcc] sm:$0xf] %v14051_v0  ;;  %5478 = vst [vmem:[#allocation3 + $0xd0] sm:$0xf] %v14051_v0  ;;  %s14179_s9 = scalar_lea.vmem %s17736_s0, %s11866_s6  ;;  %v803_v1 = vld [vmem:[%s17737_s1] sm:$0x3] }
  0x3c   : > { %5479 = vst [vmem:[#allocation3 + $0xd4] sm:$0x1] %v14051_v0  ;;  %275 = vst.msk [vmem:[#allocation2 + $0x8] sm:$0x1] %vm274_vm1, %v14051_v0  ;;  %v11204_v2 = vld [vmem:[%s17737_s1 + $0x2] sm:$0x3]  ;;  %13694 = vmatprep.subr.msk.bf16.mxu0 %vm933_vm2, %v803_v1 }
  0x3d   : > { %279 = vst.msk [vmem:[#allocation2 + $0xd4] sm:$0x1] %vm274_vm1, %v14051_v0  ;;  %v935_v3 = vsel %vm933_vm2, %v803_v1, 0  ;;  %v13759_v5 = vld [vmem:[%s14179_s9] sm:$0xff]   ;;  %v14193_v6 = vsel %vm933_vm2, %v11204_v2, 0  ;;  %v13761_v7 = vld [vmem:[%s14179_s9 + $0x8] sm:$0xff]   ;;  %vm14199_vm6 = vmand %vm504_vm5, %vm505_vm4 }
  0x3e   : > { %12365 = vmatpush3.bf16.msra.mxu0 %v935_v3  ;;  %v361_v8 = vshrl.u32 %v13759_v5, 16  ;;  %v364_v9 = vshll.u32 %v13759_v5, 16  ;;  %v13763_v10 = vld [vmem:[%s14179_s9 + $0x10] sm:$0xff]   ;;  %v13765_v11 = vld [vmem:[%s14179_s9 + $0x18] sm:$0xff]   ;;  %v368_v12 = vshrl.u32 %v13761_v7, 16  ;;  %v371_v13 = vshll.u32 %v13761_v7, 16 }
  0x3f   : > { %v13758_v4 = vld [vmem:[#allocation2] sm:$0xff]   ;;  %13695 = vmatprep.subr.msk.bf16.mxu0 %vm933_vm2, %v11204_v2  ;;  %v17851_v15 = vsel %vm14199_vm6, 4294967295, %v17850_v15  ;;  %v375_v16 = vshrl.u32 %v13763_v10, 16  ;;  %v378_v17 = vshll.u32 %v13763_v10, 16  ;;  %v382_v18 = vshrl.u32 %v13765_v11, 16  ;;  %v13769_v22 = vld [vmem:[%s14179_s9 + $0x28] sm:$0xff]  }
  0x40   : > { %12366 = vmatprep.mubr.msk.bf16.mxu0 %vm884_vm3, %v13758_v4  ;;  %v363_v14 = vrot.slane %v361_v8, 7  ;;  %17852 = vst [vmem:[#allocation10_spill] sm:$0xff] %v17851_v15  ;;  %v14203_v19 = vrot.slane %v368_v12, 7  ;;  %v385_v20 = vshll.u32 %v13765_v11, 16  ;;  %v13767_v21 = vld [vmem:[%s14179_s9 + $0x20] sm:$0xff]   ;;  %v13771_v27 = vld [vmem:[%s14179_s9 + $0x30] sm:$0xff]  }
  0x41   : > { %v14209_v25 = vrot.slane %v375_v16, 7  ;;  %v14211_v26 = vrot.slane %v382_v18, 7  ;;  %v389_v30 = vshrl.u32 %v13767_v21, 16  ;;  %v392_v31 = vshll.u32 %v13767_v21, 16  ;;  %v13773_v40 = vld [vmem:[%s14179_s9 + $0x38] sm:$0xff]   ;;  %v13775_v41 = vld [vmem:[%s14179_s9 + $0x40] sm:$0xff]  }
  0x42   : > { %v366_v23 = vor.u32 %v364_v9, %v363_v14  ;;  %v523_v24 = vsel %vm14199_vm6, %v363_v14, 0  ;;  %v373_v29 = vor.u32 %v371_v13, %v14203_v19  ;;  %v396_v35 = vshrl.u32 %v13769_v22, 16  ;;  %v13777_v54 = vld [vmem:[%s14179_s9 + $0x48] sm:$0xff]   ;;  %v13779_v8 = vld [vmem:[%s14179_s9 + $0x50] sm:$0xff]   ;;  %v13781_v9 = vld [vmem:[%s14179_s9 + $0x58] sm:$0xff]   ;;  %s11104_s17 = sshll.u32 %s230_s16, 7 }
  0x43   : > { %v11125_v28 = vcombine.low %v523_v24, %v523_v24  ;;  %v380_v33 = vor.u32 %v378_v17, %v14209_v25  ;;  %v387_v34 = vor.u32 %v385_v20, %v14211_v26  ;;  %v14221_v39 = vrot.slane %v389_v30, 7  ;;  %v13783_v14 = vld [vmem:[%s14179_s9 + $0x60] sm:$0xff]   ;;  %v13785_v16 = vld [vmem:[%s14179_s9 + $0x68] sm:$0xff]   ;;  %s17638_s23 = scalar_lea.vmem [#allocation7], %s11104_s17  ;;  %s11899_s25 = sshll.u32 %s14106_s22, 11 }
  0x44   : > { %v507_v32 = vsel %vm14199_vm6, 0, %v366_v23  ;;  %v508_v38 = vsel %vm14199_vm6, 0, %v373_v29  ;;  %v14235_v51 = vrot.slane %v396_v35, 7  ;;  %v399_v52 = vshll.u32 %v13769_v22, 16  ;;  %s11024_s26 = sshll.u32 %s17638_s23, 4  ;;  %s17687_s7 = scalar_lea.hbm %s17741_s5, %s11899_s25  ;;  %s17689_s26 = int_to_ptr.vmem [resolvable:$true] %s11024_s26 }
  0x45   : > { %v11123_v36 = vcombine.low %v507_v32, %v507_v32  ;;  %v11124_v37 = vcombine.high %v507_v32, %v507_v32  ;;  %718 = vst.msk [vmem:[#allocation2 + $0x14] sm:$0x1] %vm274_vm1, %v11125_v28  ;;  %v11126_v42 = vcombine.low %v508_v38, %v508_v38  ;;  %v11127_v43 = vcombine.high %v508_v38, %v508_v38  ;;  %s17695_s22 = scalar_lea.sflag [#allocation6], %s230_s16  ;;  %s13980_s8 = scalar_lea.vmem %s17689_s26, 2048 }
  0x46   : > { %v509_v44 = vsel %vm14199_vm6, 0, %v380_v33  ;;  %v510_v45 = vsel %vm14199_vm6, 0, %v387_v34  ;;  %v394_v50 = vor.u32 %v392_v31, %v14221_v39  ;;  %v403_v53 = vshrl.u32 %v13771_v27, 16  ;;  %p13981_p6 = scmp.ne.s32.totalorder %s17689_s26, %s13980_s8  ;;  %p18116_p9 = scmp.ne.s32.totalorder %s17843_s28, 0 }
  0x47   : > { %716 = vst.msk [vmem:[#allocation2 + $0xc] sm:$0xf] %vm271_vm0, %v11123_v36  ;;  %717 = vst.msk [vmem:[#allocation2 + $0x10] sm:$0xf] %vm271_vm0, %v11124_v37  ;;  %v11129_v46 = vcombine.low %v509_v44, %v509_v44  ;;  %v11130_v47 = vcombine.high %v509_v44, %v509_v44  ;;  %v11132_v48 = vcombine.low %v510_v45, %v510_v45  ;;  %v406_v55 = vshll.u32 %v13771_v27, 16 }
  0x48   : > { %v11133_v49 = vcombine.high %v510_v45, %v510_v45  ;;  %719 = vst.msk [vmem:[#allocation2 + $0x18] sm:$0xf] %vm271_vm0, %v11126_v42  ;;  %720 = vst.msk [vmem:[#allocation2 + $0x1c] sm:$0xf] %vm271_vm0, %v11127_v43  ;;  %v410_v56 = vshrl.u32 %v13773_v40, 16  ;;  %v413_v57 = vshll.u32 %v13773_v40, 16  ;;  %v401_v60 = vor.u32 %v399_v52, %v14235_v51  ;;  %p13982_p10 = pnand %p13981_p6, %p18116_p9 }
  0x49   : > { %722 = vst.msk [vmem:[#allocation2 + $0x24] sm:$0xf] %vm271_vm0, %v11129_v46  ;;  %723 = vst.msk [vmem:[#allocation2 + $0x28] sm:$0xf] %vm271_vm0, %v11130_v47  ;;  %v417_v58 = vshrl.u32 %v13775_v41, 16  ;;  %v511_v59 = vsel %vm14199_vm6, 0, %v394_v50 }
  0x4a   : > { %725 = vst.msk [vmem:[#allocation2 + $0x30] sm:$0xf] %vm271_vm0, %v11132_v48  ;;  %726 = vst.msk [vmem:[#allocation2 + $0x34] sm:$0xf] %vm271_vm0, %v11133_v49  ;;  %v14245_v61 = vrot.slane %v403_v53, 7  ;;  %v420_v62 = vshll.u32 %v13775_v41, 16  ;;  %v11135_v63 = vcombine.low %v511_v59, %v511_v59  ;;  %v11136_v0 = vcombine.high %v511_v59, %v511_v59  ;;  %p13983_p12 = pneg %p13982_p10 }
  0x4b   : > { %v14247_v1 = vrot.slane %v410_v56, 7  ;;  %v14249_v2 = vrot.slane %v417_v58, 7  ;;  %v512_v3 = vsel %vm14199_vm6, 0, %v401_v60  ;;  %v424_v5 = vshrl.u32 %v13777_v54, 16  ;;  %v13787_v40 = vld [vmem:[%s14179_s9 + $0x70] sm:$0xff]  }
  0x4c   : > { %v408_v4 = vor.u32 %v406_v55, %v14245_v61  ;;  %v427_v7 = vshll.u32 %v13777_v54, 16  ;;  %728 = vst.msk [vmem:[#allocation2 + $0x3c] sm:$0xf] %vm271_vm0, %v11135_v63  ;;  %729 = vst.msk [vmem:[#allocation2 + $0x40] sm:$0xf] %vm271_vm0, %v11136_v0  ;;  %v11138_v10 = vcombine.low %v512_v3, %v512_v3  ;;  %v11139_v11 = vcombine.high %v512_v3, %v512_v3 }
  0x4d   : > { %v415_v12 = vor.u32 %v413_v57, %v14247_v1  ;;  %v422_v13 = vor.u32 %v420_v62, %v14249_v2  ;;  %v14275_v31 = vrot.slane %v424_v5, 7  ;;  %v431_v32 = vshrl.u32 %v13779_v8, 16  ;;  %v1130_v58 = vld [vmem:[#allocation2] sm:$0xf] }
  0x4e   : > { %v13760_v17 = vld [vmem:[#allocation2 + $0xc] sm:$0xff]   ;;  %v513_v18 = vsel %vm14199_vm6, 0, %v408_v4  ;;  %731 = vst.msk [vmem:[#allocation2 + $0x48] sm:$0xf] %vm271_vm0, %v11138_v10  ;;  %732 = vst.msk [vmem:[#allocation2 + $0x4c] sm:$0xf] %vm271_vm0, %v11139_v11 }
  0x4f   : > { %v13762_v20 = vld [vmem:[#allocation2 + $0x18] sm:$0xff]   ;;  %v11141_v21 = vcombine.low %v513_v18, %v513_v18  ;;  %v11142_v22 = vcombine.high %v513_v18, %v513_v18  ;;  %v514_v23 = vsel %vm14199_vm6, 0, %v415_v12  ;;  %12367 = vmatmul.mubr.msk.bf16.vlgmr.msra.gmra.mrb[0].mxu0 %vm884_vm3, %v13760_v17  ;;  %v515_v28 = vsel %vm14199_vm6, 0, %v422_v13  ;;  %v14313_v10 = vld [vmem:[#allocation2 + $0x4] sm:$0xf] }
  0x50   : > { %v11144_v24 = vcombine.low %v514_v23, %v514_v23  ;;  %v11145_v27 = vcombine.high %v514_v23, %v514_v23  ;;  %12399 = vmatpush3.bf16.msra.mxu0 %v14193_v6  ;;  %12370 = vmatprep.mubr.msk.bf16.mxu0 %vm884_vm3, %v13762_v20  ;;  %v11147_v29 = vcombine.low %v515_v28, %v515_v28  ;;  %v434_v33 = vshll.u32 %v13779_v8, 16  ;;  %v13764_v41 = vld [vmem:[#allocation2 + $0x24] sm:$0xff]  }
  0x51   : > { %734 = vst.msk [vmem:[#allocation2 + $0x54] sm:$0xf] %vm271_vm0, %v11141_v21  ;;  %735 = vst.msk [vmem:[#allocation2 + $0x58] sm:$0xf] %vm271_vm0, %v11142_v22  ;;  %v11148_v30 = vcombine.high %v515_v28, %v515_v28  ;;  %v438_v34 = vshrl.u32 %v13781_v9, 16  ;;  %v441_v35 = vshll.u32 %v13781_v9, 16  ;;  %v429_v6 = vor.u32 %v427_v7, %v14275_v31 }
  0x52   : > { %737 = vst.msk [vmem:[#allocation2 + $0x60] sm:$0xf] %vm271_vm0, %v11144_v24  ;;  %738 = vst.msk [vmem:[#allocation2 + $0x64] sm:$0xf] %vm271_vm0, %v11145_v27  ;;  %v445_v36 = vshrl.u32 %v13783_v14, 16  ;;  %v448_v37 = vshll.u32 %v13783_v14, 16 }
  0x53   : > { %740 = vst.msk [vmem:[#allocation2 + $0x6c] sm:$0xf] %vm271_vm0, %v11147_v29  ;;  %741 = vst.msk [vmem:[#allocation2 + $0x70] sm:$0xf] %vm271_vm0, %v11148_v30  ;;  %v452_v38 = vshrl.u32 %v13785_v16, 16  ;;  %v14283_v42 = vrot.slane %v431_v32, 7 }
  0x54   : > { %v13766_v43 = vld [vmem:[#allocation2 + $0x30] sm:$0xff]   ;;  %v516_v44 = vsel %vm14199_vm6, 0, %v429_v6  ;;  %v14287_v45 = vrot.slane %v438_v34, 7  ;;  %v14289_v46 = vrot.slane %v445_v36, 7  ;;  %v455_v52 = vshll.u32 %v13785_v16, 16  ;;  %v13768_v12 = vld [vmem:[#allocation2 + $0x3c] sm:$0xff]  }
  0x55   : > { %v14291_v47 = vrot.slane %v452_v38, 7  ;;  %v11150_v48 = vcombine.low %v516_v44, %v516_v44  ;;  %v11151_v49 = vcombine.high %v516_v44, %v516_v44  ;;  %v436_v50 = vor.u32 %v434_v33, %v14283_v42  ;;  %v14318_v11 = vld [vmem:[%s17737_s1 + $0x4] sm:$0x3]  ;;  %v13770_v16 = vld [vmem:[#allocation2 + $0x48] sm:$0xff]   ;;  %v14341_v6 = vld [vmem:[#allocation2 + $0x10] sm:$0xf] }
  0x56   : > { %v443_v53 = vor.u32 %v441_v35, %v14287_v45  ;;  %v450_v54 = vor.u32 %v448_v37, %v14289_v46  ;;  %v459_v55 = vshrl.u32 %v13787_v40, 16  ;;  %v462_v63 = vshll.u32 %v13787_v40, 16  ;;  %13696 = vmatprep.subr.msk.bf16.mxu0 %vm933_vm2, %v14318_v11  ;;  %v14335_v28 = vld [vmem:[#allocation2 + $0x8] sm:$0x1]  ;;  %v1133_v32 = vld [vmem:[#allocation2 + $0xc] sm:$0xf] }
  0x57   : > { %12371 = vmatmul.mubr.msk.bf16.gmra.mrb[4].mxu0 %vm884_vm3, %v13764_v41  ;;  %743 = vst.msk [vmem:[#allocation2 + $0x78] sm:$0xf] %vm271_vm0, %v11150_v48  ;;  %744 = vst.msk [vmem:[#allocation2 + $0x7c] sm:$0xf] %vm271_vm0, %v11151_v49  ;;  %v517_v56 = vsel %vm14199_vm6, 0, %v436_v50  ;;  %v457_v57 = vor.u32 %v455_v52, %v14291_v47  ;;  %v1182_v18 = vshrl.u32 %v1130_v58, 16 }
  0x58   : > { %12374 = vmatprep.mubr.msk.bf16.mxu0 %vm884_vm3, %v13766_v43  ;;  %v11153_v59 = vcombine.low %v517_v56, %v517_v56  ;;  %v11154_v60 = vcombine.high %v517_v56, %v517_v56  ;;  %v518_v62 = vsel %vm14199_vm6, 0, %v443_v53  ;;  %v519_v4 = vsel %vm14199_vm6, 0, %v450_v54  ;;  %v13772_v33 = vld [vmem:[#allocation2 + $0x54] sm:$0xff]   ;;  %v14351_v54 = vld [vmem:[#allocation2 + $0x1c] sm:$0xf] }
  0x59   : > { %v11156_v0 = vcombine.low %v518_v62, %v518_v62  ;;  %v11157_v3 = vcombine.high %v518_v62, %v518_v62  ;;  %v11159_v5 = vcombine.low %v519_v4, %v519_v4  ;;  %v11160_v7 = vcombine.high %v519_v4, %v519_v4  ;;  %v13774_v38 = vld [vmem:[#allocation2 + $0x60] sm:$0xff]   ;;  %v1136_v50 = vld [vmem:[#allocation2 + $0x18] sm:$0xf] }
  0x5a   : > { %746 = vst.msk [vmem:[#allocation2 + $0x84] sm:$0xf] %vm271_vm0, %v11153_v59  ;;  %747 = vst.msk [vmem:[#allocation2 + $0x88] sm:$0xf] %vm271_vm0, %v11154_v60  ;;  %v520_v8 = vsel %vm14199_vm6, 0, %v457_v57  ;;  %v14311_v9 = vrot.slane %v459_v55, 7 }
  0x5b   : > { %749 = vst.msk [vmem:[#allocation2 + $0x90] sm:$0xf] %vm271_vm0, %v11156_v0  ;;  %750 = vst.msk [vmem:[#allocation2 + $0x94] sm:$0xf] %vm271_vm0, %v11157_v3  ;;  %v11162_v13 = vcombine.low %v520_v8, %v520_v8  ;;  %v11163_v14 = vcombine.high %v520_v8, %v520_v8  ;;  %v1185_v20 = vshll.u32 %v1130_v58, 16  ;;  %v1191_v21 = vshll.u32 %v14313_v10, 16 }
  0x5c   : > { %752 = vst.msk [vmem:[#allocation2 + $0x9c] sm:$0xf] %vm271_vm0, %v11159_v5  ;;  %753 = vst.msk [vmem:[#allocation2 + $0xa0] sm:$0xf] %vm271_vm0, %v11160_v7  ;;  %v464_v17 = vor.u32 %v462_v63, %v14311_v9  ;;  %v1195_v22 = vshrl.u32 %v14313_v10, 16  ;;  %v1184_v29 = vrot.slane %v1182_v18, 4 }
  0x5d   : > { %755 = vst.msk [vmem:[#allocation2 + $0xa8] sm:$0xf] %vm271_vm0, %v11162_v13  ;;  %756 = vst.msk [vmem:[#allocation2 + $0xac] sm:$0xf] %vm271_vm0, %v11163_v14  ;;  %v1187_v30 = vrot.slane %v1185_v20, 5  ;;  %v14339_v34 = vrot.slane %v1191_v21, 5 }
  0x5e   : > { %v521_v23 = vsel %vm14199_vm6, 0, %v464_v17  ;;  %v1197_v35 = vrot.slane %v1195_v22, 4  ;;  %v1201_v36 = vshll.u32 %v14335_v28, 16  ;;  %v1206_v37 = vshrl.u32 %v1133_v32, 16  ;;  %v1139_v55 = vld [vmem:[#allocation2 + $0x24] sm:$0xf] }
  0x5f   : > { %12375 = vmatmul.mubr.msk.bf16.gmra.mrb[8].mxu0 %vm884_vm3, %v13768_v12  ;;  %v11165_v24 = vcombine.low %v521_v23, %v521_v23  ;;  %v11166_v27 = vcombine.high %v521_v23, %v521_v23  ;;  %v1188_v40 = vor.u32 %v1187_v30, %v1184_v29  ;;  %v1209_v41 = vshll.u32 %v1133_v32, 16  ;;  %v1140_v8 = vld [vmem:[#allocation2 + $0x28] sm:$0xf]  ;;  %v13776_v12 = vld [vmem:[#allocation2 + $0x6c] sm:$0xff]   ;;  %v1143_v29 = vld [vmem:[#allocation2 + $0x34] sm:$0xf] }
  0x60   : > { %12378 = vmatprep.mubr.msk.bf16.mxu0 %vm884_vm3, %v13770_v16  ;;  %vm1178_vm7 = vsmask.f32 3328  ;;  %v1198_v43 = vor.u32 %v1197_v35, %v14339_v34  ;;  %v1215_v44 = vshll.u32 %v14341_v6, 16  ;;  %v1219_v48 = vshrl.u32 %v14341_v6, 16  ;;  %v13778_v16 = vld [vmem:[#allocation2 + $0x78] sm:$0xff]  }
  0x61   : > { %758 = vst.msk [vmem:[#allocation2 + $0xb4] sm:$0xf] %vm271_vm0, %v11165_v24  ;;  %759 = vst.msk [vmem:[#allocation2 + $0xb8] sm:$0xf] %vm271_vm0, %v11166_v27  ;;  %vm1179_vm8 = vsmask.f32 7440 }
  0x62   : > { %v524_v49 = vsel %vm14199_vm6, %v14203_v19, 0  ;;  %v1203_v52 = vrot.slane %v1201_v36, 5  ;;  %v1208_v53 = vrot.slane %v1206_v37, 4  ;;  %v1189_v56 = vrot.slane %v1188_v40, 4  ;;  %vm14355_vm9 = vmor %vm1178_vm7, %vm1179_vm8  ;;  %v14359_v19 = vld [vmem:[#allocation2 + $0x14] sm:$0x1] }
  0x63   : > { %v1211_v57 = vrot.slane %v1209_v41, 5  ;;  %v11128_v58 = vcombine.low %v524_v49, %v524_v49  ;;  %v1199_v60 = vrot.slane %v1198_v43, 4  ;;  %v14361_v62 = vrot.slane %v1215_v44, 5  ;;  %v1142_v27 = vld [vmem:[#allocation2 + $0x30] sm:$0xf] }
  0x64   : > { %v1221_v63 = vrot.slane %v1219_v48, 4  ;;  %v1230_v0 = vshrl.u32 %v1136_v50, 16  ;;  %v1233_v3 = vshll.u32 %v1136_v50, 16  ;;  %v1239_v4 = vshll.u32 %v14351_v54, 16 }
  0x65   : > { %721 = vst.msk [vmem:[#allocation2 + $0x20] sm:$0x1] %vm274_vm1, %v11128_v58  ;;  %v1243_v5 = vshrl.u32 %v14351_v54, 16  ;;  %v525_v7 = vsel %vm14199_vm6, %v14209_v25, 0  ;;  %v1254_v13 = vshrl.u32 %v1139_v55, 16  ;;  %v1257_v14 = vshll.u32 %v1139_v55, 16 }
  0x66   : > { %v1194_v17 = vsel %vm14355_vm9, %v1189_v56, %v14339_v34  ;;  %v1212_v18 = vor.u32 %v1211_v57, %v1208_v53  ;;  %v1225_v20 = vshll.u32 %v14359_v19, 16  ;;  %v11131_v21 = vcombine.low %v525_v7, %v525_v7  ;;  %v1145_v56 = vld [vmem:[#allocation2 + $0x3c] sm:$0xf]  ;;  %v13780_v57 = vld [vmem:[#allocation2 + $0x84] sm:$0xff]   ;;  %v13782_v58 = vld [vmem:[#allocation2 + $0x90] sm:$0xff]  }
  0x67   : > { %12379 = vmatmul.mubr.msk.bf16.gmra.mrb[12].mxu0 %vm884_vm3, %v13772_v33  ;;  %v1204_v22 = vsel %vm14355_vm9, %v1199_v60, %v1203_v52  ;;  %v1222_v23 = vor.u32 %v1221_v63, %v14361_v62  ;;  %v1232_v24 = vrot.slane %v1230_v0, 4  ;;  %v1263_v25 = vshll.u32 %v1140_v8, 16 }
  0x68   : > { %12382 = vmatprep.mubr.msk.bf16.mxu0 %vm884_vm3, %v13774_v38  ;;  %v1235_v30 = vrot.slane %v1233_v3, 5  ;;  %v14376_v32 = vrot.slane %v1239_v4, 5  ;;  %v1245_v33 = vrot.slane %v1243_v5, 4  ;;  %724 = vst.msk [vmem:[#allocation2 + $0x2c] sm:$0x1] %vm274_vm1, %v11131_v21  ;;  %v526_v34 = vsel %vm14199_vm6, %v14211_v26, 0 }
  0x69   : > { %v1256_v35 = vrot.slane %v1254_v13, 4  ;;  %v1259_v36 = vrot.slane %v1257_v14, 5  ;;  %v1267_v37 = vshrl.u32 %v1140_v8, 16  ;;  %v11134_v38 = vcombine.low %v526_v34, %v526_v34  ;;  %v14399_v4 = vld [vmem:[#allocation2 + $0x40] sm:$0xf] }
  0x6a   : > { %v1278_v40 = vshrl.u32 %v1142_v27, 16  ;;  %v1281_v41 = vshll.u32 %v1142_v27, 16  ;;  %v1287_v43 = vshll.u32 %v1143_v29, 16  ;;  %v14384_v44 = vcombine.low %v1194_v17, %v1204_v22 }
  0x6b   : > { %v14386_v48 = vrot.slane %v1212_v18, 4  ;;  %727 = vst.msk [vmem:[#allocation2 + $0x38] sm:$0x1] %vm274_vm1, %v11134_v38  ;;  %v1291_v49 = vshrl.u32 %v1143_v29, 16  ;;  %v527_v26 = vsel %vm14199_vm6, %v14221_v39, 0  ;;  %v14392_v50 = vrot.slane %v1222_v23, 4 }
  0x6c   : > { %v14394_v52 = vrot.slane %v1225_v20, 5  ;;  %v1236_v53 = vor.u32 %v1235_v30, %v1232_v24  ;;  %v1246_v55 = vor.u32 %v1245_v33, %v14376_v32  ;;  %v1260_v60 = vor.u32 %v1259_v36, %v1256_v35  ;;  %v14401_v5 = vld [vmem:[#allocation2 + $0x20] sm:$0x1]  ;;  %v1148_v24 = vld [vmem:[#allocation2 + $0x48] sm:$0xf] }
  0x6d   : > { %v14397_v63 = vrot.slane %v1263_v25, 5  ;;  %v1269_v0 = vrot.slane %v1267_v37, 4  ;;  %v11137_v3 = vcombine.low %v527_v26, %v527_v26  ;;  %v1280_v39 = vrot.slane %v1278_v40, 4  ;;  %v14435_v37 = vld [vmem:[#allocation2 + $0x4c] sm:$0xf] }
  0x6e   : > { %v1283_v7 = vrot.slane %v1281_v41, 5  ;;  %v14403_v8 = vrot.slane %v1287_v43, 5  ;;  %v1305_v17 = vshll.u32 %v1145_v56, 16  ;;  %v528_v18 = vsel %vm14199_vm6, %v14235_v51, 0  ;;  %v13786_v26 = vld [vmem:[#allocation2 + $0xa8] sm:$0xff]  }
  0x6f   : > { %12383 = vmatmul.mubr.msk.bf16.gmra.mrb[16].mxu0 %vm884_vm3, %v13776_v12  ;;  %v1293_v12 = vrot.slane %v1291_v49, 4  ;;  %v14409_v14 = vld [vmem:[#allocation2 + $0x2c] sm:$0x1]  ;;  %730 = vst.msk [vmem:[#allocation2 + $0x44] sm:$0x1] %vm274_vm1, %v11137_v3  ;;  %v1228_v20 = vsel %vm14355_vm9, %v14392_v50, %v14394_v52  ;;  %v14419_v21 = vrot.slane %v1236_v53, 4  ;;  %v1270_v51 = vor.u32 %v1269_v0, %v14397_v63 }
  0x70   : > { %12386 = vmatprep.mubr.msk.bf16.mxu0 %vm884_vm3, %v13778_v16  ;;  %17855 = vst [vmem:[#allocation11_spill] sm:$0xff] %v14409_v14  ;;  %v1302_v16 = vshrl.u32 %v1145_v56, 16  ;;  %v1311_v22 = vshll.u32 %v14399_v4, 16  ;;  %v1315_v23 = vshrl.u32 %v14399_v4, 16  ;;  %v14424_v25 = vrot.slane %v1246_v55, 4  ;;  %v13784_v49 = vld [vmem:[#allocation2 + $0x9c] sm:$0xff]  }
  0x71   : > { %v1249_v27 = vshll.u32 %v14401_v5, 16  ;;  %v14427_v29 = vrot.slane %v1260_v60, 4  ;;  %v1273_v30 = vshll.u32 %v14409_v14, 16  ;;  %v1284_v34 = vor.u32 %v1283_v7, %v1280_v39  ;;  %v1151_v39 = vld [vmem:[#allocation2 + $0x54] sm:$0xf] }
  0x72   : > { %v14432_v33 = vld [vmem:[#allocation2 + $0x38] sm:$0x1]  ;;  %v1294_v35 = vor.u32 %v1293_v12, %v14403_v8  ;;  %v11140_v36 = vcombine.low %v528_v18, %v528_v18  ;;  %v1304_v38 = vrot.slane %v1302_v16, 4  ;;  %v1307_v40 = vrot.slane %v1305_v17, 5  ;;  %v14505_v50 = vld [vmem:[#allocation2 + $0x70] sm:$0xf] }
  0x73   : > { %17856 = vst [vmem:[#allocation12_spill] sm:$0xff] %v14432_v33  ;;  %v1326_v41 = vshrl.u32 %v1148_v24, 16  ;;  %v1329_v43 = vshll.u32 %v1148_v24, 16  ;;  %v1242_v53 = vsel %vm14355_vm9, %v14419_v21, %v14376_v32  ;;  %v1297_v55 = vshll.u32 %v14432_v33, 16  ;;  %v14450_v17 = vld [vmem:[#allocation2 + $0x58] sm:$0xf] }
  0x74   : > { %v14442_v56 = vrot.slane %v1311_v22, 5  ;;  %733 = vst.msk [vmem:[#allocation2 + $0x50] sm:$0x1] %vm274_vm1, %v11140_v36  ;;  %v1271_v60 = vrot.slane %v1270_v51, 4  ;;  %v1335_v0 = vshll.u32 %v14435_v37, 16  ;;  %v1339_v3 = vshrl.u32 %v14435_v37, 16 }
  0x75   : > { %v1275_v7 = vrot.slane %v1273_v30, 5  ;;  %v1285_v12 = vrot.slane %v1284_v34, 4  ;;  %v1295_v16 = vrot.slane %v1294_v35, 4  ;;  %v529_v32 = vsel %vm14199_vm6, %v14245_v61, 0 }
  0x76   : > { %v14452_v18 = vld [vmem:[#allocation2 + $0x44] sm:$0x1]  ;;  %v1308_v21 = vor.u32 %v1307_v40, %v1304_v38  ;;  %v1328_v22 = vrot.slane %v1326_v41, 4  ;;  %v11143_v24 = vcombine.low %v529_v32, %v529_v32  ;;  %v1350_v36 = vshrl.u32 %v1151_v39, 16  ;;  %v13788_v32 = vld [vmem:[#allocation2 + $0xb4] sm:$0xff]  }
  0x77   : > { %12387 = vmatmul.mubr.msk.bf16.gmra.mrb[20].mxu0 %vm884_vm3, %v13780_v57  ;;  %v1317_v57 = vrot.slane %v1315_v23, 4  ;;  %v1331_v23 = vrot.slane %v1329_v43, 5  ;;  %v1353_v13 = vshll.u32 %v1151_v39, 16  ;;  %v14456_v30 = vrot.slane %v1335_v0, 5 }
  0x78   : > { %12390 = vmatprep.mubr.msk.bf16.mxu0 %vm884_vm3, %v13782_v58  ;;  %v1251_v58 = vrot.slane %v1249_v27, 5  ;;  %v1299_v27 = vrot.slane %v1297_v55, 5  ;;  %v1341_v34 = vrot.slane %v1339_v3, 4  ;;  %736 = vst.msk [vmem:[#allocation2 + $0x5c] sm:$0x1] %vm274_vm1, %v11143_v24  ;;  %v1359_v61 = vshll.u32 %v14450_v17, 16 }
  0x79   : > { %v1318_v51 = vor.u32 %v1317_v57, %v14442_v56  ;;  %v1363_v35 = vshrl.u32 %v14450_v17, 16  ;;  %v1321_v38 = vshll.u32 %v14452_v18, 16  ;;  %v1352_v40 = vrot.slane %v1350_v36, 4  ;;  %v1154_v24 = vld [vmem:[#allocation2 + $0x60] sm:$0xf] }
  0x7a   : > { %v1355_v41 = vrot.slane %v1353_v13, 5  ;;  %v530_v43 = vsel %vm14199_vm6, %v14247_v1, 0  ;;  %v1332_v57 = vor.u32 %v1331_v23, %v1328_v22  ;;  %v14472_v0 = vrot.slane %v1359_v61, 5 }
  0x7b   : > { %v14470_v55 = vld [vmem:[#allocation2 + $0x50] sm:$0x1]  ;;  %v1365_v3 = vrot.slane %v1363_v35, 4  ;;  %v1276_v13 = vsel %vm14355_vm9, %v1271_v60, %v1275_v7  ;;  %v1290_v1 = vsel %vm14355_vm9, %v1285_v12, %v14403_v8  ;;  %v11146_v39 = vcombine.low %v530_v43, %v530_v43  ;;  %v1157_v35 = vld [vmem:[#allocation2 + $0x6c] sm:$0xf] }
  0x7c   : > { %v1319_v22 = vrot.slane %v1318_v51, 4  ;;  %v1342_v23 = vor.u32 %v1341_v34, %v14456_v30  ;;  %v1323_v36 = vrot.slane %v1321_v38, 5  ;;  %v531_v8 = vsel %vm14199_vm6, %v14249_v2, 0 }
  0x7d   : > { %739 = vst.msk [vmem:[#allocation2 + $0x68] sm:$0x1] %vm274_vm1, %v11146_v39  ;;  %v17857_v60 = vsel %vm14355_vm9, %v14386_v48, %v14361_v62  ;;  %v2137_v12 = vsel %vm933_vm2, %v14318_v11, 0  ;;  %v1374_v51 = vshrl.u32 %v1154_v24, 16  ;;  %v1377_v34 = vshll.u32 %v1154_v24, 16 }
  0x7e   : > { %v11206_v7 = vcombine.low %v17857_v60, %v1228_v20  ;;  %v11149_v61 = vcombine.low %v531_v8, %v531_v8  ;;  %v1343_v48 = vrot.slane %v1342_v23, 4  ;;  %v1160_v20 = vld [vmem:[#allocation2 + $0x78] sm:$0xf]  ;;  %vm1924_vm11 = vcmask 1046532  }
  0x7f   : > { %12391 = vmatmul.mubr.msk.bf16.gmra.mrb[24].mxu0 %vm884_vm3, %v13784_v49  ;;  %v1266_v49 = vsel %vm14355_vm9, %v14427_v29, %v14397_v63  ;;  %v1300_v63 = vsel %vm14355_vm9, %v1295_v16, %v1299_v27  ;;  %v1309_v29 = vrot.slane %v1308_v21, 4  ;;  %v1333_v16 = vrot.slane %v1332_v57, 4  ;;  %v14503_v27 = vld [vmem:[#allocation2 + $0x64] sm:$0xf]  ;;  %v14532_v57 = vld [vmem:[#allocation2 + $0x7c] sm:$0xf]  ;;  %vm14717_vm12 = vmor %vm1923_vm10, %vm1924_vm11 }
  0x80   : > { %12394 = vmatprep.mubr.msk.bf16.mxu0 %vm884_vm3, %v13786_v26  ;;  %v1252_v26 = vsel %vm14355_vm9, %v14424_v25, %v1251_v58  ;;  %v1345_v25 = vshll.u32 %v14470_v55, 16  ;;  %v1356_v58 = vor.u32 %v1355_v41, %v1352_v40  ;;  %v1366_v21 = vor.u32 %v1365_v3, %v14472_v0  ;;  %742 = vst.msk [vmem:[#allocation2 + $0x74] sm:$0x1] %vm274_vm1, %v11149_v61 }
  0x81   : > { %v11207_v2 = vcombine.low %v1242_v53, %v1252_v26  ;;  %v14508_v52 = vcombine.low %v1266_v49, %v1276_v13  ;;  %v14510_v62 = vcombine.low %v1290_v1, %v1300_v63  ;;  %v1314_v11 = vsel %vm14355_vm9, %v1309_v29, %v14442_v56 }
  0x82   : > { %v1324_v53 = vsel %vm14355_vm9, %v1319_v22, %v1323_v36  ;;  %v1347_v38 = vrot.slane %v1345_v25, 5  ;;  %v14519_v40 = vrot.slane %v1356_v58, 4  ;;  %v1383_v41 = vshll.u32 %v14503_v27, 16  ;;  %v1163_v22 = vld [vmem:[#allocation2 + $0x84] sm:$0xf] }
  0x83   : > { %v1338_v43 = vsel %vm14355_vm9, %v1333_v16, %v14456_v30  ;;  %v14526_v56 = vrot.slane %v1366_v21, 4  ;;  %v1387_v49 = vshrl.u32 %v14503_v27, 16  ;;  %v14534_v3 = vrot.slane %v1374_v51, 4  ;;  %v14553_v25 = vld [vmem:[%s17737_s1 + $0x6] sm:$0x3] }
  0x84   : > { %v1379_v26 = vrot.slane %v1377_v34, 5  ;;  %v1398_v13 = vshrl.u32 %v1157_v35, 16  ;;  %v1401_v1 = vshll.u32 %v1157_v35, 16  ;;  %v14536_v39 = vcombine.low %v1314_v11, %v1324_v53  ;;  %17858 = vst [vmem:[#allocation13_spill] sm:$0xff] %v14553_v25  ;;  %v14558_v21 = vld [vmem:[#allocation2 + $0x88] sm:$0xf] }
  0x85   : > { %v1407_v30 = vshll.u32 %v14505_v50, 16  ;;  %v1411_v63 = vshrl.u32 %v14505_v50, 16  ;;  %v14548_v24 = vrot.slane %v1383_v41, 5  ;;  %v1422_v36 = vshrl.u32 %v1160_v20, 16 }
  0x86   : > { %v1389_v58 = vrot.slane %v1387_v49, 4  ;;  %v1425_v8 = vshll.u32 %v1160_v20, 16  ;;  %v1431_v60 = vshll.u32 %v14532_v57, 16  ;;  %v1435_v16 = vshrl.u32 %v14532_v57, 16 }
  0x87   : > { %12395 = vmatmul.mubr.msk.bf16.gmra.mrb[28].mxu0 %vm884_vm3, %v13788_v32  ;;  %v14538_v32 = vld [vmem:[#allocation2 + $0x5c] sm:$0x1]  ;;  %v1400_v34 = vrot.slane %v1398_v13, 4  ;;  %v1403_v61 = vrot.slane %v1401_v1, 5  ;;  %v533_v35 = vsel %vm14199_vm6, %v14283_v42, 0  ;;  %v14571_v53 = vrot.slane %v1407_v30, 5 }
  0x88   : > { %12400 = vmatprep.mubr.msk.bf16.mxu0 %vm884_vm3, %v14384_v44  ;;  %v532_v44 = vsel %vm14199_vm6, %v14275_v31, 0  ;;  %v1348_v31 = vsel %vm14355_vm9, %v1343_v48, %v1347_v38  ;;  %v1369_v51 = vshll.u32 %v14538_v32, 16  ;;  %v14567_v48 = vld [vmem:[#allocation2 + $0x68] sm:$0x1]  ;;  %v14569_v20 = vld [vmem:[#allocation2 + $0x74] sm:$0x1]  ;;  %v11155_v41 = vcombine.low %v533_v35, %v533_v35 }
  0x89   : > { %v11152_v29 = vcombine.low %v532_v44, %v532_v44  ;;  %v14565_v11 = vcombine.low %v1338_v43, %v1348_v31  ;;  %v1413_v38 = vrot.slane %v1411_v63, 4  ;;  %v1424_v49 = vrot.slane %v1422_v36, 4  ;;  %v1166_v31 = vld [vmem:[#allocation2 + $0x90] sm:$0xf] }
  0x8a   : > { %v1427_v44 = vrot.slane %v1425_v8, 5  ;;  %v14574_v13 = vrot.slane %v1431_v60, 5  ;;  %v1446_v42 = vshrl.u32 %v1163_v22, 16  ;;  %v1390_v43 = vor.u32 %v1389_v58, %v14548_v24  ;;  %748 = vst.msk [vmem:[#allocation2 + $0x8c] sm:$0x1] %vm274_vm1, %v11155_v41 }
  0x8b   : > { %745 = vst.msk [vmem:[#allocation2 + $0x80] sm:$0x1] %vm274_vm1, %v11152_v29  ;;  %v1437_v1 = vrot.slane %v1435_v16, 4  ;;  %v1449_v29 = vshll.u32 %v1163_v22, 16  ;;  %v1459_v63 = vshrl.u32 %v14558_v21, 16  ;;  %v1404_v36 = vor.u32 %v1403_v61, %v1400_v34 }
  0x8c   : > { %v1448_v30 = vrot.slane %v1446_v42, 4  ;;  %v534_v58 = vsel %vm14199_vm6, %v14287_v45, 0  ;;  %v14588_v22 = vld [vmem:[#allocation2 + $0x94] sm:$0xf]  ;;  %v1414_v8 = vor.u32 %v1413_v38, %v14571_v53  ;;  %v1371_v42 = vrot.slane %v1369_v51, 5 }
  0x8d   : > { %v1461_v35 = vrot.slane %v1459_v63, 4  ;;  %v11158_v41 = vcombine.low %v534_v58, %v534_v58  ;;  %v1428_v23 = vor.u32 %v1427_v44, %v1424_v49  ;;  %v1438_v34 = vor.u32 %v1437_v1, %v14574_v13  ;;  %v1169_v49 = vld [vmem:[#allocation2 + $0x9c] sm:$0xf]  ;;  %v14613_v1 = vld [vmem:[#allocation2 + $0xa0] sm:$0xf] }
  0x8e   : > { %v1391_v33 = vrot.slane %v1390_v43, 4  ;;  %v1473_v63 = vshll.u32 %v1166_v31, 16  ;;  %v535_v51 = vsel %vm14199_vm6, %v14289_v46, 0  ;;  %v14606_v44 = vrot.slane %v1404_v36, 4  ;;  %17859 = vst [vmem:[#allocation14_spill] sm:$0xff] %v14613_v1 }
  0x8f   : > { %12401 = vmatmul.mubr.msk.bf16.vlgmr.msra.gmra.mrb[0].mxu0 %vm884_vm3, %v11206_v7  ;;  %v1380_v7 = vor.u32 %v1379_v26, %v14534_v3  ;;  %v1417_v3 = vshll.u32 %v14569_v20, 16  ;;  %v1451_v26 = vrot.slane %v1449_v29, 5  ;;  %751 = vst.msk [vmem:[#allocation2 + $0x98] sm:$0x1] %vm274_vm1, %v11158_v41  ;;  %v1483_v46 = vshrl.u32 %v14588_v22, 16 }
  0x90   : > { %12433 = vmatpush3.bf16.msra.mxu0 %v2137_v12  ;;  %12404 = vmatprep.mubr.msk.bf16.mxu0 %vm884_vm3, %v11207_v2  ;;  %v1393_v12 = vshll.u32 %v14567_v48, 16  ;;  %v1455_v2 = vshll.u32 %v14558_v21, 16  ;;  %v1172_v58 = vld [vmem:[#allocation2 + $0xa8] sm:$0xf]  ;;  %v1931_v15 = vrot.slane %v14335_v28, 5 }
  0x91   : > { %13697 = vmatprep.subr.msk.bf16.mxu0 %vm933_vm2, %v14553_v25  ;;  %v1381_v29 = vrot.slane %v1380_v7, 4  ;;  %v1452_v45 = vor.u32 %v1451_v26, %v1448_v30  ;;  %v14608_v7 = vrot.slane %v1414_v8, 4  ;;  %v14610_v43 = vrot.slane %v1417_v3, 5  ;;  %v14630_v26 = vld [vmem:[#allocation2 + $0x8c] sm:$0x1] }
  0x92   : > { %v14591_v60 = vld [vmem:[#allocation2 + $0x80] sm:$0x1]  ;;  %v14593_v16 = vrot.slane %v1455_v2, 5  ;;  %v1395_v14 = vrot.slane %v1393_v12, 5  ;;  %v1470_v2 = vshrl.u32 %v1166_v31, 16  ;;  %v14615_v12 = vrot.slane %v1428_v23, 4 }
  0x93   : > { %v1441_v61 = vshll.u32 %v14591_v60, 16  ;;  %v14617_v30 = vrot.slane %v1438_v34, 4  ;;  %v1386_v36 = vsel %vm14355_vm9, %v1381_v29, %v14548_v24  ;;  %v11161_v23 = vcombine.low %v535_v51, %v535_v51 }
  0x94   : > { %v1462_v38 = vor.u32 %v1461_v35, %v14593_v16  ;;  %v1396_v3 = vsel %vm14355_vm9, %v1391_v33, %v1395_v14  ;;  %v14632_v8 = vrot.slane %v1452_v45, 4  ;;  %v1472_v41 = vrot.slane %v1470_v2, 4 }
  0x95   : > { %v14619_v31 = vrot.slane %v1441_v61, 5  ;;  %v1475_v34 = vrot.slane %v1473_v63, 5  ;;  %754 = vst.msk [vmem:[#allocation2 + $0xa4] sm:$0x1] %vm274_vm1, %v11161_v23  ;;  %v536_v14 = vsel %vm14199_vm6, %v14291_v47, 0  ;;  %v1465_v33 = vshll.u32 %v14630_v26, 16 }
  0x96   : > { %v14634_v35 = vrot.slane %v1462_v38, 4  ;;  %v1485_v24 = vrot.slane %v1483_v46, 4  ;;  %v1503_v29 = vshll.u32 %v14613_v1, 16  ;;  %v1507_v45 = vshrl.u32 %v14613_v1, 16  ;;  %v14645_v38 = vld [vmem:[#allocation2 + $0xac] sm:$0xf] }
  0x97   : > { %12405 = vmatmul.mubr.msk.bf16.gmra.mrb[4].mxu0 %vm884_vm3, %v14508_v52  ;;  %v1479_v52 = vshll.u32 %v14588_v22, 16  ;;  %v17860_v2 = vsel %vm14355_vm9, %v14519_v40, %v14472_v0  ;;  %v11213_v51 = vcombine.low %v1386_v36, %v1396_v3  ;;  %v1410_v47 = vsel %vm14355_vm9, %v14606_v44, %v14571_v53  ;;  %v1175_v1 = vld [vmem:[#allocation2 + $0xb4] sm:$0xf]  ;;  %v14664_v53 = vld [vmem:[#allocation2 + $0xb8] sm:$0xf] }
  0x98   : > { %12408 = vmatprep.mubr.msk.bf16.mxu0 %vm884_vm3, %v14510_v62  ;;  %v1372_v62 = vsel %vm14355_vm9, %v14526_v56, %v1371_v42  ;;  %v1494_v56 = vshrl.u32 %v1169_v49, 16  ;;  %v1497_v42 = vshll.u32 %v1169_v49, 16  ;;  %v14656_v49 = vld [vmem:[#allocation2 + $0x98] sm:$0x1]  ;;  %v11164_v46 = vcombine.low %v536_v14, %v536_v14 }
  0x99   : > { %v14636_v61 = vrot.slane %v1479_v52, 5  ;;  %v11212_v63 = vcombine.low %v17860_v2, %v1372_v62  ;;  %v1476_v52 = vor.u32 %v1475_v34, %v1472_v41  ;;  %v1518_v23 = vshrl.u32 %v1172_v58, 16 }
  0x9a   : > { %v1521_v25 = vshll.u32 %v1172_v58, 16  ;;  %v1496_v0 = vrot.slane %v1494_v56, 4  ;;  %v1499_v40 = vrot.slane %v1497_v42, 5  ;;  %v1527_v62 = vshll.u32 %v14645_v38, 16  ;;  %757 = vst.msk [vmem:[#allocation2 + $0xb0] sm:$0x1] %vm274_vm1, %v11164_v46 }
  0x9b   : > { %v1531_v36 = vshrl.u32 %v14645_v38, 16  ;;  %v1489_v44 = vshll.u32 %v14656_v49, 16  ;;  %v14667_v3 = vrot.slane %v1503_v29, 5  ;;  %v537_v58 = vsel %vm14199_vm6, %v14311_v9, 0 }
  0x9c   : > { %v1523_v41 = vrot.slane %v1521_v25, 5  ;;  %v14673_v34 = vrot.slane %v1527_v62, 5  ;;  %v1420_v42 = vsel %vm14355_vm9, %v14608_v7, %v14610_v43  ;;  %v1434_v14 = vsel %vm14355_vm9, %v14615_v12, %v14574_v13 }
  0x9d   : > { %v1533_v56 = vrot.slane %v1531_v36, 4  ;;  %v1486_v29 = vor.u32 %v1485_v24, %v14636_v61  ;;  %v11167_v9 = vcombine.low %v537_v58, %v537_v58  ;;  %v1444_v25 = vsel %vm14355_vm9, %v14617_v30, %v14619_v31 }
  0x9e   : > { %v1467_v2 = vrot.slane %v1465_v33, 5  ;;  %v1542_v46 = vshrl.u32 %v1175_v1, 16  ;;  %v1477_v62 = vrot.slane %v1476_v52, 4  ;;  %v1500_v7 = vor.u32 %v1499_v40, %v1496_v0  ;;  %v1859_v52 = vld [vmem:[#allocation2] sm:$0xe] }
  0x9f   : > { %12409 = vmatmul.mubr.msk.bf16.gmra.mrb[8].mxu0 %vm884_vm3, %v14536_v39  ;;  %v1509_v39 = vrot.slane %v1507_v45, 4  ;;  %v14684_v45 = vld [vmem:[#allocation2 + $0xa4] sm:$0x1]  ;;  %760 = vst.msk [vmem:[#allocation2 + $0xbc] sm:$0x1] %vm274_vm1, %v11167_v9  ;;  %v1551_v43 = vshll.u32 %v14664_v53, 16 }
  0xa0   : > { %12412 = vmatprep.mubr.msk.bf16.mxu0 %vm884_vm3, %v14565_v11  ;;  %v1520_v11 = vrot.slane %v1518_v23, 4  ;;  %v1545_v23 = vshll.u32 %v1175_v1, 16  ;;  %v1555_v13 = vshrl.u32 %v14664_v53, 16  ;;  %v1513_v24 = vshll.u32 %v14684_v45, 16 }
  0xa1   : > { %v1510_v12 = vor.u32 %v1509_v39, %v14667_v3  ;;  %v1544_v36 = vrot.slane %v1542_v46, 4  ;;  %v1487_v30 = vrot.slane %v1486_v29, 4  ;;  %v1491_v31 = vrot.slane %v1489_v44, 5  ;;  %v14698_v0 = vld [vmem:[#allocation2 + $0xb0] sm:$0x1] }
  0xa2   : > { %v1547_v58 = vrot.slane %v1545_v23, 5  ;;  %v1524_v33 = vor.u32 %v1523_v41, %v1520_v11  ;;  %v1534_v1 = vor.u32 %v1533_v56, %v14673_v34  ;;  %v14700_v40 = vrot.slane %v1551_v43, 5  ;;  %v1860_v29 = vld [vmem:[#allocation2 + $0xc] sm:$0xe] }
  0xa3   : > { %v1557_v9 = vrot.slane %v1555_v13, 4  ;;  %v1928_v39 = vrot.slane %v14313_v10, 5  ;;  %v11214_v46 = vcombine.low %v1410_v47, %v1420_v42  ;;  %v1537_v44 = vshll.u32 %v14698_v0, 16 }
  0xa4   : > { %v1501_v11 = vrot.slane %v1500_v7, 4  ;;  %v1511_v41 = vrot.slane %v1510_v12, 4  ;;  %v1548_v56 = vor.u32 %v1547_v58, %v1544_v36  ;;  %v11215_v23 = vcombine.low %v1434_v14, %v1444_v25 }
  0xa5   : > { %v11237_v43 = vrot.slane %v1859_v52, 9  ;;  %v1930_v13 = vrot.slane %v1928_v39, 4  ;;  %v1468_v10 = vsel %vm14355_vm9, %v14634_v35, %v1467_v2  ;;  %v1525_v47 = vrot.slane %v1524_v33, 4 }
  0xa6   : > { %v1535_v42 = vrot.slane %v1534_v1, 4  ;;  %v17861_v7 = vmov 0  ;;  %v1482_v28 = vsel %vm14355_vm9, %v1477_v62, %v14636_v61  ;;  %v1492_v14 = vsel %vm14355_vm9, %v1487_v30, %v1491_v31  ;;  %v14742_v30 = vld [vmem:[#allocation2 + $0x18] sm:$0xe] }
  0xa7   : > { %12413 = vmatmul.mubr.msk.bf16.gmra.mrb[12].mxu0 %vm884_vm3, %v11212_v63  ;;  %v1458_v63 = vsel %vm14355_vm9, %v14632_v8, %v14593_v16  ;;  %v14712_v16 = vld [vmem:[#allocation2 + $0xbc] sm:$0x1]  ;;  %v1558_v8 = vor.u32 %v1557_v9, %v14700_v40  ;;  %v17862_v7 = vsel %vm14717_vm12, 4294967295, %v17861_v7  ;;  %v1539_v35 = vrot.slane %v1537_v44, 5  ;;  %v1865_v9 = vld [vmem:[#allocation2 + $0x48] sm:$0xe] }
  0xa8   : > { %12416 = vmatprep.mubr.msk.bf16.mxu0 %vm884_vm3, %v11213_v51  ;;  %v1515_v51 = vrot.slane %v1513_v24, 5  ;;  %17863 = vst [vmem:[#allocation15_spill] sm:$0xff] %v17862_v7  ;;  %v1561_v25 = vshll.u32 %v14712_v16, 16  ;;  %v1506_v2 = vsel %vm14355_vm9, %v1501_v11, %v14667_v3  ;;  %v1549_v24 = vrot.slane %v1548_v56, 4  ;;  %v1864_v3 = vld [vmem:[#allocation2 + $0x3c] sm:$0xe] }
  0xa9   : > { %v14735_v36 = vsel %vm14717_vm12, %v11237_v43, %v1928_v39  ;;  %v14739_v61 = vsel %vm14717_vm12, %v1930_v13, %v1931_v15  ;;  %v11238_v62 = vrot.slane %v1860_v29, 9  ;;  %v1935_v58 = vrot.slane %v14341_v6, 5  ;;  %v1866_v44 = vld [vmem:[#allocation2 + $0x54] sm:$0xe] }
  0xaa   : > { %v1516_v12 = vsel %vm14355_vm9, %v1511_v41, %v1515_v51  ;;  %v11216_v31 = vcombine.low %v1458_v63, %v1468_v10  ;;  %v11217_v33 = vcombine.low %v1482_v28, %v1492_v14  ;;  %v1559_v1 = vrot.slane %v1558_v8, 4 }
  0xab   : > { %v1563_v52 = vrot.slane %v1561_v25, 5  ;;  %v1530_v15 = vsel %vm14355_vm9, %v1525_v47, %v14673_v34  ;;  %v1540_v39 = vsel %vm14355_vm9, %v1535_v42, %v1539_v35  ;;  %v1938_v6 = vrot.slane %v14359_v19, 5  ;;  %v1867_v47 = vld [vmem:[#allocation2 + $0x60] sm:$0xe]  ;;  %v1868_v35 = vld [vmem:[#allocation2 + $0x6c] sm:$0xe] }
  0xac   : > { %v1554_v63 = vsel %vm14355_vm9, %v1549_v24, %v14700_v40  ;;  %v11254_v11 = vcombine.low %v14735_v36, %v14739_v61  ;;  %v11239_v41 = vrot.slane %v14742_v30, 9  ;;  %v1942_v51 = vrot.slane %v14351_v54, 5  ;;  %v1862_v61 = vld [vmem:[#allocation2 + $0x24] sm:$0xe] }
  0xad   : > { %v14762_v34 = vsel %vm14717_vm12, %v11238_v62, %v1935_v58  ;;  %v14764_v56 = vrot.slane %v1935_v58, 4  ;;  %v11242_v29 = vrot.slane %v1864_v3, 9  ;;  %v11219_v43 = vcombine.low %v1530_v15, %v1540_v39  ;;  %v1869_v58 = vld [vmem:[#allocation2 + $0x78] sm:$0xe] }
  0xae   : > { %v1564_v40 = vsel %vm14355_vm9, %v1559_v1, %v1563_v52  ;;  %v1945_v13 = vrot.slane %v14401_v5, 5  ;;  %v1966_v10 = vrot.slane %v14452_v18, 5  ;;  %v11243_v28 = vrot.slane %v1865_v9, 9  ;;  %v1870_v1 = vld [vmem:[#allocation2 + $0x84] sm:$0xe] }
  0xaf   : > { %12417 = vmatmul.mubr.msk.bf16.gmra.mrb[16].mxu0 %vm884_vm3, %v11214_v46  ;;  %v14745_v46 = vcombine.low %v1506_v2, %v1516_v12  ;;  %v1970_v14 = vrot.slane %v14435_v37, 5  ;;  %v1973_v25 = vrot.slane %v14470_v55, 5  ;;  %v11244_v2 = vrot.slane %v1866_v44, 9 }
  0xb0   : > { %12420 = vmatprep.mubr.msk.bf16.mxu0 %vm884_vm3, %v11215_v23  ;;  %v1963_v23 = vrot.slane %v14399_v4, 5  ;;  %v14778_v4 = vrot.slane %v1942_v51, 4  ;;  %v1977_v12 = vrot.slane %v14450_v17, 5  ;;  %v14783_v18 = vcombine.low %v1554_v63, %v1564_v40  ;;  %v1871_v40 = vld [vmem:[#allocation2 + $0x90] sm:$0xe] }
  0xb1   : > { %v14791_v37 = vsel %vm14717_vm12, %v11243_v28, %v1970_v14  ;;  %v1972_v62 = vrot.slane %v1970_v14, 4  ;;  %v11245_v9 = vrot.slane %v1867_v47, 9  ;;  %v1984_v15 = vrot.slane %v14503_v27, 5 }
  0xb2   : > { %v14773_v42 = vsel %vm14717_vm12, %v11242_v29, %v1963_v23  ;;  %v1965_v8 = vrot.slane %v1963_v23, 4  ;;  %v14798_v17 = vsel %vm14717_vm12, %v11244_v2, %v1977_v12  ;;  %v1979_v3 = vrot.slane %v1977_v12, 4 }
  0xb3   : > { %v14803_v52 = vsel %vm14717_vm12, %v1972_v62, %v1973_v25  ;;  %v11246_v63 = vrot.slane %v1868_v35, 9  ;;  %v14818_v23 = vsel %vm14717_vm12, %v11245_v9, %v1984_v15  ;;  %v1986_v27 = vrot.slane %v1984_v15, 4 }
  0xb4   : > { %v14787_v24 = vsel %vm14717_vm12, %v1965_v8, %v1966_v10  ;;  %v11260_v39 = vcombine.low %v14791_v37, %v14803_v52  ;;  %v11247_v8 = vrot.slane %v1869_v58, 9  ;;  %v1998_v28 = vrot.slane %v14532_v57, 5  ;;  %v1873_v58 = vld [vmem:[#allocation2 + $0xa8] sm:$0xe]  ;;  %v2692_v52 = vld [vmem:[#allocation2 + $0x14] sm:$0x1] }
  0xb5   : > { %v11259_v55 = vcombine.low %v14773_v42, %v14787_v24  ;;  %v2001_v35 = vrot.slane %v14591_v60, 5  ;;  %v11248_v25 = vrot.slane %v1870_v1, 9  ;;  %v2005_v2 = vrot.slane %v14558_v21, 5  ;;  %v1874_v1 = vld [vmem:[#allocation2 + $0xb4] sm:$0xe] }
  0xb6   : > { %v14840_v57 = vsel %vm14717_vm12, %v11247_v8, %v1998_v28  ;;  %v2000_v62 = vrot.slane %v1998_v28, 4  ;;  %v11249_v15 = vrot.slane %v1871_v40, 9  ;;  %v11251_v28 = vrot.slane %v1873_v58, 9  ;;  %v2690_v42 = vld [vmem:[#allocation2 + $0xc] sm:$0xf] }
  0xb7   : > { %12421 = vmatmul.mubr.msk.bf16.gmra.mrb[20].mxu0 %vm884_vm3, %v11216_v31  ;;  %v1980_v31 = vrot.slane %v14538_v32, 5  ;;  %v1991_v32 = vrot.slane %v14505_v50, 5  ;;  %v1872_v50 = vld [vmem:[#allocation2 + $0x9c] sm:$0xe]  ;;  %v14848_v21 = vsel %vm14717_vm12, %v11248_v25, %v2005_v2  ;;  %v1946_v19 = vsel %vm14717_vm12, %v14778_v4, %v1945_v13 }
  0xb8   : > { %12424 = vmatprep.mubr.msk.bf16.mxu0 %vm884_vm3, %v11217_v33  ;;  %v1987_v33 = vrot.slane %v14567_v48, 5  ;;  %v1994_v48 = vrot.slane %v14569_v20, 5  ;;  %v14854_v9 = vsel %vm14717_vm12, %v2000_v62, %v2001_v35  ;;  %v13804_v35 = vld [vmem:[%s14179_s9 + $0x78] sm:$0xff]   ;;  %v11252_v62 = vrot.slane %v1874_v1, 9  ;;  %s14052_s9 = smov [#allocation7]  }
  0xb9   : > { %v14811_v44 = vsel %vm14717_vm12, %v1979_v3, %v1980_v31  ;;  %v14823_v10 = vsel %vm14717_vm12, %v11246_v63, %v1991_v32  ;;  %v1993_v47 = vrot.slane %v1991_v32, 4  ;;  %v2007_v3 = vrot.slane %v2005_v2, 4  ;;  %v17866_v13 = vld [vmem:[#allocation11_spill] sm:$0xff]  ;;  %s13984_s10 = sshll.u32 %s14052_s9, 4  ;;  %s13985_s10 = int_to_ptr.vmem [resolvable:$false] %s13984_s10 }
  0xba   : > { %v11261_v29 = vcombine.low %v14798_v17, %v14811_v44  ;;  %v14828_v14 = vsel %vm14717_vm12, %v1986_v27, %v1987_v33  ;;  %v2008_v31 = vrot.slane %v14630_v26, 5  ;;  %v2015_v33 = vrot.slane %v14656_v49, 5  ;;  %v17864_v27 = vld [vmem:[#allocation14_spill] sm:$0xff]  ;;  %v2693_v17 = vld [vmem:[#allocation2 + $0x18] sm:$0xf]  ;;  %s13986_s11 = scalar_lea.vmem %s13985_s10, 4096  ;;  %p13987_p2 = scmp.lt.s32.totalorder %s17689_s26, %s13985_s10 }
  0xbb   : > { %v11262_v20 = vcombine.low %v14818_v23, %v14828_v14  ;;  %v14836_v12 = vsel %vm14717_vm12, %v1993_v47, %v1994_v48  ;;  %v11264_v63 = vcombine.low %v14840_v57, %v14854_v9  ;;  %v11250_v26 = vrot.slane %v1872_v50, 9  ;;  %v2696_v14 = vld [vmem:[#allocation2 + $0x24] sm:$0xf]  ;;  %v13789_v57 = vld [vmem:[#allocation2 + $0xc] sm:$0xff]   ;;  %p13988_p3 = scmp.lt.s32.totalorder %s13986_s11, %s13980_s8 }
  0xbc   : > { %v11263_v60 = vcombine.low %v14823_v10, %v14836_v12  ;;  %v14862_v32 = vsel %vm14717_vm12, %v2007_v3, %v2008_v31  ;;  %v2022_v49 = vrot.slane %v14684_v45, 5  ;;  %v2026_v50 = vrot.slane %v14645_v38, 5 }
  0xbd   : > { %v11265_v48 = vcombine.low %v14848_v21, %v14862_v32  ;;  %v2029_v2 = vrot.slane %v14698_v0, 5  ;;  %v2033_v3 = vrot.slane %v14664_v53, 5  ;;  %v2036_v1 = vrot.slane %v14712_v16, 5  ;;  %p13989_p4 = por %p13988_p3, %p13987_p2 }
  0xbe   : > { %v14892_v38 = vsel %vm14717_vm12, %v11251_v28, %v2026_v50  ;;  %v2028_v58 = vrot.slane %v2026_v50, 4  ;;  %v1939_v16 = vsel %vm14717_vm12, %v14764_v56, %v1938_v6  ;;  %v13943_v6 = vld [vmem:[#allocation2 + $0x34] sm:$0xf]  ;;  %v17865_v56 = vld [vmem:[#allocation13_spill] sm:$0xff]  ;;  %v1952_v4 = vrot.slane %v17866_v13, 5 }
  0xbf   : > { %12425 = vmatmul.mubr.msk.bf16.gmra.mrb[24].mxu0 %vm884_vm3, %v14745_v46  ;;  %v2012_v46 = vrot.slane %v14588_v22, 5  ;;  %v14898_v0 = vsel %vm14717_vm12, %v11252_v62, %v2033_v3  ;;  %v2035_v53 = vrot.slane %v2033_v3, 4  ;;  %v1956_v54 = vrot.slane %v13943_v6, 5  ;;  %p13990_p7 = pnand %p13989_p4, %p13983_p12 }
  0xc0   : > { %12428 = vmatprep.mubr.msk.bf16.mxu0 %vm884_vm3, %v11219_v43  ;;  %v2019_v43 = vrot.slane %v17864_v27, 5  ;;  %v466_v27 = vshrl.u32 %v13804_v35, 16  ;;  %v2739_v24 = vshrl.u32 %v2690_v42, 16  ;;  %v2742_v37 = vshll.u32 %v2690_v42, 16  ;;  %v15034_v42 = vld [vmem:[#allocation2 + $0x38] sm:$0x1] }
  0xc1   : > { %v14869_v40 = vsel %vm14717_vm12, %v11249_v15, %v2012_v46  ;;  %v2014_v22 = vrot.slane %v2012_v46, 4  ;;  %v13942_v46 = vld [vmem:[#allocation2 + $0x28] sm:$0xf]  ;;  %v14923_v36 = vsel %vm14717_vm12, %v2035_v53, %v2036_v1  ;;  %v1958_v50 = vrot.slane %v1956_v54, 4 }
  0xc2   : > { %v14874_v47 = vsel %vm14717_vm12, %v11250_v26, %v2019_v43  ;;  %v2021_v8 = vrot.slane %v2019_v43, 4  ;;  %v2030_v26 = vsel %vm14717_vm12, %v2028_v58, %v2029_v2  ;;  %v469_v43 = vshll.u32 %v13804_v35, 16  ;;  %v17867_v35 = vld [vmem:[#allocation12_spill] sm:$0xff] }
  0xc3   : > { %v14880_v25 = vsel %vm14717_vm12, %v2014_v22, %v2015_v33  ;;  %v1949_v33 = vrot.slane %v13942_v46, 5  ;;  %v11269_v30 = vcombine.low %v14898_v0, %v14923_v36  ;;  %v2495_v22 = vsel %vm933_vm2, %v17865_v56, 0  ;;  %v13790_v0 = vld [vmem:[#allocation2 + $0x18] sm:$0xff]   ;;  %v2699_v56 = vld [vmem:[#allocation2 + $0x30] sm:$0xf] }
  0xc4   : > { %v11266_v45 = vcombine.low %v14869_v40, %v14880_v25  ;;  %v14888_v31 = vsel %vm14717_vm12, %v2021_v8, %v2022_v49  ;;  %v11268_v40 = vcombine.low %v14892_v38, %v2030_v26  ;;  %v1959_v25 = vrot.slane %v17867_v35, 5 }
  0xc5   : > { %v11267_v15 = vcombine.low %v14874_v47, %v14888_v31  ;;  %v11240_v47 = vrot.slane %v1862_v61, 9  ;;  %v1951_v8 = vrot.slane %v1949_v33, 4  ;;  %v2741_v44 = vrot.slane %v2739_v24, 4  ;;  %v3418_v24 = vld [vmem:[#allocation2 + $0x24] sm:$0xe] }
  0xc6   : > { %v1960_v1 = vsel %vm14717_vm12, %v1958_v50, %v1959_v25  ;;  %v2766_v12 = vshll.u32 %v2693_v17, 16 }
  0xc7   : > { %12429 = vmatmul.mubr.msk.bf16.gmra.mrb[28].mxu0 %vm884_vm3, %v14783_v18  ;;  %v1943_v18 = vsel %vm14717_vm12, %v11239_v41, %v1942_v51  ;;  %v1863_v41 = vld [vmem:[#allocation2 + $0x30] sm:$0xe]  ;;  %v11255_v51 = vcombine.low %v14762_v34, %v1939_v16  ;;  %v11319_v34 = vld [vmem:[%s17737_s1 + $0x8] sm:$0x3]  ;;  %v1950_v38 = vsel %vm14717_vm12, %v11240_v47, %v1949_v33  ;;  %v1953_v58 = vsel %vm14717_vm12, %v1951_v8, %v1952_v4  ;;  %v15013_v47 = vld [vmem:[#allocation2 + $0x34] sm:$0xf] }
  0xc8   : > { %12434 = vmatprep.mubr.msk.bf16.mxu0 %vm884_vm3, %v11254_v11  ;;  %v14932_v11 = vrot.slane %v466_v27, 7  ;;  %v11256_v49 = vcombine.low %v1943_v18, %v1946_v19  ;;  %v11241_v28 = vrot.slane %v1863_v41, 9  ;;  %v11257_v46 = vcombine.low %v1950_v38, %v1953_v58  ;;  %v11368_v19 = vld [vmem:[%s17737_s1 + $0xa] sm:$0x3] }
  0xc9   : > { %v2768_v18 = vrot.slane %v2766_v12, 5  ;;  %v13791_v8 = vld [vmem:[#allocation2 + $0x24] sm:$0xff]   ;;  %v15019_v25 = vsel %vm933_vm2, %v11368_v19, 0 }
  0xca   : > { %v471_v5 = vor.u32 %v469_v43, %v14932_v11  ;;  %v1957_v53 = vsel %vm14717_vm12, %v11241_v28, %v1956_v54  ;;  %v538_v33 = vsel %vm14199_vm6, %v14932_v11, 0  ;;  %v2695_v43 = vld [vmem:[#allocation2 + $0x20] sm:$0x1]  ;;  %v2697_v54 = vld [vmem:[#allocation2 + $0x28] sm:$0xf] }
  0xcb   : > { %v11258_v26 = vcombine.low %v1957_v53, %v1960_v1  ;;  %v11170_v11 = vcombine.low %v538_v33, %v538_v33  ;;  %v2796_v4 = vshll.u32 %v2697_v54, 16  ;;  %v2800_v28 = vshrl.u32 %v2697_v54, 16  ;;  %v15059_v33 = vld [vmem:[#allocation2 + $0x50] sm:$0x1] }
  0xcc   : > { %v522_v62 = vsel %vm14199_vm6, 0, %v471_v5 }
  0xcd   : > { %v11168_v3 = vcombine.low %v522_v62, %v522_v62  ;;  %v11169_v31 = vcombine.high %v522_v62, %v522_v62  ;;  %763 = vst.msk [vmem:[#allocation2 + $0xc8] sm:$0x1] %vm274_vm1, %v11170_v11  ;;  %v15030_v1 = vrot.slane %v2796_v4, 5 }
  0xcf   : > { %12435 = vmatmul.mubr.msk.bf16.vlgmr.msra.gmra.mrb[0].mxu0 %vm884_vm3, %v11255_v51  ;;  %761 = vst.msk [vmem:[#allocation2 + $0xc0] sm:$0xf] %vm271_vm0, %v11168_v3  ;;  %762 = vst.msk [vmem:[#allocation2 + $0xc4] sm:$0xf] %vm271_vm0, %v11169_v31  ;;  %v2814_v3 = vshll.u32 %v2699_v56, 16  ;;  %v2820_v31 = vshll.u32 %v15013_v47, 16 }
  0xd0   : > { %12467 = vmatpush3.bf16.msra.mxu0 %v2495_v22  ;;  %12438 = vmatprep.mubr.msk.bf16.mxu0 %vm884_vm3, %v11256_v49  ;;  %v2782_v49 = vshll.u32 %v2695_v43, 16 }
  0xd1   : > { %13698 = vmatprep.subr.msk.bf16.mxu0 %vm933_vm2, %v11319_v34 }
  0xd2   : > { %v15025_v58 = vrot.slane %v2782_v49, 5 }
  0xd7   : > { %12439 = vmatmul.mubr.msk.bf16.gmra.mrb[4].mxu0 %vm884_vm3, %v11257_v46  ;;  %v2802_v46 = vrot.slane %v2800_v28, 4 }
  0xd8   : > { %12442 = vmatprep.mubr.msk.bf16.mxu0 %vm884_vm3, %v11258_v26 }
  0xdf   : > { %12443 = vmatmul.mubr.msk.bf16.gmra.mrb[8].mxu0 %vm884_vm3, %v11259_v55  ;;  %v2691_v55 = vld [vmem:[#allocation2 + $0x10] sm:$0xf] }
  0xe0   : > { %12446 = vmatprep.mubr.msk.bf16.mxu0 %vm884_vm3, %v11260_v39  ;;  %v2694_v39 = vld [vmem:[#allocation2 + $0x1c] sm:$0xf]  ;;  %v2748_v23 = vshll.u32 %v2691_v55, 16  ;;  %v2752_v10 = vshrl.u32 %v2691_v55, 16 }
  0xe1   : > { %v2772_v21 = vshll.u32 %v2694_v39, 16  ;;  %v2776_v9 = vshrl.u32 %v2694_v39, 16  ;;  %v3496_v39 = vrot.slane %v2697_v54, 5  ;;  %v3420_v54 = vld [vmem:[#allocation2 + $0x3c] sm:$0xe] }
  0xe2   : > { %v2754_v32 = vrot.slane %v2752_v10, 4  ;;  %v15043_v10 = vrot.slane %v2820_v31, 5  ;;  %v15100_v31 = vld [vmem:[#allocation2 + $0x58] sm:$0xf] }
  0xe3   : > { %v15007_v61 = vrot.slane %v2772_v21, 5  ;;  %v2778_v6 = vrot.slane %v2776_v9, 4  ;;  %v2824_v21 = vshrl.u32 %v15013_v47, 16  ;;  %v15051_v9 = vld [vmem:[#allocation2 + $0x40] sm:$0xf] }
  0xe4   : > { %v3510_v11 = vrot.slane %v15051_v9, 5 }
  0xe5   : > { %v2779_v13 = vor.u32 %v2778_v6, %v15007_v61 }
  0xe6   : > { %v3512_v49 = vrot.slane %v3510_v11, 4 }
  0xe7   : > { %12447 = vmatmul.mubr.msk.bf16.gmra.mrb[12].mxu0 %vm884_vm3, %v11261_v29  ;;  %v2744_v29 = vrot.slane %v2742_v37, 5  ;;  %v15028_v53 = vrot.slane %v2779_v13, 4  ;;  %v13792_v37 = vld [vmem:[#allocation2 + $0x30] sm:$0xff]  }
  0xe8   : > { %12450 = vmatprep.mubr.msk.bf16.mxu0 %vm884_vm3, %v11262_v20  ;;  %v2763_v20 = vshrl.u32 %v2693_v17, 16  ;;  %v13795_v13 = vld [vmem:[#allocation2 + $0x54] sm:$0xff]  }
  0xe9   : > { %v2745_v27 = vor.u32 %v2744_v29, %v2741_v44  ;;  %v3419_v44 = vld [vmem:[#allocation2 + $0x30] sm:$0xe]  ;;  %v13793_v29 = vld [vmem:[#allocation2 + $0x3c] sm:$0xff]  }
  0xea   : > { %v2765_v16 = vrot.slane %v2763_v20, 4  ;;  %v11355_v20 = vrot.slane %v3419_v44, 9 }
  0xeb   : > { %v15011_v22 = vrot.slane %v2745_v27, 4 }
  0xec   : > { %v2769_v5 = vor.u32 %v2768_v18, %v2765_v16  ;;  %v2803_v18 = vor.u32 %v2802_v46, %v15030_v1  ;;  %v15102_v46 = vld [vmem:[#allocation2 + $0x5c] sm:$0x1] }
  0xee   : > { %v15023_v38 = vrot.slane %v2769_v5, 4  ;;  %v13794_v5 = vld [vmem:[#allocation2 + $0x48] sm:$0xff]   ;;  %v15084_v4 = vrot.slane %v2803_v18, 4 }
  0xef   : > { %12451 = vmatmul.mubr.msk.bf16.gmra.mrb[16].mxu0 %vm884_vm3, %v11263_v60  ;;  %v2758_v60 = vshll.u32 %v2692_v52, 16  ;;  %v11354_v52 = vrot.slane %v3418_v24, 9  ;;  %v13798_v24 = vld [vmem:[#allocation2 + $0x78] sm:$0xff]  }
  0xf0   : > { %12454 = vmatprep.mubr.msk.bf16.mxu0 %vm884_vm3, %v11264_v63  ;;  %v14991_v63 = vrot.slane %v2748_v23, 5  ;;  %v15041_v23 = vrot.slane %v2814_v3, 5 }
  0xf1   : > { %v15047_v12 = vsel %vm14717_vm12, %v11354_v52, %v3496_v39  ;;  %v15110_v52 = vld [vmem:[#allocation2 + $0x64] sm:$0xf] }
  0xf2   : > { %v2755_v36 = vor.u32 %v2754_v32, %v14991_v63  ;;  %v15053_v32 = vld [vmem:[#allocation2 + $0x44] sm:$0x1] }
  0xf4   : > { %v15016_v35 = vrot.slane %v2755_v36, 4 }
  0xf7   : > { %12455 = vmatmul.mubr.msk.bf16.gmra.mrb[20].mxu0 %vm884_vm3, %v11265_v48  ;;  %v2787_v48 = vshrl.u32 %v2696_v14, 16 }
  0xf8   : > { %12458 = vmatprep.mubr.msk.bf16.mxu0 %vm884_vm3, %v11266_v45  ;;  %v2790_v45 = vshll.u32 %v2696_v14, 16 }
  0xf9   : > { %v2789_v41 = vrot.slane %v2787_v48, 4  ;;  %v3506_v48 = vrot.slane %v15034_v42, 5 }
  0xfa   : > { %v2792_v51 = vrot.slane %v2790_v45, 5 }
  0xfc   : > { %v2793_v62 = vor.u32 %v2792_v51, %v2789_v41  ;;  %v3421_v41 = vld [vmem:[#allocation2 + $0x48] sm:$0xe] }
  0xfe   : > { %v15037_v55 = vrot.slane %v2793_v62, 4  ;;  %v15090_v62 = vld [vmem:[#allocation2 + $0x3c] sm:$0xf] }
  0xff   : > { %12459 = vmatmul.mubr.msk.bf16.gmra.mrb[24].mxu0 %vm884_vm3, %v11267_v15  ;;  %v3221_v15 = vsel %vm933_vm2, %v11319_v34, 0  ;;  %v2811_v34 = vshrl.u32 %v2699_v56, 16  ;;  %v3520_v56 = vrot.slane %v15059_v33, 5 }
 0x100   : > { %12462 = vmatprep.mubr.msk.bf16.mxu0 %vm884_vm3, %v11268_v40  ;;  %v15002_v40 = vrot.slane %v2758_v60, 5  ;;  %v3503_v60 = vrot.slane %v15013_v47, 5 }
 0x101   : > { %v15039_v17 = vrot.slane %v2811_v34, 4 }
 0x102   : > { %v15067_v43 = vsel %vm14717_vm12, %v11355_v20, %v3503_v60  ;;  %v3505_v16 = vrot.slane %v3503_v60, 4  ;;  %v3527_v20 = vrot.slane %v15102_v46, 5 }
 0x104   : > { %v15075_v6 = vsel %vm14717_vm12, %v3505_v16, %v3506_v48  ;;  %v3423_v48 = vld [vmem:[#allocation2 + $0x60] sm:$0xe]  ;;  %v3531_v16 = vrot.slane %v15110_v52, 5 }
 0x105   : > { %17869 = vst [vmem:[#allocation14_spill] sm:$0xff] %v15075_v6 }
 0x107   : > { %12463 = vmatmul.mubr.msk.bf16.gmra.mrb[28].mxu0 %vm884_vm3, %v11269_v30  ;;  %v2698_v30 = vld [vmem:[#allocation2 + $0x2c] sm:$0x1] }
 0x108   : > { %12468 = vmatprep.mubr.msk.bf16.mxu0 %vm884_vm3, %v13789_v57  ;;  %v2806_v50 = vshll.u32 %v2698_v30, 16  ;;  %v3499_v14 = vrot.slane %v2698_v30, 5  ;;  %v3498_v57 = vrot.slane %v3496_v39, 4  ;;  %v11356_v30 = vrot.slane %v3420_v54, 9  ;;  %v15112_v39 = vld [vmem:[#allocation2 + $0x68] sm:$0x1] }
 0x109   : > { %v3534_v18 = vrot.slane %v15112_v39, 5  ;;  %v13796_v54 = vld [vmem:[#allocation2 + $0x60] sm:$0xff]  }
 0x10a   : > { %v15032_v26 = vrot.slane %v2806_v50, 5  ;;  %v15063_v27 = vsel %vm14717_vm12, %v3498_v57, %v3499_v14  ;;  %v15088_v28 = vsel %vm14717_vm12, %v11356_v30, %v3510_v11  ;;  %v3524_v14 = vrot.slane %v15100_v31, 5  ;;  %v13797_v30 = vld [vmem:[#allocation2 + $0x6c] sm:$0xff]  }
 0x10b   : > { %17870 = vst [vmem:[#allocation13_spill] sm:$0xff] %v15088_v28 }
 0x10c   : > { %v3526_v11 = vrot.slane %v3524_v14, 4 }
 0x10f   : > { %12469 = vmatmul.mubr.msk.bf16.vlgmr.msra.gmra.mrb[0].mxu0 %vm884_vm3, %v13790_v0  ;;  %v3513_v0 = vrot.slane %v15053_v32, 5 }
 0x110   : > { %12501 = vmatpush3.bf16.msra.mxu0 %v3221_v15  ;;  %12472 = vmatprep.mubr.msk.bf16.mxu0 %vm884_vm3, %v13791_v8  ;;  %v15057_v15 = vld [vmem:[#allocation2 + $0x4c] sm:$0xf]  ;;  %v11357_v8 = vrot.slane %v3421_v41, 9 }
 0x111   : > { %13699 = vmatprep.subr.msk.bf16.mxu0 %vm933_vm2, %v11368_v19  ;;  %v3517_v51 = vrot.slane %v15057_v15, 5  ;;  %v15094_v34 = vsel %vm14717_vm12, %v3512_v49, %v3513_v0  ;;  %v11359_v0 = vrot.slane %v3423_v48, 9  ;;  %v2817_v48 = vor.u32 %v15041_v23, %v15039_v17  ;;  %v13799_v23 = vld [vmem:[#allocation2 + $0x84] sm:$0xff]   ;;  %v15177_v41 = vld [vmem:[#allocation2 + $0x8c] sm:$0x1] }
 0x112   : > { %17871 = vst [vmem:[#allocation11_spill] sm:$0xff] %v15094_v34 }
 0x113   : > { %v3519_v50 = vrot.slane %v3517_v51, 4  ;;  %v15098_v3 = vsel %vm14717_vm12, %v11357_v8, %v3517_v51  ;;  %v15134_v49 = vsel %vm14717_vm12, %v11359_v0, %v3531_v16  ;;  %v15136_v8 = vld [vmem:[#allocation2 + $0x70] sm:$0xf] }
 0x114   : > { %17872 = vst [vmem:[#allocation12_spill] sm:$0xff] %v15098_v3  ;;  %17876 = vst [vmem:[#allocation19_spill] sm:$0xff] %v15134_v49  ;;  %v15226_v49 = vld [vmem:[#allocation2 + $0xb0] sm:$0x1] }
 0x117   : > { %12473 = vmatmul.mubr.msk.bf16.gmra.mrb[4].mxu0 %vm884_vm3, %v13792_v37  ;;  %v15108_v37 = vsel %vm14717_vm12, %v3519_v50, %v3520_v56  ;;  %v3533_v56 = vrot.slane %v3531_v16, 4  ;;  %v3424_v16 = vld [vmem:[#allocation2 + $0x6c] sm:$0xe]  ;;  %v3425_v50 = vld [vmem:[#allocation2 + $0x78] sm:$0xe] }
 0x118   : > { %12476 = vmatprep.mubr.msk.bf16.mxu0 %vm884_vm3, %v13793_v29  ;;  %17873 = vst [vmem:[#allocation16_spill] sm:$0xff] %v15108_v37  ;;  %v3422_v29 = vld [vmem:[#allocation2 + $0x54] sm:$0xe]  ;;  %v11361_v17 = vrot.slane %v3425_v50, 9  ;;  %v3427_v50 = vld [vmem:[#allocation2 + $0x90] sm:$0xe] }
 0x119   : > { %v11358_v60 = vrot.slane %v3422_v29, 9  ;;  %v15144_v29 = vsel %vm14717_vm12, %v3533_v56, %v3534_v18  ;;  %v11360_v56 = vrot.slane %v3424_v16, 9  ;;  %v15175_v18 = vld [vmem:[#allocation2 + $0x88] sm:$0xf] }
 0x11a   : > { %17877 = vst [vmem:[#allocation20_spill] sm:$0xff] %v15144_v29  ;;  %v15216_v29 = vld [vmem:[#allocation2 + $0xa4] sm:$0x1] }
 0x11b   : > { %v15126_v51 = vsel %vm14717_vm12, %v11358_v60, %v3524_v14  ;;  %v15146_v14 = vld [vmem:[#allocation2 + $0x7c] sm:$0xf]  ;;  %v15148_v60 = vld [vmem:[#allocation2 + $0x80] sm:$0x1] }
 0x11c   : > { %17874 = vst [vmem:[#allocation17_spill] sm:$0xff] %v15126_v51  ;;  %v3545_v44 = vrot.slane %v15146_v14, 5  ;;  %v17887_v51 = vshll.u32 %v15090_v62, 16 }
 0x11e   : > { %v3547_v45 = vrot.slane %v3545_v44, 4  ;;  %v15173_v16 = vsel %vm14717_vm12, %v11361_v17, %v3545_v44  ;;  %v3426_v44 = vld [vmem:[#allocation2 + $0x84] sm:$0xe]  ;;  %v3555_v17 = vrot.slane %v15177_v41, 5  ;;  %v15242_v37 = vrot.slane %v17887_v51, 5 }
 0x11f   : > { %12477 = vmatmul.mubr.msk.bf16.gmra.mrb[8].mxu0 %vm884_vm3, %v13794_v5  ;;  %v15130_v5 = vsel %vm14717_vm12, %v3526_v11, %v3527_v20  ;;  %v3538_v11 = vrot.slane %v15136_v8, 5  ;;  %v3548_v20 = vrot.slane %v15148_v60, 5  ;;  %17880 = vst [vmem:[#allocation23_spill] sm:$0xff] %v15173_v16  ;;  %v13801_v16 = vld [vmem:[#allocation2 + $0x9c] sm:$0xff]  }
 0x120   : > { %12480 = vmatprep.mubr.msk.bf16.mxu0 %vm884_vm3, %v13795_v13  ;;  %17875 = vst [vmem:[#allocation18_spill] sm:$0xff] %v15130_v5  ;;  %v15138_v13 = vld [vmem:[#allocation2 + $0x74] sm:$0x1]  ;;  %v3576_v5 = vrot.slane %v15226_v49, 5 }
 0x121   : > { %v3541_v0 = vrot.slane %v15138_v13, 5  ;;  %v3540_v36 = vrot.slane %v3538_v11, 4  ;;  %v15165_v19 = vsel %vm14717_vm12, %v11360_v56, %v3538_v11  ;;  %v15185_v11 = vld [vmem:[#allocation2 + $0x94] sm:$0xf]  ;;  %v15187_v56 = vld [vmem:[#allocation2 + $0x98] sm:$0x1] }
 0x122   : > { %17878 = vst [vmem:[#allocation21_spill] sm:$0xff] %v15165_v19  ;;  %v3559_v57 = vrot.slane %v15185_v11, 5  ;;  %v3562_v2 = vrot.slane %v15187_v56, 5 }
 0x127   : > { %12481 = vmatmul.mubr.msk.bf16.gmra.mrb[12].mxu0 %vm884_vm3, %v13796_v54  ;;  %v15161_v54 = vrot.slane %v2817_v48, 4  ;;  %v15183_v48 = vsel %vm14717_vm12, %v3547_v45, %v3548_v20  ;;  %v15197_v45 = vrot.slane %v2824_v21, 4  ;;  %v11362_v20 = vrot.slane %v3426_v44, 9  ;;  %v15214_v44 = vld [vmem:[#allocation2 + $0xa0] sm:$0xf] }
 0x128   : > { %12484 = vmatprep.mubr.msk.bf16.mxu0 %vm884_vm3, %v13797_v30  ;;  %v15169_v30 = vsel %vm14717_vm12, %v3540_v36, %v3541_v0  ;;  %17881 = vst [vmem:[#allocation24_spill] sm:$0xff] %v15183_v48  ;;  %v3552_v0 = vrot.slane %v15175_v18, 5  ;;  %v13800_v36 = vld [vmem:[#allocation2 + $0x90] sm:$0xff]  }
 0x129   : > { %17879 = vst [vmem:[#allocation22_spill] sm:$0xff] %v15169_v30  ;;  %v2848_v30 = vshrl.u32 %v15051_v9, 16 }
 0x12a   : > { %v3554_v48 = vrot.slane %v3552_v0, 4  ;;  %v15204_v19 = vsel %vm14717_vm12, %v11362_v20, %v3552_v0  ;;  %v15224_v20 = vld [vmem:[#allocation2 + $0xac] sm:$0xf] }
 0x12b   : > { %17882 = vst [vmem:[#allocation25_spill] sm:$0xff] %v15204_v19  ;;  %v3573_v19 = vrot.slane %v15224_v20, 5 }
 0x12c   : > { %v15208_v47 = vsel %vm14717_vm12, %v3554_v48, %v3555_v17  ;;  %v3566_v17 = vrot.slane %v15214_v44, 5  ;;  %v13802_v48 = vld [vmem:[#allocation2 + $0xa8] sm:$0xff]  }
 0x12d   : > { %17883 = vst [vmem:[#allocation26_spill] sm:$0xff] %v15208_v47  ;;  %v3429_v47 = vld [vmem:[#allocation2 + $0xa8] sm:$0xe] }
 0x12f   : > { %12485 = vmatmul.mubr.msk.bf16.gmra.mrb[16].mxu0 %vm884_vm3, %v13798_v24  ;;  %v11363_v24 = vrot.slane %v3427_v50, 9  ;;  %v17886_v50 = vshrl.u32 %v15090_v62, 16 }
 0x130   : > { %12488 = vmatprep.mubr.msk.bf16.mxu0 %vm884_vm3, %v13799_v23  ;;  %v3561_v23 = vrot.slane %v3559_v57, 4 }
 0x131   : > { %v15212_v21 = vsel %vm14717_vm12, %v11363_v24, %v3559_v57  ;;  %v3428_v57 = vld [vmem:[#allocation2 + $0x9c] sm:$0xe]  ;;  %v3569_v24 = vrot.slane %v15216_v29, 5 }
 0x132   : > { %17884 = vst [vmem:[#allocation27_spill] sm:$0xff] %v15212_v21  ;;  %v15222_v0 = vsel %vm14717_vm12, %v3561_v23, %v3562_v2  ;;  %v15236_v2 = vrot.slane %v17886_v50, 4  ;;  %v11364_v23 = vrot.slane %v3428_v57, 9  ;;  %v13803_v21 = vld [vmem:[#allocation2 + $0xb4] sm:$0xff]   ;;  %v3575_v50 = vrot.slane %v3573_v19, 4 }
 0x133   : > { %17885 = vst [vmem:[#allocation28_spill] sm:$0xff] %v15222_v0  ;;  %v3568_v0 = vrot.slane %v3566_v17, 4  ;;  %v2751_v57 = vsel %vm14355_vm9, %v15011_v22, %v14991_v63  ;;  %v17892_v22 = vshll.u32 %v15034_v42, 16  ;;  %v2775_v42 = vsel %vm14355_vm9, %v15023_v38, %v15007_v61 }
 0x134   : > { %v15268_v63 = vsel %vm14717_vm12, %v3575_v50, %v3576_v5  ;;  %v15284_v5 = vld [vmem:[#allocation2 + $0xbc] sm:$0x1]  ;;  %v15286_v50 = vld [vmem:[#allocation2 + $0xc4] sm:$0xf] }
 0x135   : > { %v15258_v62 = vsel %vm14717_vm12, %v3568_v0, %v3569_v24  ;;  %17891 = vst [vmem:[#allocation32_spill] sm:$0xff] %v15268_v63  ;;  %v15272_v3 = vrot.slane %v17892_v22, 5  ;;  %v2850_v0 = vrot.slane %v2848_v30, 4  ;;  %v15297_v30 = vld [vmem:[#allocation2 + $0xc8] sm:$0x1]  ;;  %v3587_v61 = vrot.slane %v15286_v50, 5 }
 0x136   : > { %17889 = vst [vmem:[#allocation30_spill] sm:$0xff] %v15258_v62  ;;  %v3590_v38 = vrot.slane %v15297_v30, 5 }
 0x137   : > { %12489 = vmatmul.mubr.msk.bf16.gmra.mrb[20].mxu0 %vm884_vm3, %v13800_v36  ;;  %v11365_v36 = vrot.slane %v3429_v47, 9  ;;  %v2761_v47 = vsel %vm14355_vm9, %v15016_v35, %v15002_v40  ;;  %v17893_v40 = vshll.u32 %v15051_v9, 16  ;;  %v2785_v9 = vsel %vm14355_vm9, %v15028_v53, %v15025_v58  ;;  %v2708_v53 = vld [vmem:[#allocation2 + $0x54] sm:$0xf] }
 0x138   : > { %12492 = vmatprep.mubr.msk.bf16.mxu0 %vm884_vm3, %v13801_v16  ;;  %v15246_v16 = vsel %vm14717_vm12, %v11364_v23, %v3566_v17  ;;  %v2705_v17 = vld [vmem:[#allocation2 + $0x48] sm:$0xf]  ;;  %v11320_v24 = vcombine.low %v2751_v57, %v2761_v47  ;;  %v15282_v23 = vld [vmem:[#allocation2 + $0xb8] sm:$0xf]  ;;  %v3583_v47 = vrot.slane %v15284_v5, 5  ;;  %v3589_v34 = vrot.slane %v3587_v61, 4 }
 0x139   : > { %17888 = vst [vmem:[#allocation29_spill] sm:$0xff] %v15246_v16  ;;  %v15262_v51 = vsel %vm14717_vm12, %v11365_v36, %v3573_v19  ;;  %v15276_v35 = vrot.slane %v17893_v40, 5  ;;  %v2827_v36 = vor.u32 %v15197_v45, %v15043_v10  ;;  %v3430_v45 = vld [vmem:[#allocation2 + $0xb4] sm:$0xe]  ;;  %v3580_v57 = vrot.slane %v15282_v23, 5 }
 0x13a   : > { %17890 = vst [vmem:[#allocation31_spill] sm:$0xff] %v15262_v51  ;;  %v11366_v22 = vrot.slane %v3430_v45, 9  ;;  %v3431_v40 = vld [vmem:[#allocation2 + $0xc0] sm:$0xe]  ;;  %v2859_v19 = vshrl.u32 %v2705_v17, 16  ;;  %v2862_v58 = vshll.u32 %v2705_v17, 16 }
 0x13b   : > { %v3582_v63 = vrot.slane %v3580_v57, 4  ;;  %v11367_v51 = vrot.slane %v3431_v40, 9  ;;  %v2828_v62 = vrot.slane %v2827_v36, 4  ;;  %v2854_v16 = vshll.u32 %v15053_v32, 16 }
 0x13c   : > { %v2872_v45 = vshrl.u32 %v15057_v15, 16  ;;  %v2883_v36 = vshrl.u32 %v2708_v53, 16  ;;  %v2886_v32 = vshll.u32 %v2708_v53, 16  ;;  %v2851_v40 = vor.u32 %v2850_v0, %v15276_v35 }
 0x13d   : > { %v15315_v28 = vsel %vm14717_vm12, %v3582_v63, %v3583_v47  ;;  %v15319_v17 = vsel %vm14717_vm12, %v11367_v51, %v3587_v61  ;;  %v2864_v6 = vrot.slane %v2862_v58, 5  ;;  %v11321_v47 = vcombine.low %v2775_v42, %v2785_v9  ;;  %v2714_v63 = vld [vmem:[#allocation2 + $0x6c] sm:$0xf] }
 0x13e   : > { %v2799_v51 = vsel %vm14355_vm9, %v15037_v55, %v15030_v1  ;;  %v2892_v61 = vshll.u32 %v15100_v31, 16  ;;  %v2896_v53 = vshrl.u32 %v15100_v31, 16  ;;  %v2823_v0 = vsel %vm14355_vm9, %v15161_v54, %v15043_v10 }
 0x13f   : > { %12493 = vmatmul.mubr.msk.bf16.gmra.mrb[24].mxu0 %vm884_vm3, %v13802_v48  ;;  %v2841_v48 = vor.u32 %v15242_v37, %v15236_v2  ;;  %v13805_v37 = vld [vmem:[#allocation2 + $0xc0] sm:$0xff]   ;;  %v2868_v2 = vshll.u32 %v15057_v15, 16  ;;  %v2861_v15 = vrot.slane %v2859_v19, 4  ;;  %v2833_v1 = vsel %vm14355_vm9, %v2828_v62, %v15272_v3 }
 0x140   : > { %12496 = vmatprep.mubr.msk.bf16.mxu0 %vm884_vm3, %v13803_v21  ;;  %v15309_v21 = vsel %vm14717_vm12, %v11366_v22, %v3580_v57  ;;  %v15325_v22 = vsel %vm14717_vm12, %v3589_v34, %v3590_v38  ;;  %v2809_v34 = vsel %vm14355_vm9, %v15084_v4, %v15032_v26  ;;  %v2711_v19 = vld [vmem:[#allocation2 + $0x60] sm:$0xf]  ;;  %v2874_v42 = vrot.slane %v2872_v45, 4 }
 0x141   : > { %v2842_v55 = vrot.slane %v2841_v48, 4  ;;  %v15349_v31 = vrot.slane %v2868_v2, 5  ;;  %v2885_v9 = vrot.slane %v2883_v36, 4  ;;  %v2888_v38 = vrot.slane %v2886_v32, 5 }
 0x142   : > { %v2852_v58 = vrot.slane %v2851_v40, 4  ;;  %v2856_v26 = vrot.slane %v2854_v16, 5  ;;  %v2865_v4 = vor.u32 %v2864_v6, %v2861_v15  ;;  %v15352_v10 = vrot.slane %v2892_v61, 5 }
 0x143   : > { %v2898_v54 = vrot.slane %v2896_v53, 4  ;;  %v2907_v57 = vshrl.u32 %v2711_v19, 16  ;;  %v2910_v3 = vshll.u32 %v2711_v19, 16  ;;  %v11322_v62 = vcombine.low %v2799_v51, %v2809_v34  ;;  %v2717_v51 = vld [vmem:[#allocation2 + $0x78] sm:$0xf] }
 0x144   : > { %v11323_v48 = vcombine.low %v2823_v0, %v2833_v1  ;;  %v2920_v2 = vshrl.u32 %v15110_v52, 16  ;;  %v2875_v45 = vor.u32 %v2874_v42, %v15349_v31  ;;  %v2889_v36 = vor.u32 %v2888_v38, %v2885_v9 }
 0x145   : > { %v2931_v32 = vshrl.u32 %v2714_v63, 16  ;;  %v2934_v16 = vshll.u32 %v2714_v63, 16  ;;  %v2857_v6 = vsel %vm14355_vm9, %v2852_v58, %v2856_v26  ;;  %v2866_v40 = vrot.slane %v2865_v4, 4  ;;  %v15367_v63 = vld [vmem:[%s17737_s1 + $0xc] sm:$0x3] }
 0x146   : > { %v2899_v61 = vor.u32 %v2898_v54, %v15352_v10  ;;  %v2902_v53 = vshll.u32 %v15102_v46, 16  ;;  %v2912_v34 = vrot.slane %v2910_v3, 5  ;;  %v2922_v0 = vrot.slane %v2920_v2, 4 }
 0x147   : > { %12497 = vmatmul.mubr.msk.bf16.gmra.mrb[28].mxu0 %vm884_vm3, %v13805_v37  ;;  %v2878_v37 = vshll.u32 %v15059_v33, 16  ;;  %v2847_v33 = vsel %vm14355_vm9, %v2842_v55, %v15276_v35  ;;  %v2940_v1 = vshll.u32 %v15136_v8, 16  ;;  %v2944_v55 = vshrl.u32 %v15136_v8, 16 }
 0x148   : > { %12502 = vmatprep.mubr.msk.bf16.mxu0 %vm884_vm3, %v11320_v24  ;;  %v2916_v24 = vshll.u32 %v15110_v52, 16  ;;  %v2909_v52 = vrot.slane %v2907_v57, 4  ;;  %v2876_v46 = vrot.slane %v2875_v45, 4  ;;  %v2890_v57 = vrot.slane %v2889_v36, 4  ;;  %v2720_v36 = vld [vmem:[#allocation2 + $0x84] sm:$0xf] }
 0x149   : > { %v2880_v15 = vrot.slane %v2878_v37, 5  ;;  %v2933_v19 = vrot.slane %v2931_v32, 4  ;;  %v2936_v42 = vrot.slane %v2934_v16, 5  ;;  %v2955_v9 = vshrl.u32 %v2717_v51, 16 }
 0x14a   : > { %v15370_v35 = vrot.slane %v2916_v24, 5  ;;  %v2958_v38 = vshll.u32 %v2717_v51, 16  ;;  %v2964_v58 = vshll.u32 %v15146_v14, 16  ;;  %v2900_v26 = vrot.slane %v2899_v61, 4 }
 0x14b   : > { %v2904_v4 = vrot.slane %v2902_v53, 5  ;;  %v2913_v8 = vor.u32 %v2912_v34, %v2909_v52  ;;  %v11324_v37 = vcombine.low %v2847_v33, %v2857_v6  ;;  %v15382_v3 = vrot.slane %v2940_v1, 5 }
 0x14c   : > { %v2923_v54 = vor.u32 %v2922_v0, %v15370_v35  ;;  %v2871_v24 = vsel %vm14355_vm9, %v2866_v40, %v15349_v31  ;;  %v2895_v2 = vsel %vm14355_vm9, %v2890_v57, %v15352_v10  ;;  %v2937_v45 = vor.u32 %v2936_v42, %v2933_v19 }
 0x14d   : > { %v2960_v32 = vrot.slane %v2958_v38, 5  ;;  %v15392_v16 = vrot.slane %v2964_v58, 5  ;;  %v2905_v6 = vsel %vm14355_vm9, %v2900_v26, %v2904_v4  ;;  %v2914_v51 = vrot.slane %v2913_v8, 4 }
 0x14e   : > { %v2950_v31 = vshll.u32 %v15138_v13, 16  ;;  %v2924_v40 = vrot.slane %v2923_v54, 4  ;;  %v2979_v10 = vshrl.u32 %v2720_v36, 16  ;;  %v2982_v53 = vshll.u32 %v2720_v36, 16  ;;  %v2723_v13 = vld [vmem:[#allocation2 + $0x90] sm:$0xf] }
 0x14f   : > { %12503 = vmatmul.mubr.msk.bf16.vlgmr.msra.gmra.mrb[0].mxu0 %vm884_vm3, %v11321_v47  ;;  %v2968_v47 = vshrl.u32 %v15146_v14, 16  ;;  %v2881_v14 = vsel %vm14355_vm9, %v2876_v46, %v2880_v15  ;;  %v2988_v52 = vshll.u32 %v15175_v18, 16  ;;  %v2992_v34 = vshrl.u32 %v15175_v18, 16 }
 0x150   : > { %12535 = vmatpush3.bf16.msra.mxu0 %v15019_v25  ;;  %12506 = vmatprep.mubr.msk.bf16.mxu0 %vm884_vm3, %v11322_v62  ;;  %v2926_v25 = vshll.u32 %v15112_v39, 16  ;;  %v2946_v62 = vrot.slane %v2944_v55, 4  ;;  %v2957_v39 = vrot.slane %v2955_v9, 4  ;;  %v2938_v0 = vrot.slane %v2937_v45, 4 }
 0x151   : > { %13700 = vmatprep.subr.msk.bf16.mxu0 %vm933_vm2, %v15367_v63  ;;  %v2970_v33 = vrot.slane %v2968_v47, 4  ;;  %v2974_v46 = vshll.u32 %v15148_v60, 16  ;;  %v11325_v57 = vcombine.low %v2871_v24, %v2881_v14  ;;  %v2919_v19 = vsel %vm14355_vm9, %v2914_v51, %v15370_v35  ;;  %v2726_v47 = vld [vmem:[#allocation2 + $0x9c] sm:$0xf] }
 0x152   : > { %v2928_v61 = vrot.slane %v2926_v25, 5  ;;  %v2947_v15 = vor.u32 %v2946_v62, %v15382_v3  ;;  %v2961_v1 = vor.u32 %v2960_v32, %v2957_v39  ;;  %v2952_v42 = vrot.slane %v2950_v31, 5 }
 0x153   : > { %v2971_v55 = vor.u32 %v2970_v33, %v15392_v16  ;;  %v2981_v58 = vrot.slane %v2979_v10, 4  ;;  %v2984_v18 = vrot.slane %v2982_v53, 5  ;;  %v15409_v26 = vrot.slane %v2988_v52, 5 }
 0x154   : > { %v2929_v9 = vsel %vm14355_vm9, %v2924_v40, %v2928_v61  ;;  %v2948_v38 = vrot.slane %v2947_v15, 4  ;;  %v2994_v4 = vrot.slane %v2992_v34, 4  ;;  %v3003_v8 = vshrl.u32 %v2723_v13, 16 }
 0x155   : > { %v3006_v60 = vshll.u32 %v2723_v13, 16  ;;  %v2943_v25 = vsel %vm14355_vm9, %v2938_v0, %v15382_v3  ;;  %v2972_v54 = vrot.slane %v2971_v55, 4  ;;  %v2976_v35 = vrot.slane %v2974_v46, 5  ;;  %v2729_v0 = vld [vmem:[#allocation2 + $0xa8] sm:$0xf] }
 0x156   : > { %v3012_v62 = vshll.u32 %v15185_v11, 16  ;;  %v3016_v24 = vshrl.u32 %v15185_v11, 16  ;;  %v3027_v14 = vshrl.u32 %v2726_v47, 16  ;;  %v2953_v45 = vsel %vm14355_vm9, %v2948_v38, %v2952_v42 }
 0x157   : > { %12507 = vmatmul.mubr.msk.bf16.gmra.mrb[4].mxu0 %vm884_vm3, %v11323_v48  ;;  %v11326_v48 = vcombine.low %v2895_v2, %v2905_v6  ;;  %v3030_v2 = vshll.u32 %v2726_v47, 16  ;;  %v2998_v36 = vshll.u32 %v15177_v41, 16  ;;  %v3036_v39 = vshll.u32 %v15214_v44, 16 }
 0x158   : > { %12510 = vmatprep.mubr.msk.bf16.mxu0 %vm884_vm3, %v11324_v37  ;;  %v2962_v37 = vrot.slane %v2961_v1, 4  ;;  %v3040_v3 = vshrl.u32 %v15214_v44, 16  ;;  %v2985_v32 = vor.u32 %v2984_v18, %v2981_v58  ;;  %v2995_v33 = vor.u32 %v2994_v4, %v15409_v26 }
 0x159   : > { %v3005_v6 = vrot.slane %v3003_v8, 4  ;;  %v3008_v11 = vrot.slane %v3006_v60, 5  ;;  %v11327_v51 = vcombine.low %v2919_v19, %v2929_v9  ;;  %v2977_v31 = vsel %vm14355_vm9, %v2972_v54, %v2976_v35  ;;  %v2732_v9 = vld [vmem:[#allocation2 + $0xb4] sm:$0xf] }
 0x15a   : > { %v2967_v61 = vsel %vm14355_vm9, %v2962_v37, %v15392_v16  ;;  %v15429_v41 = vrot.slane %v3012_v62, 5  ;;  %v3018_v40 = vrot.slane %v3016_v24, 4  ;;  %v3029_v15 = vrot.slane %v3027_v14, 4 }
 0x15b   : > { %v3032_v44 = vrot.slane %v3030_v2, 5  ;;  %v11328_v10 = vcombine.low %v2943_v25, %v2953_v45  ;;  %v3000_v53 = vrot.slane %v2998_v36, 5  ;;  %v3038_v52 = vrot.slane %v3036_v39, 5 }
 0x15c   : > { %v3042_v34 = vrot.slane %v3040_v3, 4  ;;  %v2986_v1 = vrot.slane %v2985_v32, 4  ;;  %v2996_v55 = vrot.slane %v2995_v33, 4  ;;  %v3009_v46 = vor.u32 %v3008_v11, %v3005_v6  ;;  %v2735_v6 = vld [vmem:[#allocation2 + $0xc0] sm:$0xf] }
 0x15d   : > { %v3022_v13 = vshll.u32 %v15187_v56, 16  ;;  %v3019_v16 = vor.u32 %v3018_v40, %v15429_v41  ;;  %v3046_v19 = vshll.u32 %v15216_v29, 16  ;;  %v3051_v42 = vshrl.u32 %v2729_v0, 16 }
 0x15e   : > { %v3043_v38 = vor.u32 %v3042_v34, %v3038_v52  ;;  %v3054_v58 = vshll.u32 %v2729_v0, 16  ;;  %v3060_v18 = vshll.u32 %v15224_v20, 16  ;;  %v3064_v47 = vshrl.u32 %v15224_v20, 16 }
 0x15f   : > { %12511 = vmatmul.mubr.msk.bf16.gmra.mrb[8].mxu0 %vm884_vm3, %v11325_v57  ;;  %v11329_v57 = vcombine.low %v2967_v61, %v2977_v31  ;;  %v2991_v56 = vsel %vm14355_vm9, %v2986_v1, %v15409_v26  ;;  %v3001_v4 = vsel %vm14355_vm9, %v2996_v55, %v3000_v53  ;;  %v3010_v29 = vrot.slane %v3009_v46, 4 }
 0x160   : > { %12514 = vmatprep.mubr.msk.bf16.mxu0 %vm884_vm3, %v11326_v48  ;;  %v3033_v48 = vor.u32 %v3032_v44, %v3029_v15  ;;  %v3024_v8 = vrot.slane %v3022_v13, 5  ;;  %v3075_v60 = vshrl.u32 %v2732_v9, 16  ;;  %v3078_v25 = vshll.u32 %v2732_v9, 16 }
 0x161   : > { %v3084_v37 = vshll.u32 %v15282_v23, 16  ;;  %v3088_v54 = vshrl.u32 %v15282_v23, 16  ;;  %v3020_v35 = vrot.slane %v3019_v16, 4  ;;  %v3048_v20 = vrot.slane %v3046_v19, 5 }
 0x162   : > { %v3034_v62 = vrot.slane %v3033_v48, 4  ;;  %v3053_v24 = vrot.slane %v3051_v42, 4  ;;  %v3044_v14 = vrot.slane %v3043_v38, 4  ;;  %v3056_v2 = vrot.slane %v3054_v58, 5 }
 0x163   : > { %v3062_v45 = vrot.slane %v3060_v18, 5  ;;  %v3066_v36 = vrot.slane %v3064_v47, 4  ;;  %v11330_v26 = vcombine.low %v2991_v56, %v3001_v4  ;;  %v3077_v39 = vrot.slane %v3075_v60, 4  ;;  %v3416_v60 = vld [vmem:[#allocation2 + $0xc] sm:$0xe] }
 0x164   : > { %v3080_v3 = vrot.slane %v3078_v25, 5  ;;  %v3086_v32 = vrot.slane %v3084_v37, 5  ;;  %v3090_v33 = vrot.slane %v3088_v54, 4  ;;  %v3015_v11 = vsel %vm14355_vm9, %v3010_v29, %v15429_v41  ;;  %v13944_v29 = vld [vmem:[#allocation2 + $0x10] sm:$0xf] }
 0x165   : > { %v3025_v23 = vsel %vm14355_vm9, %v3020_v35, %v3024_v8  ;;  %v3039_v61 = vsel %vm14355_vm9, %v3034_v62, %v3038_v52  ;;  %v3049_v31 = vsel %vm14355_vm9, %v3044_v14, %v3048_v20  ;;  %v3057_v40 = vor.u32 %v3056_v2, %v3053_v24  ;;  %v13945_v14 = vld [vmem:[#allocation2 + $0x14] sm:$0x1] }
 0x166   : > { %v3067_v15 = vor.u32 %v3066_v36, %v3062_v45  ;;  %v3099_v44 = vshrl.u32 %v2735_v6, 16  ;;  %v3108_v41 = vshll.u32 %v15286_v50, 16  ;;  %v3112_v53 = vshrl.u32 %v15286_v50, 16  ;;  %v13946_v36 = vld [vmem:[#allocation2 + $0x1c] sm:$0xf] }
 0x167   : > { %12515 = vmatmul.mubr.msk.bf16.gmra.mrb[12].mxu0 %vm884_vm3, %v11327_v51  ;;  %v3070_v51 = vshll.u32 %v15226_v49, 16  ;;  %v3081_v34 = vor.u32 %v3080_v3, %v3077_v39  ;;  %v3091_v49 = vor.u32 %v3090_v33, %v3086_v32  ;;  %v3094_v0 = vshll.u32 %v15284_v5, 16 }
 0x168   : > { %12518 = vmatprep.mubr.msk.bf16.mxu0 %vm884_vm3, %v11328_v10  ;;  %v3102_v10 = vshll.u32 %v2735_v6, 16  ;;  %v11331_v1 = vcombine.low %v3015_v11, %v3025_v23  ;;  %v11332_v55 = vcombine.low %v3039_v61, %v3049_v31  ;;  %v3058_v52 = vrot.slane %v3057_v40, 4 }
 0x169   : > { %v3068_v46 = vrot.slane %v3067_v15, 4  ;;  %v3072_v13 = vrot.slane %v3070_v51, 5  ;;  %v3110_v48 = vrot.slane %v3108_v41, 5  ;;  %v3114_v19 = vrot.slane %v3112_v53, 4  ;;  %v13947_v51 = vld [vmem:[#allocation2 + $0x20] sm:$0x1] }
 0x16a   : > { %v3104_v16 = vrot.slane %v3102_v10, 5  ;;  %v3082_v42 = vrot.slane %v3081_v34, 4  ;;  %v3092_v9 = vrot.slane %v3091_v49, 4  ;;  %v3096_v38 = vrot.slane %v3094_v0, 5  ;;  %v11434_v10 = vld [vmem:[%s17737_s1 + $0xe] sm:$0x3] }
 0x16b   : > { %v3063_v50 = vsel %vm14355_vm9, %v3058_v52, %v3062_v45  ;;  %v3073_v5 = vsel %vm14355_vm9, %v3068_v46, %v3072_v13  ;;  %v3115_v18 = vor.u32 %v3114_v19, %v3110_v48  ;;  %v3118_v47 = vshll.u32 %v15297_v30, 16  ;;  %v17895_v53 = vld [vmem:[#allocation14_spill] sm:$0xff]  ;;  %v17898_v49 = vld [vmem:[#allocation11_spill] sm:$0xff] }
 0x16c   : > { %v3087_v56 = vsel %vm14355_vm9, %v3082_v42, %v3086_v32  ;;  %v3097_v4 = vsel %vm14355_vm9, %v3092_v9, %v3096_v38  ;;  %v3482_v8 = vrot.slane %v13944_v29, 5  ;;  %v11333_v25 = vcombine.low %v3063_v50, %v3073_v5  ;;  %v3417_v32 = vld [vmem:[#allocation2 + $0x18] sm:$0xe]  ;;  %v17913_v9 = vld [vmem:[#allocation24_spill] sm:$0xff]  ;;  %v17915_v50 = vld [vmem:[#allocation25_spill] sm:$0xff] }
 0x16d   : > { %v11334_v37 = vcombine.low %v3087_v56, %v3097_v4  ;;  %v3116_v35 = vrot.slane %v3115_v18, 4  ;;  %v3120_v62 = vrot.slane %v3118_v47, 5  ;;  %v11352_v20 = vrot.slane %v3416_v60, 9  ;;  %v17906_v13 = vld [vmem:[#allocation19_spill] sm:$0xff]  ;;  %v17916_v5 = vld [vmem:[#allocation26_spill] sm:$0xff]  ;;  %v17919_v47 = vld [vmem:[#allocation28_spill] sm:$0xff] }
 0x16e   : > { %v3484_v24 = vrot.slane %v3482_v8, 4  ;;  %v3485_v2 = vrot.slane %v13945_v14, 5  ;;  %v11353_v11 = vrot.slane %v3417_v32, 9  ;;  %v3492_v61 = vrot.slane %v13947_v51, 5  ;;  %v17912_v42 = vld [vmem:[#allocation23_spill] sm:$0xff]  ;;  %v17921_v4 = vld [vmem:[#allocation29_spill] sm:$0xff] }
 0x16f   : > { %12519 = vmatmul.mubr.msk.bf16.gmra.mrb[16].mxu0 %vm884_vm3, %v11329_v57  ;;  %v3101_v57 = vrot.slane %v3099_v44, 4  ;;  %v3121_v45 = vsel %vm14355_vm9, %v3116_v35, %v3120_v62  ;;  %v3483_v39 = vsel %vm14717_vm12, %v11352_v20, %v3482_v8  ;;  %v4050_v44 = vsel %vm933_vm2, %v15367_v63, 0  ;;  %v17897_v63 = vld [vmem:[#allocation13_spill] sm:$0xff]  ;;  %v17918_v18 = vld [vmem:[#allocation27_spill] sm:$0xff]  ;;  %v17922_v29 = vld [vmem:[#allocation30_spill] sm:$0xff] }
 0x170   : > { %12522 = vmatprep.mubr.msk.bf16.mxu0 %vm884_vm3, %v11330_v26  ;;  %v3489_v26 = vrot.slane %v13946_v36, 5  ;;  %v3486_v3 = vsel %vm14717_vm12, %v3484_v24, %v3485_v2  ;;  %v17894_v41 = vcombine.low %v15047_v12, %v15063_v27  ;;  %v17896_v34 = vcombine.low %v15067_v43, %v17895_v53  ;;  %v17903_v12 = vld [vmem:[#allocation17_spill] sm:$0xff]  ;;  %v17904_v27 = vld [vmem:[#allocation18_spill] sm:$0xff]  ;;  %v17924_v60 = vld [vmem:[#allocation31_spill] sm:$0xff] }
 0x171   : > { %v3105_v58 = vor.u32 %v3104_v16, %v3101_v57  ;;  %v11369_v6 = vcombine.low %v3483_v39, %v3486_v3  ;;  %v17899_v0 = vcombine.low %v17897_v63, %v17898_v49  ;;  %v17905_v46 = vcombine.low %v17903_v12, %v17904_v27  ;;  %v17907_v57 = vld [vmem:[#allocation20_spill] sm:$0xff]  ;;  %v17909_v16 = vld [vmem:[#allocation21_spill] sm:$0xff]  ;;  %v13806_v35 = vld [vmem:[#allocation2 + $0x18] sm:$0xff]  }
 0x172   : > { %v3491_v23 = vrot.slane %v3489_v26, 4  ;;  %v3490_v31 = vsel %vm14717_vm12, %v11353_v11, %v3489_v26  ;;  %v17908_v43 = vcombine.low %v17906_v13, %v17907_v57  ;;  %v17914_v38 = vcombine.low %v17912_v42, %v17913_v9  ;;  %v13807_v20 = vld [vmem:[#allocation2 + $0x24] sm:$0xff]   ;;  %v13808_v24 = vld [vmem:[#allocation2 + $0x30] sm:$0xff]   ;;  %v15591_v63 = vld [vmem:[#allocation2 + $0x1c] sm:$0xf] }
 0x173   : > { %v3106_v54 = vrot.slane %v3105_v58, 4  ;;  %v17917_v58 = vcombine.low %v17915_v50, %v17916_v5  ;;  %v17920_v56 = vcombine.low %v17918_v18, %v17919_v47  ;;  %v17923_v8 = vcombine.low %v17921_v4, %v17922_v29  ;;  %v15555_v2 = vld [vmem:[%s17737_s1 + $0x10] sm:$0x3]  ;;  %v13811_v3 = vld [vmem:[#allocation2 + $0x54] sm:$0xff]   ;;  %v15604_v13 = vld [vmem:[#allocation2 + $0x8c] sm:$0x1] }
 0x174   : > { %v3493_v40 = vsel %vm14717_vm12, %v3491_v23, %v3492_v61  ;;  %v17928_v62 = vcombine.low %v15319_v17, %v15325_v22  ;;  %v4776_v14 = vsel %vm933_vm2, %v11434_v10, 0  ;;  %v15562_v17 = vld [vmem:[#allocation2 + $0x58] sm:$0xf]  ;;  %v15564_v22 = vld [vmem:[#allocation2 + $0x5c] sm:$0x1]  ;;  %v4303_v12 = vshll.u32 %v15591_v63, 16 }
 0x175   : > { %v3111_v30 = vsel %vm14355_vm9, %v3106_v54, %v3110_v48  ;;  %v11370_v15 = vcombine.low %v3490_v31, %v3493_v40  ;;  %v17910_v48 = vld [vmem:[#allocation22_spill] sm:$0xff]  ;;  %v17927_v54 = vcombine.low %v15309_v21, %v15315_v28  ;;  %v13809_v28 = vld [vmem:[#allocation2 + $0x3c] sm:$0xff]   ;;  %v13810_v21 = vld [vmem:[#allocation2 + $0x48] sm:$0xff]   ;;  %v5075_v36 = vrot.slane %v15564_v22, 5 }
 0x176   : > { %v11335_v33 = vcombine.low %v3111_v30, %v3121_v45  ;;  %v17911_v19 = vcombine.low %v17909_v16, %v17910_v48  ;;  %v4976_v30 = vld [vmem:[#allocation2 + $0x54] sm:$0xe]  ;;  %v5072_v45 = vrot.slane %v15562_v17, 5  ;;  %v15580_v23 = vld [vmem:[#allocation2 + $0x70] sm:$0xf]  ;;  %v4307_v27 = vshrl.u32 %v15591_v63, 16 }
 0x177   : > { %12523 = vmatmul.mubr.msk.bf16.gmra.mrb[20].mxu0 %vm884_vm3, %v11331_v1  ;;  %v17900_v1 = vld [vmem:[#allocation12_spill] sm:$0xff]  ;;  %v11472_v26 = vrot.slane %v4976_v30, 9  ;;  %v15582_v51 = vld [vmem:[#allocation2 + $0x74] sm:$0x1]  ;;  %v4978_v61 = vld [vmem:[#allocation2 + $0x6c] sm:$0xe] }
 0x178   : > { %12526 = vmatprep.mubr.msk.bf16.mxu0 %vm884_vm3, %v11332_v55  ;;  %v17901_v55 = vld [vmem:[#allocation16_spill] sm:$0xff]  ;;  %v5074_v39 = vrot.slane %v5072_v45, 4  ;;  %v5086_v31 = vrot.slane %v15580_v23, 5  ;;  %v5089_v40 = vrot.slane %v15582_v51, 5  ;;  %v15609_v42 = vld [vmem:[#allocation2 + $0x28] sm:$0xf] }
 0x179   : > { %v17902_v52 = vcombine.low %v17900_v1, %v17901_v55  ;;  %v15571_v32 = vsel %vm14717_vm12, %v11472_v26, %v5072_v45  ;;  %v4980_v16 = vld [vmem:[#allocation2 + $0x84] sm:$0xe]  ;;  %v15613_v47 = vrot.slane %v4303_v12, 5  ;;  %v13816_v29 = vld [vmem:[#allocation2 + $0x90] sm:$0xff]   ;;  %v15634_v30 = vld [vmem:[#allocation2 + $0xa0] sm:$0xf] }
 0x17a   : > { %v11476_v9 = vrot.slane %v4980_v16, 9  ;;  %v13815_v5 = vld [vmem:[#allocation2 + $0x84] sm:$0xff]   ;;  %v15646_v12 = vld [vmem:[#allocation2 + $0x40] sm:$0xf]  ;;  %v13821_v1 = vld [vmem:[#allocation2 + $0xcc] sm:$0xff]  }
 0x17b   : > { %v15636_v45 = vld [vmem:[#allocation2 + $0xa4] sm:$0x1] }
 0x17f   : > { %12527 = vmatmul.mubr.msk.bf16.gmra.mrb[24].mxu0 %vm884_vm3, %v11333_v25  ;;  %v17925_v25 = vld [vmem:[#allocation32_spill] sm:$0xff] }
 0x180   : > { %12530 = vmatprep.mubr.msk.bf16.mxu0 %vm884_vm3, %v11334_v37  ;;  %v17926_v37 = vcombine.low %v17924_v60, %v17925_v25  ;;  %v4327_v25 = vshll.u32 %v15609_v42, 16 }
 0x182   : > { %v15639_v26 = vrot.slane %v4327_v25, 5 }
 0x187   : > { %12531 = vmatmul.mubr.msk.bf16.gmra.mrb[28].mxu0 %vm884_vm3, %v11335_v33  ;;  %v13812_v33 = vld [vmem:[#allocation2 + $0x60] sm:$0xff]  }
 0x188   : > { %12536 = vmatprep.mubr.msk.bf16.mxu0 %vm884_vm3, %v11369_v6  ;;  %v15575_v6 = vsel %vm14717_vm12, %v5074_v39, %v5075_v36  ;;  %v4982_v39 = vld [vmem:[#allocation2 + $0x9c] sm:$0xe] }
 0x18f   : > { %12537 = vmatmul.mubr.msk.bf16.vlgmr.msra.gmra.mrb[0].mxu0 %vm884_vm3, %v11370_v15  ;;  %v11474_v15 = vrot.slane %v4978_v61, 9 }
 0x190   : > { %12569 = vmatpush3.bf16.msra.mxu0 %v4050_v44  ;;  %12540 = vmatprep.mubr.msk.bf16.mxu0 %vm884_vm3, %v17894_v41  ;;  %v5088_v44 = vrot.slane %v5086_v31, 4  ;;  %v4245_v41 = vld [vmem:[#allocation2 + $0x18] sm:$0xf] }
 0x191   : > { %13701 = vmatprep.subr.msk.bf16.mxu0 %vm933_vm2, %v11434_v10  ;;  %v13813_v10 = vld [vmem:[#allocation2 + $0x6c] sm:$0xff]   ;;  %v15589_v53 = vsel %vm14717_vm12, %v11474_v15, %v5086_v31  ;;  %v4294_v55 = vshrl.u32 %v4245_v41, 16  ;;  %v11478_v15 = vrot.slane %v4982_v39, 9 }
 0x192   : > { %17929 = vst [vmem:[#allocation14_spill] sm:$0xff] %v15589_v53  ;;  %v15595_v49 = vsel %vm14717_vm12, %v5088_v44, %v5089_v40  ;;  %v13817_v44 = vld [vmem:[#allocation2 + $0x9c] sm:$0xff]  }
 0x193   : > { %17930 = vst [vmem:[#allocation13_spill] sm:$0xff] %v15595_v49 }
 0x197   : > { %12541 = vmatmul.mubr.msk.bf16.gmra.mrb[4].mxu0 %vm884_vm3, %v17896_v34  ;;  %v13814_v34 = vld [vmem:[#allocation2 + $0x78] sm:$0xff]  }
 0x198   : > { %12544 = vmatprep.mubr.msk.bf16.mxu0 %vm884_vm3, %v17899_v0  ;;  %v4248_v0 = vld [vmem:[#allocation2 + $0x24] sm:$0xf] }
 0x199   : > { %v4318_v57 = vshrl.u32 %v4248_v0, 16 }
 0x19f   : > { %12545 = vmatmul.mubr.msk.bf16.gmra.mrb[8].mxu0 %vm884_vm3, %v17902_v52  ;;  %v4297_v52 = vshll.u32 %v4245_v41, 16 }
 0x1a0   : > { %12548 = vmatprep.mubr.msk.bf16.mxu0 %vm884_vm3, %v17905_v46  ;;  %v15602_v46 = vld [vmem:[#allocation2 + $0x88] sm:$0xf] }
 0x1a1   : > { %v5100_v48 = vrot.slane %v15602_v46, 5  ;;  %v4299_v18 = vrot.slane %v4297_v52, 5  ;;  %v4254_v52 = vld [vmem:[#allocation2 + $0x3c] sm:$0xf] }
 0x1a3   : > { %v5102_v50 = vrot.slane %v5100_v48, 4  ;;  %v15617_v4 = vsel %vm14717_vm12, %v11476_v9, %v5100_v48 }
 0x1a4   : > { %17931 = vst [vmem:[#allocation11_spill] sm:$0xff] %v15617_v4  ;;  %v4272_v4 = vld [vmem:[#allocation2 + $0x84] sm:$0xf] }
 0x1a7   : > { %12549 = vmatmul.mubr.msk.bf16.gmra.mrb[12].mxu0 %vm884_vm3, %v17908_v43  ;;  %v4321_v43 = vshll.u32 %v4248_v0, 16 }
 0x1a8   : > { %12552 = vmatprep.mubr.msk.bf16.mxu0 %vm884_vm3, %v17911_v19  ;;  %v5103_v19 = vrot.slane %v15604_v13, 5 }
 0x1a9   : > { %v4323_v60 = vrot.slane %v4321_v43, 5 }
 0x1af   : > { %12553 = vmatmul.mubr.msk.bf16.gmra.mrb[16].mxu0 %vm884_vm3, %v17914_v38  ;;  %v4296_v38 = vrot.slane %v4294_v55, 4 }
 0x1b0   : > { %12556 = vmatprep.mubr.msk.bf16.mxu0 %vm884_vm3, %v17917_v58  ;;  %v15611_v58 = vld [vmem:[#allocation2 + $0x20] sm:$0x1] }
 0x1b7   : > { %12557 = vmatmul.mubr.msk.bf16.gmra.mrb[20].mxu0 %vm884_vm3, %v17920_v56  ;;  %v4309_v56 = vrot.slane %v4307_v27, 4 }
 0x1b8   : > { %12560 = vmatprep.mubr.msk.bf16.mxu0 %vm884_vm3, %v17923_v8  ;;  %v4320_v8 = vrot.slane %v4318_v57, 4  ;;  %v13818_v57 = vld [vmem:[#allocation2 + $0xa8] sm:$0xff]  }
 0x1ba   : > { %v4324_v36 = vor.u32 %v4323_v60, %v4320_v8  ;;  %v4369_v8 = vshll.u32 %v4254_v52, 16  ;;  %v4375_v60 = vshll.u32 %v15646_v12, 16 }
 0x1bc   : > { %v15652_v48 = vrot.slane %v4324_v36, 4  ;;  %v4984_v36 = vld [vmem:[#allocation2 + $0xb4] sm:$0xe] }
 0x1bf   : > { %12561 = vmatmul.mubr.msk.bf16.gmra.mrb[24].mxu0 %vm884_vm3, %v17926_v37  ;;  %v15622_v37 = vsel %vm14717_vm12, %v5102_v50, %v5103_v19 }
 0x1c0   : > { %12564 = vmatprep.mubr.msk.bf16.mxu0 %vm884_vm3, %v17927_v54  ;;  %17932 = vst [vmem:[#allocation12_spill] sm:$0xff] %v15622_v37  ;;  %v4331_v54 = vshrl.u32 %v15609_v42, 16 }
 0x1c2   : > { %v4333_v61 = vrot.slane %v4331_v54, 4  ;;  %v4379_v54 = vshrl.u32 %v15646_v12, 16 }
 0x1c4   : > { %v4334_v9 = vor.u32 %v4333_v61, %v15639_v26 }
 0x1c6   : > { %v15682_v61 = vrot.slane %v4334_v9, 4  ;;  %v13820_v9 = vld [vmem:[#allocation2 + $0xc0] sm:$0xff]  }
 0x1c7   : > { %12565 = vmatmul.mubr.msk.bf16.gmra.mrb[28].mxu0 %vm884_vm3, %v17928_v62  ;;  %v4313_v62 = vshll.u32 %v15611_v58, 16 }
 0x1c8   : > { %12570 = vmatprep.mubr.msk.bf16.mxu0 %vm884_vm3, %v13806_v35  ;;  %v15717_v35 = vld [vmem:[#allocation2 + $0xd4] sm:$0x1] }
 0x1c9   : > { %v4315_v16 = vrot.slane %v4313_v62, 5  ;;  %v15668_v62 = vld [vmem:[#allocation2 + $0xb8] sm:$0xf] }
 0x1ca   : > { %v5128_v39 = vrot.slane %v15668_v62, 5 }
 0x1cf   : > { %12571 = vmatmul.mubr.msk.bf16.vlgmr.msra.gmra.mrb[0].mxu0 %vm884_vm3, %v13807_v20  ;;  %v15628_v20 = vld [vmem:[#allocation2 + $0x2c] sm:$0x1] }
 0x1d0   : > { %12603 = vmatpush3.bf16.msra.mxu0 %v4776_v14  ;;  %12574 = vmatprep.mubr.msk.bf16.mxu0 %vm884_vm3, %v13808_v24  ;;  %v4251_v24 = vld [vmem:[#allocation2 + $0x30] sm:$0xf]  ;;  %v4300_v14 = vor.u32 %v4299_v18, %v4296_v38  ;;  %v15661_v18 = vld [vmem:[#allocation2 + $0x38] sm:$0x1] }
 0x1d1   : > { %13702 = vmatprep.subr.msk.bf16.mxu0 %vm933_vm2, %v15555_v2  ;;  %v4342_v31 = vshrl.u32 %v4251_v24, 16  ;;  %v4345_v40 = vshll.u32 %v4251_v24, 16  ;;  %v15670_v24 = vld [vmem:[#allocation2 + $0xbc] sm:$0x1] }
 0x1d2   : > { %v4301_v0 = vrot.slane %v4300_v14, 4 }
 0x1d3   : > { %v4344_v38 = vrot.slane %v4342_v31, 4  ;;  %v4347_v50 = vrot.slane %v4345_v40, 5  ;;  %v4257_v40 = vld [vmem:[#allocation2 + $0x48] sm:$0xf] }
 0x1d4   : > { %v4306_v14 = vsel %vm14355_vm9, %v4301_v0, %v15613_v47  ;;  %v13819_v0 = vld [vmem:[#allocation2 + $0xb4] sm:$0xff]  }
 0x1d5   : > { %v4348_v31 = vor.u32 %v4347_v50, %v4344_v38  ;;  %v4390_v50 = vshrl.u32 %v4257_v40, 16 }
 0x1d7   : > { %12575 = vmatmul.mubr.msk.bf16.gmra.mrb[4].mxu0 %vm884_vm3, %v13809_v28  ;;  %v4310_v28 = vor.u32 %v4309_v56, %v15613_v47  ;;  %v15685_v47 = vld [vmem:[#allocation2 + $0x4c] sm:$0xf] }
 0x1d8   : > { %12578 = vmatprep.mubr.msk.bf16.mxu0 %vm884_vm3, %v13810_v21  ;;  %v15632_v21 = vld [vmem:[#allocation2 + $0x34] sm:$0xf] }
 0x1d9   : > { %v4351_v41 = vshll.u32 %v15632_v21, 16  ;;  %v4355_v55 = vshrl.u32 %v15632_v21, 16  ;;  %v4311_v43 = vrot.slane %v4310_v28, 4 }
 0x1db   : > { %v15663_v56 = vrot.slane %v4351_v41, 5  ;;  %v4357_v25 = vrot.slane %v4355_v55, 4 }
 0x1dd   : > { %v4358_v55 = vor.u32 %v4357_v25, %v15663_v56  ;;  %v4399_v25 = vshll.u32 %v15685_v47, 16 }
 0x1df   : > { %12579 = vmatmul.mubr.msk.bf16.gmra.mrb[8].mxu0 %vm884_vm3, %v13811_v3  ;;  %v5114_v3 = vrot.slane %v15634_v30, 5 }
 0x1e0   : > { %12582 = vmatprep.mubr.msk.bf16.mxu0 %vm884_vm3, %v13812_v33  ;;  %v5117_v33 = vrot.slane %v15636_v45, 5 }
 0x1e1   : > { %v15650_v27 = vsel %vm14717_vm12, %v11478_v15, %v5114_v3  ;;  %v11480_v15 = vrot.slane %v4984_v36, 9 }
 0x1e2   : > { %17933 = vst [vmem:[#allocation16_spill] sm:$0xff] %v15650_v27 }
 0x1e7   : > { %12583 = vmatmul.mubr.msk.bf16.gmra.mrb[12].mxu0 %vm884_vm3, %v13813_v10  ;;  %v4337_v10 = vshll.u32 %v15628_v20, 16 }
 0x1e8   : > { %12586 = vmatprep.mubr.msk.bf16.mxu0 %vm884_vm3, %v13814_v34  ;;  %v5116_v34 = vrot.slane %v5114_v3, 4  ;;  %v5131_v3 = vrot.slane %v15670_v24, 5 }
 0x1e9   : > { %v15676_v28 = vrot.slane %v4337_v10, 5  ;;  %v5130_v10 = vrot.slane %v5128_v39, 4 }
 0x1ea   : > { %v15656_v19 = vsel %vm14717_vm12, %v5116_v34, %v5117_v33  ;;  %v4316_v33 = vsel %vm14355_vm9, %v4311_v43, %v4315_v16  ;;  %v4371_v34 = vrot.slane %v4369_v8, 5  ;;  %v4381_v43 = vrot.slane %v4379_v54, 4  ;;  %v4260_v8 = vld [vmem:[#allocation2 + $0x54] sm:$0xf] }
 0x1eb   : > { %17934 = vst [vmem:[#allocation17_spill] sm:$0xff] %v15656_v19  ;;  %v15694_v16 = vsel %vm14717_vm12, %v11480_v15, %v5128_v39  ;;  %v11435_v38 = vcombine.low %v4306_v14, %v4316_v33  ;;  %v15698_v36 = vsel %vm14717_vm12, %v5130_v10, %v5131_v3  ;;  %v4403_v54 = vshrl.u32 %v15685_v47, 16  ;;  %v15722_v39 = vld [vmem:[#allocation2 + $0x50] sm:$0x1]  ;;  %v15777_v19 = vld [vmem:[#allocation2 + $0x7c] sm:$0xf] }
 0x1ec   : > { %17935 = vst [vmem:[#allocation18_spill] sm:$0xff] %v15694_v16  ;;  %17936 = vst [vmem:[#allocation19_spill] sm:$0xff] %v15698_v36  ;;  %v4349_v14 = vrot.slane %v4348_v31, 4  ;;  %v4340_v3 = vsel %vm14355_vm9, %v15682_v61, %v15676_v28  ;;  %v4414_v10 = vshrl.u32 %v4260_v8, 16  ;;  %v4392_v31 = vrot.slane %v4390_v50, 4 }
 0x1ed   : > { %v15724_v28 = vrot.slane %v4399_v25, 5  ;;  %v4405_v61 = vrot.slane %v4403_v54, 4  ;;  %v4423_v16 = vshll.u32 %v15562_v17, 16  ;;  %v4427_v25 = vshrl.u32 %v15562_v17, 16  ;;  %v4263_v54 = vld [vmem:[#allocation2 + $0x60] sm:$0xf] }
 0x1ee   : > { %v4354_v11 = vsel %vm14355_vm9, %v4349_v14, %v15663_v56  ;;  %v4438_v27 = vshrl.u32 %v4263_v54, 16  ;;  %v4441_v37 = vshll.u32 %v4263_v54, 16 }
 0x1ef   : > { %12587 = vmatmul.mubr.msk.bf16.gmra.mrb[16].mxu0 %vm884_vm3, %v13815_v5  ;;  %v15715_v5 = vld [vmem:[#allocation2 + $0xd0] sm:$0xf] }
 0x1f0   : > { %12590 = vmatprep.mubr.msk.bf16.mxu0 %vm884_vm3, %v13816_v29  ;;  %v4366_v29 = vshrl.u32 %v4254_v52, 16  ;;  %v15688_v52 = vld [vmem:[#allocation2 + $0x44] sm:$0x1]  ;;  %v4443_v54 = vrot.slane %v4441_v37, 5 }
 0x1f1   : > { %v4385_v15 = vshll.u32 %v15688_v52, 16 }
 0x1f2   : > { %v4368_v41 = vrot.slane %v4366_v29, 4  ;;  %v4393_v29 = vshll.u32 %v4257_v40, 16 }
 0x1f3   : > { %v15731_v50 = vrot.slane %v4385_v15, 5 }
 0x1f4   : > { %v4372_v40 = vor.u32 %v4371_v34, %v4368_v41  ;;  %v4986_v41 = vld [vmem:[#allocation2 + $0xcc] sm:$0xe]  ;;  %v5142_v34 = vrot.slane %v15715_v5, 5 }
 0x1f7   : > { %12591 = vmatmul.mubr.msk.bf16.gmra.mrb[20].mxu0 %vm884_vm3, %v13817_v44  ;;  %v4361_v44 = vshll.u32 %v15661_v18, 16 }
 0x1f8   : > { %12594 = vmatprep.mubr.msk.bf16.mxu0 %vm884_vm3, %v13818_v57  ;;  %v15690_v57 = vrot.slane %v4375_v60, 5  ;;  %v4330_v60 = vsel %vm14355_vm9, %v15652_v48, %v15639_v26  ;;  %v4359_v26 = vrot.slane %v4358_v55, 4  ;;  %v4417_v55 = vshll.u32 %v4260_v8, 16  ;;  %v15737_v8 = vld [vmem:[#allocation2 + $0x64] sm:$0xf] }
 0x1f9   : > { %v4363_v33 = vrot.slane %v4361_v44, 5  ;;  %v4395_v44 = vrot.slane %v4393_v29, 5  ;;  %v5144_v29 = vrot.slane %v5142_v34, 4 }
 0x1fa   : > { %v4382_v48 = vor.u32 %v4381_v43, %v15690_v57  ;;  %v11482_v43 = vrot.slane %v4986_v41, 9  ;;  %v4419_v17 = vrot.slane %v4417_v55, 5 }
 0x1fb   : > { %v4364_v36 = vsel %vm14355_vm9, %v4359_v26, %v4363_v33  ;;  %v4396_v14 = vor.u32 %v4395_v44, %v4392_v31  ;;  %v4406_v33 = vor.u32 %v4405_v61, %v15724_v28  ;;  %v4416_v26 = vrot.slane %v4414_v10, 4  ;;  %v15760_v10 = vld [vmem:[#allocation4] sm:$0xff]  }
 0x1fc   : > { %v15741_v41 = vsel %vm14717_vm12, %v11482_v43, %v5142_v34  ;;  %v15743_v56 = vrot.slane %v4382_v48, 4  ;;  %v4447_v34 = vshll.u32 %v15737_v8, 16  ;;  %v4451_v48 = vshrl.u32 %v15737_v8, 16  ;;  %13102 = vmatprep.subr.bf16.mxu1 %v15760_v10 }
 0x1fd   : > { %17937 = vst [vmem:[#allocation20_spill] sm:$0xff] %v15741_v41  ;;  %v11436_v31 = vcombine.low %v4330_v60, %v4340_v3  ;;  %v5246_v44 = vsel %vm933_vm2, %v15555_v2, 0  ;;  %v4429_v61 = vrot.slane %v4427_v25, 4  ;;  %v11437_v55 = vcombine.low %v4354_v11, %v4364_v36  ;;  %v15771_v2 = vld [vmem:[#allocation2 + $0x68] sm:$0x1]  ;;  %13110 = vmatpush3.bf16.msra.mxu1 %v15760_v10 }
 0x1fe   : > { %v4397_v3 = vrot.slane %v4396_v14, 4  ;;  %v4420_v25 = vor.u32 %v4419_v17, %v4416_v26  ;;  %v4269_v11 = vld [vmem:[#allocation2 + $0x78] sm:$0xf]  ;;  %v4440_v36 = vrot.slane %v4438_v27, 4 }
 0x1ff   : > { %12595 = vmatmul.mubr.msk.bf16.gmra.mrb[24].mxu0 %vm884_vm3, %v13819_v0  ;;  %v5145_v0 = vrot.slane %v15717_v35, 5  ;;  %v4486_v26 = vshrl.u32 %v4269_v11, 16  ;;  %v4489_v27 = vshll.u32 %v4269_v11, 16 }
 0x200   : > { %12598 = vmatprep.mubr.msk.bf16.mxu0 %vm884_vm3, %v13820_v9  ;;  %v15729_v9 = vrot.slane %v4372_v40, 4  ;;  %v4409_v40 = vshll.u32 %v15722_v39, 16  ;;  %v4402_v37 = vsel %vm14355_vm9, %v4397_v3, %v15724_v28 }
 0x201   : > { %v15748_v15 = vsel %vm14717_vm12, %v5144_v29, %v5145_v0  ;;  %v15758_v0 = vrot.slane %v4423_v16, 5  ;;  %v4266_v16 = vld [vmem:[#allocation2 + $0x6c] sm:$0xf]  ;;  %v4407_v29 = vrot.slane %v4406_v33, 4  ;;  %v4475_v33 = vshrl.u32 %v15580_v23, 16 }
 0x202   : > { %17938 = vst [vmem:[#allocation21_spill] sm:$0xff] %v15748_v15  ;;  %v4378_v43 = vsel %vm14355_vm9, %v15729_v9, %v15690_v57  ;;  %v4411_v60 = vrot.slane %v4409_v40, 5  ;;  %v15775_v57 = vrot.slane %v4447_v34, 5  ;;  %v4453_v9 = vrot.slane %v4451_v48, 4 }
 0x203   : > { %v4462_v14 = vshrl.u32 %v4266_v16, 16  ;;  %v4465_v40 = vshll.u32 %v4266_v16, 16  ;;  %v4495_v34 = vshll.u32 %v15777_v19, 16  ;;  %v4499_v48 = vshrl.u32 %v15777_v19, 16 }
 0x204   : > { %v4412_v17 = vsel %vm14355_vm9, %v4407_v29, %v4411_v60  ;;  %v4444_v16 = vor.u32 %v4443_v54, %v4440_v36  ;;  %v4454_v41 = vor.u32 %v4453_v9, %v15775_v57  ;;  %v4477_v60 = vrot.slane %v4475_v33, 4 }
 0x205   : > { %v4464_v49 = vrot.slane %v4462_v14, 4  ;;  %v4467_v53 = vrot.slane %v4465_v40, 5  ;;  %v4488_v3 = vrot.slane %v4486_v26, 4  ;;  %v4491_v29 = vrot.slane %v4489_v27, 5  ;;  %v4275_v27 = vld [vmem:[#allocation2 + $0x90] sm:$0xf] }
 0x206   : > { %v4501_v36 = vrot.slane %v4499_v48, 4  ;;  %v4510_v54 = vshrl.u32 %v4272_v4, 16  ;;  %v4513_v9 = vshll.u32 %v4272_v4, 16  ;;  %v11439_v14 = vcombine.low %v4402_v37, %v4412_v17 }
 0x207   : > { %12599 = vmatmul.mubr.msk.bf16.gmra.mrb[28].mxu0 %vm884_vm3, %v13821_v1  ;;  %v4388_v1 = vsel %vm14355_vm9, %v15743_v56, %v15731_v50  ;;  %v4430_v50 = vor.u32 %v4429_v61, %v15758_v0  ;;  %v4457_v56 = vshll.u32 %v15771_v2, 16  ;;  %v4421_v61 = vrot.slane %v4420_v25, 4  ;;  %v15796_v25 = vld [vmem:[#allocation2 + $0x80] sm:$0x1] }
 0x208   : > { %12604 = vmatprep.mubr.msk.bf16.mxu0 %vm884_vm3, %v11435_v38  ;;  %v4433_v38 = vshll.u32 %v15564_v22, 16  ;;  %v4471_v22 = vshll.u32 %v15580_v23, 16  ;;  %v4468_v33 = vor.u32 %v4467_v53, %v4464_v49  ;;  %v4481_v26 = vshll.u32 %v15582_v51, 16 }
 0x209   : > { %v4431_v23 = vrot.slane %v4430_v50, 4  ;;  %v4459_v11 = vrot.slane %v4457_v56, 5  ;;  %v4455_v50 = vrot.slane %v4454_v41, 4  ;;  %v11438_v56 = vcombine.low %v4378_v43, %v4388_v1 }
 0x20a   : > { %v4435_v15 = vrot.slane %v4433_v38, 5  ;;  %v15794_v28 = vrot.slane %v4471_v22, 5  ;;  %v15798_v38 = vrot.slane %v4495_v34, 5  ;;  %v4426_v40 = vsel %vm14355_vm9, %v4421_v61, %v15758_v0  ;;  %v15811_v34 = vld [vmem:[#allocation2 + $0x94] sm:$0xf] }
 0x20b   : > { %v4505_v41 = vshll.u32 %v15796_v25, 16  ;;  %v4512_v1 = vrot.slane %v4510_v54, 4  ;;  %v4515_v37 = vrot.slane %v4513_v9, 5  ;;  %v4460_v53 = vsel %vm14355_vm9, %v4455_v50, %v4459_v11  ;;  %v4278_v54 = vld [vmem:[#allocation2 + $0x9c] sm:$0xf] }
 0x20c   : > { %v4436_v22 = vsel %vm14355_vm9, %v4431_v23, %v4435_v15  ;;  %v4478_v4 = vor.u32 %v4477_v60, %v15794_v28  ;;  %v4502_v43 = vor.u32 %v4501_v36, %v15798_v38  ;;  %v4534_v15 = vshrl.u32 %v4275_v27, 16 }
 0x20d   : > { %v4537_v17 = vshll.u32 %v4275_v27, 16  ;;  %v4543_v48 = vshll.u32 %v15811_v34, 16  ;;  %v4547_v61 = vshrl.u32 %v15811_v34, 16  ;;  %v4483_v60 = vrot.slane %v4481_v26, 5 }
 0x20e   : > { %v4479_v23 = vrot.slane %v4478_v4, 4  ;;  %v4516_v11 = vor.u32 %v4515_v37, %v4512_v1  ;;  %v4529_v36 = vshll.u32 %v15604_v13, 16  ;;  %v11440_v9 = vcombine.low %v4426_v40, %v4436_v22  ;;  %v4281_v40 = vld [vmem:[#allocation2 + $0xa8] sm:$0xf]  ;;  %v15836_v22 = vld [vmem:[#allocation2 + $0xac] sm:$0xf] }
 0x20f   : > { %12605 = vmatmul.mubr.msk.bf16.vlgmr.msra.gmra.mrb[0].mxu0 %vm884_vm3, %v11436_v31  ;;  %v4445_v31 = vrot.slane %v4444_v16, 4  ;;  %v4469_v16 = vrot.slane %v4468_v33, 4  ;;  %v15829_v27 = vrot.slane %v4543_v48, 5  ;;  %v4558_v13 = vshrl.u32 %v4278_v54, 16 }
 0x210   : > { %12637 = vmatpush3.bf16.msra.mxu0 %v5246_v44  ;;  %12608 = vmatprep.mubr.msk.bf16.mxu0 %vm884_vm3, %v11437_v55  ;;  %v4519_v44 = vshll.u32 %v15602_v46, 16  ;;  %v4523_v55 = vshrl.u32 %v15602_v46, 16  ;;  %v4492_v46 = vor.u32 %v4491_v29, %v4488_v3  ;;  %v4503_v29 = vrot.slane %v4502_v43, 4 }
 0x211   : > { %12670 = vmatprep.subr.bf16.mxu0 %v15760_v10  ;;  %v4450_v0 = vsel %vm14355_vm9, %v4445_v31, %v15775_v57  ;;  %v4507_v57 = vrot.slane %v4505_v41, 5  ;;  %v4474_v33 = vsel %vm14355_vm9, %v4469_v16, %v15794_v28  ;;  %v4484_v4 = vsel %vm14355_vm9, %v4479_v23, %v4483_v60 }
 0x212   : > { %v15819_v49 = vrot.slane %v4519_v44, 5  ;;  %v4525_v51 = vrot.slane %v4523_v55, 4  ;;  %v4493_v3 = vrot.slane %v4492_v46, 4  ;;  %v11441_v31 = vcombine.low %v4450_v0, %v4460_v53  ;;  %v15827_v44 = vld [vmem:[#allocation2 + $0x98] sm:$0x1] }
 0x213   : > { %v4536_v55 = vrot.slane %v4534_v15, 4  ;;  %v4561_v26 = vshll.u32 %v4278_v54, 16  ;;  %v4508_v46 = vsel %vm14355_vm9, %v4503_v29, %v4507_v57  ;;  %v4517_v43 = vrot.slane %v4516_v11, 4  ;;  %v15858_v54 = vld [vmem:[#allocation2 + $0xb0] sm:$0x1] }
 0x214   : > { %v4526_v50 = vor.u32 %v4525_v51, %v15819_v49  ;;  %v4498_v41 = vsel %vm14355_vm9, %v4493_v3, %v15798_v38  ;;  %v4531_v1 = vrot.slane %v4529_v36, 5  ;;  %v4553_v28 = vshll.u32 %v15827_v44, 16 }
 0x215   : > { %v4567_v0 = vshll.u32 %v15634_v30, 16  ;;  %v4571_v53 = vshrl.u32 %v15634_v30, 16  ;;  %v4582_v51 = vshrl.u32 %v4281_v40, 16  ;;  %v4585_v15 = vshll.u32 %v4281_v40, 16 }
 0x216   : > { %v4527_v37 = vrot.slane %v4526_v50, 4  ;;  %v4595_v38 = vshrl.u32 %v15836_v22, 16  ;;  %v4560_v16 = vrot.slane %v4558_v13, 4  ;;  %v4563_v23 = vrot.slane %v4561_v26, 5 }
 0x217   : > { %12609 = vmatmul.mubr.msk.bf16.gmra.mrb[4].mxu0 %vm884_vm3, %v11438_v56  ;;  %v4539_v56 = vrot.slane %v4537_v17, 5  ;;  %v4591_v17 = vshll.u32 %v15836_v22, 16  ;;  %v11442_v60 = vcombine.low %v4474_v33, %v4484_v4  ;;  %v11443_v57 = vcombine.low %v4498_v41, %v4508_v46 }
 0x218   : > { %12612 = vmatprep.mubr.msk.bf16.mxu0 %vm884_vm3, %v11439_v14  ;;  %v4549_v14 = vrot.slane %v4547_v61, 4  ;;  %v4522_v30 = vsel %vm14355_vm9, %v4517_v43, %v15819_v49  ;;  %v4532_v3 = vsel %vm14355_vm9, %v4527_v37, %v4531_v1  ;;  %v4555_v29 = vrot.slane %v4553_v28, 5  ;;  %v4287_v43 = vld [vmem:[#allocation2 + $0xc0] sm:$0xf]  ;;  %v15863_v1 = vld [vmem:[#allocation2 + $0xc4] sm:$0xf] }
 0x219   : > { %v4540_v48 = vor.u32 %v4539_v56, %v4536_v55  ;;  %v15856_v11 = vrot.slane %v4567_v0, 5  ;;  %v4573_v36 = vrot.slane %v4571_v53, 4  ;;  %v4593_v50 = vrot.slane %v4591_v17, 5  ;;  %v4284_v56 = vld [vmem:[#allocation2 + $0xb4] sm:$0xf] }
 0x21a   : > { %v4550_v61 = vor.u32 %v4549_v14, %v15829_v27  ;;  %v4597_v55 = vrot.slane %v4595_v38, 4  ;;  %v4564_v4 = vor.u32 %v4563_v23, %v4560_v16  ;;  %v4577_v13 = vshll.u32 %v15636_v45, 16 }
 0x21b   : > { %v4541_v14 = vrot.slane %v4540_v48, 4  ;;  %v4601_v49 = vshll.u32 %v15858_v54, 16  ;;  %v11444_v26 = vcombine.low %v4522_v30, %v4532_v3  ;;  %v4574_v40 = vor.u32 %v4573_v36, %v15856_v11 }
 0x21c   : > { %v4551_v33 = vrot.slane %v4550_v61, 4  ;;  %v4606_v41 = vshrl.u32 %v4284_v56, 16  ;;  %v4609_v46 = vshll.u32 %v4284_v56, 16  ;;  %v4598_v28 = vor.u32 %v4597_v55, %v4593_v50 }
 0x21d   : > { %v4615_v0 = vshll.u32 %v15668_v62, 16  ;;  %v4619_v53 = vshrl.u32 %v15668_v62, 16  ;;  %v4546_v45 = vsel %vm14355_vm9, %v4541_v14, %v15829_v27  ;;  %v4579_v17 = vrot.slane %v4577_v13, 5  ;;  %v4290_v14 = vld [vmem:[#allocation2 + $0xcc] sm:$0xf] }
 0x21e   : > { %v4630_v38 = vshrl.u32 %v4287_v43, 16  ;;  %v4633_v48 = vshll.u32 %v4287_v43, 16  ;;  %v4639_v61 = vshll.u32 %v15863_v1, 16  ;;  %v4643_v16 = vshrl.u32 %v15863_v1, 16 }
 0x21f   : > { %12613 = vmatmul.mubr.msk.bf16.gmra.mrb[8].mxu0 %vm884_vm3, %v11440_v9  ;;  %v4584_v9 = vrot.slane %v4582_v51, 4  ;;  %v4556_v51 = vsel %vm14355_vm9, %v4551_v33, %v4555_v29  ;;  %v4575_v23 = vrot.slane %v4574_v40, 4  ;;  %v4608_v62 = vrot.slane %v4606_v41, 4 }
 0x220   : > { %12616 = vmatprep.mubr.msk.bf16.mxu0 %vm884_vm3, %v11441_v31  ;;  %v4587_v31 = vrot.slane %v4585_v15, 5  ;;  %v4565_v15 = vrot.slane %v4564_v4, 4  ;;  %v4611_v30 = vrot.slane %v4609_v46, 5  ;;  %v4599_v3 = vrot.slane %v4598_v28, 4 }
 0x221   : > { %v4617_v36 = vrot.slane %v4615_v0, 5  ;;  %v11445_v27 = vcombine.low %v4546_v45, %v4556_v51  ;;  %v4635_v55 = vrot.slane %v4633_v48, 5  ;;  %v4641_v29 = vrot.slane %v4639_v61, 5 }
 0x222   : > { %v4588_v37 = vor.u32 %v4587_v31, %v4584_v9  ;;  %v4621_v9 = vrot.slane %v4619_v53, 4  ;;  %v4632_v31 = vrot.slane %v4630_v38, 4  ;;  %v4645_v56 = vrot.slane %v4643_v16, 4 }
 0x223   : > { %v4570_v33 = vsel %vm14355_vm9, %v4565_v15, %v15856_v11  ;;  %v4580_v4 = vsel %vm14355_vm9, %v4575_v23, %v4579_v17  ;;  %v4612_v13 = vor.u32 %v4611_v30, %v4608_v62  ;;  %v4625_v43 = vshll.u32 %v15670_v24, 16 }
 0x224   : > { %v4622_v46 = vor.u32 %v4621_v9, %v4617_v36  ;;  %v4654_v11 = vshrl.u32 %v4290_v14, 16  ;;  %v4663_v28 = vshll.u32 %v15715_v5, 16  ;;  %v4667_v0 = vshrl.u32 %v15715_v5, 16 }
 0x225   : > { %v4636_v53 = vor.u32 %v4635_v55, %v4632_v31  ;;  %v4646_v45 = vor.u32 %v4645_v56, %v4641_v29  ;;  %v11446_v51 = vcombine.low %v4570_v33, %v4580_v4  ;;  %v4613_v15 = vrot.slane %v4612_v13, 4  ;;  %v4971_v56 = vld [vmem:[#allocation2 + $0x18] sm:$0xe] }
 0x226   : > { %v4623_v17 = vrot.slane %v4622_v46, 4  ;;  %v4627_v38 = vrot.slane %v4625_v43, 5  ;;  %v4656_v48 = vrot.slane %v4654_v11, 4  ;;  %v4665_v24 = vrot.slane %v4663_v28, 5  ;;  %v4973_v28 = vld [vmem:[#allocation2 + $0x30] sm:$0xe] }
 0x227   : > { %12617 = vmatmul.mubr.msk.bf16.gmra.mrb[12].mxu0 %vm884_vm3, %v11442_v60  ;;  %v4603_v60 = vrot.slane %v4601_v49, 5  ;;  %v15881_v49 = vld [vmem:[#allocation2 + $0xc8] sm:$0x1]  ;;  %v4669_v16 = vrot.slane %v4667_v0, 4  ;;  %v4637_v23 = vrot.slane %v4636_v53, 4  ;;  %v4618_v5 = vsel %vm14355_vm9, %v4613_v15, %v4617_v36 }
 0x228   : > { %12620 = vmatprep.mubr.msk.bf16.mxu0 %vm884_vm3, %v11443_v57  ;;  %v4589_v57 = vrot.slane %v4588_v37, 4  ;;  %v4657_v37 = vshll.u32 %v4290_v14, 16  ;;  %v4628_v30 = vsel %vm14355_vm9, %v4623_v17, %v4627_v38  ;;  %v4673_v9 = vshll.u32 %v15717_v35, 16 }
 0x229   : > { %v4604_v41 = vsel %vm14355_vm9, %v4599_v3, %v4603_v60  ;;  %v4647_v60 = vrot.slane %v4646_v45, 4  ;;  %v4670_v3 = vor.u32 %v4669_v16, %v4665_v24  ;;  %v5037_v55 = vrot.slane %v15591_v63, 5 }
 0x22a   : > { %v4594_v40 = vsel %vm14355_vm9, %v4589_v57, %v4593_v50  ;;  %v4659_v61 = vrot.slane %v4657_v37, 5  ;;  %v11448_v14 = vcombine.low %v4618_v5, %v4628_v30  ;;  %v4675_v13 = vrot.slane %v4673_v9, 5  ;;  %v4972_v37 = vld [vmem:[#allocation2 + $0x24] sm:$0xe] }
 0x22b   : > { %v11447_v50 = vcombine.low %v4594_v40, %v4604_v41  ;;  %v4671_v4 = vrot.slane %v4670_v3, 4  ;;  %v11467_v40 = vrot.slane %v4971_v56, 9  ;;  %v5039_v41 = vrot.slane %v5037_v55, 4 }
 0x22c   : > { %v4660_v57 = vor.u32 %v4659_v61, %v4656_v48  ;;  %v5040_v46 = vrot.slane %v15611_v58, 5  ;;  %v5051_v58 = vrot.slane %v15632_v21, 5  ;;  %v11468_v45 = vrot.slane %v4972_v37, 9  ;;  %v4974_v61 = vld [vmem:[#allocation2 + $0x3c] sm:$0xe] }
 0x22d   : > { %v4676_v63 = vsel %vm14355_vm9, %v4671_v4, %v4675_v13  ;;  %v5038_v43 = vsel %vm14717_vm12, %v11467_v40, %v5037_v55  ;;  %v5058_v38 = vrot.slane %v15646_v12, 5  ;;  %v5061_v5 = vrot.slane %v15688_v52, 5 }
 0x22e   : > { %v4661_v33 = vrot.slane %v4660_v57, 4  ;;  %v5041_v11 = vsel %vm14717_vm12, %v5039_v41, %v5040_v46  ;;  %v5053_v15 = vrot.slane %v5051_v58, 4  ;;  %v5068_v12 = vrot.slane %v15722_v39, 5 }
 0x22f   : > { %12621 = vmatmul.mubr.msk.bf16.gmra.mrb[16].mxu0 %vm884_vm3, %v11444_v26  ;;  %v4649_v26 = vshll.u32 %v15881_v49, 16  ;;  %v11484_v53 = vcombine.low %v5038_v43, %v5041_v11  ;;  %v5079_v39 = vrot.slane %v15737_v8, 5  ;;  %v5093_v4 = vrot.slane %v15777_v19, 5  ;;  %v4979_v8 = vld [vmem:[#allocation2 + $0x78] sm:$0xe] }
 0x230   : > { %12624 = vmatprep.mubr.msk.bf16.mxu0 %vm884_vm3, %v11445_v27  ;;  %v4642_v27 = vsel %vm14355_vm9, %v4637_v23, %v4641_v29  ;;  %v4666_v35 = vsel %vm14355_vm9, %v4661_v33, %v4665_v24  ;;  %v5044_v29 = vrot.slane %v15609_v42, 5  ;;  %v5054_v42 = vrot.slane %v15661_v18, 5  ;;  %v4975_v24 = vld [vmem:[#allocation2 + $0x48] sm:$0xe] }
 0x231   : > { %v4651_v62 = vrot.slane %v4649_v26, 5  ;;  %v11450_v0 = vcombine.low %v4666_v35, %v4676_v63  ;;  %v5065_v18 = vrot.slane %v15685_v47, 5  ;;  %v11471_v30 = vrot.slane %v4975_v24, 9  ;;  %v17947_v24 = vld [vmem:[#allocation17_spill] sm:$0xff] }
 0x232   : > { %v5046_v26 = vrot.slane %v5044_v29, 4  ;;  %v5045_v17 = vsel %vm14717_vm12, %v11468_v45, %v5044_v29  ;;  %v11475_v40 = vrot.slane %v4979_v8, 9  ;;  %v5095_v41 = vrot.slane %v5093_v4, 4  ;;  %v4981_v29 = vld [vmem:[#allocation2 + $0x90] sm:$0xe] }
 0x233   : > { %v4652_v31 = vsel %vm14355_vm9, %v4647_v60, %v4651_v62  ;;  %v11470_v60 = vrot.slane %v4974_v61, 9  ;;  %v5060_v62 = vrot.slane %v5058_v38, 4  ;;  %v5067_v57 = vrot.slane %v5065_v18, 4 }
 0x234   : > { %v11449_v36 = vcombine.low %v4642_v27, %v4652_v31  ;;  %v5066_v9 = vsel %vm14717_vm12, %v11471_v30, %v5065_v18  ;;  %v4977_v27 = vld [vmem:[#allocation2 + $0x60] sm:$0xe]  ;;  %v5096_v46 = vrot.slane %v15796_v25, 5  ;;  %v5094_v35 = vsel %vm14717_vm12, %v11475_v40, %v5093_v4 }
 0x235   : > { %v5059_v3 = vsel %vm14717_vm12, %v11470_v60, %v5058_v38  ;;  %v5062_v47 = vsel %vm14717_vm12, %v5060_v62, %v5061_v5  ;;  %v5069_v52 = vsel %vm14717_vm12, %v5067_v57, %v5068_v12  ;;  %v11473_v56 = vrot.slane %v4977_v27, 9  ;;  %v4985_v38 = vld [vmem:[#allocation2 + $0xc0] sm:$0xe]  ;;  %v17949_v62 = vld [vmem:[#allocation18_spill] sm:$0xff]  ;;  %v17950_v5 = vld [vmem:[#allocation19_spill] sm:$0xff] }
 0x236   : > { %v11487_v31 = vcombine.low %v5059_v3, %v5062_v47  ;;  %v11488_v55 = vcombine.low %v5066_v9, %v5069_v52  ;;  %v5097_v63 = vsel %vm14717_vm12, %v5095_v41, %v5096_v46  ;;  %v5107_v19 = vrot.slane %v15811_v34, 5  ;;  %v17946_v18 = vld [vmem:[#allocation16_spill] sm:$0xff]  ;;  %v17953_v57 = vld [vmem:[#allocation21_spill] sm:$0xff]  ;;  %v13823_v3 = vld [vmem:[#allocation4 + $0x8] sm:$0xff]  }
 0x237   : > { %12625 = vmatmul.mubr.msk.bf16.gmra.mrb[20].mxu0 %vm884_vm3, %v11446_v51  ;;  %v5047_v51 = vrot.slane %v15628_v20, 5  ;;  %v5055_v20 = vsel %vm14717_vm12, %v5053_v15, %v5054_v42  ;;  %v11492_v43 = vcombine.low %v5094_v35, %v5097_v63  ;;  %v11477_v11 = vrot.slane %v4981_v29, 9  ;;  %v17944_v15 = vld [vmem:[#allocation12_spill] sm:$0xff]  ;;  %13103 = vmatprep.subr.bf16.mxu1 %v13823_v3  ;;  %v13825_v9 = vld [vmem:[#allocation4 + $0x18] sm:$0xff]   ;;  %v13826_v52 = vld [vmem:[#allocation4 + $0x20] sm:$0xff]  }
 0x238   : > { %12628 = vmatprep.mubr.msk.bf16.mxu0 %vm884_vm3, %v11447_v50  ;;  %v11469_v50 = vrot.slane %v4973_v28, 9  ;;  %v5109_v37 = vrot.slane %v5107_v19, 4  ;;  %v5110_v25 = vrot.slane %v15827_v44, 5  ;;  %v5121_v34 = vrot.slane %v15836_v22, 5  ;;  %13111 = vmatpush3.bf16.msra.mxu1 %v13823_v3  ;;  %v13824_v47 = vld [vmem:[#allocation4 + $0x10] sm:$0xff]  }
 0x239   : > { %v5048_v21 = vsel %vm14717_vm12, %v5046_v26, %v5047_v51  ;;  %v5108_v28 = vsel %vm14717_vm12, %v11477_v11, %v5107_v19  ;;  %v5124_v44 = vrot.slane %v15858_v54, 5  ;;  %v5135_v22 = vrot.slane %v15863_v1, 5  ;;  %13104 = vmatprep.subr.bf16.mxu1 %v13824_v47  ;;  %v13828_v27 = vld [vmem:[#allocation4 + $0x30] sm:$0xff]  }
 0x23a   : > { %v5052_v48 = vsel %vm14717_vm12, %v11469_v50, %v5051_v58  ;;  %v11485_v16 = vcombine.low %v5045_v17, %v5048_v21  ;;  %v17940_v58 = vld [vmem:[#allocation14_spill] sm:$0xff]  ;;  %v5123_v51 = vrot.slane %v5121_v34, 4  ;;  %v17943_v50 = vld [vmem:[#allocation11_spill] sm:$0xff]  ;;  %v5138_v54 = vrot.slane %v15881_v49, 5  ;;  %v17952_v49 = vld [vmem:[#allocation20_spill] sm:$0xff] }
 0x23b   : > { %v11486_v23 = vcombine.low %v5052_v48, %v5055_v20  ;;  %v17945_v42 = vcombine.low %v17943_v50, %v17944_v15  ;;  %v11481_v20 = vrot.slane %v4985_v38, 9  ;;  %v5137_v61 = vrot.slane %v5135_v22, 4 }
 0x23c   : > { %v5125_v21 = vsel %vm14717_vm12, %v5123_v51, %v5124_v44  ;;  %v17951_v30 = vcombine.low %v17949_v62, %v17950_v5  ;;  %v17954_v12 = vcombine.low %v17952_v49, %v17953_v57  ;;  %13112 = vmatpush3.bf16.msra.mxu1 %v13824_v47 }
 0x23d   : > { %v5139_v60 = vsel %vm14717_vm12, %v5137_v61, %v5138_v54  ;;  %13105 = vmatprep.subr.bf16.mxu1 %v13825_v9 }
 0x23f   : > { %12629 = vmatmul.mubr.msk.bf16.gmra.mrb[24].mxu0 %vm884_vm3, %v11448_v14  ;;  %v5081_v14 = vrot.slane %v5079_v39, 4 }
 0x240   : > { %12632 = vmatprep.mubr.msk.bf16.mxu0 %vm884_vm3, %v11449_v36  ;;  %v5082_v36 = vrot.slane %v15771_v2, 5  ;;  %v17939_v2 = vcombine.low %v15571_v32, %v15575_v6  ;;  %v17941_v32 = vld [vmem:[#allocation13_spill] sm:$0xff]  ;;  %13113 = vmatpush3.bf16.msra.mxu1 %v13825_v9 }
 0x241   : > { %v17942_v6 = vcombine.low %v17940_v58, %v17941_v32  ;;  %13106 = vmatprep.subr.bf16.mxu1 %v13826_v52 }
 0x242   : > { %v5083_v33 = vsel %vm14717_vm12, %v5081_v14, %v5082_v36  ;;  %v16012_v14 = vld [vmem:[%s17738_s2] ss:$0 sm:$0xff]  ;;  %v6289_v36 = vld [vmem:[#allocation3] sm:$0xf] }
 0x243   : > { %v6338_v41 = vshrl.u32 %v6289_v36, 16  ;;  %v6341_v46 = vshll.u32 %v6289_v36, 16 }
 0x244   : > { %13114 = vmatpush3.bf16.msra.mxu1 %v13826_v52 }
 0x245   : > { %v6340_v58 = vrot.slane %v6338_v41, 4  ;;  %v6343_v32 = vrot.slane %v6341_v46, 5 }
 0x247   : > { %12633 = vmatmul.mubr.msk.bf16.gmra.mrb[28].mxu0 %vm884_vm3, %v11450_v0  ;;  %v5111_v0 = vsel %vm14717_vm12, %v5109_v37, %v5110_v25 }
 0x248   : > { %12638 = vmatprep.mubr.msk.bf16.mxu0 %vm884_vm3, %v11484_v53  ;;  %v4983_v53 = vld [vmem:[#allocation2 + $0xa8] sm:$0xe]  ;;  %v11494_v45 = vcombine.low %v5108_v28, %v5111_v0 }
 0x249   : > { %v11479_v26 = vrot.slane %v4983_v53, 9 }
 0x24b   : > { %v5122_v17 = vsel %vm14717_vm12, %v11479_v26, %v5121_v34 }
 0x24c   : > { %v11496_v48 = vcombine.low %v5122_v17, %v5125_v21 }
 0x24f   : > { %12639 = vmatmul.mubr.msk.bf16.vlgmr.msra.gmra.mrb[0].mxu0 %vm884_vm3, %v11485_v16  ;;  %v17948_v16 = vcombine.low %v17946_v18, %v17947_v24  ;;  %v6291_v24 = vld [vmem:[#allocation3 + $0x8] sm:$0x1] }
 0x250   : > { %12642 = vmatprep.mubr.msk.bf16.mxu0 %vm884_vm3, %v11486_v23  ;;  %12671 = vmatpush3.bf16.msra.mxu0 %v15760_v10  ;;  %v5080_v10 = vsel %vm14717_vm12, %v11473_v56, %v5079_v39  ;;  %v5136_v23 = vsel %vm14717_vm12, %v11481_v20, %v5135_v22  ;;  %v13827_v39 = vld [vmem:[#allocation4 + $0x28] sm:$0xff]   ;;  %v16006_v56 = vld [vmem:[#allocation4 + $0x40] sm:$0xff]  }
 0x251   : > { %v11490_v13 = vcombine.low %v5080_v10, %v5083_v33  ;;  %v11498_v1 = vcombine.low %v5136_v23, %v5139_v60  ;;  %12672 = vmatprep.subr.bf16.mxu0 %v13823_v3  ;;  %13107 = vmatprep.subr.bf16.mxu1 %v13827_v39  ;;  %v16014_v33 = vld [vmem:[#allocation3 + $0x4] sm:$0xf] }
 0x252   : > { %13115 = vmatpush3.bf16.msra.mxu1 %v13827_v39  ;;  %v6347_v63 = vshll.u32 %v16014_v33, 16  ;;  %v6351_v19 = vshrl.u32 %v16014_v33, 16 }
 0x253   : > { %13108 = vmatprep.subr.bf16.mxu1 %v13828_v27 }
 0x254   : > { %12673 = vmatpush3.bf16.msra.mxu0 %v13823_v3  ;;  %v16022_v28 = vrot.slane %v6347_v63, 5  ;;  %v6353_v0 = vrot.slane %v6351_v19, 4 }
 0x255   : > { %12674 = vmatprep.subr.bf16.mxu0 %v13824_v47 }
 0x256   : > { %13116 = vmatpush3.bf16.msra.mxu1 %v13828_v27 }
 0x257   : > { %12643 = vmatmul.mubr.msk.bf16.gmra.mrb[4].mxu0 %vm884_vm3, %v11487_v31  ;;  %v13829_v31 = vld [vmem:[#allocation4 + $0x38] sm:$0xff]  }
 0x258   : > { %12646 = vmatprep.mubr.msk.bf16.mxu0 %vm884_vm3, %v11488_v55  ;;  %12675 = vmatpush3.bf16.msra.mxu0 %v13824_v47  ;;  %v13830_v55 = vld [vmem:[#allocation3] sm:$0xff]  }
 0x259   : > { %12676 = vmatprep.subr.bf16.mxu0 %v13825_v9  ;;  %13109 = vmatprep.subr.bf16.mxu1 %v13829_v31 }
 0x25a   : > { %13117 = vmatpush3.bf16.msra.mxu1 %v13829_v31 }
 0x25b   : > { %12718 = vmatprep.subr.bf16.mxu1 %v16006_v56 }
 0x25c   : > { %12677 = vmatpush3.bf16.msra.mxu0 %v13825_v9  ;;  %v6357_v9 = vshll.u32 %v6291_v24, 16 }
 0x25d   : > { %12678 = vmatprep.subr.bf16.mxu0 %v13826_v52 }
 0x25f   : > { %12647 = vmatmul.mubr.msk.bf16.gmra.mrb[8].mxu0 %vm884_vm3, %v17939_v2 }
 0x260   : > { %12650 = vmatprep.mubr.msk.bf16.mxu0 %vm884_vm3, %v11490_v13  ;;  %12679 = vmatpush3.bf16.msra.mxu0 %v13826_v52 }
 0x261   : > { %12680 = vmatprep.subr.bf16.mxu0 %v13827_v39 }
 0x264   : > { %12681 = vmatpush3.bf16.msra.mxu0 %v13827_v39 }
 0x265   : > { %12682 = vmatprep.subr.bf16.mxu0 %v13828_v27 }
 0x267   : > { %12651 = vmatmul.mubr.msk.bf16.gmra.mrb[12].mxu0 %vm884_vm3, %v17942_v6 }
 0x268   : > { %12654 = vmatprep.mubr.msk.bf16.mxu0 %vm884_vm3, %v11492_v43  ;;  %12683 = vmatpush3.bf16.msra.mxu0 %v13828_v27 }
 0x269   : > { %12684 = vmatprep.subr.bf16.mxu0 %v13829_v31 }
 0x26c   : > { %12685 = vmatpush3.bf16.msra.mxu0 %v13829_v31 }
 0x26f   : > { %12655 = vmatmul.mubr.msk.bf16.gmra.mrb[16].mxu0 %vm884_vm3, %v17945_v42  ;;  %v6344_v42 = vor.u32 %v6343_v32, %v6340_v58 }
 0x270   : > { %12658 = vmatprep.mubr.msk.bf16.mxu0 %vm884_vm3, %v11494_v45 }
 0x277   : > { %12659 = vmatmul.mubr.msk.bf16.gmra.mrb[20].mxu0 %vm884_vm3, %v17948_v16 }
 0x278   : > { %12662 = vmatprep.mubr.msk.bf16.mxu0 %vm884_vm3, %v11496_v48  ;;  %v6354_v48 = vor.u32 %v6353_v0, %v16022_v28 }
 0x27f   : > { %12663 = vmatmul.mubr.msk.bf16.gmra.mrb[24].mxu0 %vm884_vm3, %v17951_v30 }
 0x280   : > { %12666 = vmatprep.mubr.msk.bf16.mxu0 %vm884_vm3, %v11498_v1 }
 0x287   : > { %12667 = vmatmul.mubr.msk.bf16.gmra.mrb[28].mxu0 %vm884_vm3, %v17954_v12 }
 0x288   : > { %12686 = vmatprep.mubr.bf16.mxu0 %v13830_v55 }
 0x322   : > { %v12640_v10 = vpop.f32.mrb[0].mxu0 }
 0x323   : > { %v13118_v4 = vadd.f32 %v12640_v10, %v16012_v14  ;;  %v5282_v8 = vpop.f32.mrb[1].mxu0 }
 0x324   : > { %v13119_v13 = vadd.f32 %v16012_v14, %v5282_v8  ;;  %v12641_v40 = vpop.f32.mrb[2].mxu0 }
 0x325   : > { %v13120_v2 = vadd.f32 %v12641_v40, %v16012_v14  ;;  %v5285_v35 = vpop.f32.mrb[3].mxu0  ;;  %v5443_v43 = vmax.f32 %v13118_v4, 0.0 }
 0x326   : > { %v13121_v29 = vadd.f32 %v16012_v14, %v5285_v35  ;;  %v5441_v37 = vmax.f32 %v13119_v13, 0.0  ;;  %v16037_v13 = vrot.slane %v6344_v42, 4  ;;  %v16041_v35 = vrot.slane %v6354_v48, 4 }
 0x327   : > { %v5444_v11 = vmax.f32 %v13120_v2, 0.0 }
 0x328   : > { %v5442_v25 = vmax.f32 %v13121_v29, 0.0 }
 0x329   : > { %v5481_v6 = vpack.c.bf16 %v5444_v11, %v5443_v43  ;;  %v16044_v11 = vrot.slane %v6357_v9, 5 }
 0x32a   : > { %v5480_v34 = vpack.c.bf16 %v5442_v25, %v5441_v37  ;;  %v12644_v53 = vpop.f32.mrb[4].mxu0 }
 0x32b   : > { %v5504_v45 = vshrl.u32 %v5481_v6, 16  ;;  %v13122_v26 = vadd.f32 %v12644_v53, %v16012_v14  ;;  %v5298_v51 = vpop.f32.mrb[5].mxu0  ;;  %v5507_v21 = vshll.u32 %v5481_v6, 16 }
 0x32c   : > { %v5497_v44 = vshrl.u32 %v5480_v34, 16  ;;  %v13123_v50 = vadd.f32 %v16012_v14, %v5298_v51  ;;  %v12645_v15 = vpop.f32.mrb[6].mxu0  ;;  %v5500_v61 = vshll.u32 %v5480_v34, 16 }
 0x32d   : > { %v5506_v17 = vrot.slane %v5504_v45, 7  ;;  %v13124_v22 = vadd.f32 %v12645_v15, %v16012_v14  ;;  %v5301_v38 = vpop.f32.mrb[7].mxu0  ;;  %v5447_v54 = vmax.f32 %v13122_v26, 0.0 }
 0x32e   : > { %v5499_v20 = vrot.slane %v5497_v44, 7  ;;  %v13125_v18 = vadd.f32 %v16012_v14, %v5301_v38  ;;  %v5445_v1 = vmax.f32 %v13123_v50, 0.0 }
 0x32f   : > { %v5509_v16 = vor.u32 %v5507_v21, %v5506_v17  ;;  %v5657_v60 = vsel %vm14199_vm6, %v5506_v17, 0  ;;  %v5448_v62 = vmax.f32 %v13124_v22, 0.0  ;;  %v7109_v17 = vrot.slane %v16014_v33, 5 }
 0x330   : > { %v11521_v5 = vcombine.low %v5657_v60, %v5657_v60  ;;  %v5502_v30 = vor.u32 %v5500_v61, %v5499_v20  ;;  %v5656_v49 = vsel %vm14199_vm6, %v5499_v20, 0  ;;  %v5446_v57 = vmax.f32 %v13125_v18, 0.0 }
 0x331   : > { %v5641_v12 = vsel %vm14199_vm6, 0, %v5509_v16  ;;  %v11518_v3 = vcombine.low %v5656_v49, %v5656_v49  ;;  %v5483_v47 = vpack.c.bf16 %v5448_v62, %v5447_v54 }
 0x332   : > { %v11519_v52 = vcombine.low %v5641_v12, %v5641_v12  ;;  %v11520_v39 = vcombine.high %v5641_v12, %v5641_v12  ;;  %5854 = vst [vmem:[#allocation3 + $0x20] sm:$0x1] %v11521_v5  ;;  %v5640_v27 = vsel %vm14199_vm6, 0, %v5502_v30  ;;  %v5482_v31 = vpack.c.bf16 %v5446_v57, %v5445_v1  ;;  %v12648_v55 = vpop.f32.mrb[8].mxu0 }
 0x333   : > { %v11516_v36 = vcombine.low %v5640_v27, %v5640_v27  ;;  %v11517_v10 = vcombine.high %v5640_v27, %v5640_v27  ;;  %5851 = vst [vmem:[#allocation3 + $0x14] sm:$0x1] %v11518_v3  ;;  %v5518_v4 = vshrl.u32 %v5483_v47, 16  ;;  %v5314_v8 = vpop.f32.mrb[9].mxu0  ;;  %v13126_v41 = vadd.f32 %v12648_v55, %v16012_v14 }
 0x334   : > { %5852 = vst [vmem:[#allocation3 + $0x18] sm:$0xf] %v11519_v52  ;;  %5853 = vst [vmem:[#allocation3 + $0x1c] sm:$0xf] %v11520_v39  ;;  %v5511_v40 = vshrl.u32 %v5482_v31, 16  ;;  %v13127_v46 = vadd.f32 %v16012_v14, %v5314_v8  ;;  %v12649_v2 = vpop.f32.mrb[10].mxu0 }
 0x335   : > { %5849 = vst [vmem:[#allocation3 + $0xc] sm:$0xf] %v11516_v36  ;;  %5850 = vst [vmem:[#allocation3 + $0x10] sm:$0xf] %v11517_v10  ;;  %v5520_v63 = vrot.slane %v5518_v4, 7  ;;  %v5521_v19 = vshll.u32 %v5483_v47, 16  ;;  %v13128_v29 = vadd.f32 %v12649_v2, %v16012_v14 }
 0x336   : > { %v5317_v43 = vpop.f32.mrb[11].mxu0  ;;  %v5513_v37 = vrot.slane %v5511_v40, 7  ;;  %v5514_v25 = vshll.u32 %v5482_v31, 16  ;;  %v5451_v58 = vmax.f32 %v13126_v41, 0.0  ;;  %v5449_v34 = vmax.f32 %v13127_v46, 0.0 }
 0x337   : > { %v13129_v32 = vadd.f32 %v16012_v14, %v5317_v43  ;;  %v5523_v6 = vor.u32 %v5521_v19, %v5520_v63  ;;  %v5659_v0 = vsel %vm14199_vm6, %v5520_v63, 0  ;;  %v5452_v53 = vmax.f32 %v13128_v29, 0.0 }
 0x338   : > { %v11527_v45 = vcombine.low %v5659_v0, %v5659_v0  ;;  %v5516_v26 = vor.u32 %v5514_v25, %v5513_v37  ;;  %v5658_v51 = vsel %vm14199_vm6, %v5513_v37, 0 }
 0x339   : > { %v5450_v44 = vmax.f32 %v13129_v32, 0.0  ;;  %v5643_v50 = vsel %vm14199_vm6, 0, %v5523_v6  ;;  %v11524_v15 = vcombine.low %v5658_v51, %v5658_v51  ;;  %v5485_v42 = vpack.c.bf16 %v5452_v53, %v5451_v58  ;;  %v13836_v6 = vld [vmem:[#allocation4 + $0x48] sm:$0xff]  }
 0x33a   : > { %v11525_v21 = vcombine.low %v5643_v50, %v5643_v50  ;;  %v11526_v22 = vcombine.high %v5643_v50, %v5643_v50  ;;  %5860 = vst [vmem:[#allocation3 + $0x38] sm:$0x1] %v11527_v45  ;;  %v5642_v38 = vsel %vm14199_vm6, 0, %v5516_v26  ;;  %v12652_v20 = vpop.f32.mrb[12].mxu0 }
 0x33b   : > { %v5484_v48 = vpack.c.bf16 %v5450_v44, %v5449_v34  ;;  %v11522_v61 = vcombine.low %v5642_v38, %v5642_v38  ;;  %v11523_v54 = vcombine.high %v5642_v38, %v5642_v38  ;;  %5857 = vst [vmem:[#allocation3 + $0x2c] sm:$0x1] %v11524_v15  ;;  %v5532_v18 = vshrl.u32 %v5485_v42, 16  ;;  %v5330_v16 = vpop.f32.mrb[13].mxu0  ;;  %v13831_v60 = vld [vmem:[#allocation3 + $0x18] sm:$0xff]  }
 0x33c   : > { %v5535_v24 = vshll.u32 %v5485_v42, 16  ;;  %5858 = vst [vmem:[#allocation3 + $0x30] sm:$0xf] %v11525_v21  ;;  %5859 = vst [vmem:[#allocation3 + $0x34] sm:$0xf] %v11526_v22  ;;  %v13130_v5 = vadd.f32 %v12652_v20, %v16012_v14  ;;  %v13131_v30 = vadd.f32 %v16012_v14, %v5330_v16  ;;  %v12653_v49 = vpop.f32.mrb[14].mxu0  ;;  %12690 = vmatprep.mubr.bf16.mxu1 %v13831_v60 }
 0x33d   : > { %v5525_v1 = vshrl.u32 %v5484_v48, 16  ;;  %v5528_v62 = vshll.u32 %v5484_v48, 16  ;;  %v13832_v57 = vld [vmem:[#allocation3 + $0xc] sm:$0xff]   ;;  %5855 = vst [vmem:[#allocation3 + $0x24] sm:$0xf] %v11522_v61  ;;  %v5534_v12 = vrot.slane %v5532_v18, 7  ;;  %v13132_v3 = vadd.f32 %v12653_v49, %v16012_v14 }
 0x33e   : > { %5856 = vst [vmem:[#allocation3 + $0x28] sm:$0xf] %v11523_v54  ;;  %v5333_v47 = vpop.f32.mrb[15].mxu0  ;;  %v5455_v52 = vmax.f32 %v13130_v5, 0.0  ;;  %v5453_v39 = vmax.f32 %v13131_v30, 0.0  ;;  %12687 = vmatmul.mubr.bf16.vlgmr.msra.gmra.mrb[32].mxu0 %v13832_v57 }
 0x33f   : > { %v5527_v9 = vrot.slane %v5525_v1, 7  ;;  %v13133_v27 = vadd.f32 %v16012_v14, %v5333_v47  ;;  %v6292_v31 = vld [vmem:[#allocation3 + $0xc] sm:$0xf]  ;;  %v5537_v55 = vor.u32 %v5535_v24, %v5534_v12  ;;  %v5661_v36 = vsel %vm14199_vm6, %v5534_v12, 0 }
 0x340   : > { %v5456_v10 = vmax.f32 %v13132_v3, 0.0  ;;  %v6362_v4 = vshrl.u32 %v6292_v31, 16  ;;  %v11533_v8 = vcombine.low %v5661_v36, %v5661_v36  ;;  %v13839_v12 = vld [vmem:[#allocation4 + $0x50] sm:$0xff]  }
 0x341   : > { %v5530_v40 = vor.u32 %v5528_v62, %v5527_v9  ;;  %v5660_v41 = vsel %vm14199_vm6, %v5527_v9, 0  ;;  %v5454_v46 = vmax.f32 %v13133_v27, 0.0  ;;  %v5645_v2 = vsel %vm14199_vm6, 0, %v5537_v55 }
 0x342   : > { %v11530_v63 = vcombine.low %v5660_v41, %v5660_v41  ;;  %v5487_v19 = vpack.c.bf16 %v5456_v10, %v5455_v52  ;;  %v16066_v29 = vrot.slane %v6362_v4, 4  ;;  %v11531_v43 = vcombine.low %v5645_v2, %v5645_v2  ;;  %5866 = vst [vmem:[#allocation3 + $0x50] sm:$0x1] %v11533_v8  ;;  %v12656_v32 = vpop.f32.mrb[16].mxu0  ;;  %v13842_v41 = vld [vmem:[#allocation4 + $0x58] sm:$0xff]  }
 0x343   : > { %v11532_v37 = vcombine.high %v5645_v2, %v5645_v2  ;;  %v5644_v25 = vsel %vm14199_vm6, 0, %v5530_v40  ;;  %v5486_v58 = vpack.c.bf16 %v5454_v46, %v5453_v39  ;;  %v5346_v26 = vpop.f32.mrb[17].mxu0  ;;  %v13835_v51 = vld [vmem:[#allocation3 + $0x30] sm:$0xff]   ;;  %v13134_v15 = vadd.f32 %v12656_v32, %v16012_v14 }
 0x344   : > { %v11528_v0 = vcombine.low %v5644_v25, %v5644_v25  ;;  %v11529_v34 = vcombine.high %v5644_v25, %v5644_v25  ;;  %5863 = vst [vmem:[#allocation3 + $0x44] sm:$0x1] %v11530_v63  ;;  %v5546_v53 = vshrl.u32 %v5487_v19, 16  ;;  %v5549_v45 = vshll.u32 %v5487_v19, 16  ;;  %5864 = vst [vmem:[#allocation3 + $0x48] sm:$0xf] %v11531_v43 }
 0x345   : > { %5865 = vst [vmem:[#allocation3 + $0x4c] sm:$0xf] %v11532_v37  ;;  %v5539_v44 = vshrl.u32 %v5486_v58, 16  ;;  %v5542_v50 = vshll.u32 %v5486_v58, 16  ;;  %v13135_v42 = vadd.f32 %v16012_v14, %v5346_v26  ;;  %v12657_v21 = vpop.f32.mrb[18].mxu0  ;;  %v13834_v22 = vld [vmem:[#allocation3 + $0x24] sm:$0xff]  }
 0x346   : > { %5861 = vst [vmem:[#allocation3 + $0x3c] sm:$0xf] %v11528_v0  ;;  %5862 = vst [vmem:[#allocation3 + $0x40] sm:$0xf] %v11529_v34  ;;  %v5548_v38 = vrot.slane %v5546_v53, 7  ;;  %v13136_v48 = vadd.f32 %v12657_v21, %v16012_v14  ;;  %v5349_v20 = vpop.f32.mrb[19].mxu0  ;;  %12691 = vmatmul.mubr.bf16.vlgmr.msra.gmra.mrb[0].mxu1 %v13834_v22 }
 0x347   : > { %v5541_v61 = vrot.slane %v5539_v44, 7  ;;  %v5459_v54 = vmax.f32 %v13134_v15, 0.0  ;;  %v5457_v18 = vmax.f32 %v13135_v42, 0.0  ;;  %v13137_v24 = vadd.f32 %v16012_v14, %v5349_v20  ;;  %12719 = vmatpush3.bf16.msra.mxu1 %v16006_v56  ;;  %12694 = vmatprep.mubr.bf16.mxu1 %v13835_v51 }
 0x348   : > { %v5551_v16 = vor.u32 %v5549_v45, %v5548_v38  ;;  %v5663_v60 = vsel %vm14199_vm6, %v5548_v38, 0  ;;  %v5460_v1 = vmax.f32 %v13136_v48, 0.0  ;;  %v6365_v62 = vshll.u32 %v6292_v31, 16  ;;  %12720 = vmatprep.subr.bf16.mxu1 %v13836_v6  ;;  %v16089_v45 = vld [vmem:[#allocation3 + $0x10] sm:$0xf]  ;;  %v13845_v38 = vld [vmem:[#allocation4 + $0x60] sm:$0xff]  }
 0x349   : > { %v11539_v5 = vcombine.low %v5663_v60, %v5663_v60  ;;  %v5544_v30 = vor.u32 %v5542_v50, %v5541_v61  ;;  %v5662_v49 = vsel %vm14199_vm6, %v5541_v61, 0  ;;  %v5458_v57 = vmax.f32 %v13137_v24, 0.0 }
 0x34a   : > { %v5647_v3 = vsel %vm14199_vm6, 0, %v5551_v16  ;;  %v11536_v47 = vcombine.low %v5662_v49, %v5662_v49  ;;  %v5489_v9 = vpack.c.bf16 %v5460_v1, %v5459_v54  ;;  %v16081_v52 = vrot.slane %v6365_v62, 5  ;;  %v12660_v55 = vpop.f32.mrb[20].mxu0 }
 0x34b   : > { %v11537_v39 = vcombine.low %v5647_v3, %v5647_v3  ;;  %v11538_v27 = vcombine.high %v5647_v3, %v5647_v3  ;;  %5872 = vst [vmem:[#allocation3 + $0x68] sm:$0x1] %v11539_v5  ;;  %v5646_v56 = vsel %vm14199_vm6, 0, %v5544_v30  ;;  %v5488_v31 = vpack.c.bf16 %v5458_v57, %v5457_v18  ;;  %v5362_v40 = vpop.f32.mrb[21].mxu0  ;;  %12721 = vmatpush3.bf16.msra.mxu1 %v13836_v6 }
 0x34c   : > { %v11534_v36 = vcombine.low %v5646_v56, %v5646_v56  ;;  %v11535_v10 = vcombine.high %v5646_v56, %v5646_v56  ;;  %5869 = vst [vmem:[#allocation3 + $0x5c] sm:$0x1] %v11536_v47  ;;  %v5560_v4 = vshrl.u32 %v5489_v9, 16  ;;  %v5563_v8 = vshll.u32 %v5489_v9, 16  ;;  %v12661_v19 = vpop.f32.mrb[22].mxu0  ;;  %v13838_v37 = vld [vmem:[#allocation3 + $0x48] sm:$0xff]   ;;  %12722 = vmatprep.subr.bf16.mxu1 %v13839_v12 }
 0x34d   : > { %5870 = vst [vmem:[#allocation3 + $0x60] sm:$0xf] %v11537_v39  ;;  %5871 = vst [vmem:[#allocation3 + $0x64] sm:$0xf] %v11538_v27  ;;  %v5553_v46 = vshrl.u32 %v5488_v31, 16  ;;  %v13138_v2 = vadd.f32 %v12660_v55, %v16012_v14  ;;  %v13139_v63 = vadd.f32 %v16012_v14, %v5362_v40  ;;  %v13837_v43 = vld [vmem:[#allocation3 + $0x3c] sm:$0xff]   ;;  %v13140_v58 = vadd.f32 %v12661_v19, %v16012_v14 }
 0x34e   : > { %5867 = vst [vmem:[#allocation3 + $0x54] sm:$0xf] %v11534_v36  ;;  %5868 = vst [vmem:[#allocation3 + $0x58] sm:$0xf] %v11535_v10  ;;  %v5562_v25 = vrot.slane %v5560_v4, 7  ;;  %v5365_v32 = vpop.f32.mrb[23].mxu0  ;;  %12695 = vmatmul.mubr.bf16.gmra.mrb[4].mxu1 %v13837_v43 }
 0x34f   : > { %v5555_v0 = vrot.slane %v5553_v46, 7  ;;  %v5556_v6 = vshll.u32 %v5488_v31, 16  ;;  %v5463_v34 = vmax.f32 %v13138_v2, 0.0  ;;  %v13141_v53 = vadd.f32 %v16012_v14, %v5365_v32  ;;  %12698 = vmatprep.mubr.bf16.mxu1 %v13838_v37  ;;  %12723 = vmatpush3.bf16.msra.mxu1 %v13839_v12  ;;  %v13848_v12 = vld [vmem:[#allocation4 + $0x68] sm:$0xff]  }
 0x350   : > { %v5565_v26 = vor.u32 %v5563_v8, %v5562_v25  ;;  %v5665_v51 = vsel %vm14199_vm6, %v5562_v25, 0  ;;  %v5461_v44 = vmax.f32 %v13139_v63, 0.0  ;;  %v5464_v50 = vmax.f32 %v13140_v58, 0.0  ;;  %12724 = vmatprep.subr.bf16.mxu1 %v13842_v41  ;;  %v13851_v58 = vld [vmem:[#allocation4 + $0x70] sm:$0xff]  }
 0x351   : > { %v11545_v15 = vcombine.low %v5665_v51, %v5665_v51  ;;  %v5558_v42 = vor.u32 %v5556_v6, %v5555_v0  ;;  %v5664_v21 = vsel %vm14199_vm6, %v5555_v0, 0  ;;  %v5462_v22 = vmax.f32 %v13141_v53, 0.0 }
 0x352   : > { %v5649_v48 = vsel %vm14199_vm6, 0, %v5565_v26  ;;  %v11542_v20 = vcombine.low %v5664_v21, %v5664_v21  ;;  %v5491_v61 = vpack.c.bf16 %v5464_v50, %v5463_v34  ;;  %v6371_v54 = vshll.u32 %v16089_v45, 16  ;;  %v12664_v1 = vpop.f32.mrb[24].mxu0 }
 0x353   : > { %v11543_v18 = vcombine.low %v5649_v48, %v5649_v48  ;;  %v11544_v24 = vcombine.high %v5649_v48, %v5649_v48  ;;  %5878 = vst [vmem:[#allocation3 + $0x80] sm:$0x1] %v11545_v15  ;;  %v5648_v16 = vsel %vm14199_vm6, 0, %v5558_v42  ;;  %v5490_v60 = vpack.c.bf16 %v5462_v22, %v5461_v44  ;;  %v5378_v57 = vpop.f32.mrb[25].mxu0  ;;  %12725 = vmatpush3.bf16.msra.mxu1 %v13842_v41  ;;  %v13853_v15 = vld [vmem:[#allocation4 + $0x78] sm:$0xff]  }
 0x354   : > { %v11540_v62 = vcombine.low %v5648_v16, %v5648_v16  ;;  %v11541_v5 = vcombine.high %v5648_v16, %v5648_v16  ;;  %5875 = vst [vmem:[#allocation3 + $0x74] sm:$0x1] %v11542_v20  ;;  %v5574_v30 = vshrl.u32 %v5491_v61, 16  ;;  %v5577_v49 = vshll.u32 %v5491_v61, 16  ;;  %v12665_v39 = vpop.f32.mrb[26].mxu0  ;;  %v13841_v56 = vld [vmem:[#allocation3 + $0x60] sm:$0xff]   ;;  %12726 = vmatprep.subr.bf16.mxu1 %v13845_v38 }
 0x355   : > { %5876 = vst [vmem:[#allocation3 + $0x78] sm:$0xf] %v11543_v18  ;;  %5877 = vst [vmem:[#allocation3 + $0x7c] sm:$0xf] %v11544_v24  ;;  %v5567_v3 = vshrl.u32 %v5490_v60, 16  ;;  %v13142_v47 = vadd.f32 %v12664_v1, %v16012_v14  ;;  %v13143_v9 = vadd.f32 %v16012_v14, %v5378_v57  ;;  %v13840_v27 = vld [vmem:[#allocation3 + $0x54] sm:$0xff]   ;;  %v13144_v55 = vadd.f32 %v12665_v39, %v16012_v14 }
 0x356   : > { %5873 = vst [vmem:[#allocation3 + $0x6c] sm:$0xf] %v11540_v62  ;;  %5874 = vst [vmem:[#allocation3 + $0x70] sm:$0xf] %v11541_v5  ;;  %v5576_v31 = vrot.slane %v5574_v30, 7  ;;  %v5381_v36 = vpop.f32.mrb[27].mxu0  ;;  %12699 = vmatmul.mubr.bf16.gmra.mrb[8].mxu1 %v13840_v27  ;;  %v6350_v30 = vsel %vm14355_vm9, %v16037_v13, %v16022_v28 }
 0x357   : > { %v5569_v10 = vrot.slane %v5567_v3, 7  ;;  %v5570_v4 = vshll.u32 %v5490_v60, 16  ;;  %v5467_v8 = vmax.f32 %v13142_v47, 0.0  ;;  %v13145_v40 = vadd.f32 %v16012_v14, %v5381_v36  ;;  %12702 = vmatprep.mubr.bf16.mxu1 %v13841_v56  ;;  %12727 = vmatpush3.bf16.msra.mxu1 %v13845_v38 }
 0x358   : > { %v5579_v41 = vor.u32 %v5577_v49, %v5576_v31  ;;  %v5667_v46 = vsel %vm14199_vm6, %v5576_v31, 0  ;;  %v5465_v2 = vmax.f32 %v13143_v9, 0.0  ;;  %v5468_v63 = vmax.f32 %v13144_v55, 0.0  ;;  %12728 = vmatprep.subr.bf16.mxu1 %v13848_v12 }
 0x359   : > { %v11551_v19 = vcombine.low %v5667_v46, %v5667_v46  ;;  %v5572_v43 = vor.u32 %v5570_v4, %v5569_v10  ;;  %v5666_v37 = vsel %vm14199_vm6, %v5569_v10, 0  ;;  %v5466_v25 = vmax.f32 %v13145_v40, 0.0  ;;  %v16127_v10 = vld [vmem:[#allocation4 + $0x80] sm:$0xff]  }
 0x35a   : > { %v5651_v32 = vsel %vm14199_vm6, 0, %v5579_v41  ;;  %v11548_v0 = vcombine.low %v5666_v37, %v5666_v37  ;;  %v5493_v6 = vpack.c.bf16 %v5468_v63, %v5467_v8  ;;  %v16110_v34 = vrot.slane %v6371_v54, 5  ;;  %v12668_v50 = vpop.f32.mrb[28].mxu0  ;;  %v16133_v41 = vld [vmem:[#allocation3 + $0x14] sm:$0x1] }
 0x35b   : > { %v11549_v53 = vcombine.low %v5651_v32, %v5651_v32  ;;  %v11550_v26 = vcombine.high %v5651_v32, %v5651_v32  ;;  %5884 = vst [vmem:[#allocation3 + $0x98] sm:$0x1] %v11551_v19  ;;  %v5650_v51 = vsel %vm14199_vm6, 0, %v5572_v43  ;;  %v5492_v44 = vpack.c.bf16 %v5466_v25, %v5465_v2  ;;  %v5394_v48 = vpop.f32.mrb[29].mxu0  ;;  %12729 = vmatpush3.bf16.msra.mxu1 %v13848_v12  ;;  %v6295_v43 = vld [vmem:[#allocation3 + $0x18] sm:$0xf] }
 0x35c   : > { %v11546_v42 = vcombine.low %v5650_v51, %v5650_v51  ;;  %v11547_v21 = vcombine.high %v5650_v51, %v5650_v51  ;;  %5881 = vst [vmem:[#allocation3 + $0x8c] sm:$0x1] %v11548_v0  ;;  %v5588_v22 = vshrl.u32 %v5493_v6, 16  ;;  %v5591_v38 = vshll.u32 %v5493_v6, 16  ;;  %v13844_v20 = vld [vmem:[#allocation3 + $0x78] sm:$0xff]   ;;  %v12669_v16 = vpop.f32.mrb[30].mxu0  ;;  %12730 = vmatprep.subr.bf16.mxu1 %v13851_v58 }
 0x35d   : > { %5882 = vst [vmem:[#allocation3 + $0x90] sm:$0xf] %v11549_v53  ;;  %5883 = vst [vmem:[#allocation3 + $0x94] sm:$0xf] %v11550_v26  ;;  %v5581_v61 = vshrl.u32 %v5492_v44, 16  ;;  %v5584_v54 = vshll.u32 %v5492_v44, 16  ;;  %v13146_v18 = vadd.f32 %v12668_v50, %v16012_v14  ;;  %v13147_v24 = vadd.f32 %v16012_v14, %v5394_v48 }
 0x35e   : > { %v13843_v60 = vld [vmem:[#allocation3 + $0x6c] sm:$0xff]   ;;  %5879 = vst [vmem:[#allocation3 + $0x84] sm:$0xf] %v11546_v42  ;;  %5880 = vst [vmem:[#allocation3 + $0x88] sm:$0xf] %v11547_v21  ;;  %v5590_v1 = vrot.slane %v5588_v22, 7  ;;  %v13148_v62 = vadd.f32 %v12669_v16, %v16012_v14  ;;  %v6360_v26 = vsel %vm14355_vm9, %v16041_v35, %v16044_v11  ;;  %v6368_v51 = vor.u32 %v16081_v52, %v16066_v29 }
 0x35f   : > { %v5397_v5 = vpop.f32.mrb[31].mxu0  ;;  %v5583_v49 = vrot.slane %v5581_v61, 7  ;;  %v5471_v57 = vmax.f32 %v13146_v18, 0.0  ;;  %v5469_v12 = vmax.f32 %v13147_v24, 0.0  ;;  %12703 = vmatmul.mubr.bf16.gmra.mrb[12].mxu1 %v13843_v60  ;;  %v6375_v27 = vshrl.u32 %v16089_v45, 16 }
 0x360   : > { %v13149_v3 = vadd.f32 %v16012_v14, %v5397_v5  ;;  %v5593_v47 = vor.u32 %v5591_v38, %v5590_v1  ;;  %v5669_v9 = vsel %vm14199_vm6, %v5590_v1, 0  ;;  %v5472_v39 = vmax.f32 %v13148_v62, 0.0  ;;  %12706 = vmatprep.mubr.bf16.mxu1 %v13844_v20  ;;  %12731 = vmatpush3.bf16.msra.mxu1 %v13851_v58  ;;  %v16129_v14 = vld [vmem:[#allocation3] sm:$0xe]  ;;  %v16137_v37 = vld [vmem:[#allocation3 + $0x1c] sm:$0xf] }
 0x361   : > { %v11557_v56 = vcombine.low %v5669_v9, %v5669_v9  ;;  %v5586_v31 = vor.u32 %v5584_v54, %v5583_v49  ;;  %v5668_v55 = vsel %vm14199_vm6, %v5583_v49, 0  ;;  %12732 = vmatprep.subr.bf16.mxu1 %v13853_v15  ;;  %v6377_v46 = vrot.slane %v6375_v27, 4  ;;  %v16155_v16 = vld [vmem:[#allocation3 + $0x20] sm:$0x1]  ;;  %v16165_v27 = vld [vmem:[#allocation3 + $0x28] sm:$0xf] }
 0x362   : > { %v5470_v36 = vmax.f32 %v13149_v3, 0.0  ;;  %v5653_v4 = vsel %vm14199_vm6, 0, %v5593_v47  ;;  %v11554_v8 = vcombine.low %v5668_v55, %v5668_v55  ;;  %v5495_v40 = vpack.c.bf16 %v5472_v39, %v5471_v57  ;;  %v16161_v57 = vld [vmem:[#allocation3 + $0x2c] sm:$0x1]  ;;  %v6298_v39 = vld [vmem:[#allocation3 + $0x24] sm:$0xf] }
 0x363   : > { %v11555_v45 = vcombine.low %v5653_v4, %v5653_v4  ;;  %v11556_v2 = vcombine.high %v5653_v4, %v5653_v4  ;;  %5890 = vst [vmem:[#allocation3 + $0xb0] sm:$0x1] %v11557_v56  ;;  %v5652_v63 = vsel %vm14199_vm6, 0, %v5586_v31  ;;  %v11613_v0 = vrot.slane %v16129_v14, 9 }
 0x364   : > { %v5494_v19 = vpack.c.bf16 %v5470_v36, %v5469_v12  ;;  %v11552_v25 = vcombine.low %v5652_v63, %v5652_v63  ;;  %v11553_v58 = vcombine.high %v5652_v63, %v5652_v63  ;;  %5887 = vst [vmem:[#allocation3 + $0xa4] sm:$0x1] %v11554_v8  ;;  %v5602_v32 = vshrl.u32 %v5495_v40, 16  ;;  %12733 = vmatpush3.bf16.msra.mxu1 %v13853_v15  ;;  %v13847_v38 = vld [vmem:[#allocation3 + $0x90] sm:$0xff]  }
 0x365   : > { %5888 = vst [vmem:[#allocation3 + $0xa8] sm:$0xf] %v11555_v45  ;;  %5889 = vst [vmem:[#allocation3 + $0xac] sm:$0xf] %v11556_v2  ;;  %v5605_v6 = vshll.u32 %v5495_v40, 16  ;;  %12766 = vmatprep.subr.bf16.mxu1 %v16127_v10  ;;  %v13846_v15 = vld [vmem:[#allocation3 + $0x84] sm:$0xff]   ;;  %v6378_v48 = vor.u32 %v6377_v46, %v16110_v34  ;;  %v11589_v4 = vcombine.low %v6350_v30, %v6360_v26 }
 0x366   : > { %v5595_v53 = vshrl.u32 %v5494_v19, 16  ;;  %5885 = vst [vmem:[#allocation3 + $0x9c] sm:$0xf] %v11552_v25  ;;  %5886 = vst [vmem:[#allocation3 + $0xa0] sm:$0xf] %v11553_v58  ;;  %v5604_v44 = vrot.slane %v5602_v32, 7  ;;  %v16176_v8 = vsel %vm14717_vm12, %v11613_v0, %v7109_v17 }
 0x367   : > { %v5598_v50 = vshll.u32 %v5494_v19, 16  ;;  %v6386_v42 = vshrl.u32 %v6295_v43, 16  ;;  %v6389_v21 = vshll.u32 %v6295_v43, 16  ;;  %v6381_v20 = vshll.u32 %v16133_v41, 16  ;;  %12707 = vmatmul.mubr.bf16.gmra.mrb[16].mxu1 %v13846_v15  ;;  %v6301_v63 = vld [vmem:[#allocation3 + $0x30] sm:$0xf] }
 0x368   : > { %v5597_v22 = vrot.slane %v5595_v53, 7  ;;  %v6395_v35 = vshll.u32 %v16137_v37, 16  ;;  %v5607_v11 = vor.u32 %v5605_v6, %v5604_v44  ;;  %v5671_v61 = vsel %vm14199_vm6, %v5604_v44, 0  ;;  %12710 = vmatprep.mubr.bf16.mxu1 %v13847_v38  ;;  %v16186_v25 = vld [vmem:[#allocation3 + $0x34] sm:$0xf] }
 0x369   : > { %v6388_v29 = vrot.slane %v6386_v42, 4  ;;  %v6399_v52 = vshrl.u32 %v16137_v37, 16  ;;  %v11563_v54 = vcombine.low %v5671_v61, %v5671_v61  ;;  %v6391_v60 = vrot.slane %v6389_v21, 5 }
 0x36a   : > { %v5600_v18 = vor.u32 %v5598_v50, %v5597_v22  ;;  %v5670_v24 = vsel %vm14199_vm6, %v5597_v22, 0  ;;  %v5655_v1 = vsel %vm14199_vm6, 0, %v5607_v11  ;;  %v6369_v5 = vrot.slane %v6368_v51, 4  ;;  %v6304_v22 = vld [vmem:[#allocation3 + $0x3c] sm:$0xf] }
 0x36b   : > { %v11560_v62 = vcombine.low %v5670_v24, %v5670_v24  ;;  %v16159_v49 = vrot.slane %v6395_v35, 5  ;;  %v11561_v12 = vcombine.low %v5655_v1, %v5655_v1  ;;  %v11562_v3 = vcombine.high %v5655_v1, %v5655_v1  ;;  %5896 = vst [vmem:[#allocation3 + $0xc8] sm:$0x1] %v11563_v54  ;;  %v16194_v11 = vld [vmem:[#allocation3 + $0x40] sm:$0xf] }
 0x36c   : > { %v5654_v47 = vsel %vm14199_vm6, 0, %v5600_v18  ;;  %v6379_v9 = vrot.slane %v6378_v48, 4  ;;  %v6392_v55 = vor.u32 %v6391_v60, %v6388_v29  ;;  %v6401_v36 = vrot.slane %v6399_v52, 4  ;;  %v13850_v19 = vld [vmem:[#allocation3 + $0xa8] sm:$0xff]  }
 0x36d   : > { %v11558_v56 = vcombine.low %v5654_v47, %v5654_v47  ;;  %v11559_v31 = vcombine.high %v5654_v47, %v5654_v47  ;;  %5893 = vst [vmem:[#allocation3 + $0xbc] sm:$0x1] %v11560_v62  ;;  %5894 = vst [vmem:[#allocation3 + $0xc0] sm:$0xf] %v11561_v12  ;;  %v13849_v14 = vld [vmem:[#allocation3 + $0x9c] sm:$0xff]   ;;  %v6383_v23 = vrot.slane %v6381_v20, 5  ;;  %v6374_v28 = vsel %vm14355_vm9, %v6369_v5, %v16110_v34 }
 0x36e   : > { %5895 = vst [vmem:[#allocation3 + $0xc4] sm:$0xf] %v11562_v3  ;;  %v6402_v40 = vor.u32 %v6401_v36, %v16159_v49  ;;  %v6405_v46 = vshll.u32 %v16155_v16, 16  ;;  %v6410_v45 = vshrl.u32 %v6298_v39, 16  ;;  %v6413_v2 = vshll.u32 %v6298_v39, 16 }
 0x36f   : > { %5891 = vst [vmem:[#allocation3 + $0xb4] sm:$0xf] %v11558_v56  ;;  %5892 = vst [vmem:[#allocation3 + $0xb8] sm:$0xf] %v11559_v31  ;;  %v6419_v13 = vshll.u32 %v16165_v27, 16  ;;  %v6423_v30 = vshrl.u32 %v16165_v27, 16  ;;  %12711 = vmatmul.mubr.bf16.gmra.mrb[20].mxu1 %v13849_v14  ;;  %v6384_v58 = vsel %vm14355_vm9, %v6379_v9, %v6383_v23 }
 0x370   : > { %v6429_v43 = vshll.u32 %v16161_v57, 16  ;;  %v6393_v32 = vrot.slane %v6392_v55, 4  ;;  %v6412_v0 = vrot.slane %v6410_v45, 4  ;;  %v6415_v6 = vrot.slane %v6413_v2, 5  ;;  %12714 = vmatprep.mubr.bf16.mxu1 %v13850_v19  ;;  %v16190_v34 = vld [vmem:[#allocation3 + $0x38] sm:$0x1] }
 0x371   : > { %v6403_v53 = vrot.slane %v6402_v40, 4  ;;  %v6421_v26 = vrot.slane %v6419_v13, 5  ;;  %v6425_v51 = vrot.slane %v6423_v30, 4  ;;  %v6434_v44 = vshrl.u32 %v6301_v63, 16  ;;  %v16204_v9 = vld [vmem:[#allocation3 + $0x44] sm:$0x1] }
 0x372   : > { %v6407_v50 = vrot.slane %v6405_v46, 5  ;;  %v6416_v15 = vor.u32 %v6415_v6, %v6412_v0  ;;  %v6437_v42 = vshll.u32 %v6301_v63, 16  ;;  %v6443_v21 = vshll.u32 %v16186_v25, 16  ;;  %v6307_v39 = vld [vmem:[#allocation3 + $0x48] sm:$0xf] }
 0x373   : > { %v6426_v38 = vor.u32 %v6425_v51, %v6421_v26  ;;  %v6431_v48 = vrot.slane %v6429_v43, 5  ;;  %v6436_v20 = vrot.slane %v6434_v44, 4  ;;  %v6447_v35 = vshrl.u32 %v16186_v25, 16  ;;  %v16209_v36 = vld [vmem:[#allocation3 + $0x4c] sm:$0xf]  ;;  %v13855_v51 = vld [vmem:[#allocation4 + $0x88] sm:$0xff]  }
 0x374   : > { %v6417_v61 = vrot.slane %v6416_v15, 4  ;;  %v6439_v29 = vrot.slane %v6437_v42, 5  ;;  %v6445_v52 = vrot.slane %v6443_v21, 5  ;;  %v6453_v54 = vshll.u32 %v16190_v34, 16  ;;  %v6310_v13 = vld [vmem:[#allocation3 + $0x54] sm:$0xf] }
 0x375   : > { %v11590_v24 = vcombine.low %v6374_v28, %v6384_v58  ;;  %v6398_v60 = vsel %vm14355_vm9, %v6393_v32, %v16159_v49  ;;  %v6408_v1 = vsel %vm14355_vm9, %v6403_v53, %v6407_v50  ;;  %v6427_v62 = vrot.slane %v6426_v38, 4  ;;  %v16213_v28 = vld [vmem:[#allocation3 + $0x50] sm:$0x1] }
 0x376   : > { %v13852_v18 = vld [vmem:[#allocation3 + $0xb4] sm:$0xff]   ;;  %v6422_v5 = vsel %vm14355_vm9, %v6417_v61, %v6421_v26  ;;  %v6440_v12 = vor.u32 %v6439_v29, %v6436_v20  ;;  %v6449_v3 = vrot.slane %v6447_v35, 4  ;;  %v6455_v47 = vrot.slane %v6453_v54, 5  ;;  %v16225_v20 = vld [vmem:[#allocation3 + $0x5c] sm:$0x1] }
 0x377   : > { %v6432_v56 = vsel %vm14355_vm9, %v6427_v62, %v6431_v48  ;;  %v6458_v31 = vshrl.u32 %v6304_v22, 16  ;;  %v6461_v55 = vshll.u32 %v6304_v22, 16  ;;  %v6467_v49 = vshll.u32 %v16194_v11, 16  ;;  %12715 = vmatmul.mubr.bf16.gmra.mrb[24].mxu1 %v13852_v18  ;;  %v16220_v26 = vld [vmem:[#allocation3 + $0x58] sm:$0xf] }
 0x378   : > { %v11591_v14 = vcombine.low %v6398_v60, %v6408_v1  ;;  %v6441_v23 = vrot.slane %v6440_v12, 4  ;;  %v6450_v40 = vor.u32 %v6449_v3, %v6445_v52  ;;  %v6471_v46 = vshrl.u32 %v16194_v11, 16  ;;  %12734 = vmatprep.mubr.bf16.mxu1 %v11589_v4  ;;  %v6313_v35 = vld [vmem:[#allocation3 + $0x60] sm:$0xf]  ;;  %v16228_v18 = vld [vmem:[#allocation3 + $0x64] sm:$0xf] }
 0x379   : > { %v6460_v45 = vrot.slane %v6458_v31, 4  ;;  %v6463_v2 = vrot.slane %v6461_v55, 5  ;;  %v6469_v63 = vrot.slane %v6467_v49, 5  ;;  %v6477_v19 = vshll.u32 %v16204_v9, 16  ;;  %v13856_v12 = vld [vmem:[#allocation4 + $0x90] sm:$0xff]  }
 0x37a   : > { %v16215_v30 = vcombine.low %v6422_v5, %v6432_v56  ;;  %v6451_v43 = vrot.slane %v6450_v40, 4  ;;  %v6473_v58 = vrot.slane %v6471_v46, 4  ;;  %v6482_v32 = vshrl.u32 %v6307_v39, 16  ;;  %v16238_v40 = vld [vmem:[#allocation3 + $0x68] sm:$0x1] }
 0x37b   : > { %v6446_v0 = vsel %vm14355_vm9, %v6441_v23, %v6445_v52  ;;  %v6464_v6 = vor.u32 %v6463_v2, %v6460_v45  ;;  %v6485_v53 = vshll.u32 %v6307_v39, 16  ;;  %v6491_v4 = vshll.u32 %v16209_v36, 16 }
 0x37c   : > { %v6456_v44 = vsel %vm14355_vm9, %v6451_v43, %v6455_v47  ;;  %v6474_v50 = vor.u32 %v6473_v58, %v6469_v63  ;;  %v6484_v15 = vrot.slane %v6482_v32, 4  ;;  %v6495_v42 = vshrl.u32 %v16209_v36, 16 }
 0x37d   : > { %v6465_v21 = vrot.slane %v6464_v6, 4  ;;  %v6479_v22 = vrot.slane %v6477_v19, 5  ;;  %v6487_v38 = vrot.slane %v6485_v53, 5  ;;  %v6493_v48 = vrot.slane %v6491_v4, 5  ;;  %v16249_v6 = vld [vmem:[#allocation3 + $0x70] sm:$0xf] }
 0x37e   : > { %v6475_v61 = vrot.slane %v6474_v50, 4  ;;  %v6497_v29 = vrot.slane %v6495_v42, 4  ;;  %v6501_v52 = vshll.u32 %v16213_v28, 16  ;;  %v6506_v54 = vshrl.u32 %v6310_v13, 16  ;;  %v6319_v42 = vld [vmem:[#allocation3 + $0x78] sm:$0xf] }
 0x37f   : > { %v11593_v60 = vcombine.low %v6446_v0, %v6456_v44  ;;  %v6488_v1 = vor.u32 %v6487_v38, %v6484_v15  ;;  %v6509_v62 = vshll.u32 %v6310_v13, 16  ;;  %v6515_v5 = vshll.u32 %v16220_v26, 16  ;;  %12735 = vmatmul.mubr.bf16.vlgmr.msra.gmra.mrb[28].mxu1 %v11590_v24  ;;  %v6316_v24 = vld [vmem:[#allocation3 + $0x6c] sm:$0xf]  ;;  %v16251_v15 = vld [vmem:[#allocation3 + $0x74] sm:$0x1] }
 0x380   : > { %v6470_v3 = vsel %vm14355_vm9, %v6465_v21, %v6469_v63  ;;  %v6480_v47 = vsel %vm14355_vm9, %v6475_v61, %v6479_v22  ;;  %v6498_v39 = vor.u32 %v6497_v29, %v6493_v48  ;;  %v6508_v56 = vrot.slane %v6506_v54, 4  ;;  %12767 = vmatpush3.bf16.msra.mxu1 %v16127_v10  ;;  %12738 = vmatprep.mubr.bf16.mxu1 %v11591_v14  ;;  %v13857_v21 = vld [vmem:[#allocation4 + $0x98] sm:$0xff]  }
 0x381   : > { %v6489_v31 = vrot.slane %v6488_v1, 4  ;;  %v6503_v55 = vrot.slane %v6501_v52, 5  ;;  %v6511_v49 = vrot.slane %v6509_v62, 5  ;;  %v16236_v23 = vrot.slane %v6515_v5, 5  ;;  %12768 = vmatprep.subr.bf16.mxu1 %v13855_v51  ;;  %v13858_v5 = vld [vmem:[#allocation4 + $0xa0] sm:$0xff]  }
 0x382   : > { %v6499_v46 = vrot.slane %v6498_v39, 4  ;;  %v6519_v45 = vshrl.u32 %v16220_v26, 16  ;;  %v6525_v2 = vshll.u32 %v16225_v20, 16  ;;  %v6530_v63 = vshrl.u32 %v6313_v35, 16 }
 0x383   : > { %v16242_v19 = vcombine.low %v6470_v3, %v6480_v47  ;;  %v6512_v13 = vor.u32 %v6511_v49, %v6508_v56  ;;  %v6533_v10 = vshll.u32 %v6313_v35, 16  ;;  %v6539_v14 = vshll.u32 %v16228_v18, 16  ;;  %v16258_v47 = vld [vmem:[#allocation3 + $0x7c] sm:$0xf]  ;;  %v16261_v49 = vld [vmem:[#allocation3 + $0x80] sm:$0x1] }
 0x384   : > { %v6494_v43 = vsel %vm14355_vm9, %v6489_v31, %v6493_v48  ;;  %v6504_v58 = vsel %vm14355_vm9, %v6499_v46, %v6503_v55  ;;  %v6521_v32 = vrot.slane %v6519_v45, 4  ;;  %v6532_v0 = vrot.slane %v6530_v63, 4  ;;  %12769 = vmatpush3.bf16.msra.mxu1 %v13855_v51 }
 0x385   : > { %v6513_v53 = vrot.slane %v6512_v13, 4  ;;  %v6527_v4 = vrot.slane %v6525_v2, 5  ;;  %v6535_v44 = vrot.slane %v6533_v10, 5  ;;  %v6541_v50 = vrot.slane %v6539_v14, 5  ;;  %12770 = vmatprep.subr.bf16.mxu1 %v13856_v12 }
 0x386   : > { %v6522_v22 = vor.u32 %v6521_v32, %v16236_v23  ;;  %v6543_v38 = vshrl.u32 %v16228_v18, 16  ;;  %v6549_v48 = vshll.u32 %v16238_v40, 16  ;;  %v6554_v35 = vshrl.u32 %v6316_v24, 16  ;;  %v16271_v32 = vld [vmem:[#allocation3 + $0x88] sm:$0xf] }
 0x387   : > { %v11595_v61 = vcombine.low %v6494_v43, %v6504_v58  ;;  %v6536_v29 = vor.u32 %v6535_v44, %v6532_v0  ;;  %v6557_v52 = vshll.u32 %v6316_v24, 16  ;;  %v6563_v51 = vshll.u32 %v16249_v6, 16  ;;  %12739 = vmatmul.mubr.bf16.gmra.mrb[0].mxu1 %v16215_v30  ;;  %v6322_v24 = vld [vmem:[#allocation3 + $0x84] sm:$0xf] }
 0x388   : > { %v6523_v54 = vrot.slane %v6522_v22, 4  ;;  %v6545_v1 = vrot.slane %v6543_v38, 4  ;;  %v6551_v62 = vrot.slane %v6549_v48, 5  ;;  %v6556_v3 = vrot.slane %v6554_v35, 4  ;;  %12742 = vmatprep.mubr.bf16.mxu1 %v11593_v60  ;;  %12771 = vmatpush3.bf16.msra.mxu1 %v13856_v12  ;;  %v16275_v22 = vld [vmem:[#allocation3 + $0x8c] sm:$0x1] }
 0x389   : > { %v6537_v39 = vrot.slane %v6536_v29, 4  ;;  %v6559_v56 = vrot.slane %v6557_v52, 5  ;;  %v6565_v31 = vrot.slane %v6563_v51, 5  ;;  %v6567_v55 = vshrl.u32 %v16249_v6, 16  ;;  %12772 = vmatprep.subr.bf16.mxu1 %v13857_v21  ;;  %v13859_v48 = vld [vmem:[#allocation4 + $0xa8] sm:$0xff]  }
 0x38a   : > { %v6518_v30 = vsel %vm14355_vm9, %v6513_v53, %v16236_v23  ;;  %v6546_v46 = vor.u32 %v6545_v1, %v6541_v50  ;;  %v6573_v45 = vshll.u32 %v16251_v15, 16  ;;  %v6578_v2 = vshrl.u32 %v6319_v42, 16 }
 0x38b   : > { %v6528_v60 = vsel %vm14355_vm9, %v6523_v54, %v6527_v4  ;;  %v6542_v12 = vsel %vm14355_vm9, %v6537_v39, %v6541_v50  ;;  %v6560_v63 = vor.u32 %v6559_v56, %v6556_v3  ;;  %v6569_v13 = vrot.slane %v6567_v55, 4  ;;  %v6325_v39 = vld [vmem:[#allocation3 + $0x90] sm:$0xf] }
 0x38c   : > { %v6547_v10 = vrot.slane %v6546_v46, 4  ;;  %v6575_v14 = vrot.slane %v6573_v45, 5  ;;  %v6580_v43 = vrot.slane %v6578_v2, 4  ;;  %v6581_v58 = vshll.u32 %v6319_v42, 16  ;;  %12773 = vmatpush3.bf16.msra.mxu1 %v13857_v21  ;;  %v16288_v2 = vld [vmem:[#allocation3 + $0x94] sm:$0xf] }
 0x38d   : > { %v6561_v23 = vrot.slane %v6560_v63, 4  ;;  %v6570_v0 = vor.u32 %v6569_v13, %v6565_v31  ;;  %v6587_v53 = vshll.u32 %v16258_v47, 16  ;;  %v6591_v44 = vshrl.u32 %v16258_v47, 16  ;;  %12774 = vmatprep.subr.bf16.mxu1 %v13858_v5  ;;  %v16290_v13 = vld [vmem:[#allocation3 + $0x98] sm:$0x1] }
 0x38e   : > { %v6552_v4 = vsel %vm14355_vm9, %v6547_v10, %v6551_v62  ;;  %v6583_v50 = vrot.slane %v6581_v58, 5  ;;  %v6597_v38 = vshll.u32 %v16261_v49, 16  ;;  %v6602_v42 = vshrl.u32 %v6322_v24, 16 }
 0x38f   : > { %v11596_v35 = vcombine.low %v6518_v30, %v6528_v60  ;;  %v11597_v29 = vcombine.low %v6542_v12, %v6552_v4  ;;  %v6571_v21 = vrot.slane %v6570_v0, 4  ;;  %v6589_v52 = vrot.slane %v6587_v53, 5  ;;  %12743 = vmatmul.mubr.bf16.gmra.mrb[4].mxu1 %v16242_v19  ;;  %v13860_v60 = vld [vmem:[#allocation4 + $0xb0] sm:$0xff]  }
 0x390   : > { %v6566_v51 = vsel %vm14355_vm9, %v6561_v23, %v6565_v31  ;;  %v6584_v54 = vor.u32 %v6583_v50, %v6580_v43  ;;  %v6593_v1 = vrot.slane %v6591_v44, 4  ;;  %v6604_v3 = vrot.slane %v6602_v42, 4  ;;  %12746 = vmatprep.mubr.bf16.mxu1 %v11595_v61  ;;  %12775 = vmatpush3.bf16.msra.mxu1 %v13858_v5  ;;  %v6328_v44 = vld [vmem:[#allocation3 + $0x9c] sm:$0xf] }
 0x391   : > { %v6576_v62 = vsel %vm14355_vm9, %v6571_v21, %v6575_v14  ;;  %v6605_v56 = vshll.u32 %v6322_v24, 16  ;;  %v6611_v55 = vshll.u32 %v16271_v32, 16  ;;  %v6615_v30 = vshrl.u32 %v16271_v32, 16  ;;  %12776 = vmatprep.subr.bf16.mxu1 %v13859_v48  ;;  %v16301_v21 = vld [vmem:[#allocation3 + $0xa0] sm:$0xf] }
 0x392   : > { %v6585_v46 = vrot.slane %v6584_v54, 4  ;;  %v6594_v45 = vor.u32 %v6593_v1, %v6589_v52  ;;  %v6599_v19 = vrot.slane %v6597_v38, 5  ;;  %v6621_v31 = vshll.u32 %v16275_v22, 16 }
 0x393   : > { %v6607_v12 = vrot.slane %v6605_v56, 5  ;;  %v6613_v61 = vrot.slane %v6611_v55, 5  ;;  %v6617_v63 = vrot.slane %v6615_v30, 4  ;;  %v6626_v5 = vshrl.u32 %v6325_v39, 16  ;;  %v16303_v56 = vld [vmem:[#allocation3 + $0xa4] sm:$0x1] }
 0x394   : > { %v16292_v24 = vcombine.low %v6566_v51, %v6576_v62  ;;  %v6590_v10 = vsel %vm14355_vm9, %v6585_v46, %v6589_v52  ;;  %v6595_v14 = vrot.slane %v6594_v45, 4  ;;  %v6629_v43 = vshll.u32 %v6325_v39, 16  ;;  %12777 = vmatpush3.bf16.msra.mxu1 %v13859_v48  ;;  %v13861_v52 = vld [vmem:[#allocation4 + $0xb8] sm:$0xff]  }
 0x395   : > { %v6608_v58 = vor.u32 %v6607_v12, %v6604_v3  ;;  %v6618_v23 = vor.u32 %v6617_v63, %v6613_v61  ;;  %v6628_v0 = vrot.slane %v6626_v5, 4  ;;  %v6635_v53 = vshll.u32 %v16288_v2, 16  ;;  %12778 = vmatprep.subr.bf16.mxu1 %v13860_v60 }
 0x396   : > { %v6600_v4 = vsel %vm14355_vm9, %v6595_v14, %v6599_v19  ;;  %v6631_v50 = vrot.slane %v6629_v43, 5  ;;  %v6639_v38 = vshrl.u32 %v16288_v2, 16  ;;  %v6645_v42 = vshll.u32 %v16290_v13, 16  ;;  %v16312_v14 = vld [vmem:[#allocation4 + $0xc0] sm:$0xff]  }
 0x397   : > { %v6609_v51 = vrot.slane %v6608_v58, 4  ;;  %v6619_v54 = vrot.slane %v6618_v23, 4  ;;  %v6623_v1 = vrot.slane %v6621_v31, 5  ;;  %v6637_v48 = vrot.slane %v6635_v53, 5  ;;  %12747 = vmatmul.mubr.bf16.gmra.mrb[8].mxu1 %v11596_v35  ;;  %v6331_v31 = vld [vmem:[#allocation3 + $0xa8] sm:$0xf] }
 0x398   : > { %v11599_v3 = vcombine.low %v6590_v10, %v6600_v4  ;;  %v6632_v39 = vor.u32 %v6631_v50, %v6628_v0  ;;  %v6641_v62 = vrot.slane %v6639_v38, 4  ;;  %v6650_v55 = vshrl.u32 %v6328_v44, 16  ;;  %12750 = vmatprep.mubr.bf16.mxu1 %v11597_v29  ;;  %12779 = vmatpush3.bf16.msra.mxu1 %v13860_v60  ;;  %v16310_v10 = vld [vmem:[#allocation3 + $0xac] sm:$0xf]  ;;  %v16318_v38 = vld [vmem:[#allocation3 + $0xb0] sm:$0x1] }
 0x399   : > { %v6614_v30 = vsel %vm14355_vm9, %v6609_v51, %v6613_v61  ;;  %v6624_v46 = vsel %vm14355_vm9, %v6619_v54, %v6623_v1  ;;  %v6653_v45 = vshll.u32 %v6328_v44, 16  ;;  %v6659_v19 = vshll.u32 %v16301_v21, 16  ;;  %12780 = vmatprep.subr.bf16.mxu1 %v13861_v52  ;;  %v6334_v51 = vld [vmem:[#allocation3 + $0xb4] sm:$0xf] }
 0x39a   : > { %v6633_v12 = vrot.slane %v6632_v39, 4  ;;  %v6642_v35 = vor.u32 %v6641_v62, %v6637_v48  ;;  %v6647_v63 = vrot.slane %v6645_v42, 5  ;;  %v6652_v5 = vrot.slane %v6650_v55, 4  ;;  %v16324_v55 = vld [vmem:[#allocation3 + $0xb8] sm:$0xf] }
 0x39b   : > { %v6655_v29 = vrot.slane %v6653_v45, 5  ;;  %v6661_v43 = vrot.slane %v6659_v19, 5  ;;  %v6663_v61 = vshrl.u32 %v16301_v21, 16  ;;  %v6669_v58 = vshll.u32 %v16303_v56, 16 }
 0x39c   : > { %v11600_v23 = vcombine.low %v6614_v30, %v6624_v46  ;;  %v6643_v0 = vrot.slane %v6642_v35, 4  ;;  %v6674_v53 = vshrl.u32 %v6331_v31, 16  ;;  %v6677_v60 = vshll.u32 %v6331_v31, 16  ;;  %12781 = vmatpush3.bf16.msra.mxu1 %v13861_v52 }
 0x39d   : > { %v6638_v44 = vsel %vm14355_vm9, %v6633_v12, %v6637_v48  ;;  %v6656_v4 = vor.u32 %v6655_v29, %v6652_v5  ;;  %v6665_v50 = vrot.slane %v6663_v61, 4  ;;  %v6683_v42 = vshll.u32 %v16310_v10, 16  ;;  %12814 = vmatprep.subr.bf16.mxu1 %v16312_v14  ;;  %v16329_v5 = vld [vmem:[#allocation3 + $0xbc] sm:$0x1] }
 0x39e   : > { %v6648_v54 = vsel %vm14355_vm9, %v6643_v0, %v6647_v63  ;;  %v6676_v1 = vrot.slane %v6674_v53, 4  ;;  %v6679_v39 = vrot.slane %v6677_v60, 5  ;;  %v6687_v62 = vshrl.u32 %v16310_v10, 16 }
 0x39f   : > { %v6657_v48 = vrot.slane %v6656_v4, 4  ;;  %v6666_v30 = vor.u32 %v6665_v50, %v6661_v43  ;;  %v6671_v46 = vrot.slane %v6669_v58, 5  ;;  %v6685_v45 = vrot.slane %v6683_v42, 5  ;;  %12751 = vmatmul.mubr.bf16.gmra.mrb[12].mxu1 %v16292_v24 }
 0x3a0   : > { %v6680_v19 = vor.u32 %v6679_v39, %v6676_v1  ;;  %v6689_v31 = vrot.slane %v6687_v62, 4  ;;  %v6693_v52 = vshll.u32 %v16318_v38, 16  ;;  %v6698_v12 = vshrl.u32 %v6334_v51, 16  ;;  %12754 = vmatprep.mubr.bf16.mxu1 %v11599_v3 }
 0x3a1   : > { %v11601_v35 = vcombine.low %v6638_v44, %v6648_v54  ;;  %v6667_v63 = vrot.slane %v6666_v30, 4  ;;  %v6701_v29 = vshll.u32 %v6334_v51, 16  ;;  %v6707_v61 = vshll.u32 %v16324_v55, 16  ;;  %v7044_v44 = vld [vmem:[#allocation3 + $0xc] sm:$0xe] }
 0x3a2   : > { %v6662_v0 = vsel %vm14355_vm9, %v6657_v48, %v6661_v43  ;;  %v6681_v58 = vrot.slane %v6680_v19, 4  ;;  %v6690_v53 = vor.u32 %v6689_v31, %v6685_v45  ;;  %v6700_v60 = vrot.slane %v6698_v12, 4  ;;  %v13948_v48 = vld [vmem:[#allocation3 + $0x8] sm:$0x1]  ;;  %v13949_v12 = vld [vmem:[#allocation3 + $0x10] sm:$0xf] }
 0x3a3   : > { %v6672_v24 = vsel %vm14355_vm9, %v6667_v63, %v6671_v46  ;;  %v6703_v4 = vrot.slane %v6701_v29, 5  ;;  %v6709_v50 = vrot.slane %v6707_v61, 5  ;;  %v6711_v3 = vshrl.u32 %v16324_v55, 16  ;;  %v7045_v29 = vld [vmem:[#allocation3 + $0x18] sm:$0xe] }
 0x3a4   : > { %v6686_v42 = vsel %vm14355_vm9, %v6681_v58, %v6685_v45  ;;  %v6691_v51 = vrot.slane %v6690_v53, 4  ;;  %v6695_v54 = vrot.slane %v6693_v52, 5  ;;  %v6717_v1 = vshll.u32 %v16329_v5, 16  ;;  %v7046_v53 = vld [vmem:[#allocation3 + $0x24] sm:$0xe] }
 0x3a5   : > { %v6704_v39 = vor.u32 %v6703_v4, %v6700_v60  ;;  %v6713_v43 = vrot.slane %v6711_v3, 4  ;;  %v7111_v62 = vrot.slane %v7109_v17, 4  ;;  %v7112_v30 = vrot.slane %v13948_v48, 5 }
 0x3a6   : > { %v11602_v46 = vcombine.low %v6662_v0, %v6672_v24  ;;  %v6696_v19 = vsel %vm14355_vm9, %v6691_v51, %v6695_v54  ;;  %v11614_v31 = vrot.slane %v7044_v44, 9  ;;  %v7116_v63 = vrot.slane %v13949_v12, 5  ;;  %v7049_v12 = vld [vmem:[#allocation3 + $0x48] sm:$0xe] }
 0x3a7   : > { %v6705_v45 = vrot.slane %v6704_v39, 4  ;;  %v6714_v61 = vor.u32 %v6713_v43, %v6709_v50  ;;  %v6719_v52 = vrot.slane %v6717_v1, 5  ;;  %v16346_v58 = vsel %vm14717_vm12, %v7111_v62, %v7112_v30  ;;  %12755 = vmatmul.mubr.bf16.gmra.mrb[16].mxu1 %v11600_v23  ;;  %v7048_v39 = vld [vmem:[#allocation3 + $0x3c] sm:$0xe] }
 0x3a8   : > { %v11603_v33 = vcombine.low %v6686_v42, %v6696_v19  ;;  %v11629_v17 = vcombine.low %v16176_v8, %v16346_v58  ;;  %v7118_v0 = vrot.slane %v7116_v63, 4  ;;  %v7119_v60 = vrot.slane %v16133_v41, 5  ;;  %12758 = vmatprep.mubr.bf16.mxu1 %v11601_v35  ;;  %v7047_v41 = vld [vmem:[#allocation3 + $0x30] sm:$0xe] }
 0x3a9   : > { %v6710_v24 = vsel %vm14355_vm9, %v6705_v45, %v6709_v50  ;;  %v6715_v4 = vrot.slane %v6714_v61, 4  ;;  %v11615_v3 = vrot.slane %v7045_v29, 9  ;;  %v7123_v44 = vrot.slane %v16137_v37, 5  ;;  %v7050_v61 = vld [vmem:[#allocation3 + $0x54] sm:$0xe] }
 0x3aa   : > { %v16356_v51 = vsel %vm14717_vm12, %v11614_v31, %v7116_v63  ;;  %v16360_v23 = vsel %vm14717_vm12, %v7118_v0, %v7119_v60  ;;  %v11616_v42 = vrot.slane %v7046_v53, 9  ;;  %v7130_v54 = vrot.slane %v16165_v27, 5 }
 0x3ab   : > { %v6720_v35 = vsel %vm14355_vm9, %v6715_v4, %v6719_v52  ;;  %v11630_v50 = vcombine.low %v16356_v51, %v16360_v23  ;;  %v7125_v1 = vrot.slane %v7123_v44, 4  ;;  %v7126_v37 = vrot.slane %v16155_v16, 5  ;;  %v13864_v51 = vld [vmem:[#allocation4 + $0xd0] sm:$0xff]  }
 0x3ac   : > { %v11604_v43 = vcombine.low %v6710_v24, %v6720_v35  ;;  %v16370_v62 = vsel %vm14717_vm12, %v11615_v3, %v7123_v44  ;;  %v7132_v48 = vrot.slane %v7130_v54, 4  ;;  %v7133_v30 = vrot.slane %v16161_v57, 5 }
 0x3ad   : > { %v16375_v27 = vsel %vm14717_vm12, %v7125_v1, %v7126_v37  ;;  %v16379_v19 = vsel %vm14717_vm12, %v11616_v42, %v7130_v54  ;;  %v11617_v31 = vrot.slane %v7047_v41, 9  ;;  %v7137_v16 = vrot.slane %v16186_v25, 5  ;;  %v7051_v54 = vld [vmem:[#allocation3 + $0x60] sm:$0xe]  ;;  %v7052_v41 = vld [vmem:[#allocation3 + $0x6c] sm:$0xe] }
 0x3ae   : > { %v16384_v63 = vsel %vm14717_vm12, %v7132_v48, %v7133_v30  ;;  %v7140_v29 = vrot.slane %v16190_v34, 5  ;;  %v11618_v45 = vrot.slane %v7048_v39, 9  ;;  %v7144_v57 = vrot.slane %v16194_v11, 5 }
 0x3af   : > { %v11631_v52 = vcombine.low %v16370_v62, %v16375_v27  ;;  %v11632_v53 = vcombine.low %v16379_v19, %v16384_v63  ;;  %v16394_v25 = vsel %vm14717_vm12, %v11617_v31, %v7137_v16  ;;  %v7139_v0 = vrot.slane %v7137_v16, 4  ;;  %12759 = vmatmul.mubr.bf16.gmra.mrb[20].mxu1 %v11602_v46  ;;  %v7053_v31 = vld [vmem:[#allocation3 + $0x78] sm:$0xe]  ;;  %v13865_v27 = vld [vmem:[#allocation4 + $0xd8] sm:$0xff]   ;;  %v13868_v19 = vld [vmem:[#allocation4 + $0xf0] sm:$0xff]  }
 0x3b0   : > { %v7146_v60 = vrot.slane %v7144_v57, 4  ;;  %v7147_v24 = vrot.slane %v16204_v9, 5  ;;  %v11619_v34 = vrot.slane %v7049_v12, 9  ;;  %v7151_v4 = vrot.slane %v16209_v36, 5  ;;  %12762 = vmatprep.mubr.bf16.mxu1 %v11603_v33  ;;  %v13869_v63 = vld [vmem:[#allocation4 + $0xf8] sm:$0xff]  }
 0x3b1   : > { %v16400_v11 = vsel %vm14717_vm12, %v7139_v0, %v7140_v29  ;;  %v16404_v3 = vsel %vm14717_vm12, %v11618_v45, %v7144_v57  ;;  %v11620_v44 = vrot.slane %v7050_v61, 9  ;;  %v7158_v42 = vrot.slane %v16220_v26, 5  ;;  %v7054_v45 = vld [vmem:[#allocation3 + $0x84] sm:$0xe] }
 0x3b2   : > { %v11633_v46 = vcombine.low %v16394_v25, %v16400_v11  ;;  %v16411_v9 = vsel %vm14717_vm12, %v7146_v60, %v7147_v24  ;;  %v7153_v36 = vrot.slane %v7151_v4, 4  ;;  %v7154_v33 = vrot.slane %v16213_v28, 5  ;;  %v13870_v25 = vld [vmem:[#allocation3 + $0xc] sm:$0xff]  }
 0x3b3   : > { %v11634_v35 = vcombine.low %v16404_v3, %v16411_v9  ;;  %v16418_v1 = vsel %vm14717_vm12, %v11619_v34, %v7151_v4  ;;  %v7160_v26 = vrot.slane %v7158_v42, 4  ;;  %v7161_v37 = vrot.slane %v16225_v20, 5  ;;  %v7927_v11 = vld [vmem:[#allocation3 + $0xc] sm:$0xf]  ;;  %v16537_v3 = vld [vmem:[#allocation3 + $0x10] sm:$0xf] }
 0x3b4   : > { %v16423_v39 = vsel %vm14717_vm12, %v7153_v36, %v7154_v33  ;;  %v16427_v48 = vsel %vm14717_vm12, %v11620_v44, %v7158_v42  ;;  %v11621_v28 = vrot.slane %v7051_v54, 9  ;;  %v7165_v30 = vrot.slane %v16228_v18, 5  ;;  %v7055_v36 = vld [vmem:[#allocation3 + $0x90] sm:$0xe]  ;;  %v7056_v33 = vld [vmem:[#allocation3 + $0x9c] sm:$0xe] }
 0x3b5   : > { %v11635_v16 = vcombine.low %v16418_v1, %v16423_v39  ;;  %v16434_v12 = vsel %vm14717_vm12, %v7160_v26, %v7161_v37  ;;  %v11622_v20 = vrot.slane %v7052_v41, 9  ;;  %v7172_v29 = vrot.slane %v16249_v6, 5  ;;  %v13874_v1 = vld [vmem:[#allocation4 + $0x108] sm:$0xff]  }
 0x3b6   : > { %v11636_v57 = vcombine.low %v16427_v48, %v16434_v12  ;;  %v16441_v61 = vsel %vm14717_vm12, %v11621_v28, %v7165_v30  ;;  %v7167_v18 = vrot.slane %v7165_v30, 4  ;;  %v7168_v0 = vrot.slane %v16238_v40, 5  ;;  %v7057_v28 = vld [vmem:[#allocation3 + $0xa8] sm:$0xe]  ;;  %v13863_v30 = vld [vmem:[#allocation4 + $0xc8] sm:$0xff]  }
 0x3b7   : > { %v7174_v60 = vrot.slane %v7172_v29, 4  ;;  %v7175_v24 = vrot.slane %v16251_v15, 5  ;;  %v11623_v34 = vrot.slane %v7053_v31, 9  ;;  %v7179_v4 = vrot.slane %v16258_v47, 5  ;;  %12763 = vmatmul.mubr.bf16.gmra.mrb[24].mxu1 %v11604_v43  ;;  %v13873_v39 = vld [vmem:[#allocation3 + $0x24] sm:$0xff]  }
 0x3b8   : > { %v16448_v6 = vsel %vm14717_vm12, %v7167_v18, %v7168_v0  ;;  %v16452_v44 = vsel %vm14717_vm12, %v11622_v20, %v7172_v29  ;;  %v11624_v42 = vrot.slane %v7054_v45, 9  ;;  %v7186_v54 = vrot.slane %v16271_v32, 5  ;;  %12782 = vmatprep.mubr.bf16.mxu1 %v11629_v17  ;;  %v7058_v45 = vld [vmem:[#allocation3 + $0xb4] sm:$0xe] }
 0x3b9   : > { %v11637_v40 = vcombine.low %v16441_v61, %v16448_v6  ;;  %v16462_v15 = vsel %vm14717_vm12, %v7174_v60, %v7175_v24  ;;  %v7181_v47 = vrot.slane %v7179_v4, 4  ;;  %v7182_v43 = vrot.slane %v16261_v49, 5  ;;  %v7930_v61 = vld [vmem:[#allocation3 + $0x18] sm:$0xf]  ;;  %v13877_v6 = vld [vmem:[#allocation4 + $0x110] sm:$0xff]  }
 0x3ba   : > { %v11638_v41 = vcombine.low %v16452_v44, %v16462_v15  ;;  %v16469_v32 = vsel %vm14717_vm12, %v11623_v34, %v7179_v4  ;;  %v7188_v8 = vrot.slane %v7186_v54, 4  ;;  %v7189_v58 = vrot.slane %v16275_v22, 5  ;;  %v16541_v44 = vld [vmem:[#allocation3 + $0x14] sm:$0x1]  ;;  %v16543_v15 = vld [vmem:[#allocation3 + $0x20] sm:$0x1] }
 0x3bb   : > { %v16474_v17 = vsel %vm14717_vm12, %v7181_v47, %v7182_v43  ;;  %v16478_v26 = vsel %vm14717_vm12, %v11624_v42, %v7186_v54  ;;  %v11625_v49 = vrot.slane %v7055_v36, 9  ;;  %v7193_v37 = vrot.slane %v16288_v2, 5 }
 0x3bc   : > { %v11639_v31 = vcombine.low %v16469_v32, %v16474_v17  ;;  %v7190_v20 = vsel %vm14717_vm12, %v7188_v8, %v7189_v58  ;;  %v11626_v22 = vrot.slane %v7056_v33, 9  ;;  %v7200_v29 = vrot.slane %v16301_v21, 5 }
 0x3bd   : > { %v11640_v18 = vcombine.low %v16478_v26, %v7190_v20  ;;  %v7194_v0 = vsel %vm14717_vm12, %v11625_v49, %v7193_v37  ;;  %v7195_v60 = vrot.slane %v7193_v37, 4  ;;  %v7196_v2 = vrot.slane %v16290_v13, 5  ;;  %v16549_v49 = vld [vmem:[#allocation3 + $0x24] sm:$0xf]  ;;  %v13880_v37 = vld [vmem:[#allocation4 + $0x118] sm:$0xff]  }
 0x3be   : > { %v7202_v24 = vrot.slane %v7200_v29, 4  ;;  %v7203_v34 = vrot.slane %v16303_v56, 5  ;;  %v11627_v4 = vrot.slane %v7057_v28, 9  ;;  %v7207_v42 = vrot.slane %v16310_v10, 5  ;;  %v8683_v20 = vld [vmem:[#allocation3 + $0x24] sm:$0xe] }
 0x3bf   : > { %v7197_v54 = vsel %vm14717_vm12, %v7195_v60, %v7196_v2  ;;  %v7201_v21 = vsel %vm14717_vm12, %v11626_v22, %v7200_v29  ;;  %v11628_v36 = vrot.slane %v7058_v45, 9  ;;  %v7214_v47 = vrot.slane %v16324_v55, 5  ;;  %12783 = vmatmul.mubr.bf16.vlgmr.msra.gmra.mrb[28].mxu1 %v11630_v50  ;;  %v16553_v45 = vld [vmem:[#allocation3 + $0x2c] sm:$0x1]  ;;  %v16558_v2 = vld [vmem:[#allocation3 + $0x38] sm:$0x1] }
 0x3c0   : > { %v11641_v13 = vcombine.low %v7194_v0, %v7197_v54  ;;  %v7204_v56 = vsel %vm14717_vm12, %v7202_v24, %v7203_v34  ;;  %v7209_v43 = vrot.slane %v7207_v42, 4  ;;  %v7210_v10 = vrot.slane %v16318_v38, 5  ;;  %12815 = vmatpush3.bf16.msra.mxu1 %v16312_v14  ;;  %12786 = vmatprep.mubr.bf16.mxu1 %v11631_v52  ;;  %v13867_v52 = vld [vmem:[#allocation4 + $0xe8] sm:$0xff]   ;;  %v8684_v24 = vld [vmem:[#allocation3 + $0x30] sm:$0xe]  ;;  %v13883_v34 = vld [vmem:[#allocation4 + $0x120] sm:$0xff]  }
 0x3c1   : > { %v11642_v33 = vcombine.low %v7201_v21, %v7204_v56  ;;  %v7216_v32 = vrot.slane %v7214_v47, 4  ;;  %v7217_v55 = vrot.slane %v16329_v5, 5  ;;  %12816 = vmatprep.subr.bf16.mxu1 %v13863_v30  ;;  %v7208_v23 = vsel %vm14717_vm12, %v11627_v4, %v7207_v42  ;;  %v13866_v5 = vld [vmem:[#allocation4 + $0xe0] sm:$0xff]   ;;  %v16565_v21 = vld [vmem:[#allocation3 + $0x40] sm:$0xf] }
 0x3c2   : > { %v7211_v50 = vsel %vm14717_vm12, %v7209_v43, %v7210_v10  ;;  %v7215_v14 = vsel %vm14717_vm12, %v11628_v36, %v7214_v47  ;;  %v7979_v9 = vshll.u32 %v7927_v11, 16  ;;  %v7985_v48 = vshll.u32 %v16537_v3, 16  ;;  %v13876_v0 = vld [vmem:[#allocation3 + $0x3c] sm:$0xff]   ;;  %v16572_v43 = vld [vmem:[#allocation3 + $0x4c] sm:$0xf] }
 0x3c3   : > { %v11643_v8 = vcombine.low %v7208_v23, %v7211_v50  ;;  %v7218_v38 = vsel %vm14717_vm12, %v7216_v32, %v7217_v55  ;;  %v8000_v26 = vshrl.u32 %v7930_v61, 16  ;;  %v11703_v36 = vrot.slane %v8683_v20, 9  ;;  %v16579_v55 = vld [vmem:[#allocation3 + $0x44] sm:$0x1]  ;;  %v8685_v50 = vld [vmem:[#allocation3 + $0x3c] sm:$0xe] }
 0x3c4   : > { %v11644_v62 = vcombine.low %v7215_v14, %v7218_v38  ;;  %12817 = vmatpush3.bf16.msra.mxu1 %v13863_v30  ;;  %v16545_v58 = vrot.slane %v7985_v48, 5  ;;  %v8003_v30 = vshll.u32 %v7930_v61, 16  ;;  %v8024_v56 = vshrl.u32 %v16549_v49, 16  ;;  %v16584_v38 = vld [vmem:[#allocation3 + $0x50] sm:$0x1]  ;;  %v13878_v48 = vld [vmem:[#allocation3 + $0x48] sm:$0xff]  }
 0x3c5   : > { %12818 = vmatprep.subr.bf16.mxu1 %v13864_v51  ;;  %v16562_v42 = vrot.slane %v8000_v26, 4  ;;  %v8688_v20 = vld [vmem:[#allocation3 + $0x60] sm:$0xe] }
 0x3c7   : > { %12787 = vmatmul.mubr.bf16.gmra.mrb[0].mxu1 %v11632_v53  ;;  %v13871_v53 = vld [vmem:[#allocation4 + $0x100] sm:$0xff]  }
 0x3c8   : > { %12790 = vmatprep.mubr.bf16.mxu1 %v11633_v46  ;;  %12819 = vmatpush3.bf16.msra.mxu1 %v13864_v51  ;;  %v7976_v46 = vshrl.u32 %v7927_v11, 16  ;;  %v11704_v51 = vrot.slane %v8684_v24, 9  ;;  %v16595_v11 = vld [vmem:[#allocation3 + $0x5c] sm:$0x1] }
 0x3c9   : > { %12820 = vmatprep.subr.bf16.mxu1 %v13865_v27 }
 0x3ca   : > { %v7978_v12 = vrot.slane %v7976_v46, 4 }
 0x3cc   : > { %12821 = vmatpush3.bf16.msra.mxu1 %v13865_v27  ;;  %v8764_v27 = vrot.slane %v16553_v45, 5 }
 0x3cd   : > { %12822 = vmatprep.subr.bf16.mxu1 %v13866_v5 }
 0x3cf   : > { %12791 = vmatmul.mubr.bf16.gmra.mrb[4].mxu1 %v11634_v35  ;;  %v13872_v35 = vld [vmem:[#allocation3 + $0x18] sm:$0xff]  }
 0x3d0   : > { %12794 = vmatprep.mubr.bf16.mxu1 %v11635_v16  ;;  %12823 = vmatpush3.bf16.msra.mxu1 %v13866_v5  ;;  %v7989_v16 = vshrl.u32 %v16537_v3, 16  ;;  %v8686_v5 = vld [vmem:[#allocation3 + $0x48] sm:$0xe] }
 0x3d1   : > { %12824 = vmatprep.subr.bf16.mxu1 %v13867_v52 }
 0x3d2   : > { %v16547_v17 = vrot.slane %v7989_v16, 4  ;;  %v13886_v16 = vld [vmem:[#allocation4 + $0x128] sm:$0xff]  }
 0x3d4   : > { %12825 = vmatpush3.bf16.msra.mxu1 %v13867_v52 }
 0x3d5   : > { %12826 = vmatprep.subr.bf16.mxu1 %v13868_v19 }
 0x3d7   : > { %12795 = vmatmul.mubr.bf16.gmra.mrb[8].mxu1 %v11636_v57  ;;  %v7981_v57 = vrot.slane %v7979_v9, 5 }
 0x3d8   : > { %12798 = vmatprep.mubr.bf16.mxu1 %v11637_v40  ;;  %12827 = vmatpush3.bf16.msra.mxu1 %v13868_v19  ;;  %v7931_v40 = vld [vmem:[#allocation3 + $0x1c] sm:$0xf]  ;;  %v16588_v19 = vld [vmem:[#allocation3 + $0x58] sm:$0xf] }
 0x3d9   : > { %12828 = vmatprep.subr.bf16.mxu1 %v13869_v63  ;;  %v7982_v28 = vor.u32 %v7981_v57, %v7978_v12  ;;  %v8009_v22 = vshll.u32 %v7931_v40, 16  ;;  %v8013_v29 = vshrl.u32 %v7931_v40, 16  ;;  %v16606_v12 = vld [vmem:[#allocation3 + $0x64] sm:$0xf]  ;;  %v8782_v40 = vrot.slane %v16572_v43, 5 }
 0x3da   : > { %v16666_v57 = vld [vmem:[#allocation3 + $0x94] sm:$0xf] }
 0x3db   : > { %v16567_v47 = vrot.slane %v7982_v28, 4  ;;  %v16577_v32 = vrot.slane %v8013_v29, 4  ;;  %v8784_v29 = vrot.slane %v8782_v40, 4 }
 0x3dc   : > { %12829 = vmatpush3.bf16.msra.mxu1 %v13869_v63 }
 0x3dd   : > { %12862 = vmatprep.subr.bf16.mxu1 %v13871_v53 }
 0x3df   : > { %12799 = vmatmul.mubr.bf16.gmra.mrb[12].mxu1 %v11638_v41  ;;  %v13875_v41 = vld [vmem:[#allocation3 + $0x30] sm:$0xff]  }
 0x3e0   : > { %12802 = vmatprep.mubr.bf16.mxu1 %v11639_v31  ;;  %v16551_v31 = vld [vmem:[#allocation3 + $0x28] sm:$0xf] }
 0x3e1   : > { %v8761_v10 = vrot.slane %v16551_v31, 5  ;;  %v8033_v14 = vshll.u32 %v16551_v31, 16  ;;  %v8037_v52 = vshrl.u32 %v16551_v31, 16 }
 0x3e3   : > { %v16592_v63 = vsel %vm14717_vm12, %v11703_v36, %v8761_v10  ;;  %v8789_v36 = vrot.slane %v16588_v19, 5  ;;  %v16685_v60 = vrot.slane %v8037_v52, 4 }
 0x3e4   : > { %17956 = vst [vmem:[#allocation22_spill] sm:$0xff] %v16592_v63  ;;  %v8085_v63 = vshrl.u32 %v16565_v21, 16 }
 0x3e7   : > { %12803 = vmatmul.mubr.bf16.gmra.mrb[16].mxu1 %v11640_v18  ;;  %v16555_v18 = vld [vmem:[#allocation3 + $0x34] sm:$0xf] }
 0x3e8   : > { %12806 = vmatprep.mubr.bf16.mxu1 %v11641_v13  ;;  %v16569_v13 = vrot.slane %v8003_v30, 5  ;;  %v8768_v23 = vrot.slane %v16555_v18, 5  ;;  %v8778_v30 = vrot.slane %v16579_v55, 5 }
 0x3ea   : > { %v16603_v9 = vsel %vm14717_vm12, %v11704_v51, %v8768_v23 }
 0x3eb   : > { %17958 = vst [vmem:[#allocation24_spill] sm:$0xff] %v16603_v9 }
 0x3ef   : > { %12807 = vmatmul.mubr.bf16.gmra.mrb[20].mxu1 %v11642_v33  ;;  %v16575_v33 = vrot.slane %v8009_v22, 5  ;;  %v16622_v22 = vld [vmem:[#allocation3 + $0x68] sm:$0x1] }
 0x3f0   : > { %12810 = vmatprep.mubr.bf16.mxu1 %v11643_v8  ;;  %v8027_v8 = vshll.u32 %v16549_v49, 16 }
 0x3f7   : > { %12811 = vmatmul.mubr.bf16.gmra.mrb[24].mxu1 %v11644_v62  ;;  %v8763_v62 = vrot.slane %v8761_v10, 4  ;;  %v16626_v10 = vld [vmem:[#allocation3 + $0x70] sm:$0xf] }
 0x3f8   : > { %12830 = vmatprep.mubr.bf16.mxu1 %v13870_v25  ;;  %v8771_v25 = vrot.slane %v16558_v2, 5 }
 0x3f9   : > { %v16599_v46 = vsel %vm14717_vm12, %v8763_v62, %v8764_v27  ;;  %v8796_v62 = vrot.slane %v16606_v12, 5  ;;  %v8689_v27 = vld [vmem:[#allocation3 + $0x6c] sm:$0xe] }
 0x3fa   : > { %17957 = vst [vmem:[#allocation23_spill] sm:$0xff] %v16599_v46  ;;  %v11709_v54 = vrot.slane %v8689_v27, 9  ;;  %v13892_v27 = vld [vmem:[#allocation4 + $0x138] sm:$0xff]  }
 0x3fb   : > { %v8798_v26 = vrot.slane %v8796_v62, 4 }
 0x3ff   : > { %12831 = vmatmul.mubr.bf16.vlgmr.msra.gmra.mrb[28].mxu1 %v13872_v35  ;;  %v11705_v35 = vrot.slane %v8685_v50, 9  ;;  %v8792_v50 = vrot.slane %v16595_v11, 5 }
 0x400   : > { %12863 = vmatpush3.bf16.msra.mxu1 %v13871_v53  ;;  %12834 = vmatprep.mubr.bf16.mxu1 %v13873_v39  ;;  %v8770_v53 = vrot.slane %v8768_v23, 4  ;;  %v8687_v39 = vld [vmem:[#allocation3 + $0x54] sm:$0xe] }
 0x401   : > { %12864 = vmatprep.subr.bf16.mxu1 %v13874_v1  ;;  %v11707_v24 = vrot.slane %v8687_v39, 9  ;;  %v8791_v39 = vrot.slane %v8789_v36, 4 }
 0x402   : > { %v16612_v61 = vsel %vm14717_vm12, %v8770_v53, %v8771_v25  ;;  %v13889_v53 = vld [vmem:[#allocation4 + $0x130] sm:$0xff]   ;;  %v16642_v25 = vld [vmem:[#allocation3 + $0x7c] sm:$0xf] }
 0x403   : > { %17959 = vst [vmem:[#allocation25_spill] sm:$0xff] %v16612_v61  ;;  %v16670_v49 = vsel %vm14717_vm12, %v11707_v24, %v8789_v36  ;;  %v8803_v36 = vrot.slane %v16626_v10, 5  ;;  %v8810_v52 = vrot.slane %v16642_v25, 5  ;;  %v16701_v24 = vld [vmem:[#allocation3 + $0x98] sm:$0x1] }
 0x404   : > { %12865 = vmatpush3.bf16.msra.mxu1 %v13874_v1  ;;  %v8775_v1 = vrot.slane %v16565_v21, 5  ;;  %17967 = vst [vmem:[#allocation14_spill] sm:$0xff] %v16670_v49 }
 0x405   : > { %12866 = vmatprep.subr.bf16.mxu1 %v13877_v6 }
 0x406   : > { %v8777_v28 = vrot.slane %v8775_v1, 4 }
 0x407   : > { %12835 = vmatmul.mubr.bf16.gmra.mrb[0].mxu1 %v13875_v41  ;;  %v13879_v41 = vld [vmem:[#allocation3 + $0x54] sm:$0xff]  }
 0x408   : > { %12838 = vmatprep.mubr.bf16.mxu1 %v13876_v0  ;;  %12867 = vmatpush3.bf16.msra.mxu1 %v13877_v6  ;;  %v11706_v6 = vrot.slane %v8686_v5, 9  ;;  %v8785_v0 = vrot.slane %v16584_v38, 5  ;;  %v16630_v51 = vsel %vm14717_vm12, %v8777_v28, %v8778_v30  ;;  %v16658_v28 = vld [vmem:[#allocation3 + $0x80] sm:$0x1]  ;;  %v16660_v30 = vld [vmem:[#allocation3 + $0x88] sm:$0xf] }
 0x409   : > { %12868 = vmatprep.subr.bf16.mxu1 %v13880_v37  ;;  %17961 = vst [vmem:[#allocation27_spill] sm:$0xff] %v16630_v51  ;;  %v8817_v49 = vrot.slane %v16660_v30, 5 }
 0x40a   : > { %v16634_v23 = vsel %vm14717_vm12, %v11706_v6, %v8782_v40  ;;  %v16654_v40 = vrot.slane %v8024_v56, 4  ;;  %v16674_v56 = vsel %vm14717_vm12, %v8791_v39, %v8792_v50  ;;  %v8691_v50 = vld [vmem:[#allocation3 + $0x84] sm:$0xe]  ;;  %v13882_v39 = vld [vmem:[#allocation3 + $0x6c] sm:$0xff]  }
 0x40b   : > { %17962 = vst [vmem:[#allocation28_spill] sm:$0xff] %v16634_v23  ;;  %17968 = vst [vmem:[#allocation13_spill] sm:$0xff] %v16674_v56  ;;  %v11711_v56 = vrot.slane %v8691_v50, 9  ;;  %v16725_v50 = vld [vmem:[#allocation4 + $0x140] sm:$0xff]  }
 0x40c   : > { %12869 = vmatpush3.bf16.msra.mxu1 %v13880_v37  ;;  %v16619_v37 = vsel %vm14717_vm12, %v11705_v35, %v8775_v1  ;;  %v16648_v1 = vsel %vm14717_vm12, %v8784_v29, %v8785_v0  ;;  %v8690_v29 = vld [vmem:[#allocation3 + $0x78] sm:$0xe]  ;;  %v16681_v35 = vrot.slane %v8033_v14, 5 }
 0x40d   : > { %12870 = vmatprep.subr.bf16.mxu1 %v13883_v34  ;;  %17960 = vst [vmem:[#allocation26_spill] sm:$0xff] %v16619_v37  ;;  %17964 = vst [vmem:[#allocation30_spill] sm:$0xff] %v16648_v1  ;;  %v11710_v31 = vrot.slane %v8690_v29, 9  ;;  %v8812_v29 = vrot.slane %v8810_v52, 4  ;;  %v16714_v1 = vld [vmem:[#allocation3 + $0xac] sm:$0xf]  ;;  %v16742_v23 = vsel %vm14717_vm12, %v11711_v56, %v8817_v49 }
 0x40e   : > { %17976 = vst [vmem:[#allocation21_spill] sm:$0xff] %v16742_v23  ;;  %v8696_v37 = vld [vmem:[#allocation3 + $0xc0] sm:$0xe] }
 0x40f   : > { %12839 = vmatmul.mubr.bf16.gmra.mrb[4].mxu1 %v13878_v48  ;;  %v11708_v48 = vrot.slane %v8688_v20, 9  ;;  %v13881_v20 = vld [vmem:[#allocation3 + $0x60] sm:$0xff]  }
 0x410   : > { %12842 = vmatprep.mubr.bf16.mxu1 %v13879_v41  ;;  %12871 = vmatpush3.bf16.msra.mxu1 %v13883_v34  ;;  %v16640_v34 = vld [vmem:[#allocation3 + $0x74] sm:$0x1]  ;;  %v16656_v41 = vrot.slane %v8027_v8, 5  ;;  %v8799_v8 = vrot.slane %v16622_v22, 5 }
 0x411   : > { %v16638_v5 = vpop.f32.mrb[32].mxu0  ;;  %12872 = vmatprep.subr.bf16.mxu1 %v13886_v16 }
 0x412   : > { %17963 = vst [vmem:[#allocation29_spill] sm:$0xff] %v16638_v5  ;;  %v16650_v6 = vpop.f32.mrb[33].mxu0  ;;  %v16696_v14 = vsel %vm14717_vm12, %v8798_v26, %v8799_v8  ;;  %v16707_v5 = vsel %vm14717_vm12, %v11709_v54, %v8803_v36  ;;  %v16710_v26 = vld [vmem:[#allocation3 + $0xa0] sm:$0xf]  ;;  %v8813_v8 = vrot.slane %v16658_v28, 5 }
 0x413   : > { %17965 = vst [vmem:[#allocation31_spill] sm:$0xff] %v16650_v6  ;;  %v16664_v0 = vpop.f32.mrb[34].mxu0  ;;  %17971 = vst [vmem:[#allocation16_spill] sm:$0xff] %v16696_v14  ;;  %v8824_v6 = vrot.slane %v16666_v57, 5  ;;  %v8693_v14 = vld [vmem:[#allocation3 + $0x9c] sm:$0xe] }
 0x414   : > { %17966 = vst [vmem:[#allocation32_spill] sm:$0xff] %v16664_v0  ;;  %v16677_v4 = vpop.f32.mrb[35].mxu0  ;;  %12873 = vmatpush3.bf16.msra.mxu1 %v13886_v16  ;;  %v16692_v16 = vsel %vm14717_vm12, %v11708_v48, %v8796_v62  ;;  %v16699_v0 = vld [vmem:[#allocation3 + $0x8c] sm:$0x1]  ;;  %17972 = vst [vmem:[#allocation17_spill] sm:$0xff] %v16707_v5  ;;  %v8805_v62 = vrot.slane %v8803_v36, 4  ;;  %v16722_v36 = vsel %vm14717_vm12, %v11710_v31, %v8810_v52 }
 0x415   : > { %17969 = vst [vmem:[#allocation11_spill] sm:$0xff] %v16677_v4  ;;  %12874 = vmatprep.subr.bf16.mxu1 %v13889_v53  ;;  %17970 = vst [vmem:[#allocation12_spill] sm:$0xff] %v16692_v16  ;;  %v8692_v4 = vld [vmem:[#allocation3 + $0x90] sm:$0xe]  ;;  %v8806_v48 = vrot.slane %v16640_v34, 5  ;;  %v11713_v51 = vrot.slane %v8693_v14, 9 }
 0x416   : > { %17974 = vst [vmem:[#allocation19_spill] sm:$0xff] %v16722_v36  ;;  %v8694_v16 = vld [vmem:[#allocation3 + $0xa8] sm:$0xe]  ;;  %v16734_v31 = vld [vmem:[#allocation3 + $0xa4] sm:$0x1]  ;;  %v8831_v52 = vrot.slane %v16710_v26, 5 }
 0x417   : > { %12843 = vmatmul.mubr.bf16.gmra.mrb[8].mxu1 %v13881_v20  ;;  %v16718_v54 = vsel %vm14717_vm12, %v8805_v62, %v8806_v48  ;;  %v11712_v20 = vrot.slane %v8692_v4, 9  ;;  %v8819_v62 = vrot.slane %v8817_v49, 4  ;;  %v8820_v48 = vrot.slane %v16699_v0, 5  ;;  %v16736_v4 = vld [vmem:[#allocation3 + $0xb0] sm:$0x1] }
 0x418   : > { %12846 = vmatprep.mubr.bf16.mxu1 %v13882_v39  ;;  %12875 = vmatpush3.bf16.msra.mxu1 %v13889_v53  ;;  %17973 = vst [vmem:[#allocation18_spill] sm:$0xff] %v16718_v54  ;;  %v16731_v39 = vsel %vm14717_vm12, %v8812_v29, %v8813_v8  ;;  %v8826_v53 = vrot.slane %v8824_v6, 4  ;;  %v8827_v54 = vrot.slane %v16701_v24, 5  ;;  %v16745_v29 = vld [vmem:[#allocation3 + $0xb8] sm:$0xf]  ;;  %v16772_v56 = vsel %vm14717_vm12, %v11713_v51, %v8831_v52 }
 0x419   : > { %12876 = vmatprep.subr.bf16.mxu1 %v13892_v27  ;;  %17975 = vst [vmem:[#allocation20_spill] sm:$0xff] %v16731_v39  ;;  %v16749_v8 = vsel %vm14717_vm12, %v8819_v62, %v8820_v48  ;;  %v16753_v5 = vsel %vm14717_vm12, %v11712_v20, %v8824_v6  ;;  %v8695_v39 = vld [vmem:[#allocation3 + $0xb4] sm:$0xe]  ;;  %v16756_v49 = vld [vmem:[#allocation3 + $0xc4] sm:$0xf]  ;;  %v11714_v62 = vrot.slane %v8694_v16, 9 }
 0x41a   : > { %17977 = vst [vmem:[#allocation10_spill] sm:$0xff] %v16749_v8  ;;  %17978 = vst [vmem:[#allocation33_spill] sm:$0xff] %v16753_v5  ;;  %v16762_v36 = vsel %vm14717_vm12, %v8826_v53, %v8827_v54  ;;  %v8838_v48 = vrot.slane %v16714_v1, 5  ;;  %v13884_v6 = vld [vmem:[#allocation3 + $0x78] sm:$0xff]   ;;  %v13885_v20 = vld [vmem:[#allocation3 + $0x84] sm:$0xff]   ;;  %v8833_v8 = vrot.slane %v8831_v52, 4  ;;  %v8030_v5 = vor.u32 %v16656_v41, %v16654_v40 }
 0x41b   : > { %17979 = vst [vmem:[#allocation34_spill] sm:$0xff] %v16762_v36  ;;  %v16766_v14 = vld [vmem:[#allocation3 + $0xbc] sm:$0x1]  ;;  %17980 = vst [vmem:[#allocation35_spill] sm:$0xff] %v16772_v56  ;;  %v8834_v54 = vrot.slane %v16734_v31, 5  ;;  %v8841_v23 = vrot.slane %v16736_v4, 5 }
 0x41c   : > { %12877 = vmatpush3.bf16.msra.mxu1 %v13892_v27  ;;  %v16775_v16 = vld [vmem:[#allocation3 + $0xc8] sm:$0x1]  ;;  %v8840_v53 = vrot.slane %v8838_v48, 4  ;;  %v11715_v61 = vrot.slane %v8695_v39, 9  ;;  %v8845_v9 = vrot.slane %v16745_v29, 5  ;;  %v16785_v51 = vsel %vm14717_vm12, %v11714_v62, %v8838_v48 }
 0x41d   : > { %12910 = vmatprep.subr.bf16.mxu1 %v16725_v50  ;;  %v16781_v46 = vsel %vm14717_vm12, %v8833_v8, %v8834_v54  ;;  %17982 = vst [vmem:[#allocation37_spill] sm:$0xff] %v16785_v51  ;;  %v11716_v52 = vrot.slane %v8696_v37, 9  ;;  %v8852_v27 = vrot.slane %v16756_v49, 5  ;;  %v7936_v36 = vld [vmem:[#allocation3 + $0x30] sm:$0xf]  ;;  %v8848_v8 = vrot.slane %v16766_v14, 5 }
 0x41e   : > { %17981 = vst [vmem:[#allocation36_spill] sm:$0xff] %v16781_v46  ;;  %v16792_v39 = vsel %vm14717_vm12, %v8840_v53, %v8841_v23  ;;  %v8006_v54 = vor.u32 %v16569_v13, %v16562_v42  ;;  %v8855_v48 = vrot.slane %v16775_v16, 5  ;;  %v7939_v23 = vld [vmem:[#allocation3 + $0x3c] sm:$0xf]  ;;  %v16806_v53 = vsel %vm14717_vm12, %v11715_v61, %v8845_v9  ;;  %v7942_v51 = vld [vmem:[#allocation3 + $0x48] sm:$0xf] }
 0x41f   : > { %12847 = vmatmul.mubr.bf16.gmra.mrb[12].mxu1 %v13884_v6  ;;  %17983 = vst [vmem:[#allocation38_spill] sm:$0xff] %v16792_v39  ;;  %v8847_v6 = vrot.slane %v8845_v9, 4  ;;  %v8854_v62 = vrot.slane %v8852_v27, 4  ;;  %17984 = vst [vmem:[#allocation39_spill] sm:$0xff] %v16806_v53  ;;  %v8048_v13 = vshrl.u32 %v7936_v36, 16  ;;  %v16816_v39 = vsel %vm14717_vm12, %v11716_v52, %v8852_v27  ;;  %v13888_v53 = vld [vmem:[#allocation3 + $0x9c] sm:$0xff]  }
 0x420   : > { %12850 = vmatprep.mubr.bf16.mxu1 %v13885_v20  ;;  %v8016_v20 = vor.u32 %v16577_v32, %v16575_v33  ;;  %17986 = vst [vmem:[#allocation41_spill] sm:$0xff] %v16816_v39  ;;  %v17988_v40 = vshll.u32 %v16541_v44, 16  ;;  %v8040_v61 = vor.u32 %v16685_v60, %v16681_v35  ;;  %v8051_v41 = vshll.u32 %v7936_v36, 16 }
 0x421   : > { %v16810_v42 = vsel %vm14717_vm12, %v8847_v6, %v8848_v8  ;;  %v16820_v32 = vsel %vm14717_vm12, %v8854_v62, %v8855_v48  ;;  %v13887_v8 = vld [vmem:[#allocation3 + $0x90] sm:$0xff]   ;;  %v8057_v37 = vshll.u32 %v16555_v18, 16  ;;  %v8061_v27 = vshrl.u32 %v16555_v18, 16 }
 0x422   : > { %17985 = vst [vmem:[#allocation40_spill] sm:$0xff] %v16810_v42  ;;  %17987 = vst [vmem:[#allocation42_spill] sm:$0xff] %v16820_v32  ;;  %v7997_v9 = vrot.slane %v17988_v40, 5  ;;  %v8072_v52 = vshrl.u32 %v7939_v23, 16  ;;  %v8075_v42 = vshll.u32 %v7939_v23, 16  ;;  %v7988_v62 = vsel %vm14355_vm9, %v16567_v47, %v16545_v58 }
 0x423   : > { %v17989_v60 = vor.u32 %v16547_v17, %v16545_v58  ;;  %v17990_v48 = vshll.u32 %v16543_v15, 16  ;;  %v8043_v6 = vshll.u32 %v16553_v45, 16  ;;  %v8007_v32 = vrot.slane %v8006_v54, 4 }
 0x424   : > { %v8017_v18 = vrot.slane %v8016_v20, 4  ;;  %v8031_v39 = vrot.slane %v8030_v5, 4  ;;  %v8050_v23 = vrot.slane %v8048_v13, 4  ;;  %v8041_v46 = vrot.slane %v8040_v61, 4 }
 0x425   : > { %v7993_v36 = vrot.slane %v17989_v60, 4  ;;  %v8021_v40 = vrot.slane %v17990_v48, 5  ;;  %v8053_v56 = vrot.slane %v8051_v41, 5  ;;  %v8081_v47 = vshll.u32 %v16565_v21, 16  ;;  %v7945_v41 = vld [vmem:[#allocation3 + $0x54] sm:$0xf] }
 0x426   : > { %v16842_v58 = vrot.slane %v8057_v37, 5  ;;  %v8063_v17 = vrot.slane %v8061_v27, 4  ;;  %v8074_v15 = vrot.slane %v8072_v52, 4  ;;  %v8077_v60 = vrot.slane %v8075_v42, 5  ;;  %v13891_v52 = vld [vmem:[#allocation3 + $0xb4] sm:$0xff]  }
 0x427   : > { %12851 = vmatmul.mubr.bf16.gmra.mrb[16].mxu1 %v13887_v8  ;;  %v7998_v45 = vsel %vm14355_vm9, %v7993_v36, %v7997_v9  ;;  %v8045_v54 = vrot.slane %v8043_v6, 5  ;;  %v8096_v20 = vshrl.u32 %v7942_v51, 16  ;;  %v8099_v5 = vshll.u32 %v7942_v51, 16  ;;  %v13890_v6 = vld [vmem:[#allocation3 + $0xa8] sm:$0xff]  }
 0x428   : > { %12854 = vmatprep.mubr.bf16.mxu1 %v13888_v53  ;;  %v8012_v53 = vsel %vm14355_vm9, %v8007_v32, %v16575_v33  ;;  %v8022_v13 = vsel %vm14355_vm9, %v8017_v18, %v8021_v40  ;;  %v8036_v21 = vsel %vm14355_vm9, %v8031_v39, %v16681_v35  ;;  %v8067_v37 = vshll.u32 %v16558_v2, 16 }
 0x429   : > { %v8046_v42 = vsel %vm14355_vm9, %v8041_v46, %v8045_v54  ;;  %v8054_v9 = vor.u32 %v8053_v56, %v8050_v23  ;;  %v16857_v61 = vrot.slane %v8081_v47, 5  ;;  %v8087_v51 = vrot.slane %v8085_v63, 4  ;;  %v7948_v23 = vld [vmem:[#allocation3 + $0x60] sm:$0xf] }
 0x42a   : > { %v8064_v33 = vor.u32 %v8063_v17, %v16842_v58  ;;  %v8078_v32 = vor.u32 %v8077_v60, %v8074_v15  ;;  %v8091_v8 = vshll.u32 %v16579_v55, 16  ;;  %v8105_v27 = vshll.u32 %v16572_v43, 16 }
 0x42b   : > { %v8098_v35 = vrot.slane %v8096_v20, 4  ;;  %v8101_v39 = vrot.slane %v8099_v5, 5  ;;  %v8109_v2 = vshrl.u32 %v16572_v43, 16  ;;  %v11677_v46 = vcombine.low %v7988_v62, %v7998_v45  ;;  %v7951_v20 = vld [vmem:[#allocation3 + $0x6c] sm:$0xf] }
 0x42c   : > { %v16863_v56 = vcombine.low %v8012_v53, %v8022_v13  ;;  %v8120_v36 = vshrl.u32 %v7945_v41, 16  ;;  %v8123_v63 = vshll.u32 %v7945_v41, 16  ;;  %v16865_v48 = vcombine.low %v8036_v21, %v8046_v42 }
 0x42d   : > { %v16867_v40 = vrot.slane %v8054_v9, 4  ;;  %v16869_v18 = vrot.slane %v8067_v37, 5  ;;  %v8088_v55 = vor.u32 %v8087_v51, %v16857_v61  ;;  %v16872_v47 = vrot.slane %v8064_v33, 4  ;;  %v13893_v37 = vld [vmem:[#allocation3 + $0xc0] sm:$0xff]  }
 0x42e   : > { %v16874_v17 = vrot.slane %v8078_v32, 4  ;;  %v16876_v43 = vrot.slane %v8091_v8, 5  ;;  %v16878_v62 = vrot.slane %v8105_v27, 5  ;;  %v8102_v15 = vor.u32 %v8101_v39, %v8098_v35  ;;  %v7954_v8 = vld [vmem:[#allocation3 + $0x78] sm:$0xf] }
 0x42f   : > { %12855 = vmatmul.mubr.bf16.gmra.mrb[20].mxu1 %v13890_v6  ;;  %v8111_v60 = vrot.slane %v8109_v2, 4  ;;  %v8129_v45 = vshll.u32 %v16588_v19, 16  ;;  %v8133_v54 = vshrl.u32 %v16588_v19, 16  ;;  %v8122_v5 = vrot.slane %v8120_v36, 4 }
 0x430   : > { %12858 = vmatprep.mubr.bf16.mxu1 %v13891_v52  ;;  %v8125_v53 = vrot.slane %v8123_v63, 5  ;;  %v8144_v13 = vshrl.u32 %v7948_v23, 16  ;;  %v8147_v21 = vshll.u32 %v7948_v23, 16  ;;  %v16882_v42 = vrot.slane %v8088_v55, 4 }
 0x431   : > { %v8115_v9 = vshll.u32 %v16584_v38, 16  ;;  %v8153_v51 = vshll.u32 %v16606_v12, 16  ;;  %v8157_v41 = vshrl.u32 %v16606_v12, 16  ;;  %v8168_v6 = vshrl.u32 %v7951_v20, 16 }
 0x432   : > { %v8171_v33 = vshll.u32 %v7951_v20, 16  ;;  %v8177_v32 = vshll.u32 %v16626_v10, 16  ;;  %v8181_v19 = vshrl.u32 %v16626_v10, 16  ;;  %v16889_v27 = vrot.slane %v8102_v15, 4 }
 0x433   : > { %v8112_v52 = vor.u32 %v8111_v60, %v16878_v62  ;;  %v16892_v35 = vrot.slane %v8129_v45, 5  ;;  %v8135_v39 = vrot.slane %v8133_v54, 4  ;;  %v8126_v38 = vor.u32 %v8125_v53, %v8122_v5 }
 0x434   : > { %v8139_v2 = vshll.u32 %v16595_v11, 16  ;;  %v8146_v36 = vrot.slane %v8144_v13, 4  ;;  %v8149_v12 = vrot.slane %v8147_v21, 5  ;;  %v16895_v63 = vrot.slane %v8153_v51, 5  ;;  %v13895_v51 = vld [vmem:[#allocation4 + $0x148] sm:$0xff]  }
 0x435   : > { %v8159_v55 = vrot.slane %v8157_v41, 4  ;;  %v8192_v23 = vshrl.u32 %v7954_v8, 16  ;;  %v8195_v10 = vshll.u32 %v7954_v8, 16  ;;  %v8170_v20 = vrot.slane %v8168_v6, 4 }
 0x436   : > { %v8173_v15 = vrot.slane %v8171_v33, 5  ;;  %v16897_v7 = vrot.slane %v8177_v32, 5  ;;  %v8183_v60 = vrot.slane %v8181_v19, 4  ;;  %v8060_v45 = vsel %vm14355_vm9, %v16867_v40, %v16842_v58 }
 0x437   : > { %12859 = vmatmul.mubr.bf16.gmra.mrb[24].mxu1 %v13893_v37  ;;  %v8070_v11 = vsel %vm14355_vm9, %v16872_v47, %v16869_v18  ;;  %v8136_v54 = vor.u32 %v8135_v39, %v16892_v35  ;;  %v8094_v5 = vsel %vm14355_vm9, %v16882_v42, %v16876_v43  ;;  %v8113_v53 = vrot.slane %v8112_v52, 4  ;;  %v7957_v47 = vld [vmem:[#allocation3 + $0x84] sm:$0xf] }
 0x438   : > { %12878 = vmatprep.mubr.bf16.mxu1 %v11677_v46  ;;  %v8084_v46 = vsel %vm14355_vm9, %v16874_v17, %v16857_v61  ;;  %v8117_v13 = vrot.slane %v8115_v9, 5  ;;  %v8127_v58 = vrot.slane %v8126_v38, 4  ;;  %v8150_v40 = vor.u32 %v8149_v12, %v8146_v36 }
 0x439   : > { %v8160_v21 = vor.u32 %v8159_v55, %v16895_v63  ;;  %v8194_v37 = vrot.slane %v8192_v23, 4  ;;  %v8197_v18 = vrot.slane %v8195_v10, 5  ;;  %v8108_v61 = vsel %vm14355_vm9, %v16889_v27, %v16878_v62 }
 0x43a   : > { %v8141_v17 = vrot.slane %v8139_v2, 5  ;;  %v8174_v41 = vor.u32 %v8173_v15, %v8170_v20  ;;  %v8184_v6 = vor.u32 %v8183_v60, %v16897_v7  ;;  %v8137_v43 = vrot.slane %v8136_v54, 4  ;;  %v13897_v54 = vld [vmem:[#allocation4 + $0x158] sm:$0xff]  }
 0x43b   : > { %v8163_v42 = vshll.u32 %v16622_v22, 16  ;;  %v8187_v9 = vshll.u32 %v16640_v34, 16  ;;  %v8201_v33 = vshll.u32 %v16642_v25, 16  ;;  %v8118_v32 = vsel %vm14355_vm9, %v8113_v53, %v8117_v13  ;;  %v7960_v13 = vld [vmem:[#allocation3 + $0x90] sm:$0xf] }
 0x43c   : > { %v8205_v19 = vshrl.u32 %v16642_v25, 16  ;;  %v8216_v8 = vshrl.u32 %v7957_v47, 16  ;;  %v8219_v62 = vshll.u32 %v7957_v47, 16  ;;  %v8132_v22 = vsel %vm14355_vm9, %v8127_v58, %v16892_v35 }
 0x43d   : > { %v8151_v34 = vrot.slane %v8150_v40, 4  ;;  %v8161_v27 = vrot.slane %v8160_v21, 4  ;;  %v8198_v52 = vor.u32 %v8197_v18, %v8194_v37  ;;  %v8175_v39 = vrot.slane %v8174_v41, 4  ;;  %v13898_v41 = vld [vmem:[#allocation4 + $0x160] sm:$0xff]  }
 0x43e   : > { %v8185_v38 = vrot.slane %v8184_v6, 4  ;;  %v8225_v2 = vshll.u32 %v16660_v30, 16  ;;  %v8229_v25 = vshrl.u32 %v16660_v30, 16  ;;  %v8165_v36 = vrot.slane %v8163_v42, 5 }
 0x43f   : > { %12879 = vmatmul.mubr.bf16.vlgmr.msra.gmra.mrb[28].mxu1 %v16863_v56  ;;  %v13896_v56 = vld [vmem:[#allocation4 + $0x150] sm:$0xff]   ;;  %v16938_v12 = vrot.slane %v8201_v33, 5  ;;  %v8207_v55 = vrot.slane %v8205_v19, 4  ;;  %v8211_v35 = vshll.u32 %v16658_v28, 16  ;;  %v8218_v23 = vrot.slane %v8216_v8, 4 }
 0x440   : > { %12911 = vmatpush3.bf16.msra.mxu1 %v16725_v50  ;;  %12882 = vmatprep.mubr.bf16.mxu1 %v16865_v48  ;;  %v8142_v50 = vsel %vm14355_vm9, %v8137_v43, %v8141_v17  ;;  %v8189_v48 = vrot.slane %v8187_v9, 5  ;;  %v8221_v10 = vrot.slane %v8219_v62, 5  ;;  %v11680_v20 = vcombine.low %v8060_v45, %v8070_v11  ;;  %v7966_v17 = vld [vmem:[#allocation3 + $0xa8] sm:$0xf] }
 0x441   : > { %12912 = vmatprep.subr.bf16.mxu1 %v13895_v51  ;;  %v8156_v15 = vsel %vm14355_vm9, %v8151_v34, %v16895_v63  ;;  %v8166_v30 = vsel %vm14355_vm9, %v8161_v27, %v8165_v36  ;;  %v16946_v60 = vrot.slane %v8198_v52, 4  ;;  %v8180_v53 = vsel %vm14355_vm9, %v8175_v39, %v16897_v7  ;;  %v7969_v39 = vld [vmem:[#allocation3 + $0xb4] sm:$0xf] }
 0x442   : > { %v8190_v28 = vsel %vm14355_vm9, %v8185_v38, %v8189_v48  ;;  %v16953_v45 = vrot.slane %v8225_v2, 5  ;;  %v8231_v11 = vrot.slane %v8229_v25, 4  ;;  %v11681_v58 = vcombine.low %v8084_v46, %v8094_v5  ;;  %v13899_v2 = vld [vmem:[#allocation4 + $0x168] sm:$0xff]  }
 0x443   : > { %v11682_v63 = vcombine.low %v8108_v61, %v8118_v32  ;;  %v11683_v40 = vcombine.low %v8132_v22, %v8142_v50  ;;  %v16955_v21 = vcombine.low %v8156_v15, %v8166_v30  ;;  %v8208_v37 = vor.u32 %v8207_v55, %v16938_v12 }
 0x444   : > { %12913 = vmatpush3.bf16.msra.mxu1 %v13895_v51  ;;  %v16958_v18 = vrot.slane %v8211_v35, 5  ;;  %v8222_v47 = vor.u32 %v8221_v10, %v8218_v23  ;;  %v7963_v51 = vld [vmem:[#allocation3 + $0x9c] sm:$0xf]  ;;  %v16960_v7 = vcombine.low %v8180_v53, %v8190_v28  ;;  %v8204_v46 = vsel %vm14355_vm9, %v16946_v60, %v16938_v12  ;;  %v7972_v28 = vld [vmem:[#allocation3 + $0xc0] sm:$0xf] }
 0x445   : > { %12914 = vmatprep.subr.bf16.mxu1 %v13896_v56  ;;  %v8235_v5 = vshll.u32 %v16699_v0, 16  ;;  %v8240_v61 = vshrl.u32 %v7960_v13, 16  ;;  %v8232_v6 = vor.u32 %v8231_v11, %v16953_v45  ;;  %v8243_v43 = vshll.u32 %v7960_v13, 16 }
 0x446   : > { %v8249_v42 = vshll.u32 %v16666_v57, 16  ;;  %v8253_v9 = vshrl.u32 %v16666_v57, 16  ;;  %v8264_v33 = vshrl.u32 %v7963_v51, 16  ;;  %v8267_v32 = vshll.u32 %v7963_v51, 16 }
 0x447   : > { %12883 = vmatmul.mubr.bf16.gmra.mrb[0].mxu1 %v11680_v20  ;;  %v8273_v19 = vshll.u32 %v16710_v26, 16  ;;  %v8277_v8 = vshrl.u32 %v16710_v26, 16  ;;  %v16972_v62 = vrot.slane %v8208_v37, 4  ;;  %v16974_v0 = vrot.slane %v8222_v47, 4 }
 0x448   : > { %12886 = vmatprep.mubr.bf16.mxu1 %v11681_v58  ;;  %12915 = vmatpush3.bf16.msra.mxu1 %v13896_v56  ;;  %v8288_v22 = vshrl.u32 %v7966_v17, 16  ;;  %v8291_v34 = vshll.u32 %v7966_v17, 16  ;;  %v16976_v27 = vrot.slane %v8235_v5, 5  ;;  %v8242_v52 = vrot.slane %v8240_v61, 4 }
 0x449   : > { %12916 = vmatprep.subr.bf16.mxu1 %v13897_v54  ;;  %v8297_v56 = vshll.u32 %v16714_v1, 16  ;;  %v8301_v57 = vshrl.u32 %v16714_v1, 16  ;;  %v16980_v38 = vrot.slane %v8232_v6, 4  ;;  %v8245_v26 = vrot.slane %v8243_v43, 5 }
 0x44a   : > { %v16982_v25 = vrot.slane %v8249_v42, 5  ;;  %v8255_v50 = vrot.slane %v8253_v9, 4  ;;  %v8266_v36 = vrot.slane %v8264_v33, 4  ;;  %v8269_v48 = vrot.slane %v8267_v32, 5  ;;  %v13901_v9 = vld [vmem:[#allocation4 + $0x178] sm:$0xff]  }
 0x44b   : > { %v16984_v55 = vrot.slane %v8273_v19, 5  ;;  %v8279_v35 = vrot.slane %v8277_v8, 4  ;;  %v8290_v23 = vrot.slane %v8288_v22, 4  ;;  %v8293_v10 = vrot.slane %v8291_v34, 5 }
 0x44c   : > { %12917 = vmatpush3.bf16.msra.mxu1 %v13897_v54  ;;  %v8312_v20 = vshrl.u32 %v7969_v39, 16  ;;  %v8315_v15 = vshll.u32 %v7969_v39, 16  ;;  %v16986_v1 = vrot.slane %v8297_v56, 5  ;;  %v8303_v30 = vrot.slane %v8301_v57, 4 }
 0x44d   : > { %12918 = vmatprep.subr.bf16.mxu1 %v13898_v41  ;;  %v8321_v54 = vshll.u32 %v16745_v29, 16  ;;  %v8325_v53 = vshrl.u32 %v16745_v29, 16  ;;  %v8214_v11 = vsel %vm14355_vm9, %v16972_v62, %v16958_v18  ;;  %v8228_v13 = vsel %vm14355_vm9, %v16974_v0, %v16953_v45 }
 0x44e   : > { %v8246_v58 = vor.u32 %v8245_v26, %v8242_v52  ;;  %v8238_v29 = vsel %vm14355_vm9, %v16980_v38, %v16976_v27  ;;  %v8256_v37 = vor.u32 %v8255_v50, %v16982_v25  ;;  %v8270_v47 = vor.u32 %v8269_v48, %v8266_v36  ;;  %v8681_v36 = vld [vmem:[#allocation3 + $0xc] sm:$0xe] }
 0x44f   : > { %12887 = vmatmul.mubr.bf16.gmra.mrb[4].mxu1 %v11682_v63  ;;  %v8259_v63 = vshll.u32 %v16701_v24, 16  ;;  %v8280_v18 = vor.u32 %v8279_v35, %v16984_v55  ;;  %v8314_v51 = vrot.slane %v8312_v20, 4  ;;  %v8317_v5 = vrot.slane %v8315_v15, 5 }
 0x450   : > { %12890 = vmatprep.mubr.bf16.mxu1 %v11683_v40  ;;  %12919 = vmatpush3.bf16.msra.mxu1 %v13898_v41  ;;  %v13900_v40 = vld [vmem:[#allocation4 + $0x170] sm:$0xff]   ;;  %v8336_v61 = vshrl.u32 %v7972_v28, 16  ;;  %v8339_v17 = vshll.u32 %v7972_v28, 16  ;;  %v8294_v45 = vor.u32 %v8293_v10, %v8290_v23  ;;  %v8304_v41 = vor.u32 %v8303_v30, %v16986_v1 }
 0x451   : > { %12920 = vmatprep.subr.bf16.mxu1 %v13899_v2  ;;  %v17006_v24 = vrot.slane %v8321_v54, 5  ;;  %v8327_v6 = vrot.slane %v8325_v53, 4  ;;  %v8247_v43 = vrot.slane %v8246_v58, 4  ;;  %v8283_v42 = vshll.u32 %v16734_v31, 16  ;;  %v17044_v53 = vld [vmem:[#allocation3 + $0x1c] sm:$0xf] }
 0x452   : > { %v8345_v33 = vshll.u32 %v16756_v49, 16  ;;  %v8349_v32 = vshrl.u32 %v16756_v49, 16  ;;  %v8257_v19 = vrot.slane %v8256_v37, 4  ;;  %v8261_v8 = vrot.slane %v8259_v63, 5  ;;  %v17047_v37 = vld [vmem:[#allocation3 + $0x18] sm:$0xe] }
 0x453   : > { %v8271_v62 = vrot.slane %v8270_v47, 4  ;;  %v8307_v0 = vshll.u32 %v16736_v4, 16  ;;  %v8281_v22 = vrot.slane %v8280_v18, 4  ;;  %v8318_v34 = vor.u32 %v8317_v5, %v8314_v51  ;;  %v17049_v47 = vld [vmem:[#allocation3 + $0x20] sm:$0x1] }
 0x454   : > { %12921 = vmatpush3.bf16.msra.mxu1 %v13899_v2  ;;  %v8338_v27 = vrot.slane %v8336_v61, 4  ;;  %v8341_v52 = vrot.slane %v8339_v17, 5  ;;  %v8295_v31 = vrot.slane %v8294_v45, 4  ;;  %v8305_v56 = vrot.slane %v8304_v41, 4  ;;  %v17021_v2 = vld [vmem:[#allocation4 + $0x180] sm:$0xff]  }
 0x455   : > { %12922 = vmatprep.subr.bf16.mxu1 %v13900_v40  ;;  %v8328_v57 = vor.u32 %v8327_v6, %v17006_v24  ;;  %v8747_v49 = vrot.slane %v16537_v3, 5  ;;  %v8252_v39 = vsel %vm14355_vm9, %v8247_v43, %v16982_v25  ;;  %v8285_v4 = vrot.slane %v8283_v42, 5  ;;  %v17064_v5 = vld [vmem:[#allocation3 + $0x2c] sm:$0x1]  ;;  %v17072_v6 = vld [vmem:[#allocation3 + $0x1c] sm:$0xf] }
 0x456   : > { %v8351_v38 = vrot.slane %v8349_v32, 4  ;;  %v8276_v26 = vsel %vm14355_vm9, %v8271_v62, %v16984_v55  ;;  %v8309_v50 = vrot.slane %v8307_v0, 5  ;;  %v8331_v3 = vshll.u32 %v16766_v14, 16  ;;  %v17075_v42 = vld [vmem:[#allocation3 + $0x34] sm:$0xf] }
 0x457   : > { %12891 = vmatmul.mubr.bf16.gmra.mrb[8].mxu1 %v16955_v21  ;;  %v17019_v21 = vrot.slane %v8345_v33, 5  ;;  %v8286_v25 = vsel %vm14355_vm9, %v8281_v22, %v8285_v4  ;;  %v8319_v48 = vrot.slane %v8318_v34, 4  ;;  %v8342_v35 = vor.u32 %v8341_v52, %v8338_v27  ;;  %v17086_v34 = vld [vmem:[#allocation3 + $0x20] sm:$0x1] }
 0x458   : > { %12894 = vmatprep.mubr.bf16.mxu1 %v16960_v7  ;;  %12923 = vmatpush3.bf16.msra.mxu1 %v13900_v40  ;;  %v8262_v7 = vsel %vm14355_vm9, %v8257_v19, %v8261_v8  ;;  %v8355_v23 = vshll.u32 %v16775_v16, 16  ;;  %v8300_v10 = vsel %vm14355_vm9, %v8295_v31, %v16986_v1  ;;  %v8310_v20 = vsel %vm14355_vm9, %v8305_v56, %v8309_v50  ;;  %v10320_v1 = vld [vmem:[#allocation3 + $0x18] sm:$0xe]  ;;  %v10322_v8 = vld [vmem:[#allocation3 + $0x30] sm:$0xe] }
 0x459   : > { %12924 = vmatprep.subr.bf16.mxu1 %v13901_v9  ;;  %v8329_v15 = vrot.slane %v8328_v57, 4  ;;  %v8749_v55 = vrot.slane %v8747_v49, 4  ;;  %v11686_v14 = vcombine.low %v8204_v46, %v8214_v11  ;;  %v11687_v30 = vcombine.low %v8228_v13, %v8238_v29  ;;  %v17056_v13 = vld [vmem:[#allocation3 + $0x28] sm:$0xf]  ;;  %v10321_v29 = vld [vmem:[#allocation3 + $0x24] sm:$0xe] }
 0x45a   : > { %v8352_v54 = vor.u32 %v8351_v38, %v17019_v21  ;;  %v11701_v16 = vrot.slane %v8681_v36, 9  ;;  %v11688_v28 = vcombine.low %v8252_v39, %v8262_v7  ;;  %v11689_v58 = vcombine.low %v8276_v26, %v8286_v25  ;;  %v17089_v52 = vld [vmem:[#allocation3 + $0x40] sm:$0xf]  ;;  %v10323_v31 = vld [vmem:[#allocation3 + $0x3c] sm:$0xe] }
 0x45b   : > { %v8333_v63 = vrot.slane %v8331_v3, 5  ;;  %v8750_v40 = vrot.slane %v16541_v44, 5  ;;  %v17051_v12 = vcombine.low %v8300_v10, %v8310_v20  ;;  %v8324_v60 = vsel %vm14355_vm9, %v8319_v48, %v17006_v24  ;;  %v17091_v56 = vld [vmem:[#allocation3 + $0x38] sm:$0x1]  ;;  %v17093_v57 = vld [vmem:[#allocation3 + $0x44] sm:$0x1] }
 0x45c   : > { %12925 = vmatpush3.bf16.msra.mxu1 %v13901_v9  ;;  %v8343_v46 = vrot.slane %v8342_v35, 4  ;;  %v8357_v11 = vrot.slane %v8355_v23, 5  ;;  %v11789_v61 = vrot.slane %v10320_v1, 9  ;;  %v10386_v17 = vrot.slane %v17044_v53, 5  ;;  %v17106_v7 = vld [vmem:[#allocation3 + $0x4c] sm:$0xf] }
 0x45d   : > { %12958 = vmatprep.subr.bf16.mxu1 %v17021_v2  ;;  %v8334_v44 = vsel %vm14355_vm9, %v8329_v15, %v8333_v63  ;;  %v17062_v51 = vsel %vm14717_vm12, %v8749_v55, %v8750_v40  ;;  %v8353_v45 = vrot.slane %v8352_v54, 4  ;;  %v17069_v41 = vsel %vm14717_vm12, %v11701_v16, %v8747_v49  ;;  %v10324_v36 = vld [vmem:[#allocation3 + $0x48] sm:$0xe]  ;;  %v17111_v25 = vld [vmem:[#allocation3 + $0x50] sm:$0x1] }
 0x45e   : > { %v17813_v43 = vrot.slane %v17072_v6, 5  ;;  %v10388_v9 = vrot.slane %v10386_v17, 4  ;;  %v10389_v33 = vrot.slane %v17049_v47, 5  ;;  %v11790_v32 = vrot.slane %v10321_v29, 9  ;;  %v17113_v48 = vld [vmem:[#allocation3 + $0x58] sm:$0xf] }
 0x45f   : > { %12895 = vmatmul.mubr.bf16.gmra.mrb[12].mxu1 %v11686_v14  ;;  %v10393_v19 = vrot.slane %v17056_v13, 5  ;;  %v17079_v62 = vcombine.low %v8324_v60, %v8334_v44  ;;  %v8348_v0 = vsel %vm14355_vm9, %v8343_v46, %v17019_v21  ;;  %v17097_v49 = vsel %vm14717_vm12, %v11789_v61, %v10386_v17  ;;  %v10325_v15 = vld [vmem:[#allocation3 + $0x54] sm:$0xe]  ;;  %v17128_v14 = vld [vmem:[#allocation3 + $0x5c] sm:$0x1] }
 0x460   : > { %12898 = vmatprep.mubr.bf16.mxu1 %v11687_v30  ;;  %v17101_v39 = vsel %vm14717_vm12, %v10388_v9, %v10389_v33  ;;  %v10396_v21 = vrot.slane %v17064_v5, 5  ;;  %v8358_v38 = vsel %vm14355_vm9, %v8353_v45, %v8357_v11  ;;  %v11791_v50 = vrot.slane %v10322_v8, 9  ;;  %v17135_v63 = vld [vmem:[#allocation3 + $0x64] sm:$0xf]  ;;  %v17138_v46 = vld [vmem:[#allocation3 + $0x68] sm:$0x1] }
 0x461   : > { %v10395_v4 = vrot.slane %v10393_v19, 4  ;;  %v10400_v3 = vrot.slane %v17075_v42, 5  ;;  %v17117_v35 = vsel %vm14717_vm12, %v11790_v32, %v10393_v19  ;;  %v11792_v10 = vrot.slane %v10323_v31, 9  ;;  %v17140_v11 = vld [vmem:[#allocation3 + $0x70] sm:$0xf] }
 0x462   : > { %v10407_v20 = vrot.slane %v17089_v52, 5  ;;  %v17126_v55 = vrot.slane %v17813_v43, 4  ;;  %v10403_v16 = vrot.slane %v17091_v56, 5  ;;  %v17133_v1 = vcombine.low %v8348_v0, %v8358_v38  ;;  %v10326_v17 = vld [vmem:[#allocation3 + $0x60] sm:$0xe] }
 0x463   : > { %v17121_v23 = vsel %vm14717_vm12, %v10395_v4, %v10396_v21  ;;  %v10402_v54 = vrot.slane %v10400_v3, 4  ;;  %v11793_v60 = vrot.slane %v10324_v36, 9  ;;  %v17144_v29 = vsel %vm14717_vm12, %v11791_v50, %v10400_v3  ;;  %v17151_v45 = vld [vmem:[#allocation3 + $0x74] sm:$0x1]  ;;  %v10327_v8 = vld [vmem:[#allocation3 + $0x6c] sm:$0xe] }
 0x464   : > { %17992 = vst [vmem:[#allocation15_spill] sm:$0xff] %v17121_v23  ;;  %v10409_v40 = vrot.slane %v10407_v20, 4  ;;  %17993 = vst [vmem:[#allocation43_spill] sm:$0xff] %v17144_v29  ;;  %v11794_v61 = vrot.slane %v10325_v15, 9  ;;  %v17157_v33 = vsel %vm14717_vm12, %v11792_v10, %v10407_v20  ;;  %v10421_v19 = vrot.slane %v17113_v48, 5 }
 0x465   : > { %v17148_v44 = vsel %vm14717_vm12, %v10402_v54, %v10403_v16  ;;  %17995 = vst [vmem:[#allocation45_spill] sm:$0xff] %v17157_v33  ;;  %v17164_v0 = vld [vmem:[#allocation3 + $0x7c] sm:$0xf]  ;;  %v10417_v21 = vrot.slane %v17111_v25, 5  ;;  %v10424_v38 = vrot.slane %v17128_v14, 5  ;;  %v11795_v36 = vrot.slane %v10326_v17, 9 }
 0x466   : > { %17994 = vst [vmem:[#allocation44_spill] sm:$0xff] %v17148_v44  ;;  %v10423_v3 = vrot.slane %v10421_v19, 4  ;;  %v10428_v10 = vrot.slane %v17135_v63, 5  ;;  %v10328_v20 = vld [vmem:[#allocation3 + $0x78] sm:$0xe]  ;;  %v17183_v16 = vsel %vm14717_vm12, %v11794_v61, %v10421_v19  ;;  %v13933_v44 = vld [vmem:[#allocation3 + $0xcc] sm:$0xff]  }
 0x467   : > { %12899 = vmatmul.mubr.bf16.gmra.mrb[16].mxu1 %v11688_v28  ;;  %v10410_v28 = vrot.slane %v17093_v57, 5  ;;  %v17175_v15 = vld [vmem:[#allocation3 + $0x80] sm:$0x1]  ;;  %17999 = vst [vmem:[#allocation49_spill] sm:$0xff] %v17183_v16  ;;  %v17188_v17 = vld [vmem:[#allocation3 + $0x8c] sm:$0x1] }
 0x468   : > { %12902 = vmatprep.mubr.bf16.mxu1 %v11689_v58  ;;  %v10414_v58 = vrot.slane %v17106_v7, 5  ;;  %v17194_v9 = vsel %vm14717_vm12, %v10423_v3, %v10424_v38  ;;  %v11797_v30 = vrot.slane %v10328_v20, 9  ;;  %v10330_v26 = vld [vmem:[#allocation3 + $0x90] sm:$0xe]  ;;  %v17202_v31 = vld [vmem:[#allocation3 + $0x94] sm:$0xf]  ;;  %v17208_v38 = vsel %vm14717_vm12, %v11795_v36, %v10428_v10 }
 0x469   : > { %v17161_v32 = vsel %vm14717_vm12, %v10409_v40, %v10410_v28  ;;  %v11796_v40 = vrot.slane %v10327_v8, 9  ;;  %v10435_v28 = vrot.slane %v17140_v11, 5  ;;  %18000 = vst [vmem:[#allocation50_spill] sm:$0xff] %v17194_v9  ;;  %v10438_v8 = vrot.slane %v17151_v45, 5  ;;  %v17204_v24 = vld [vmem:[#allocation3 + $0x98] sm:$0x1] }
 0x46a   : > { %17996 = vst [vmem:[#allocation46_spill] sm:$0xff] %v17161_v32  ;;  %v10416_v4 = vrot.slane %v10414_v58, 4  ;;  %v17172_v50 = vsel %vm14717_vm12, %v11793_v60, %v10414_v58  ;;  %v10329_v60 = vld [vmem:[#allocation3 + $0x84] sm:$0xe]  ;;  %v17186_v58 = vld [vmem:[#allocation3 + $0x88] sm:$0xf] }
 0x46b   : > { %17997 = vst [vmem:[#allocation47_spill] sm:$0xff] %v17172_v50  ;;  %v10437_v19 = vrot.slane %v10435_v28, 4  ;;  %18001 = vst [vmem:[#allocation51_spill] sm:$0xff] %v17208_v38  ;;  %v10442_v3 = vrot.slane %v17164_v0, 5  ;;  %v11798_v61 = vrot.slane %v10329_v60, 9  ;;  %v17221_v20 = vsel %vm14717_vm12, %v11796_v40, %v10435_v28 }
 0x46c   : > { %v17179_v54 = vsel %vm14717_vm12, %v10416_v4, %v10417_v21  ;;  %v10430_v4 = vrot.slane %v10428_v10, 4  ;;  %v10431_v21 = vrot.slane %v17138_v46, 5  ;;  %v17215_v43 = vld [vmem:[#allocation3 + $0xa0] sm:$0xf]  ;;  %18003 = vst [vmem:[#allocation53_spill] sm:$0xff] %v17221_v20  ;;  %v10449_v10 = vrot.slane %v17186_v58, 5 }
 0x46d   : > { %17998 = vst [vmem:[#allocation48_spill] sm:$0xff] %v17179_v54  ;;  %v17225_v36 = vsel %vm14717_vm12, %v10437_v19, %v10438_v8  ;;  %v10444_v27 = vrot.slane %v10442_v3, 4  ;;  %v10445_v22 = vrot.slane %v17175_v15, 5  ;;  %v17237_v40 = vsel %vm14717_vm12, %v11797_v30, %v10442_v3  ;;  %v10332_v20 = vld [vmem:[#allocation3 + $0xa8] sm:$0xe] }
 0x46e   : > { %18004 = vst [vmem:[#allocation54_spill] sm:$0xff] %v17225_v36  ;;  %18005 = vst [vmem:[#allocation55_spill] sm:$0xff] %v17237_v40  ;;  %v10451_v28 = vrot.slane %v10449_v10, 4  ;;  %v10452_v19 = vrot.slane %v17188_v17, 5  ;;  %v10456_v8 = vrot.slane %v17202_v31, 5  ;;  %v17247_v60 = vsel %vm14717_vm12, %v11798_v61, %v10449_v10 }
 0x46f   : > { %12903 = vmatmul.mubr.bf16.gmra.mrb[20].mxu1 %v17051_v12  ;;  %v17212_v12 = vsel %vm14717_vm12, %v10430_v4, %v10431_v21  ;;  %v10331_v4 = vld [vmem:[#allocation3 + $0x9c] sm:$0xe]  ;;  %v17228_v21 = vld [vmem:[#allocation3 + $0xa4] sm:$0x1]  ;;  %v17243_v38 = vsel %vm14717_vm12, %v10444_v27, %v10445_v22  ;;  %18007 = vst [vmem:[#allocation57_spill] sm:$0xff] %v17247_v60  ;;  %v10463_v36 = vrot.slane %v17215_v43, 5  ;;  %v18011_v54 = vcombine.low %v17069_v41, %v17062_v51 }
 0x470   : > { %12906 = vmatprep.mubr.bf16.mxu1 %v17079_v62  ;;  %18002 = vst [vmem:[#allocation52_spill] sm:$0xff] %v17212_v12  ;;  %v11799_v62 = vrot.slane %v10330_v26, 9  ;;  %v17233_v12 = vld [vmem:[#allocation3 + $0xac] sm:$0xf]  ;;  %18006 = vst [vmem:[#allocation56_spill] sm:$0xff] %v17243_v38  ;;  %v11800_v26 = vrot.slane %v10331_v4, 9  ;;  %v17258_v22 = vsel %vm14717_vm12, %v10451_v28, %v10452_v19 }
 0x471   : > { %v10333_v9 = vld [vmem:[#allocation3 + $0xb4] sm:$0xe]  ;;  %v17250_v30 = vld [vmem:[#allocation3 + $0xb0] sm:$0x1]  ;;  %v17252_v3 = vld [vmem:[#allocation3 + $0xb8] sm:$0xf] }
 0x472   : > { %18008 = vst [vmem:[#allocation58_spill] sm:$0xff] %v17258_v22  ;;  %v10458_v27 = vrot.slane %v10456_v8, 4  ;;  %v10459_v61 = vrot.slane %v17204_v24, 5  ;;  %v17261_v10 = vld [vmem:[#allocation3 + $0xbc] sm:$0x1]  ;;  %v17269_v50 = vsel %vm14717_vm12, %v11799_v62, %v10456_v8  ;;  %v10465_v32 = vrot.slane %v10463_v36, 4 }
 0x473   : > { %v17263_v4 = vld [vmem:[#allocation3 + $0xc4] sm:$0xf]  ;;  %18009 = vst [vmem:[#allocation59_spill] sm:$0xff] %v17269_v50  ;;  %v10466_v16 = vrot.slane %v17228_v21, 5  ;;  %v11801_v19 = vrot.slane %v10332_v20, 9  ;;  %v10470_v38 = vrot.slane %v17233_v12, 5  ;;  %v17285_v8 = vsel %vm14717_vm12, %v11800_v26, %v10463_v36 }
 0x474   : > { %v17275_v28 = vsel %vm14717_vm12, %v10458_v27, %v10459_v61  ;;  %v11802_v40 = vrot.slane %v10333_v9, 9  ;;  %v10334_v33 = vld [vmem:[#allocation3 + $0xc0] sm:$0xe]  ;;  %18012 = vst [vmem:[#allocation61_spill] sm:$0xff] %v17285_v8  ;;  %v10477_v20 = vrot.slane %v17252_v3, 5  ;;  %v18014_v9 = vrot.slane %v17086_v34, 5 }
 0x475   : > { %18010 = vst [vmem:[#allocation60_spill] sm:$0xff] %v17275_v28  ;;  %v17297_v41 = vld [vmem:[#allocation3 + $0xc8] sm:$0x1]  ;;  %v10472_v27 = vrot.slane %v10470_v38, 4  ;;  %v10473_v36 = vrot.slane %v17250_v30, 5  ;;  %v10484_v61 = vrot.slane %v17263_v4, 5 }
 0x476   : > { %v8758_v51 = vsel %vm14717_vm12, %v17126_v55, %v18014_v9  ;;  %v10479_v26 = vrot.slane %v10477_v20, 4  ;;  %v18015_v34 = vrot.slane %v17072_v6, 5  ;;  %v18016_v62 = vrot.slane %v17047_v37, 9  ;;  %v18076_v59 = vld [vmem:[#allocation47_spill] sm:$0xff] }
 0x477   : > { %12907 = vmatmul.mubr.bf16.gmra.mrb[24].mxu1 %v17133_v1  ;;  %v17289_v1 = vsel %vm14717_vm12, %v10465_v32, %v10466_v16  ;;  %v10480_v32 = vrot.slane %v17261_v10, 5  ;;  %v11803_v16 = vrot.slane %v10334_v33, 9  ;;  %v17312_v9 = vsel %vm14717_vm12, %v11801_v19, %v10470_v38  ;;  %v13903_v19 = vld [vmem:[#allocation4 + $0x188] sm:$0xff]  }
 0x478   : > { %12926 = vmatprep.mubr.bf16.mxu1 %v18011_v54  ;;  %18013 = vst [vmem:[#allocation62_spill] sm:$0xff] %v17289_v1  ;;  %v8755_v55 = vsel %vm14717_vm12, %v18016_v62, %v18015_v34  ;;  %18017 = vst [vmem:[#allocation63_spill] sm:$0xff] %v17312_v9  ;;  %v17316_v54 = vsel %vm14717_vm12, %v10472_v27, %v10473_v36  ;;  %v17320_v33 = vsel %vm14717_vm12, %v11802_v40, %v10477_v20  ;;  %v18027_v27 = vld [vmem:[#allocation25_spill] sm:$0xff] }
 0x479   : > { %18018 = vst [vmem:[#allocation64_spill] sm:$0xff] %v17316_v54  ;;  %18019 = vst [vmem:[#allocation65_spill] sm:$0xff] %v17320_v33  ;;  %v17326_v37 = vsel %vm14717_vm12, %v10479_v26, %v10480_v32  ;;  %v10486_v62 = vrot.slane %v10484_v61, 4  ;;  %v10487_v34 = vrot.slane %v17297_v41, 5  ;;  %v11718_v38 = vcombine.low %v8755_v55, %v8758_v51  ;;  %v18023_v26 = vld [vmem:[#allocation22_spill] sm:$0xff]  ;;  %v18024_v51 = vld [vmem:[#allocation23_spill] sm:$0xff] }
 0x47a   : > { %18020 = vst [vmem:[#allocation66_spill] sm:$0xff] %v17326_v37  ;;  %v17333_v36 = vsel %vm14717_vm12, %v11803_v16, %v10484_v61  ;;  %v18025_v32 = vcombine.low %v18023_v26, %v18024_v51  ;;  %v13904_v55 = vld [vmem:[#allocation4 + $0x190] sm:$0xff]   ;;  %v13905_v16 = vld [vmem:[#allocation4 + $0x198] sm:$0xff]   ;;  %v13907_v26 = vld [vmem:[#allocation4 + $0x1a8] sm:$0xff]   ;;  %v9676_v28 = vshrl.u32 %v17075_v42, 16 }
 0x47b   : > { %18021 = vst [vmem:[#allocation67_spill] sm:$0xff] %v17333_v36  ;;  %v17337_v40 = vsel %vm14717_vm12, %v10486_v62, %v10487_v34  ;;  %v18026_v61 = vld [vmem:[#allocation24_spill] sm:$0xff]  ;;  %v18029_v62 = vld [vmem:[#allocation26_spill] sm:$0xff]  ;;  %v18030_v34 = vld [vmem:[#allocation27_spill] sm:$0xff] }
 0x47c   : > { %18022 = vst [vmem:[#allocation68_spill] sm:$0xff] %v17337_v40  ;;  %v18028_v6 = vcombine.low %v18026_v61, %v18027_v27  ;;  %v18032_v51 = vld [vmem:[#allocation28_spill] sm:$0xff]  ;;  %v18036_v40 = vld [vmem:[#allocation13_spill] sm:$0xff]  ;;  %v18059_v37 = vld [vmem:[#allocation39_spill] sm:$0xff] }
 0x47d   : > { %v13909_v27 = vld [vmem:[#allocation4 + $0x1b8] sm:$0xff]   ;;  %v18039_v61 = vld [vmem:[#allocation16_spill] sm:$0xff] }
 0x47e   : > { %v18060_v33 = vld [vmem:[#allocation40_spill] sm:$0xff] }
 0x47f   : > { %12927 = vmatmul.mubr.bf16.vlgmr.msra.gmra.mrb[28].mxu1 %v11718_v38  ;;  %v18031_v38 = vcombine.low %v18029_v62, %v18030_v34  ;;  %v18042_v34 = vld [vmem:[#allocation18_spill] sm:$0xff] }
 0x480   : > { %12959 = vmatpush3.bf16.msra.mxu1 %v17021_v2  ;;  %12930 = vmatprep.mubr.bf16.mxu1 %v18025_v32  ;;  %v13906_v2 = vld [vmem:[#allocation4 + $0x1a0] sm:$0xff]  }
 0x481   : > { %12960 = vmatprep.subr.bf16.mxu1 %v13903_v19  ;;  %v18033_v32 = vld [vmem:[#allocation30_spill] sm:$0xff] }
 0x482   : > { %v18034_v20 = vcombine.low %v18032_v51, %v18033_v32  ;;  %v18048_v51 = vld [vmem:[#allocation10_spill] sm:$0xff] }
 0x484   : > { %12961 = vmatpush3.bf16.msra.mxu1 %v13903_v19  ;;  %v18035_v19 = vld [vmem:[#allocation14_spill] sm:$0xff] }
 0x485   : > { %12962 = vmatprep.subr.bf16.mxu1 %v13904_v55  ;;  %v18037_v36 = vcombine.low %v18035_v19, %v18036_v40  ;;  %v18045_v40 = vld [vmem:[#allocation20_spill] sm:$0xff]  ;;  %v18050_v19 = vld [vmem:[#allocation33_spill] sm:$0xff] }
 0x487   : > { %12931 = vmatmul.mubr.bf16.gmra.mrb[0].mxu1 %v18028_v6  ;;  %v13908_v6 = vld [vmem:[#allocation4 + $0x1b0] sm:$0xff]  }
 0x488   : > { %12934 = vmatprep.mubr.bf16.mxu1 %v18031_v38  ;;  %12963 = vmatpush3.bf16.msra.mxu1 %v13904_v55  ;;  %v18038_v55 = vld [vmem:[#allocation12_spill] sm:$0xff] }
 0x489   : > { %12964 = vmatprep.subr.bf16.mxu1 %v13905_v16  ;;  %v18040_v62 = vcombine.low %v18038_v55, %v18039_v61  ;;  %v18051_v55 = vld [vmem:[#allocation34_spill] sm:$0xff] }
 0x48a   : > { %v18052_v61 = vcombine.low %v18050_v19, %v18051_v55  ;;  %v13914_v19 = vld [vmem:[#allocation4 + $0x1c8] sm:$0xff]   ;;  %v13913_v55 = vld [vmem:[#allocation3 + $0x30] sm:$0xff]  }
 0x48c   : > { %12965 = vmatpush3.bf16.msra.mxu1 %v13905_v16  ;;  %v18041_v16 = vld [vmem:[#allocation17_spill] sm:$0xff] }
 0x48d   : > { %12966 = vmatprep.subr.bf16.mxu1 %v13906_v2  ;;  %v18043_v38 = vcombine.low %v18041_v16, %v18042_v34  ;;  %v18054_v16 = vld [vmem:[#allocation36_spill] sm:$0xff] }
 0x48f   : > { %12935 = vmatmul.mubr.bf16.gmra.mrb[4].mxu1 %v18034_v20  ;;  %v13911_v20 = vld [vmem:[#allocation4 + $0x1c0] sm:$0xff]  }
 0x490   : > { %12938 = vmatprep.mubr.bf16.mxu1 %v18037_v36  ;;  %12967 = vmatpush3.bf16.msra.mxu1 %v13906_v2  ;;  %v18044_v36 = vld [vmem:[#allocation19_spill] sm:$0xff] }
 0x491   : > { %12968 = vmatprep.subr.bf16.mxu1 %v13907_v26  ;;  %v18046_v2 = vcombine.low %v18044_v36, %v18045_v40  ;;  %v18061_v36 = vcombine.low %v18059_v37, %v18060_v33  ;;  %v13910_v40 = vld [vmem:[#allocation3 + $0x18] sm:$0xff]   ;;  %v13916_v33 = vld [vmem:[#allocation3 + $0x48] sm:$0xff]  }
 0x492   : > { %v13923_v37 = vld [vmem:[#allocation4 + $0x1e0] sm:$0xff]  }
 0x494   : > { %12969 = vmatpush3.bf16.msra.mxu1 %v13907_v26  ;;  %v18047_v26 = vld [vmem:[#allocation21_spill] sm:$0xff] }
 0x495   : > { %12970 = vmatprep.subr.bf16.mxu1 %v13908_v6  ;;  %v18049_v32 = vcombine.low %v18047_v26, %v18048_v51  ;;  %v18063_v26 = vld [vmem:[#allocation42_spill] sm:$0xff] }
 0x497   : > { %12939 = vmatmul.mubr.bf16.gmra.mrb[8].mxu1 %v18040_v62  ;;  %v18053_v62 = vld [vmem:[#allocation35_spill] sm:$0xff] }
 0x498   : > { %12942 = vmatprep.mubr.bf16.mxu1 %v18043_v38  ;;  %12971 = vmatpush3.bf16.msra.mxu1 %v13908_v6  ;;  %v18055_v34 = vcombine.low %v18053_v62, %v18054_v16  ;;  %v18056_v6 = vld [vmem:[#allocation37_spill] sm:$0xff]  ;;  %v18057_v38 = vld [vmem:[#allocation38_spill] sm:$0xff] }
 0x499   : > { %12972 = vmatprep.subr.bf16.mxu1 %v13909_v27  ;;  %v13915_v62 = vld [vmem:[#allocation3 + $0x3c] sm:$0xff]   ;;  %v13920_v16 = vld [vmem:[#allocation4 + $0x1d8] sm:$0xff]  }
 0x49c   : > { %12973 = vmatpush3.bf16.msra.mxu1 %v13909_v27  ;;  %v18058_v27 = vcombine.low %v18056_v6, %v18057_v38  ;;  %v13926_v6 = vld [vmem:[#allocation4 + $0x1e8] sm:$0xff]  }
 0x49d   : > { %13006 = vmatprep.subr.bf16.mxu1 %v13911_v20  ;;  %v13919_v38 = vld [vmem:[#allocation3 + $0x60] sm:$0xff]  }
 0x49f   : > { %12943 = vmatmul.mubr.bf16.gmra.mrb[12].mxu1 %v18046_v2  ;;  %v18062_v2 = vld [vmem:[#allocation41_spill] sm:$0xff] }
 0x4a0   : > { %12946 = vmatprep.mubr.bf16.mxu1 %v18049_v32  ;;  %v18064_v51 = vcombine.low %v18062_v2, %v18063_v26  ;;  %v13912_v32 = vld [vmem:[#allocation3 + $0x24] sm:$0xff]   ;;  %v9566_v2 = vld [vmem:[#allocation3 + $0x18] sm:$0xf] }
 0x4a1   : > { %v17384_v26 = vld [vmem:[#allocation4 + $0x200] sm:$0xff]  }
 0x4a7   : > { %12947 = vmatmul.mubr.bf16.gmra.mrb[16].mxu1 %v18052_v61  ;;  %v13917_v61 = vld [vmem:[#allocation4 + $0x1d0] sm:$0xff]  }
 0x4a8   : > { %12950 = vmatprep.mubr.bf16.mxu1 %v18055_v34  ;;  %v13918_v34 = vld [vmem:[#allocation3 + $0x54] sm:$0xff]  }
 0x4af   : > { %12951 = vmatmul.mubr.bf16.gmra.mrb[20].mxu1 %v18058_v27  ;;  %v13921_v27 = vld [vmem:[#allocation3 + $0x6c] sm:$0xff]  }
 0x4b0   : > { %12954 = vmatprep.mubr.bf16.mxu1 %v18061_v36  ;;  %v13932_v36 = vld [vmem:[#allocation4 + $0x1f8] sm:$0xff]  }
 0x4b7   : > { %12955 = vmatmul.mubr.bf16.gmra.mrb[24].mxu1 %v18064_v51  ;;  %v9569_v51 = vld [vmem:[#allocation3 + $0x24] sm:$0xf] }
 0x4b8   : > { %12974 = vmatprep.mubr.bf16.mxu1 %v13910_v40  ;;  %v13922_v40 = vld [vmem:[#allocation3 + $0x78] sm:$0xff]  }
 0x4bf   : > { %12975 = vmatmul.mubr.bf16.vlgmr.msra.gmra.mrb[28].mxu1 %v13912_v32  ;;  %v9615_v32 = vshrl.u32 %v9566_v2, 16 }
 0x4c0   : > { %13007 = vmatpush3.bf16.msra.mxu1 %v13911_v20  ;;  %12978 = vmatprep.mubr.bf16.mxu1 %v13913_v55  ;;  %v13929_v20 = vld [vmem:[#allocation4 + $0x1f0] sm:$0xff]  }
 0x4c1   : > { %13008 = vmatprep.subr.bf16.mxu1 %v13914_v19  ;;  %v13924_v55 = vld [vmem:[#allocation3 + $0x84] sm:$0xff]  }
 0x4c4   : > { %13009 = vmatpush3.bf16.msra.mxu1 %v13914_v19  ;;  %v9618_v19 = vshll.u32 %v9566_v2, 16 }
 0x4c5   : > { %13010 = vmatprep.subr.bf16.mxu1 %v13917_v61 }
 0x4c7   : > { %12979 = vmatmul.mubr.bf16.gmra.mrb[0].mxu1 %v13915_v62  ;;  %v9628_v62 = vshrl.u32 %v17044_v53, 16 }
 0x4c8   : > { %12982 = vmatprep.mubr.bf16.mxu1 %v13916_v33  ;;  %13011 = vmatpush3.bf16.msra.mxu1 %v13917_v61  ;;  %v9624_v61 = vshll.u32 %v17044_v53, 16  ;;  %v9639_v33 = vshrl.u32 %v9569_v51, 16 }
 0x4c9   : > { %13012 = vmatprep.subr.bf16.mxu1 %v13920_v16 }
 0x4ca   : > { %v9641_v2 = vrot.slane %v9639_v33, 4 }
 0x4cc   : > { %13013 = vmatpush3.bf16.msra.mxu1 %v13920_v16  ;;  %v13925_v16 = vld [vmem:[#allocation3 + $0x90] sm:$0xff]  }
 0x4cd   : > { %13014 = vmatprep.subr.bf16.mxu1 %v13923_v37 }
 0x4cf   : > { %12983 = vmatmul.mubr.bf16.gmra.mrb[4].mxu1 %v13918_v34  ;;  %v9648_v34 = vshll.u32 %v17056_v13, 16 }
 0x4d0   : > { %12986 = vmatprep.mubr.bf16.mxu1 %v13919_v38  ;;  %13015 = vmatpush3.bf16.msra.mxu1 %v13923_v37  ;;  %v9642_v37 = vshll.u32 %v9569_v51, 16  ;;  %v9617_v38 = vrot.slane %v9615_v32, 4 }
 0x4d1   : > { %13016 = vmatprep.subr.bf16.mxu1 %v13926_v6  ;;  %v17393_v53 = vrot.slane %v9648_v34, 5 }
 0x4d2   : > { %v9644_v54 = vrot.slane %v9642_v37, 5 }
 0x4d4   : > { %13017 = vmatpush3.bf16.msra.mxu1 %v13926_v6  ;;  %v9652_v6 = vshrl.u32 %v17056_v13, 16  ;;  %v13927_v13 = vld [vmem:[#allocation3 + $0x9c] sm:$0xff]  }
 0x4d5   : > { %13018 = vmatprep.subr.bf16.mxu1 %v13929_v20 }
 0x4d6   : > { %v9654_v9 = vrot.slane %v9652_v6, 4  ;;  %v9658_v6 = vshll.u32 %v17064_v5, 16  ;;  %v13931_v5 = vld [vmem:[#allocation3 + $0xc0] sm:$0xff]  }
 0x4d7   : > { %12987 = vmatmul.mubr.bf16.gmra.mrb[8].mxu1 %v13921_v27  ;;  %v9572_v27 = vld [vmem:[#allocation3 + $0x30] sm:$0xf] }
 0x4d8   : > { %12990 = vmatprep.mubr.bf16.mxu1 %v13922_v40  ;;  %13019 = vmatpush3.bf16.msra.mxu1 %v13929_v20  ;;  %v9620_v20 = vrot.slane %v9618_v19, 5  ;;  %v9630_v40 = vrot.slane %v9628_v62, 4  ;;  %v9663_v1 = vshrl.u32 %v9572_v27, 16  ;;  %v9666_v8 = vshll.u32 %v9572_v27, 16  ;;  %v13928_v19 = vld [vmem:[#allocation3 + $0xa8] sm:$0xff]  }
 0x4d9   : > { %13020 = vmatprep.subr.bf16.mxu1 %v13932_v36  ;;  %v9645_v62 = vor.u32 %v9644_v54, %v9641_v2  ;;  %v9575_v27 = vld [vmem:[#allocation3 + $0x3c] sm:$0xf]  ;;  %v13930_v2 = vld [vmem:[#allocation3 + $0xb4] sm:$0xff]  }
 0x4da   : > { %v9621_v51 = vor.u32 %v9620_v20, %v9617_v38  ;;  %v9665_v33 = vrot.slane %v9663_v1, 4  ;;  %v9668_v37 = vrot.slane %v9666_v8, 5  ;;  %v9678_v20 = vrot.slane %v9676_v28, 4 }
 0x4db   : > { %v9660_v1 = vrot.slane %v9658_v6, 5 }
 0x4dc   : > { %13021 = vmatpush3.bf16.msra.mxu1 %v13932_v36  ;;  %v17391_v36 = vrot.slane %v9624_v61, 5  ;;  %v9634_v61 = vshll.u32 %v17049_v47, 16  ;;  %v9622_v34 = vrot.slane %v9621_v51, 4  ;;  %v9669_v60 = vor.u32 %v9668_v37, %v9665_v33  ;;  %v9578_v47 = vld [vmem:[#allocation3 + $0x48] sm:$0xf] }
 0x4dd   : > { %13054 = vmatprep.subr.bf16.mxu1 %v17384_v26  ;;  %v9690_v51 = vshll.u32 %v9575_v27, 16  ;;  %v9724_v37 = vshrl.u32 %v17106_v7, 16 }
 0x4de   : > { %v9631_v32 = vor.u32 %v9630_v40, %v17391_v36  ;;  %v9636_v50 = vrot.slane %v9634_v61, 5  ;;  %v9646_v40 = vrot.slane %v9645_v62, 4  ;;  %v9627_v54 = vsel %vm14355_vm9, %v9622_v34, %v17391_v36  ;;  %v9581_v62 = vld [vmem:[#allocation3 + $0x54] sm:$0xf] }
 0x4df   : > { %12991 = vmatmul.mubr.bf16.gmra.mrb[12].mxu1 %v13924_v55  ;;  %v9672_v55 = vshll.u32 %v17075_v42, 16  ;;  %v9714_v61 = vshll.u32 %v9578_v47, 16  ;;  %v9720_v36 = vshll.u32 %v17106_v7, 16  ;;  %v17418_v33 = vrot.slane %v9669_v60, 4 }
 0x4e0   : > { %12994 = vmatprep.mubr.bf16.mxu1 %v13925_v16  ;;  %v9655_v16 = vor.u32 %v9654_v9, %v17393_v53  ;;  %v9632_v42 = vrot.slane %v9631_v32, 4  ;;  %v9687_v9 = vshrl.u32 %v9575_v27, 16  ;;  %v9682_v32 = vshll.u32 %v17091_v56, 16  ;;  %v17423_v56 = vld [vmem:[#allocation3 + $0xd4] sm:$0x1] }
 0x4e1   : > { %v17401_v38 = vrot.slane %v9672_v55, 5  ;;  %v9696_v55 = vshll.u32 %v17089_v52, 16  ;;  %v9692_v27 = vrot.slane %v9690_v51, 5  ;;  %v9716_v7 = vrot.slane %v9714_v61, 5 }
 0x4e2   : > { %v9656_v22 = vrot.slane %v9655_v16, 4  ;;  %v9637_v28 = vsel %vm14355_vm9, %v9632_v42, %v9636_v50  ;;  %v9651_v16 = vsel %vm14355_vm9, %v9646_v40, %v17393_v53  ;;  %v9689_v6 = vrot.slane %v9687_v9, 4 }
 0x4e3   : > { %v9679_v8 = vor.u32 %v9678_v20, %v17401_v38  ;;  %v10335_v20 = vld [vmem:[#allocation3 + $0xcc] sm:$0xe]  ;;  %v10494_v53 = vrot.slane %v17423_v56, 5  ;;  %v17429_v40 = vrot.slane %v9696_v55, 5  ;;  %v9738_v29 = vshll.u32 %v9581_v62, 16 }
 0x4e4   : > { %v9661_v50 = vsel %vm14355_vm9, %v9656_v22, %v9660_v1  ;;  %v11804_v22 = vrot.slane %v10335_v20, 9  ;;  %v17431_v1 = vrot.slane %v9720_v36, 5  ;;  %v9684_v23 = vrot.slane %v9682_v32, 5 }
 0x4e5   : > { %v17425_v34 = vrot.slane %v9679_v8, 4  ;;  %v9735_v8 = vshrl.u32 %v9581_v62, 16  ;;  %v9744_v51 = vshll.u32 %v17113_v48, 16  ;;  %v9748_v55 = vshrl.u32 %v17113_v48, 16 }
 0x4e6   : > { %v11766_v61 = vcombine.low %v9651_v16, %v9661_v50  ;;  %v9706_v36 = vshll.u32 %v17093_v57, 16  ;;  %v9675_v32 = vsel %vm14355_vm9, %v17418_v33, %v17401_v38  ;;  %v9693_v18 = vor.u32 %v9692_v27, %v9689_v6 }
 0x4e7   : > { %12995 = vmatmul.mubr.bf16.gmra.mrb[16].mxu1 %v13927_v13  ;;  %v9700_v13 = vshrl.u32 %v17089_v52, 16  ;;  %v17421_v52 = vld [vmem:[#allocation3 + $0xd0] sm:$0xf]  ;;  %v9685_v48 = vsel %vm14355_vm9, %v17425_v34, %v9684_v23  ;;  %v9737_v16 = vrot.slane %v9735_v8, 4  ;;  %v9740_v50 = vrot.slane %v9738_v29, 5 }
 0x4e8   : > { %12998 = vmatprep.mubr.bf16.mxu1 %v13928_v19  ;;  %v9711_v19 = vshrl.u32 %v9578_v47, 16  ;;  %v10491_v42 = vrot.slane %v17421_v52, 5  ;;  %v9768_v33 = vshll.u32 %v17135_v63, 16  ;;  %v9772_v23 = vshrl.u32 %v17135_v63, 16 }
 0x4e9   : > { %v9702_v60 = vrot.slane %v9700_v13, 4  ;;  %v9708_v27 = vrot.slane %v9706_v36, 5  ;;  %v9694_v29 = vrot.slane %v9693_v18, 4  ;;  %v9590_v18 = vld [vmem:[#allocation3 + $0x78] sm:$0xf] }
 0x4ea   : > { %v9713_v47 = vrot.slane %v9711_v19, 4  ;;  %v17435_v9 = vsel %vm14717_vm12, %v11804_v22, %v10491_v42  ;;  %v11765_v19 = vcombine.low %v9627_v54, %v9637_v28  ;;  %v9587_v54 = vld [vmem:[#allocation3 + $0x6c] sm:$0xf]  ;;  %v17463_v63 = vrot.slane %v9768_v33, 5 }
 0x4eb   : > { %18065 = vst [vmem:[#allocation22_spill] sm:$0xff] %v17435_v9  ;;  %v9703_v20 = vor.u32 %v9702_v60, %v17429_v40  ;;  %v9783_v34 = vshrl.u32 %v9587_v54, 16  ;;  %v9786_v6 = vshll.u32 %v9587_v54, 16  ;;  %v9792_v60 = vshll.u32 %v17140_v11, 16 }
 0x4ec   : > { %v9717_v28 = vor.u32 %v9716_v7, %v9713_v47  ;;  %v9796_v47 = vshrl.u32 %v17140_v11, 16  ;;  %v9774_v54 = vrot.slane %v9772_v23, 4  ;;  %v9807_v33 = vshrl.u32 %v9590_v18, 16 }
 0x4ed   : > { %v9704_v7 = vrot.slane %v9703_v20, 4  ;;  %v9785_v36 = vrot.slane %v9783_v34, 4  ;;  %v9788_v62 = vrot.slane %v9786_v6, 5  ;;  %v17465_v9 = vrot.slane %v9792_v60, 5 }
 0x4ee   : > { %v9798_v11 = vrot.slane %v9796_v47, 4  ;;  %v9699_v20 = vsel %vm14355_vm9, %v9694_v29, %v17429_v40  ;;  %v13936_v40 = vld [vmem:[#allocation4 + $0x210] sm:$0xff]  }
 0x4ef   : > { %12999 = vmatmul.mubr.bf16.gmra.mrb[20].mxu1 %v13930_v2  ;;  %v10493_v2 = vrot.slane %v10491_v42, 4  ;;  %v17455_v42 = vrot.slane %v9744_v51, 5 }
 0x4f0   : > { %13002 = vmatprep.mubr.bf16.mxu1 %v13931_v5  ;;  %v9726_v5 = vrot.slane %v9724_v37, 4  ;;  %v9584_v37 = vld [vmem:[#allocation3 + $0x60] sm:$0xf] }
 0x4f1   : > { %v17441_v13 = vsel %vm14717_vm12, %v10493_v2, %v10494_v53  ;;  %v9750_v53 = vrot.slane %v9748_v55, 4  ;;  %v9759_v22 = vshrl.u32 %v9584_v37, 16  ;;  %v9762_v38 = vshll.u32 %v9584_v37, 16  ;;  %v13935_v37 = vld [vmem:[#allocation4 + $0x208] sm:$0xff]  }
 0x4f2   : > { %18066 = vst [vmem:[#allocation23_spill] sm:$0xff] %v17441_v13  ;;  %v9727_v57 = vor.u32 %v9726_v5, %v17431_v1  ;;  %v9718_v2 = vrot.slane %v9717_v28, 4  ;;  %v9741_v5 = vor.u32 %v9740_v50, %v9737_v16  ;;  %v9709_v28 = vsel %vm14355_vm9, %v9704_v7, %v9708_v27  ;;  %v9593_v27 = vld [vmem:[#allocation3 + $0x84] sm:$0xf]  ;;  %v13937_v7 = vld [vmem:[#allocation4 + $0x218] sm:$0xff]  }
 0x4f3   : > { %v9751_v51 = vor.u32 %v9750_v53, %v17455_v42  ;;  %v9761_v55 = vrot.slane %v9759_v22, 4  ;;  %v9754_v16 = vshll.u32 %v17128_v14, 16  ;;  %v9778_v50 = vshll.u32 %v17138_v46, 16 }
 0x4f4   : > { %v9728_v8 = vrot.slane %v9727_v57, 4  ;;  %v9723_v57 = vsel %vm14355_vm9, %v9718_v2, %v17431_v1  ;;  %v9775_v22 = vor.u32 %v9774_v54, %v17463_v63  ;;  %v9799_v1 = vor.u32 %v9798_v11, %v17465_v9 }
 0x4f5   : > { %v9752_v53 = vrot.slane %v9751_v51, 4  ;;  %v9810_v14 = vshll.u32 %v9590_v18, 16  ;;  %v11768_v23 = vcombine.low %v9699_v20, %v9709_v28  ;;  %v9756_v6 = vrot.slane %v9754_v16, 5 }
 0x4f6   : > { %v9780_v60 = vrot.slane %v9778_v50, 5  ;;  %v9776_v29 = vrot.slane %v9775_v22, 4  ;;  %v9840_v54 = vshll.u32 %v17186_v58, 16  ;;  %v9868_v16 = vshrl.u32 %v17202_v31, 16 }
 0x4f7   : > { %13003 = vmatmul.mubr.bf16.gmra.mrb[24].mxu1 %v13933_v44  ;;  %v9730_v44 = vshll.u32 %v17111_v25, 16  ;;  %v11767_v25 = vcombine.low %v9675_v32, %v9685_v48  ;;  %v9757_v47 = vsel %vm14355_vm9, %v9752_v53, %v9756_v6  ;;  %v9812_v51 = vrot.slane %v9810_v14, 5  ;;  %v13939_v14 = vld [vmem:[#allocation4 + $0x228] sm:$0xff]   ;;  %v9602_v6 = vld [vmem:[#allocation3 + $0xa8] sm:$0xf] }
 0x4f8   : > { %13022 = vmatprep.mubr.bf16.mxu1 %v11765_v19  ;;  %v9764_v19 = vrot.slane %v9762_v38, 5  ;;  %v9789_v38 = vor.u32 %v9788_v62, %v9785_v36  ;;  %v9802_v62 = vshll.u32 %v17151_v45, 16  ;;  %v9844_v45 = vshrl.u32 %v17186_v58, 16 }
 0x4f9   : > { %v9732_v13 = vrot.slane %v9730_v44, 5  ;;  %v9781_v20 = vsel %vm14355_vm9, %v9776_v29, %v9780_v60  ;;  %v9864_v58 = vshll.u32 %v17202_v31, 16  ;;  %v17508_v53 = vrot.slane %v9840_v54, 5 }
 0x4fa   : > { %v9765_v48 = vor.u32 %v9764_v19, %v9761_v55  ;;  %v9790_v2 = vrot.slane %v9789_v38, 4  ;;  %v9831_v19 = vshrl.u32 %v9593_v27, 16  ;;  %v9846_v22 = vrot.slane %v9844_v45, 4 }
 0x4fb   : > { %v9733_v32 = vsel %vm14355_vm9, %v9728_v8, %v9732_v13  ;;  %v9820_v13 = vshrl.u32 %v17164_v0, 16  ;;  %v9596_v8 = vld [vmem:[#allocation3 + $0x90] sm:$0xf]  ;;  %v9870_v31 = vrot.slane %v9868_v16, 4  ;;  %v9888_v29 = vshll.u32 %v17215_v43, 16 }
 0x4fc   : > { %v11769_v34 = vcombine.low %v9723_v57, %v9733_v32  ;;  %v9766_v44 = vrot.slane %v9765_v48, 4  ;;  %v9855_v11 = vshrl.u32 %v9596_v8, 16  ;;  %v9858_v18 = vshll.u32 %v9596_v8, 16  ;;  %v13938_v57 = vld [vmem:[#allocation4 + $0x220] sm:$0xff]  }
 0x4fd   : > { %v9795_v28 = vsel %vm14355_vm9, %v9790_v2, %v17465_v9  ;;  %v9833_v48 = vrot.slane %v9831_v19, 4  ;;  %v9847_v60 = vor.u32 %v9846_v22, %v17508_v53  ;;  %v9892_v2 = vshrl.u32 %v17215_v43, 16 }
 0x4fe   : > { %v9771_v36 = vsel %vm14355_vm9, %v9766_v44, %v17463_v63  ;;  %v9857_v9 = vrot.slane %v9855_v11, 4  ;;  %v9860_v38 = vrot.slane %v9858_v18, 5  ;;  %v9906_v8 = vshll.u32 %v9602_v6, 16 }
 0x4ff   : > { %13023 = vmatmul.mubr.bf16.vlgmr.msra.gmra.mrb[28].mxu1 %v11766_v61  ;;  %v9742_v61 = vrot.slane %v9741_v5, 4  ;;  %v9809_v5 = vrot.slane %v9807_v33, 4  ;;  %v9850_v19 = vshll.u32 %v17188_v17, 16  ;;  %v9874_v43 = vshll.u32 %v17204_v24, 16 }
 0x500   : > { %13055 = vmatpush3.bf16.msra.mxu1 %v17384_v26  ;;  %13026 = vmatprep.mubr.bf16.mxu1 %v11767_v25  ;;  %v9816_v26 = vshll.u32 %v17164_v0, 16  ;;  %v9800_v0 = vrot.slane %v9799_v1, 4  ;;  %v9804_v25 = vrot.slane %v9802_v62, 5  ;;  %v17510_v1 = vrot.slane %v9864_v58, 5  ;;  %v13941_v58 = vld [vmem:[#allocation4 + $0x238] sm:$0xff]  }
 0x501   : > { %13056 = vmatprep.subr.bf16.mxu1 %v13935_v37  ;;  %v9747_v46 = vsel %vm14355_vm9, %v9742_v61, %v17455_v42  ;;  %v9822_v42 = vrot.slane %v9820_v13, 4  ;;  %v9813_v63 = vor.u32 %v9812_v51, %v9809_v5  ;;  %v9826_v61 = vshll.u32 %v17175_v15, 16 }
 0x502   : > { %v17490_v55 = vrot.slane %v9816_v26, 5  ;;  %v9805_v32 = vsel %vm14355_vm9, %v9800_v0, %v9804_v25  ;;  %v11770_v33 = vcombine.low %v9747_v46, %v9757_v47  ;;  %v9599_v26 = vld [vmem:[#allocation3 + $0x9c] sm:$0xf]  ;;  %v9861_v62 = vor.u32 %v9860_v38, %v9857_v9  ;;  %v13940_v0 = vld [vmem:[#allocation4 + $0x230] sm:$0xff]   ;;  %v9608_v38 = vld [vmem:[#allocation3 + $0xc0] sm:$0xf] }
 0x503   : > { %v9814_v15 = vrot.slane %v9813_v63, 4  ;;  %v9879_v46 = vshrl.u32 %v9599_v26, 16  ;;  %v9882_v47 = vshll.u32 %v9599_v26, 16  ;;  %v9903_v5 = vshrl.u32 %v9602_v6, 16 }
 0x504   : > { %13057 = vmatpush3.bf16.msra.mxu1 %v13935_v37  ;;  %v9834_v37 = vshll.u32 %v9593_v27, 16  ;;  %v9823_v50 = vor.u32 %v9822_v42, %v17490_v55  ;;  %v9828_v27 = vrot.slane %v9826_v61, 5  ;;  %v9912_v42 = vshll.u32 %v17233_v12, 16  ;;  %v9605_v61 = vld [vmem:[#allocation3 + $0xb4] sm:$0xf] }
 0x505   : > { %13058 = vmatprep.subr.bf16.mxu1 %v13936_v40  ;;  %v9819_v51 = vsel %vm14355_vm9, %v9814_v15, %v17490_v55  ;;  %v9862_v25 = vrot.slane %v9861_v62, 4  ;;  %v9881_v11 = vrot.slane %v9879_v46, 4  ;;  %v9884_v18 = vrot.slane %v9882_v47, 5 }
 0x506   : > { %v9824_v13 = vrot.slane %v9823_v50, 4  ;;  %v9905_v17 = vrot.slane %v9903_v5, 4  ;;  %v9852_v16 = vrot.slane %v9850_v19, 5  ;;  %v9898_v9 = vshll.u32 %v17228_v21, 16 }
 0x507   : > { %13027 = vmatmul.mubr.bf16.gmra.mrb[0].mxu1 %v11768_v23  ;;  %v11771_v23 = vcombine.low %v9771_v36, %v9781_v20  ;;  %v9848_v36 = vrot.slane %v9847_v60, 4  ;;  %v17525_v20 = vrot.slane %v9888_v29, 5  ;;  %v9885_v22 = vor.u32 %v9884_v18, %v9881_v11 }
 0x508   : > { %13030 = vmatprep.mubr.bf16.mxu1 %v11769_v34  ;;  %13059 = vmatpush3.bf16.msra.mxu1 %v13936_v40  ;;  %v9836_v40 = vrot.slane %v9834_v37, 5  ;;  %v11772_v34 = vcombine.low %v9795_v28, %v9805_v32  ;;  %v9916_v37 = vshrl.u32 %v17233_v12, 16  ;;  %v9829_v54 = vsel %vm14355_vm9, %v9824_v13, %v9828_v27 }
 0x509   : > { %13060 = vmatprep.subr.bf16.mxu1 %v13937_v7  ;;  %v9894_v28 = vrot.slane %v9892_v2, 4  ;;  %v11773_v12 = vcombine.low %v9819_v51, %v9829_v54  ;;  %v17527_v32 = vrot.slane %v9912_v42, 5  ;;  %v9853_v50 = vsel %vm14355_vm9, %v9848_v36, %v9852_v16  ;;  %v9611_v2 = vld [vmem:[#allocation3 + $0xcc] sm:$0xf] }
 0x50a   : > { %v9837_v44 = vor.u32 %v9836_v40, %v9833_v48  ;;  %v9918_v63 = vrot.slane %v9916_v37, 4  ;;  %v9876_v48 = vrot.slane %v9874_v43, 5  ;;  %v9867_v40 = vsel %vm14355_vm9, %v9862_v25, %v17510_v1 }
 0x50b   : > { %v9951_v15 = vshrl.u32 %v9608_v38, 16  ;;  %v9954_v6 = vshll.u32 %v9608_v38, 16  ;;  %v9960_v21 = vshll.u32 %v17263_v4, 16  ;;  %v9964_v13 = vshrl.u32 %v17263_v4, 16 }
 0x50c   : > { %13061 = vmatpush3.bf16.msra.mxu1 %v13937_v7  ;;  %v9871_v7 = vor.u32 %v9870_v31, %v17510_v1  ;;  %v9838_v45 = vrot.slane %v9837_v44, 4  ;;  %v9895_v31 = vor.u32 %v9894_v28, %v17525_v20  ;;  %v9919_v26 = vor.u32 %v9918_v63, %v17527_v32 }
 0x50d   : > { %13062 = vmatprep.subr.bf16.mxu1 %v13938_v57  ;;  %v9940_v1 = vshrl.u32 %v17252_v3, 16  ;;  %v9886_v60 = vrot.slane %v9885_v22, 4  ;;  %v9900_v62 = vrot.slane %v9898_v9, 5  ;;  %v9922_v29 = vshll.u32 %v17250_v30, 16 }
 0x50e   : > { %v9872_v55 = vrot.slane %v9871_v7, 4  ;;  %v9843_v24 = vsel %vm14355_vm9, %v9838_v45, %v17508_v53  ;;  %v9896_v46 = vrot.slane %v9895_v31, 4  ;;  %v9920_v5 = vrot.slane %v9919_v26, 4 }
 0x50f   : > { %13031 = vmatmul.mubr.bf16.gmra.mrb[4].mxu1 %v11770_v33  ;;  %v11774_v27 = vcombine.low %v9843_v24, %v9853_v50  ;;  %v9953_v51 = vrot.slane %v9951_v15, 4  ;;  %v9956_v19 = vrot.slane %v9954_v6, 5  ;;  %v9962_v42 = vrot.slane %v9960_v21, 5 }
 0x510   : > { %13034 = vmatprep.mubr.bf16.mxu1 %v11771_v23  ;;  %13063 = vmatpush3.bf16.msra.mxu1 %v13938_v57  ;;  %v9908_v57 = vrot.slane %v9906_v8, 5  ;;  %v9877_v33 = vsel %vm14355_vm9, %v9872_v55, %v9876_v48  ;;  %v9930_v23 = vshll.u32 %v9605_v61, 16  ;;  %v9966_v4 = vrot.slane %v9964_v13, 4 }
 0x511   : > { %13064 = vmatprep.subr.bf16.mxu1 %v13939_v14  ;;  %v11775_v44 = vcombine.low %v9867_v40, %v9877_v33  ;;  %v9975_v37 = vshrl.u32 %v9611_v2, 16  ;;  %v9978_v54 = vshll.u32 %v9611_v2, 16  ;;  %v9984_v45 = vshll.u32 %v17421_v52, 16  ;;  %v18077_v2 = vld [vmem:[#allocation48_spill] sm:$0xff] }
 0x512   : > { %v9909_v53 = vor.u32 %v9908_v57, %v9905_v17  ;;  %v9932_v8 = vrot.slane %v9930_v23, 5  ;;  %v9988_v36 = vshrl.u32 %v17421_v52, 16  ;;  %v9891_v30 = vsel %vm14355_vm9, %v9886_v60, %v17525_v20  ;;  %v18070_v60 = vld [vmem:[#allocation43_spill] sm:$0xff] }
 0x513   : > { %v9924_v43 = vrot.slane %v9922_v29, 5  ;;  %v9901_v25 = vsel %vm14355_vm9, %v9896_v46, %v9900_v62  ;;  %v9946_v55 = vshll.u32 %v17261_v10, 16  ;;  %v9957_v52 = vor.u32 %v9956_v19, %v9953_v51  ;;  %v18071_v62 = vld [vmem:[#allocation44_spill] sm:$0xff]  ;;  %v18074_v29 = vld [vmem:[#allocation46_spill] sm:$0xff]  ;;  %v18085_v51 = vld [vmem:[#allocation53_spill] sm:$0xff] }
 0x514   : > { %13065 = vmatpush3.bf16.msra.mxu1 %v13939_v14  ;;  %v9927_v14 = vshrl.u32 %v9605_v61, 16  ;;  %v9910_v47 = vrot.slane %v9909_v53, 4  ;;  %v9967_v57 = vor.u32 %v9966_v4, %v9962_v42  ;;  %v9986_v20 = vrot.slane %v9984_v45, 5  ;;  %v18086_v19 = vld [vmem:[#allocation54_spill] sm:$0xff]  ;;  %v18088_v4 = vld [vmem:[#allocation55_spill] sm:$0xff]  ;;  %v18091_v45 = vld [vmem:[#allocation57_spill] sm:$0xff] }
 0x515   : > { %13066 = vmatprep.subr.bf16.mxu1 %v13940_v0  ;;  %v9925_v17 = vsel %vm14355_vm9, %v9920_v5, %v9924_v43  ;;  %v9990_v16 = vrot.slane %v9988_v36, 4  ;;  %v11776_v63 = vcombine.low %v9891_v30, %v9901_v25  ;;  %v9970_v61 = vshll.u32 %v17297_v41, 16  ;;  %v18092_v36 = vld [vmem:[#allocation58_spill] sm:$0xff]  ;;  %v18094_v43 = vld [vmem:[#allocation59_spill] sm:$0xff]  ;;  %v18095_v25 = vld [vmem:[#allocation60_spill] sm:$0xff] }
 0x516   : > { %v9929_v7 = vrot.slane %v9927_v14, 4  ;;  %v9915_v28 = vsel %vm14355_vm9, %v9910_v47, %v17527_v32  ;;  %v9958_v10 = vrot.slane %v9957_v52, 4  ;;  %v9968_v40 = vrot.slane %v9967_v57, 4  ;;  %v18073_v47 = vld [vmem:[#allocation45_spill] sm:$0xff]  ;;  %v18101_v52 = vld [vmem:[#allocation64_spill] sm:$0xff] }
 0x517   : > { %13035 = vmatmul.mubr.bf16.gmra.mrb[8].mxu1 %v11772_v34  ;;  %v9936_v34 = vshll.u32 %v17252_v3, 16  ;;  %v11777_v24 = vcombine.low %v9915_v28, %v9925_v17  ;;  %v9948_v32 = vrot.slane %v9946_v55, 5  ;;  %v9991_v9 = vor.u32 %v9990_v16, %v9986_v20  ;;  %v18098_v55 = vld [vmem:[#allocation62_spill] sm:$0xff]  ;;  %v18100_v17 = vld [vmem:[#allocation63_spill] sm:$0xff] }
 0x518   : > { %13038 = vmatprep.mubr.bf16.mxu1 %v11773_v12  ;;  %13067 = vmatpush3.bf16.msra.mxu1 %v13940_v0  ;;  %v9942_v0 = vrot.slane %v9940_v1, 4  ;;  %v9933_v11 = vor.u32 %v9932_v8, %v9929_v7  ;;  %v9980_v12 = vrot.slane %v9978_v54, 5  ;;  %v9994_v38 = vshll.u32 %v17423_v56, 16  ;;  %v18079_v8 = vld [vmem:[#allocation49_spill] sm:$0xff]  ;;  %v18106_v16 = vld [vmem:[#allocation67_spill] sm:$0xff] }
 0x519   : > { %13068 = vmatprep.subr.bf16.mxu1 %v13941_v58  ;;  %v9938_v3 = vrot.slane %v9936_v34, 5  ;;  %v9972_v33 = vrot.slane %v9970_v61, 5  ;;  %v9963_v41 = vsel %vm14355_vm9, %v9958_v10, %v9962_v42  ;;  %v9992_v23 = vrot.slane %v9991_v9, 4  ;;  %v17625_v10 = vld [vmem:[%s17740_s4] ss:$0 sm:$0xff] }
 0x51a   : > { %v9934_v48 = vrot.slane %v9933_v11, 4  ;;  %v9996_v34 = vrot.slane %v9994_v38, 5  ;;  %v18067_v13 = vcombine.low %v17097_v49, %v17101_v39  ;;  %v18072_v46 = vcombine.low %v18070_v60, %v18071_v62  ;;  %v18082_v39 = vld [vmem:[#allocation51_spill] sm:$0xff] }
 0x51b   : > { %v9943_v18 = vor.u32 %v9942_v0, %v9938_v3  ;;  %v9973_v14 = vsel %vm14355_vm9, %v9968_v40, %v9972_v33  ;;  %v18075_v7 = vcombine.low %v18073_v47, %v18074_v29  ;;  %v18078_v5 = vcombine.low %v18076_v59, %v18077_v2  ;;  %v18112_v40 = vld [vmem:[#allocation29_spill] sm:$0xff]  ;;  %v18114_v33 = vld [vmem:[#allocation32_spill] sm:$0xff] }
 0x51c   : > { %13069 = vmatpush3.bf16.msra.mxu1 %v13941_v58  ;;  %v9977_v58 = vrot.slane %v9975_v37, 4  ;;  %v9939_v31 = vsel %vm14355_vm9, %v9934_v48, %v9938_v3  ;;  %v11779_v15 = vcombine.low %v9963_v41, %v9973_v14  ;;  %v9997_v6 = vsel %vm14355_vm9, %v9992_v23, %v9996_v34  ;;  %v18080_v3 = vld [vmem:[#allocation50_spill] sm:$0xff]  ;;  %v18089_v37 = vld [vmem:[#allocation56_spill] sm:$0xff]  ;;  %v18110_v48 = vld [vmem:[#allocation23_spill] sm:$0xff] }
 0x51d   : > { %v9944_v50 = vrot.slane %v9943_v18, 4  ;;  %v18081_v49 = vcombine.low %v18079_v8, %v18080_v3  ;;  %v18087_v42 = vcombine.low %v18085_v51, %v18086_v19  ;;  %v18090_v54 = vcombine.low %v18088_v4, %v18089_v37  ;;  %v18097_v18 = vld [vmem:[#allocation61_spill] sm:$0xff]  ;;  %v18115_v14 = vld [vmem:[#allocation11_spill] sm:$0xff] }
 0x51e   : > { %v9981_v22 = vor.u32 %v9980_v12, %v9977_v58  ;;  %v18093_v30 = vcombine.low %v18091_v45, %v18092_v36  ;;  %v18096_v11 = vcombine.low %v18094_v43, %v18095_v25  ;;  %v18099_v28 = vcombine.low %v18097_v18, %v18098_v55  ;;  %v18103_v58 = vld [vmem:[#allocation65_spill] sm:$0xff]  ;;  %v18104_v12 = vld [vmem:[#allocation66_spill] sm:$0xff] }
 0x51f   : > { %13039 = vmatmul.mubr.bf16.gmra.mrb[12].mxu1 %v11774_v27  ;;  %v9949_v53 = vsel %vm14355_vm9, %v9944_v50, %v9948_v32  ;;  %v18068_v27 = vld [vmem:[#allocation15_spill] sm:$0xff]  ;;  %v18102_v57 = vcombine.low %v18100_v17, %v18101_v52  ;;  %v6259_v32 = vadd.f32 %v18112_v40, %v17625_v10 }
 0x520   : > { %13042 = vmatprep.mubr.bf16.mxu1 %v11775_v44  ;;  %v9982_v26 = vrot.slane %v9981_v22, 4  ;;  %v11778_v1 = vcombine.low %v9939_v31, %v9949_v53  ;;  %v18069_v44 = vcombine.low %v17117_v35, %v18068_v27  ;;  %v18083_v35 = vld [vmem:[#allocation52_spill] sm:$0xff]  ;;  %v18113_v22 = vld [vmem:[#allocation31_spill] sm:$0xff]  ;;  %v6260_v31 = vadd.f32 %v18114_v33, %v17625_v10 }
 0x521   : > { %v18084_v0 = vcombine.low %v18082_v39, %v18083_v35  ;;  %v6257_v9 = vadd.f32 %v17625_v10, %v18113_v22 }
 0x522   : > { %v9987_v56 = vsel %vm14355_vm9, %v9982_v26, %v9986_v20  ;;  %v18105_v20 = vcombine.low %v18103_v58, %v18104_v12  ;;  %v6258_v26 = vadd.f32 %v17625_v10, %v18115_v14 }
 0x523   : > { %v11780_v21 = vcombine.low %v9987_v56, %v9997_v6 }
 0x527   : > { %13043 = vmatmul.mubr.bf16.gmra.mrb[16].mxu1 %v11776_v63  ;;  %v18107_v63 = vld [vmem:[#allocation68_spill] sm:$0xff] }
 0x528   : > { %13046 = vmatprep.mubr.bf16.mxu1 %v11777_v24  ;;  %v18108_v61 = vcombine.low %v18106_v16, %v18107_v63  ;;  %v18109_v24 = vld [vmem:[#allocation22_spill] sm:$0xff] }
 0x529   : > { %v18111_v50 = vcombine.low %v18109_v24, %v18110_v48 }
 0x52f   : > { %13047 = vmatmul.mubr.bf16.gmra.mrb[20].mxu1 %v11778_v1 }
 0x530   : > { %13050 = vmatprep.mubr.bf16.mxu1 %v11779_v15 }
 0x537   : > { %13051 = vmatmul.mubr.bf16.gmra.mrb[24].mxu1 %v11780_v21 }
 0x538   : > { %13070 = vmatprep.mubr.bf16.mxu1 %v18067_v13 }
 0x53f   : > { %13071 = vmatmul.mubr.bf16.vlgmr.msra.gmra.mrb[28].mxu1 %v18069_v44 }
 0x540   : > { %13074 = vmatprep.mubr.bf16.mxu1 %v18072_v46 }
 0x547   : > { %13075 = vmatmul.mubr.bf16.gmra.mrb[0].mxu1 %v18075_v7 }
 0x548   : > { %13078 = vmatprep.mubr.bf16.mxu1 %v18078_v5 }
 0x54f   : > { %13079 = vmatmul.mubr.bf16.gmra.mrb[4].mxu1 %v18081_v49 }
 0x550   : > { %13082 = vmatprep.mubr.bf16.mxu1 %v18084_v0 }
 0x557   : > { %13083 = vmatmul.mubr.bf16.gmra.mrb[8].mxu1 %v18087_v42 }
 0x558   : > { %13086 = vmatprep.mubr.bf16.mxu1 %v18090_v54 }
 0x55f   : > { %13087 = vmatmul.mubr.bf16.gmra.mrb[12].mxu1 %v18093_v30 }
 0x560   : > { %13090 = vmatprep.mubr.bf16.mxu1 %v18096_v11 }
 0x567   : > { %13091 = vmatmul.mubr.bf16.gmra.mrb[16].mxu1 %v18099_v28 }
 0x568   : > { %13094 = vmatprep.mubr.bf16.mxu1 %v18102_v57 }
 0x56f   : > { %13095 = vmatmul.mubr.bf16.gmra.mrb[20].mxu1 %v18105_v20 }
 0x570   : > { %13098 = vmatprep.mubr.bf16.mxu1 %v18108_v61 }
 0x577   : > { %13099 = vmatmul.mubr.bf16.gmra.mrb[24].mxu1 %v18111_v50 }
 0x612   : > { %v13072_v38 = vpop.f32.mrb[28].mxu1 }
 0x613   : > { %v13151_v53 = vadd.f32 %v13072_v38, %v6259_v32  ;;  %v10659_v41 = vpop.f32.mrb[29].mxu1 }
 0x614   : > { %v13153_v23 = vadd.f32 %v10659_v41, %v6257_v9  ;;  %v13073_v34 = vpop.f32.mrb[30].mxu1 }
 0x615   : > { %v13155_v1 = vadd.f32 %v13073_v34, %v6260_v31  ;;  %v10662_v15 = vpop.f32.mrb[31].mxu1  ;;  %v10820_v6 = vmax.f32 %v13151_v53, 0.0 }
 0x616   : > { %v13157_v56 = vadd.f32 %v10662_v15, %v6258_v26  ;;  %v10818_v13 = vmax.f32 %v13153_v23, 0.0 }
 0x617   : > { %v10821_v21 = vmax.f32 %v13155_v1, 0.0 }
 0x618   : > { %v10819_v27 = vmax.f32 %v13157_v56, 0.0 }
 0x619   : > { %v11908_v44 = vpack.c.bf16 %v10821_v21, %v10820_v6 }
 0x61a   : > { %v11903_v60 = vpack.c.bf16 %v10819_v27, %v10818_v13  ;;  %v13076_v62 = vpop.f32.mrb[0].mxu1 }
 0x61b   : > { %11980 = vst [vmem:[%s17638_s23 + $0x8] sm:$0xff] %v11908_v44   ;;  %v13158_v46 = vadd.f32 %v13076_v62, %v17625_v10  ;;  %v10675_v47 = vpop.f32.mrb[1].mxu1 }
 0x61c   : > { %11904 = vst [vmem:[%s17638_s23] sm:$0xff] %v11903_v60   ;;  %v13159_v29 = vadd.f32 %v17625_v10, %v10675_v47  ;;  %v13077_v7 = vpop.f32.mrb[2].mxu1 }
 0x61d   : > { %v13160_v59 = vadd.f32 %v13077_v7, %v17625_v10  ;;  %v10678_v2 = vpop.f32.mrb[3].mxu1  ;;  %v10824_v8 = vmax.f32 %v13158_v46, 0.0 }
 0x61e   : > { %v13161_v5 = vadd.f32 %v17625_v10, %v10678_v2  ;;  %v10822_v49 = vmax.f32 %v13159_v29, 0.0 }
 0x61f   : > { %v10825_v3 = vmax.f32 %v13160_v59, 0.0 }
 0x620   : > { %v10823_v39 = vmax.f32 %v13161_v5, 0.0 }
 0x621   : > { %v11918_v35 = vpack.c.bf16 %v10825_v3, %v10824_v8 }
 0x622   : > { %v11913_v0 = vpack.c.bf16 %v10823_v39, %v10822_v49  ;;  %v13080_v51 = vpop.f32.mrb[4].mxu1 }
 0x623   : > { %11982 = vst [vmem:[%s17638_s23 + $0x18] sm:$0xff] %v11918_v35   ;;  %v13162_v19 = vadd.f32 %v13080_v51, %v17625_v10  ;;  %v10691_v42 = vpop.f32.mrb[5].mxu1 }
 0x624   : > { %11981 = vst [vmem:[%s17638_s23 + $0x10] sm:$0xff] %v11913_v0   ;;  %v13163_v4 = vadd.f32 %v17625_v10, %v10691_v42  ;;  %v13081_v37 = vpop.f32.mrb[6].mxu1 }
 0x625   : > { %v13164_v54 = vadd.f32 %v13081_v37, %v17625_v10  ;;  %v10694_v45 = vpop.f32.mrb[7].mxu1  ;;  %v10828_v30 = vmax.f32 %v13162_v19, 0.0 }
 0x626   : > { %v13165_v36 = vadd.f32 %v17625_v10, %v10694_v45  ;;  %v10826_v25 = vmax.f32 %v13163_v4, 0.0 }
 0x627   : > { %v10829_v43 = vmax.f32 %v13164_v54, 0.0 }
 0x628   : > { %v10827_v11 = vmax.f32 %v13165_v36, 0.0 }
 0x629   : > { %v11928_v18 = vpack.c.bf16 %v10829_v43, %v10828_v30 }
 0x62a   : > { %v11923_v55 = vpack.c.bf16 %v10827_v11, %v10826_v25  ;;  %v13084_v28 = vpop.f32.mrb[8].mxu1 }
 0x62b   : > { %11984 = vst [vmem:[%s17638_s23 + $0x28] sm:$0xff] %v11928_v18   ;;  %v13166_v17 = vadd.f32 %v13084_v28, %v17625_v10  ;;  %v10707_v52 = vpop.f32.mrb[9].mxu1 }
 0x62c   : > { %11983 = vst [vmem:[%s17638_s23 + $0x20] sm:$0xff] %v11923_v55   ;;  %v13167_v57 = vadd.f32 %v17625_v10, %v10707_v52  ;;  %v13085_v58 = vpop.f32.mrb[10].mxu1 }
 0x62d   : > { %v13168_v12 = vadd.f32 %v13085_v58, %v17625_v10  ;;  %v10710_v20 = vpop.f32.mrb[11].mxu1  ;;  %v10832_v63 = vmax.f32 %v13166_v17, 0.0 }
 0x62e   : > { %v13169_v16 = vadd.f32 %v17625_v10, %v10710_v20  ;;  %v10830_v24 = vmax.f32 %v13167_v57, 0.0 }
 0x62f   : > { %v10833_v61 = vmax.f32 %v13168_v12, 0.0 }
 0x630   : > { %v10831_v48 = vmax.f32 %v13169_v16, 0.0 }
 0x631   : > { %v11938_v50 = vpack.c.bf16 %v10833_v61, %v10832_v63 }
 0x632   : > { %v11933_v40 = vpack.c.bf16 %v10831_v48, %v10830_v24  ;;  %v13088_v32 = vpop.f32.mrb[12].mxu1 }
 0x633   : > { %11986 = vst [vmem:[%s17638_s23 + $0x38] sm:$0xff] %v11938_v50   ;;  %v13170_v22 = vadd.f32 %v13088_v32, %v17625_v10  ;;  %v10723_v9 = vpop.f32.mrb[13].mxu1 }
 0x634   : > { %11985 = vst [vmem:[%s17638_s23 + $0x30] sm:$0xff] %v11933_v40   ;;  %v13171_v38 = vadd.f32 %v17625_v10, %v10723_v9  ;;  %v13089_v33 = vpop.f32.mrb[14].mxu1 }
 0x635   : > { %v13172_v31 = vadd.f32 %v13089_v33, %v17625_v10  ;;  %v10726_v53 = vpop.f32.mrb[15].mxu1  ;;  %v10836_v14 = vmax.f32 %v13170_v22, 0.0 }
 0x636   : > { %v13173_v41 = vadd.f32 %v17625_v10, %v10726_v53  ;;  %v10834_v23 = vmax.f32 %v13171_v38, 0.0 }
 0x637   : > { %v10837_v26 = vmax.f32 %v13172_v31, 0.0 }
 0x638   : > { %v10835_v34 = vmax.f32 %v13173_v41, 0.0 }
 0x639   : > { %v11948_v1 = vpack.c.bf16 %v10837_v26, %v10836_v14 }
 0x63a   : > { %v11943_v15 = vpack.c.bf16 %v10835_v34, %v10834_v23  ;;  %v13092_v56 = vpop.f32.mrb[16].mxu1 }
 0x63b   : > { %11988 = vst [vmem:[%s17638_s23 + $0x48] sm:$0xff] %v11948_v1   ;;  %v13174_v6 = vadd.f32 %v13092_v56, %v17625_v10  ;;  %v10739_v21 = vpop.f32.mrb[17].mxu1 }
 0x63c   : > { %11987 = vst [vmem:[%s17638_s23 + $0x40] sm:$0xff] %v11943_v15   ;;  %v13175_v13 = vadd.f32 %v17625_v10, %v10739_v21  ;;  %v13093_v27 = vpop.f32.mrb[18].mxu1 }
 0x63d   : > { %v13176_v44 = vadd.f32 %v13093_v27, %v17625_v10  ;;  %v10742_v60 = vpop.f32.mrb[19].mxu1  ;;  %v10840_v46 = vmax.f32 %v13174_v6, 0.0 }
 0x63e   : > { %v13177_v62 = vadd.f32 %v17625_v10, %v10742_v60  ;;  %v10838_v29 = vmax.f32 %v13175_v13, 0.0 }
 0x63f   : > { %v10841_v47 = vmax.f32 %v13176_v44, 0.0 }
 0x640   : > { %v10839_v7 = vmax.f32 %v13177_v62, 0.0 }
 0x641   : > { %v11958_v59 = vpack.c.bf16 %v10841_v47, %v10840_v46 }
 0x642   : > { %v11953_v2 = vpack.c.bf16 %v10839_v7, %v10838_v29  ;;  %v13096_v5 = vpop.f32.mrb[20].mxu1 }
 0x643   : > { %11990 = vst [vmem:[%s17638_s23 + $0x58] sm:$0xff] %v11958_v59   ;;  %v13178_v8 = vadd.f32 %v13096_v5, %v17625_v10  ;;  %v10755_v3 = vpop.f32.mrb[21].mxu1 }
 0x644   : > { %11989 = vst [vmem:[%s17638_s23 + $0x50] sm:$0xff] %v11953_v2   ;;  %v13179_v49 = vadd.f32 %v17625_v10, %v10755_v3  ;;  %v13097_v39 = vpop.f32.mrb[22].mxu1 }
 0x645   : > { %v13180_v35 = vadd.f32 %v13097_v39, %v17625_v10  ;;  %v10758_v0 = vpop.f32.mrb[23].mxu1  ;;  %v10844_v19 = vmax.f32 %v13178_v8, 0.0 }
 0x646   : > { %v13181_v51 = vadd.f32 %v17625_v10, %v10758_v0  ;;  %v10842_v4 = vmax.f32 %v13179_v49, 0.0 }
 0x647   : > { %v10845_v42 = vmax.f32 %v13180_v35, 0.0 }
 0x648   : > { %v10843_v37 = vmax.f32 %v13181_v51, 0.0 }
 0x649   : > { %v11968_v54 = vpack.c.bf16 %v10845_v42, %v10844_v19 }
 0x64a   : > { %v11963_v45 = vpack.c.bf16 %v10843_v37, %v10842_v4  ;;  %v13100_v36 = vpop.f32.mrb[24].mxu1 }
 0x64b   : > { %11992 = vst [vmem:[%s17638_s23 + $0x68] sm:$0xff] %v11968_v54   ;;  %v13182_v30 = vadd.f32 %v13100_v36, %v17625_v10  ;;  %v10771_v43 = vpop.f32.mrb[25].mxu1 }
 0x64c   : > { %11991 = vst [vmem:[%s17638_s23 + $0x60] sm:$0xff] %v11963_v45   ;;  %v13183_v25 = vadd.f32 %v17625_v10, %v10771_v43  ;;  %v13101_v11 = vpop.f32.mrb[26].mxu1 }
 0x64d   : > { %v13184_v18 = vadd.f32 %v13101_v11, %v17625_v10  ;;  %v10774_v55 = vpop.f32.mrb[27].mxu1  ;;  %v10848_v17 = vmax.f32 %v13182_v30, 0.0 }
 0x64e   : > { %v13185_v28 = vadd.f32 %v17625_v10, %v10774_v55  ;;  %v10846_v57 = vmax.f32 %v13183_v25, 0.0 }
 0x64f   : > { %v10849_v52 = vmax.f32 %v13184_v18, 0.0 }
 0x650   : > { %v10847_v58 = vmax.f32 %v13185_v28, 0.0 }
 0x651   : > { %v11978_v12 = vpack.c.bf16 %v10849_v52, %v10848_v17 }
 0x652   : > { %v11973_v20 = vpack.c.bf16 %v10847_v58, %v10846_v57 }
 0x653   : > { %11994 = vst [vmem:[%s17638_s23 + $0x78] sm:$0xff] %v11978_v12  }
 0x654   : > { %11993 = vst [vmem:[%s17638_s23 + $0x70] sm:$0xff] %v11973_v20  }
 0x655   : > { %13993 = shalt.err (!%p13990_p7)
}
 0x656   : > { %s13994_s12 = scalar_lea.hbm %s17687_s7, 2048  ;;  %s13998_s15 = scalar_lea.hbm %s17741_s5, 4096 }
 0x657   : > { %p13995_p8 = scmp.ne.s32.totalorder %s17687_s7, %s13994_s12  ;;  %p13999_p1 = scmp.lt.u32.totalorder %s17687_s7, %s17741_s5 }
 0x658   : > { %p14000_p0 = scmp.lt.u32.totalorder %s13998_s15, %s13994_s12  ;;  %p14002_p6 = scmp.lt.u32.totalorder %s13994_s12, %s17687_s7 }
 0x659   : > { %p13996_p11 = pnand %p13995_p8, %p18116_p9 }
 0x65a   : > { %p14001_p5 = por %p14000_p0, %p13999_p1 }
 0x65b   : > { %p13997_p13 = pneg %p13996_p11 }
 0x65c   : > { %p14003_p10 = por %p14002_p6, %p14001_p5 }
 0x65e   : > { %p14004_p12 = pnand %p14003_p10, %p13997_p13 }
 0x660   : > { %14007 = shalt.err (!%p14004_p12)
}
 0x661   : > { %s14053_s23 = smov 64   ;;  %s14054_s25 = smov 4  }
 0x662   : > { %13707 = dma.vmem_to_hbm [thread:$0]  (%p18116_p9), %s17689_s26, 2048, %s17687_s7, %s17695_s22, %s14053_s23, %s14053_s23, %s14054_s25  }
 0x663 PF: > { %p13719_p2 = scmp.ge.s32.totalorder %s14046_s21, 2  ;;  %s11039_s30 = sand.u32 1, %s14034_s18  }
 0x664   : > { %p18117_p3 = scmp.ne.s32.totalorder %s17844_s29, 0  ;;  %s11040_s6 = scalar_lea.sflag [#allocation6], %s11039_s30 }
 0x666   : > { %p13714_p4 = pnand %p13719_p2, %p18117_p3 }
 0x668   : > { %14029 = dma.done.wait (!%p13714_p4), %s11040_s6, 2048  }
 0x669   : > { %14031 = vsyncadd (!%p13714_p4), %s11040_s6, 4294965248  ;;  %p16_p7 = scmp.ge.s32.totalorder %s14110_s24, 4   ;;  %s18118_s18 = smov %s14038_s19 }
 0x66a   : > { %s18119_s19 = smov %s14042_s20  ;;  %s18120_s20 = smov %s14121_s27 }
 0x66b   : > { %s18121_s21 = smov %s14110_s24  ;;  %18 = sbr.rel (!%p16_p7) target bundleno = 4 (0x4), region = 102 }
 0x672   :  { %11045 = vsyncpa [#allocation5], 1 }
 0x673   :  { %11047 = vsyncpa [#allocation5 + $0x1], 1 }
 0x674   :  { %11048 = vsyncpa [#allocation6], 1 }
 0x675   :  { %11050 = vsyncpa [#allocation6 + $0x1], 1 }

</bundles_post_ra>
